<compile_context>
chip_gen: v7x
topology: tpu7x:2x2x1
jax: 0.10.0
libtpu: 0.0.40
codegen_flags: <defaults>
</compile_context>

<pallas_src>
import jax
import jax.numpy as jnp
from jax.experimental import pallas as pl
from jax.experimental.pallas import tpu as pltpu


def _rn_kernel(chi_ref,
               gw1a, gw1b, gb1, gw2, gb2, gw3, gb3, gw4, gb4,
               pw1, pb1, pw2, pb2, pw3, pb3,
               out_ref):
    TB, nf, emb = chi_ref.shape
    n_pairs = nf * nf
    theta = gw1a.shape[1]
    cdt = gw2.dtype  # compute (matmul operand) dtype: f32 or bf16

    x = chi_ref[...]                          # (TB, nf, emb), compute dtype
    xf = x.reshape(TB * nf, emb)

    # ---- g_theta layer 1, split form:
    #      h1[b, i, j] = relu(chi[b,i] @ W1[:emb] + chi[b,j] @ W1[emb:] + b1)
    a = jnp.dot(xf, gw1a[...], preferred_element_type=jnp.float32)   # (TB*nf, theta) f32
    b = jnp.dot(xf, gw1b[...], preferred_element_type=jnp.float32)   # (TB*nf, theta) f32
    a4 = a.reshape(TB, nf, 1, theta)
    b4 = b.reshape(TB, 1, nf, theta)
    h = jnp.maximum(a4 + b4 + gb1[...], 0.0)                          # (TB, nf, nf, theta) f32
    h = h.reshape(TB * n_pairs, theta)

    # ---- g_theta layers 2..4: Linear(theta, theta) + ReLU on all pair rows ----
    h = jnp.maximum(
        jnp.dot(h.astype(cdt), gw2[...], preferred_element_type=jnp.float32) + gb2[...], 0.0)
    h = jnp.maximum(
        jnp.dot(h.astype(cdt), gw3[...], preferred_element_type=jnp.float32) + gb3[...], 0.0)
    h = jnp.maximum(
        jnp.dot(h.astype(cdt), gw4[...], preferred_element_type=jnp.float32) + gb4[...], 0.0)

    # ---- sum over the pair dimension -> (TB, theta) ----
    obj = jnp.sum(h.reshape(TB, n_pairs, theta), axis=1)

    # ---- f_phi: Linear(512,256)+ReLU, Dropout(eval=identity),
    #             Linear(256,256)+ReLU, Linear(256,n_labels) ----
    z = jnp.maximum(
        jnp.dot(obj.astype(cdt), pw1[...], preferred_element_type=jnp.float32) + pb1[...], 0.0)
    z = jnp.maximum(
        jnp.dot(z.astype(cdt), pw2[...], preferred_element_type=jnp.float32) + pb2[...], 0.0)
    logits = jnp.dot(z.astype(cdt), pw3[...], preferred_element_type=jnp.float32) + pb3[...]

    out_ref[...] = logits.astype(out_ref.dtype)


def relation_network_forward(chi, params, n_labels, *, block_batch=None,
                             compute_dtype=jnp.float32):
    """chi: (B, n_features, embedding_size) float32."""
    B, n_feat, emb = chi.shape
    n_pairs = n_feat * n_feat

    if block_batch is None:
        # Aim for >= 128 pair-rows per grid step to fill MXU rows.
        block_batch = max(1, min(B, pl.cdiv(128, n_pairs)))
    TB = block_batch

    B_pad = pl.cdiv(B, TB) * TB
    if B_pad != B:
        chi = jnp.pad(chi, ((0, B_pad - B), (0, 0), (0, 0)))

    (gw1, gb1, gw2, gb2, gw3, gb3, gw4, gb4,
     pw1, pb1, pw2, pb2, pw3, pb3) = params

    cdt = compute_dtype
    # Split the first g_theta Linear; cast matmul operands (weights + chi) to
    # compute dtype; keep biases in f32 (accumulation / ReLU stays f32).
    kparams = (gw1[:emb].astype(cdt), gw1[emb:].astype(cdt), gb1,
               gw2.astype(cdt), gb2,
               gw3.astype(cdt), gb3,
               gw4.astype(cdt), gb4,
               pw1.astype(cdt), pb1,
               pw2.astype(cdt), pb2,
               pw3.astype(cdt), pb3)
    chi_c = chi.astype(cdt)

    def _full_spec(a):
        n = a.ndim
        return pl.BlockSpec(a.shape, lambda gb: (0,) * n)

    weight_specs = [_full_spec(p) for p in kparams]

    out = pl.pallas_call(
        _rn_kernel,
        out_shape=jax.ShapeDtypeStruct((B_pad, n_labels), jnp.float32),
        grid_spec=pltpu.PrefetchScalarGridSpec(
            num_scalar_prefetch=0,
            grid=(B_pad // TB,),
            in_specs=[pl.BlockSpec((TB, n_feat, emb), lambda gb: (gb, 0, 0))]
                     + weight_specs,
            out_specs=pl.BlockSpec((TB, n_labels), lambda gb: (gb, 0)),
        ),
        compiler_params=pltpu.CompilerParams(
            dimension_semantics=("parallel",)),
    )(chi_c, *kparams)
    return out[:B]


def init_params(key, embedding_size, theta_dim, n_labels):
    """Deterministic synthetic parameters with the module's shapes."""
    keys = jax.random.split(key, 14)
    ki = iter(keys)

    def linear(kin, fan_in, fan_out):
        bound = 1.0 / jnp.sqrt(fan_in)
        w = jax.random.uniform(kin, (fan_in, fan_out), jnp.float32, -bound, bound)
        b = jax.random.uniform(next(ki), (1, fan_out), jnp.float32, -bound, bound)
        return w, b

    # g_theta: 4 x Linear(theta_dim, theta_dim)
    gw1, gb1 = linear(next(ki), theta_dim, theta_dim)
    gw2, gb2 = linear(next(ki), theta_dim, theta_dim)
    gw3, gb3 = linear(next(ki), theta_dim, theta_dim)
    gw4, gb4 = linear(next(ki), theta_dim, theta_dim)
    # f_phi: Linear(512,256), Linear(256,256), Linear(256, n_labels)
    pw1, pb1 = linear(next(ki), 512, 256)
    pw2, pb2 = linear(next(ki), 256, 256)
    pw3, pb3 = linear(next(ki), 256, n_labels)
    return (gw1, gb1, gw2, gb2, gw3, gb3, gw4, gb4,
            pw1, pb1, pw2, pb2, pw3, pb3)


def reference_forward(chi, params, compute_dtype=jnp.float32):
    """Pure-JAX reference of the same forward pass (pairs built explicitly)."""
    B, n_feat, emb = chi.shape
    chi_rep = jnp.repeat(chi, n_feat, axis=1)
    chi_tile = jnp.tile(chi, (1, n_feat, 1))
    pairs = jnp.concatenate([chi_rep, chi_tile], axis=2)

    (gw1, gb1, gw2, gb2, gw3, gb3, gw4, gb4,
     pw1, pb1, pw2, pb2, pw3, pb3) = params

    c = lambda t: t.astype(compute_dtype)

    def lin(x, w, b):
        return jnp.dot(c(x), c(w), preferred_element_type=jnp.float32) + b

    h = jax.nn.relu(lin(pairs, gw1, gb1))
    h = jax.nn.relu(lin(h, gw2, gb2))
    h = jax.nn.relu(lin(h, gw3, gb3))
    h = jax.nn.relu(lin(h, gw4, gb4))
    obj = jnp.sum(h, axis=1)                      # (B, theta_dim)
    z = jax.nn.relu(lin(obj, pw1, pb1))           # Dropout in eval mode = identity
    z = jax.nn.relu(lin(z, pw2, pb2))
    return lin(z, pw3, pb3)


if __name__ == "__main__":
    # theta_dim must be 512 (f_phi in=512) and theta_dim == 2*embedding_size.
    batch = 16
    n_features = 4          # -> 16 pairs per example
    embedding_size = 256
    theta_dim = 512
    n_labels = 8

    key = jax.random.PRNGKey(0)
    k_chi, k_param = jax.random.split(key)
    chi = jax.random.normal(k_chi, (batch, n_features, embedding_size), jnp.float32)
    params = init_params(k_param, embedding_size, theta_dim, n_labels)

    # f32 operand path (correctness baseline): TB=8 -> 128 pair-rows/step, 2 grid steps.
    logits = relation_network_forward(chi, params, n_labels, block_batch=8)
    logits = jax.block_until_ready(logits)
    ref = reference_forward(chi, params)
    assert logits.shape == (batch, n_labels)
    assert jnp.allclose(logits, ref, rtol=1e-3, atol=1e-3), "f32 mismatch vs reference"

    # bf16 operand / f32 accumulation path (MXU fast path on v6e/v7x).
    logits_bf16 = relation_network_forward(chi, params, n_labels, block_batch=8,
                                           compute_dtype=jnp.bfloat16)
    logits_bf16 = jax.block_until_ready(logits_bf16)
    ref_bf16 = reference_forward(chi, params, compute_dtype=jnp.bfloat16)
    assert jnp.allclose(logits_bf16, ref_bf16, rtol=2e-2, atol=2e-2), \
        "bf16 mismatch vs bf16 reference"

    print("KERNEL_OK")
</pallas_src>

<mosaic_0001>
module attributes {stable_mosaic.version = 11 : i64} {
  func.func @_rn_kernel(%arg0: i32, %arg1: memref<8x4x256xf32, #tpu.memory_space<vmem>>, %arg2: memref<256x512xf32, #tpu.memory_space<vmem>>, %arg3: memref<256x512xf32, #tpu.memory_space<vmem>>, %arg4: memref<1x512xf32, #tpu.memory_space<vmem>>, %arg5: memref<512x512xf32, #tpu.memory_space<vmem>>, %arg6: memref<1x512xf32, #tpu.memory_space<vmem>>, %arg7: memref<512x512xf32, #tpu.memory_space<vmem>>, %arg8: memref<1x512xf32, #tpu.memory_space<vmem>>, %arg9: memref<512x512xf32, #tpu.memory_space<vmem>>, %arg10: memref<1x512xf32, #tpu.memory_space<vmem>>, %arg11: memref<512x256xf32, #tpu.memory_space<vmem>>, %arg12: memref<1x256xf32, #tpu.memory_space<vmem>>, %arg13: memref<256x256xf32, #tpu.memory_space<vmem>>, %arg14: memref<1x256xf32, #tpu.memory_space<vmem>>, %arg15: memref<256x8xf32, #tpu.memory_space<vmem>>, %arg16: memref<1x8xf32, #tpu.memory_space<vmem>>, %arg17: memref<8x8xf32, #tpu.memory_space<vmem>>) attributes {dimension_semantics = [#tpu.dimension_semantics<parallel>], iteration_bounds = array<i64: 2>, scalar_prefetch = 0 : i64, scratch_operands = 0 : i64, tpu.core_type = #tpu.core_type<tc>, window_params = [{transform_indices = @transform_0, window_bounds = array<i64: 8, 4, 256>}, {pipeline_mode = #tpu.pipeline_mode<synchronous>, transform_indices = @transform_1, window_bounds = array<i64: 256, 512>}, {pipeline_mode = #tpu.pipeline_mode<synchronous>, transform_indices = @transform_2, window_bounds = array<i64: 256, 512>}, {pipeline_mode = #tpu.pipeline_mode<synchronous>, transform_indices = @transform_3, window_bounds = array<i64: 1, 512>}, {pipeline_mode = #tpu.pipeline_mode<synchronous>, transform_indices = @transform_4, window_bounds = array<i64: 512, 512>}, {pipeline_mode = #tpu.pipeline_mode<synchronous>, transform_indices = @transform_5, window_bounds = array<i64: 1, 512>}, {pipeline_mode = #tpu.pipeline_mode<synchronous>, transform_indices = @transform_6, window_bounds = array<i64: 512, 512>}, {pipeline_mode = #tpu.pipeline_mode<synchronous>, transform_indices = @transform_7, window_bounds = array<i64: 1, 512>}, {pipeline_mode = #tpu.pipeline_mode<synchronous>, transform_indices = @transform_8, window_bounds = array<i64: 512, 512>}, {pipeline_mode = #tpu.pipeline_mode<synchronous>, transform_indices = @transform_9, window_bounds = array<i64: 1, 512>}, {pipeline_mode = #tpu.pipeline_mode<synchronous>, transform_indices = @transform_10, window_bounds = array<i64: 512, 256>}, {pipeline_mode = #tpu.pipeline_mode<synchronous>, transform_indices = @transform_11, window_bounds = array<i64: 1, 256>}, {pipeline_mode = #tpu.pipeline_mode<synchronous>, transform_indices = @transform_12, window_bounds = array<i64: 256, 256>}, {pipeline_mode = #tpu.pipeline_mode<synchronous>, transform_indices = @transform_13, window_bounds = array<i64: 1, 256>}, {pipeline_mode = #tpu.pipeline_mode<synchronous>, transform_indices = @transform_14, window_bounds = array<i64: 256, 8>}, {pipeline_mode = #tpu.pipeline_mode<synchronous>, transform_indices = @transform_15, window_bounds = array<i64: 1, 8>}, {transform_indices = @transform_16, window_bounds = array<i64: 8, 8>}]} {
    %c0 = arith.constant 0 : index
    %c0_0 = arith.constant 0 : index
    %c0_1 = arith.constant 0 : index
    %0 = vector.load %arg1[%c0, %c0_0, %c0_1] : memref<8x4x256xf32, #tpu.memory_space<vmem>>, vector<8x4x256xf32>
    %1 = vector.shape_cast %0 : vector<8x4x256xf32> to vector<32x256xf32>
    %c0_2 = arith.constant 0 : index
    %c0_3 = arith.constant 0 : index
    %2 = vector.load %arg2[%c0_2, %c0_3] : memref<256x512xf32, #tpu.memory_space<vmem>>, vector<256x512xf32>
    %cst = arith.constant dense<0.000000e+00> : vector<32x512xf32>
    %3 = tpu.matmul %1, %2, %cst {dimension_numbers = #tpu.dot_dimension_numbers<[1], [0], [0], [1], [0, 0, 1, 1], [], []>} : vector<32x256xf32>, vector<256x512xf32>, vector<32x512xf32> -> vector<32x512xf32>
    %c0_4 = arith.constant 0 : index
    %c0_5 = arith.constant 0 : index
    %4 = vector.load %arg3[%c0_4, %c0_5] : memref<256x512xf32, #tpu.memory_space<vmem>>, vector<256x512xf32>
    %cst_6 = arith.constant dense<0.000000e+00> : vector<32x512xf32>
    %5 = tpu.matmul %1, %4, %cst_6 {dimension_numbers = #tpu.dot_dimension_numbers<[1], [0], [0], [1], [0, 0, 1, 1], [], []>} : vector<32x256xf32>, vector<256x512xf32>, vector<32x512xf32> -> vector<32x512xf32>
    %6 = vector.shape_cast %3 : vector<32x512xf32> to vector<8x4x1x512xf32>
    %7 = vector.shape_cast %5 : vector<32x512xf32> to vector<8x1x4x512xf32>
    %8 = vector.broadcast %6 : vector<8x4x1x512xf32> to vector<8x4x4x512xf32>
    %9 = vector.broadcast %7 : vector<8x1x4x512xf32> to vector<8x4x4x512xf32>
    %10 = arith.addf %8, %9 : vector<8x4x4x512xf32>
    %c0_7 = arith.constant 0 : index
    %c0_8 = arith.constant 0 : index
    %11 = vector.load %arg4[%c0_7, %c0_8] : memref<1x512xf32, #tpu.memory_space<vmem>>, vector<1x512xf32>
    %12 = vector.shape_cast %11 : vector<1x512xf32> to vector<1x1x1x512xf32>
    %13 = vector.broadcast %12 : vector<1x1x1x512xf32> to vector<8x4x4x512xf32>
    %14 = arith.addf %10, %13 : vector<8x4x4x512xf32>
    %cst_9 = arith.constant 0.000000e+00 : f32
    %15 = vector.broadcast %cst_9 : f32 to vector<8x4x4x512xf32>
    %16 = arith.maximumf %14, %15 : vector<8x4x4x512xf32>
    %17 = vector.shape_cast %16 : vector<8x4x4x512xf32> to vector<128x512xf32>
    %c0_10 = arith.constant 0 : index
    %c0_11 = arith.constant 0 : index
    %18 = vector.load %arg5[%c0_10, %c0_11] : memref<512x512xf32, #tpu.memory_space<vmem>>, vector<512x512xf32>
    %cst_12 = arith.constant dense<0.000000e+00> : vector<128x512xf32>
    %19 = tpu.matmul %17, %18, %cst_12 {dimension_numbers = #tpu.dot_dimension_numbers<[1], [0], [0], [1], [0, 0, 1, 1], [], []>} : vector<128x512xf32>, vector<512x512xf32>, vector<128x512xf32> -> vector<128x512xf32>
    %c0_13 = arith.constant 0 : index
    %c0_14 = arith.constant 0 : index
    %20 = vector.load %arg6[%c0_13, %c0_14] : memref<1x512xf32, #tpu.memory_space<vmem>>, vector<1x512xf32>
    %21 = vector.broadcast %20 : vector<1x512xf32> to vector<128x512xf32>
    %22 = arith.addf %19, %21 : vector<128x512xf32>
    %cst_15 = arith.constant 0.000000e+00 : f32
    %23 = vector.broadcast %cst_15 : f32 to vector<128x512xf32>
    %24 = arith.maximumf %22, %23 : vector<128x512xf32>
    %c0_16 = arith.constant 0 : index
    %c0_17 = arith.constant 0 : index
    %25 = vector.load %arg7[%c0_16, %c0_17] : memref<512x512xf32, #tpu.memory_space<vmem>>, vector<512x512xf32>
    %cst_18 = arith.constant dense<0.000000e+00> : vector<128x512xf32>
    %26 = tpu.matmul %24, %25, %cst_18 {dimension_numbers = #tpu.dot_dimension_numbers<[1], [0], [0], [1], [0, 0, 1, 1], [], []>} : vector<128x512xf32>, vector<512x512xf32>, vector<128x512xf32> -> vector<128x512xf32>
    %c0_19 = arith.constant 0 : index
    %c0_20 = arith.constant 0 : index
    %27 = vector.load %arg8[%c0_19, %c0_20] : memref<1x512xf32, #tpu.memory_space<vmem>>, vector<1x512xf32>
    %28 = vector.broadcast %27 : vector<1x512xf32> to vector<128x512xf32>
    %29 = arith.addf %26, %28 : vector<128x512xf32>
    %cst_21 = arith.constant 0.000000e+00 : f32
    %30 = vector.broadcast %cst_21 : f32 to vector<128x512xf32>
    %31 = arith.maximumf %29, %30 : vector<128x512xf32>
    %c0_22 = arith.constant 0 : index
    %c0_23 = arith.constant 0 : index
    %32 = vector.load %arg9[%c0_22, %c0_23] : memref<512x512xf32, #tpu.memory_space<vmem>>, vector<512x512xf32>
    %cst_24 = arith.constant dense<0.000000e+00> : vector<128x512xf32>
    %33 = tpu.matmul %31, %32, %cst_24 {dimension_numbers = #tpu.dot_dimension_numbers<[1], [0], [0], [1], [0, 0, 1, 1], [], []>} : vector<128x512xf32>, vector<512x512xf32>, vector<128x512xf32> -> vector<128x512xf32>
    %c0_25 = arith.constant 0 : index
    %c0_26 = arith.constant 0 : index
    %34 = vector.load %arg10[%c0_25, %c0_26] : memref<1x512xf32, #tpu.memory_space<vmem>>, vector<1x512xf32>
    %35 = vector.broadcast %34 : vector<1x512xf32> to vector<128x512xf32>
    %36 = arith.addf %33, %35 : vector<128x512xf32>
    %cst_27 = arith.constant 0.000000e+00 : f32
    %37 = vector.broadcast %cst_27 : f32 to vector<128x512xf32>
    %38 = arith.maximumf %36, %37 : vector<128x512xf32>
    %39 = vector.shape_cast %38 : vector<128x512xf32> to vector<8x16x512xf32>
    %cst_28 = arith.constant dense<0.000000e+00> : vector<8x512xf32>
    %40 = vector.multi_reduction <add>, %39, %cst_28 [1] : vector<8x16x512xf32> to vector<8x512xf32>
    %c0_29 = arith.constant 0 : index
    %c0_30 = arith.constant 0 : index
    %41 = vector.load %arg11[%c0_29, %c0_30] : memref<512x256xf32, #tpu.memory_space<vmem>>, vector<512x256xf32>
    %cst_31 = arith.constant dense<0.000000e+00> : vector<8x256xf32>
    %42 = tpu.matmul %40, %41, %cst_31 {dimension_numbers = #tpu.dot_dimension_numbers<[1], [0], [0], [1], [0, 0, 1, 1], [], []>} : vector<8x512xf32>, vector<512x256xf32>, vector<8x256xf32> -> vector<8x256xf32>
    %c0_32 = arith.constant 0 : index
    %c0_33 = arith.constant 0 : index
    %43 = vector.load %arg12[%c0_32, %c0_33] : memref<1x256xf32, #tpu.memory_space<vmem>>, vector<1x256xf32>
    %44 = vector.broadcast %43 : vector<1x256xf32> to vector<8x256xf32>
    %45 = arith.addf %42, %44 : vector<8x256xf32>
    %cst_34 = arith.constant 0.000000e+00 : f32
    %46 = vector.broadcast %cst_34 : f32 to vector<8x256xf32>
    %47 = arith.maximumf %45, %46 : vector<8x256xf32>
    %c0_35 = arith.constant 0 : index
    %c0_36 = arith.constant 0 : index
    %48 = vector.load %arg13[%c0_35, %c0_36] : memref<256x256xf32, #tpu.memory_space<vmem>>, vector<256x256xf32>
    %cst_37 = arith.constant dense<0.000000e+00> : vector<8x256xf32>
    %49 = tpu.matmul %47, %48, %cst_37 {dimension_numbers = #tpu.dot_dimension_numbers<[1], [0], [0], [1], [0, 0, 1, 1], [], []>} : vector<8x256xf32>, vector<256x256xf32>, vector<8x256xf32> -> vector<8x256xf32>
    %c0_38 = arith.constant 0 : index
    %c0_39 = arith.constant 0 : index
    %50 = vector.load %arg14[%c0_38, %c0_39] : memref<1x256xf32, #tpu.memory_space<vmem>>, vector<1x256xf32>
    %51 = vector.broadcast %50 : vector<1x256xf32> to vector<8x256xf32>
    %52 = arith.addf %49, %51 : vector<8x256xf32>
    %cst_40 = arith.constant 0.000000e+00 : f32
    %53 = vector.broadcast %cst_40 : f32 to vector<8x256xf32>
    %54 = arith.maximumf %52, %53 : vector<8x256xf32>
    %c0_41 = arith.constant 0 : index
    %c0_42 = arith.constant 0 : index
    %55 = vector.load %arg15[%c0_41, %c0_42] : memref<256x8xf32, #tpu.memory_space<vmem>>, vector<256x8xf32>
    %cst_43 = arith.constant dense<0.000000e+00> : vector<8x8xf32>
    %56 = tpu.matmul %54, %55, %cst_43 {dimension_numbers = #tpu.dot_dimension_numbers<[1], [0], [0], [1], [0, 0, 1, 1], [], []>} : vector<8x256xf32>, vector<256x8xf32>, vector<8x8xf32> -> vector<8x8xf32>
    %c0_44 = arith.constant 0 : index
    %c0_45 = arith.constant 0 : index
    %57 = vector.load %arg16[%c0_44, %c0_45] : memref<1x8xf32, #tpu.memory_space<vmem>>, vector<1x8xf32>
    %58 = vector.broadcast %57 : vector<1x8xf32> to vector<8x8xf32>
    %59 = arith.addf %56, %58 : vector<8x8xf32>
    %c0_46 = arith.constant 0 : index
    %c0_47 = arith.constant 0 : index
    %60 = vector.load %arg17[%c0_46, %c0_47] : memref<8x8xf32, #tpu.memory_space<vmem>>, vector<8x8xf32>
    tpu.vector_store %arg17[%c0_46, %c0_47], %59 {strides = array<i32>} : memref<8x8xf32, #tpu.memory_space<vmem>>, vector<8x8xf32>,
    return
  }
  func.func @transform_0(%arg0: i32) -> (i32, i32, i32) {
    %c0_i32 = arith.constant 0 : i32
    %c0_i32_0 = arith.constant 0 : i32
    %c0_i32_1 = arith.constant 0 : i32
    return %arg0, %c0_i32, %c0_i32_0 : i32, i32, i32
  }
  func.func @transform_1(%arg0: i32) -> (i32, i32) {
    %c0_i32 = arith.constant 0 : i32
    %c0_i32_0 = arith.constant 0 : i32
    %c0_i32_1 = arith.constant 0 : i32
    return %c0_i32, %c0_i32_0 : i32, i32
  }
  func.func @transform_2(%arg0: i32) -> (i32, i32) {
    %c0_i32 = arith.constant 0 : i32
    %c0_i32_0 = arith.constant 0 : i32
    %c0_i32_1 = arith.constant 0 : i32
    return %c0_i32, %c0_i32_0 : i32, i32
  }
  func.func @transform_3(%arg0: i32) -> (i32, i32) {
    %c0_i32 = arith.constant 0 : i32
    %c0_i32_0 = arith.constant 0 : i32
    %c0_i32_1 = arith.constant 0 : i32
    return %c0_i32, %c0_i32_0 : i32, i32
  }
  func.func @transform_4(%arg0: i32) -> (i32, i32) {
    %c0_i32 = arith.constant 0 : i32
    %c0_i32_0 = arith.constant 0 : i32
    %c0_i32_1 = arith.constant 0 : i32
    return %c0_i32, %c0_i32_0 : i32, i32
  }
  func.func @transform_5(%arg0: i32) -> (i32, i32) {
    %c0_i32 = arith.constant 0 : i32
    %c0_i32_0 = arith.constant 0 : i32
    %c0_i32_1 = arith.constant 0 : i32
    return %c0_i32, %c0_i32_0 : i32, i32
  }
  func.func @transform_6(%arg0: i32) -> (i32, i32) {
    %c0_i32 = arith.constant 0 : i32
    %c0_i32_0 = arith.constant 0 : i32
    %c0_i32_1 = arith.constant 0 : i32
    return %c0_i32, %c0_i32_0 : i32, i32
  }
  func.func @transform_7(%arg0: i32) -> (i32, i32) {
    %c0_i32 = arith.constant 0 : i32
    %c0_i32_0 = arith.constant 0 : i32
    %c0_i32_1 = arith.constant 0 : i32
    return %c0_i32, %c0_i32_0 : i32, i32
  }
  func.func @transform_8(%arg0: i32) -> (i32, i32) {
    %c0_i32 = arith.constant 0 : i32
    %c0_i32_0 = arith.constant 0 : i32
    %c0_i32_1 = arith.constant 0 : i32
    return %c0_i32, %c0_i32_0 : i32, i32
  }
  func.func @transform_9(%arg0: i32) -> (i32, i32) {
    %c0_i32 = arith.constant 0 : i32
    %c0_i32_0 = arith.constant 0 : i32
    %c0_i32_1 = arith.constant 0 : i32
    return %c0_i32, %c0_i32_0 : i32, i32
  }
  func.func @transform_10(%arg0: i32) -> (i32, i32) {
    %c0_i32 = arith.constant 0 : i32
    %c0_i32_0 = arith.constant 0 : i32
    %c0_i32_1 = arith.constant 0 : i32
    return %c0_i32, %c0_i32_0 : i32, i32
  }
  func.func @transform_11(%arg0: i32) -> (i32, i32) {
    %c0_i32 = arith.constant 0 : i32
    %c0_i32_0 = arith.constant 0 : i32
    %c0_i32_1 = arith.constant 0 : i32
    return %c0_i32, %c0_i32_0 : i32, i32
  }
  func.func @transform_12(%arg0: i32) -> (i32, i32) {
    %c0_i32 = arith.constant 0 : i32
    %c0_i32_0 = arith.constant 0 : i32
    %c0_i32_1 = arith.constant 0 : i32
    return %c0_i32, %c0_i32_0 : i32, i32
  }
  func.func @transform_13(%arg0: i32) -> (i32, i32) {
    %c0_i32 = arith.constant 0 : i32
    %c0_i32_0 = arith.constant 0 : i32
    %c0_i32_1 = arith.constant 0 : i32
    return %c0_i32, %c0_i32_0 : i32, i32
  }
  func.func @transform_14(%arg0: i32) -> (i32, i32) {
    %c0_i32 = arith.constant 0 : i32
    %c0_i32_0 = arith.constant 0 : i32
    %c0_i32_1 = arith.constant 0 : i32
    return %c0_i32, %c0_i32_0 : i32, i32
  }
  func.func @transform_15(%arg0: i32) -> (i32, i32) {
    %c0_i32 = arith.constant 0 : i32
    %c0_i32_0 = arith.constant 0 : i32
    %c0_i32_1 = arith.constant 0 : i32
    return %c0_i32, %c0_i32_0 : i32, i32
  }
  func.func @transform_16(%arg0: i32) -> (i32, i32) {
    %c0_i32 = arith.constant 0 : i32
    %c0_i32_0 = arith.constant 0 : i32
    return %arg0, %c0_i32 : i32, i32
  }
}

</mosaic_0001>

<bundles_post_ra>
// kernel: tpu_custom_call.1
= control target key start
LH: loop header
LB: loop body
LE: loop exit
PB: predicated region body
PF: predicated region fallthrough
CT: control target
= control target key end

     0   :  { %s11943_s0 = inlined_call_operand.vmem [shape: f32[16,4,256], index: 0, kind: input, shape index: {}]   ;;  %s11944_s1 = inlined_call_operand.hbm [shape: f32[256,512], index: 1, kind: input, shape index: {}]   ;;  %s11945_s2 = inlined_call_operand.hbm [shape: f32[256,512], index: 2, kind: input, shape index: {}]   ;;  %s11946_s3 = inlined_call_operand.vmem [shape: f32[1,512], index: 3, kind: input, shape index: {}]   ;;  %s11947_s4 = inlined_call_operand.hbm [shape: f32[512,512], index: 4, kind: input, shape index: {}]   ;;  %s11948_s5 = inlined_call_operand.vmem [shape: f32[1,512], index: 5, kind: input, shape index: {}]   ;;  %s11949_s6 = inlined_call_operand.hbm [shape: f32[512,512], index: 6, kind: input, shape index: {}]   ;;  %s11950_s7 = inlined_call_operand.vmem [shape: f32[1,512], index: 7, kind: input, shape index: {}]   ;;  %s11951_s8 = inlined_call_operand.hbm [shape: f32[512,512], index: 8, kind: input, shape index: {}]   ;;  %s11952_s9 = inlined_call_operand.vmem [shape: f32[1,512], index: 9, kind: input, shape index: {}]   ;;  %s11953_s10 = inlined_call_operand.hbm [shape: f32[512,256], index: 10, kind: input, shape index: {}]   ;;  %s11954_s11 = inlined_call_operand.vmem [shape: f32[1,256], index: 11, kind: input, shape index: {}]   ;;  %s11955_s12 = inlined_call_operand.hbm [shape: f32[256,256], index: 12, kind: input, shape index: {}]   ;;  %s11956_s13 = inlined_call_operand.vmem [shape: f32[1,256], index: 13, kind: input, shape index: {}]   ;;  %s11957_s14 = inlined_call_operand.vmem [shape: f32[256,8], index: 14, kind: input, shape index: {}]   ;;  %s11958_s15 = inlined_call_operand.vmem [shape: f32[1,8], index: 15, kind: input, shape index: {}]   ;;  %s11959_s16 = inlined_call_operand.vmem [shape: f32[16,8], index: 16, kind: output, shape index: {}]  }
   0x1   :  { %12137 = sst [smem:[#allocation169_spill]] %s11943_s0 }
   0x2   :  { %12138 = sst [smem:[#allocation170_spill]] %s11956_s13 }
   0x3   :  { %12139 = sst [smem:[#allocation171_spill]] %s11958_s15 }
   0x4   :  { %12140 = sst [smem:[#allocation172_spill]] %s11959_s16 }
   0x5   :  { %21 = vsyncpa [#allocation3], 0 }
   0x6   :  { %22 = vsyncpa [#allocation5], 0 }
   0x7   :  { %23 = vsyncpa [#allocation8], 0 }
   0x8   :  { %24 = vsyncpa [#allocation11], 0  ;;  %s9115_s21 = smov 0  }
   0x9 LB: > { %12141 = sst [smem:[#allocation17_spill]] %s9016_s21  ;;  %s9121_s22 = sadd.s32 4294967295, %s9016_s21   ;;  %s9016_s21 = sphi %s9115_s21, %s30_s21  }
   0xa   : > { %p6926_p0 = scmp.ge.s32.totalorder %s9016_s21, 1  ;;  %p402_p1 = scmp.lt.s32.totalorder %s9016_s21, 3 }
   0xb   : > { %p11965_p2 = scmp.eq.s32.totalorder %s9121_s22, 0  ;;  %s9018_s24 = smov [#allocation4]  }
   0xc   : > { %p9126_p3 = pnand %p6926_p0, %p402_p1  ;;  %s427_s25 = sshll.u32 %s9018_s24, 4  ;;  %s9130_s25 = int_to_ptr.vmem [resolvable:$true] %s427_s25 }
   0xd   : > { %s9019_s26 = smov [#allocation7]   ;;  %s9020_s29 = smov [#allocation10]  }
   0xe   : > { %s12142_s23 = scalar_select %p9126_p3, 1, 0 }
   0xf   : > { %p8730_p4 = pneg %p9126_p3  ;;  %s459_s27 = sshll.u32 %s9019_s26, 4  ;;  %s9134_s27 = int_to_ptr.vmem [resolvable:$true] %s459_s27 }
  0x10   : > { %s491_s30 = sshll.u32 %s9020_s29, 4  ;;  %s8798_s18 = scalar_lea.hbm %s11945_s2, 16384  ;;  %s9142_s30 = int_to_ptr.vmem [resolvable:$true] %s491_s30 }
  0x11   : > { %p9138_p5 = pnand %p11965_p2, %p8730_p4  ;;  %p8799_p6 = scmp.ne.s32.totalorder %s11945_s2, %s8798_s18 }
  0x12   : > { %p8805_p10 = scmp.lt.u32.totalorder %s8798_s18, %s11945_s2 }
  0x13   : > { %p9152_p7 = pneg %p9138_p5 }
  0x15   : > { %p8801_p8 = pnand %p9152_p7, %p8799_p6 }
  0x17   : > { %p8802_p9 = pneg %p8801_p8 }
  0x19   : > { %p8807_p11 = pnand %p8805_p10, %p8802_p9 }
  0x1b   : > { %8810 = shalt.err (!%p8807_p11)
}
  0x1c   : > { %s8811_s0 = scalar_lea.vmem %s9130_s25, 16384  ;;  %p8819_p1 = scmp.lt.s32.totalorder %s9130_s25, %s9130_s25 }
  0x1d   : > { %p8812_p12 = scmp.ne.s32.totalorder %s9130_s25, %s8811_s0  ;;  %p8820_p4 = scmp.lt.s32.totalorder %s8811_s0, %s8811_s0 }
  0x1f   : > { %p8814_p13 = pnand %p8812_p12, %p9152_p7  ;;  %p8821_p6 = por %p8820_p4, %p8819_p1 }
  0x21   : > { %p8815_p0 = pneg %p8814_p13 }
  0x23   : > { %p8822_p8 = pnand %p8821_p6, %p8815_p0 }
  0x25   : > { %8825 = shalt.err (!%p8822_p8)
}
  0x26   : > { %s11961_s17 = smov 512   ;;  %s11963_s18 = smov 32  }
  0x27   : > { %8736 = dma.hbm_to_vmem [thread:$0]  (!%p9138_p5), %s11945_s2, 16384, %s9130_s25, [#allocation5], %s11961_s17, %s11961_s17, %s11963_s18  }
  0x28   : > { %s8826_s0 = scalar_lea.hbm %s11949_s6, 32768 }
  0x29   : > { %p8827_p9 = scmp.ne.s32.totalorder %s11949_s6, %s8826_s0  ;;  %p8833_p12 = scmp.lt.u32.totalorder %s8826_s0, %s11949_s6 }
  0x2b   : > { %p8829_p10 = pnand %p8827_p9, %p9152_p7 }
  0x2d   : > { %p8830_p11 = pneg %p8829_p10 }
  0x2f   : > { %p8835_p13 = pnand %p8833_p12, %p8830_p11 }
  0x31   : > { %8838 = shalt.err (!%p8835_p13)
}
  0x32   : > { %s8839_s25 = scalar_lea.vmem %s9134_s27, 32768  ;;  %p8847_p6 = scmp.lt.s32.totalorder %s9134_s27, %s9134_s27 }
  0x33   : > { %p8840_p0 = scmp.ne.s32.totalorder %s9134_s27, %s8839_s25  ;;  %p8848_p8 = scmp.lt.s32.totalorder %s8839_s25, %s8839_s25 }
  0x35   : > { %p8842_p1 = pnand %p8840_p0, %p9152_p7  ;;  %p8849_p9 = por %p8848_p8, %p8847_p6 }
  0x37   : > { %p8843_p4 = pneg %p8842_p1 }
  0x39   : > { %p8850_p10 = pnand %p8849_p9, %p8843_p4 }
  0x3b   : > { %8853 = shalt.err (!%p8850_p10)
}
  0x3c   : > { %8742 = dma.hbm_to_vmem [thread:$0]  (!%p9138_p5), %s11949_s6, 32768, %s9134_s27, [#allocation8], %s11961_s17, %s11961_s17, %s11963_s18  }
  0x3d   : > { %s8854_s19 = scalar_lea.hbm %s11953_s10, 16384 }
  0x3e   : > { %p8855_p11 = scmp.ne.s32.totalorder %s11953_s10, %s8854_s19  ;;  %p8861_p0 = scmp.lt.u32.totalorder %s8854_s19, %s11953_s10 }
  0x40   : > { %p8857_p12 = pnand %p8855_p11, %p9152_p7 }
  0x42   : > { %p8858_p13 = pneg %p8857_p12 }
  0x44   : > { %p8863_p1 = pnand %p8861_p0, %p8858_p13 }
  0x46   : > { %8866 = shalt.err (!%p8863_p1)
}
  0x47   : > { %s8867_s27 = scalar_lea.vmem %s9142_s30, 16384  ;;  %p8875_p9 = scmp.lt.s32.totalorder %s9142_s30, %s9142_s30 }
  0x48   : > { %p8868_p4 = scmp.ne.s32.totalorder %s9142_s30, %s8867_s27  ;;  %p8876_p10 = scmp.lt.s32.totalorder %s8867_s27, %s8867_s27 }
  0x4a   : > { %p8870_p6 = pnand %p8868_p4, %p9152_p7  ;;  %p8877_p11 = por %p8876_p10, %p8875_p9 }
  0x4c   : > { %p8871_p8 = pneg %p8870_p6 }
  0x4e   : > { %p8878_p12 = pnand %p8877_p11, %p8871_p8 }
  0x50   : > { %8881 = shalt.err (!%p8878_p12)
}
  0x51   : > { %s11967_s25 = smov 256   ;;  %s11968_s13 = smov 16  }
  0x52   : > { %8748 = dma.hbm_to_vmem [thread:$0]  (!%p9138_p5), %s11953_s10, 16384, %s9142_s30, [#allocation11], %s11967_s25, %s11967_s25, %s11968_s13  }
  0x53   : > { %s9025_s21 = smov [#allocation2]   ;;  %s9026_s20 = smov [#allocation6]  }
  0x54   : > { %s414_s19 = sshll.u32 %s9025_s21, 4  ;;  %s443_s26 = sshll.u32 %s9026_s20, 4  ;;  %s415_s19 = int_to_ptr.vmem [resolvable:$true] %s414_s19  ;;  %s9228_s26 = int_to_ptr.vmem [resolvable:$true] %s443_s26 }
  0x55   : > { %s8882_s27 = scalar_lea.hbm %s11944_s1, 16384 }
  0x56   : > { %p8883_p13 = scmp.ne.s32.totalorder %s11944_s1, %s8882_s27  ;;  %p8889_p4 = scmp.lt.u32.totalorder %s8882_s27, %s11944_s1 }
  0x58   : > { %p8885_p0 = pnand %p8883_p13, %p9152_p7 }
  0x5a   : > { %p8886_p1 = pneg %p8885_p0 }
  0x5c   : > { %p8891_p6 = pnand %p8889_p4, %p8886_p1 }
  0x5e   : > { %8894 = shalt.err (!%p8891_p6)
}
  0x5f   : > { %s8895_s16 = scalar_lea.vmem %s415_s19, 16384  ;;  %p8903_p11 = scmp.lt.s32.totalorder %s415_s19, %s415_s19 }
  0x60   : > { %p8896_p8 = scmp.ne.s32.totalorder %s415_s19, %s8895_s16  ;;  %p8904_p12 = scmp.lt.s32.totalorder %s8895_s16, %s8895_s16 }
  0x62   : > { %p8898_p9 = pnand %p8896_p8, %p9152_p7  ;;  %p8905_p2 = por %p8904_p12, %p8903_p11 }
  0x64   : > { %p8899_p10 = pneg %p8898_p9 }
  0x66   : > { %p8906_p3 = pnand %p8905_p2, %p8899_p10 }
  0x68   : > { %8909 = shalt.err (!%p8906_p3)
}
  0x69   : > { %s12145_s17 = smov 32   ;;  %s12146_s18 = smov 512  }
  0x6a   : > { %8733 = dma.hbm_to_vmem [thread:$0]  (!%p9138_p5), %s11944_s1, 16384, %s415_s19, [#allocation3], %s12146_s18, %s12146_s18, %s12145_s17  }
  0x6b   : > { %s8910_s27 = scalar_lea.hbm %s11947_s4, 32768 }
  0x6c   : > { %p8911_p13 = scmp.ne.s32.totalorder %s11947_s4, %s8910_s27  ;;  %p8917_p0 = scmp.lt.u32.totalorder %s8910_s27, %s11947_s4 }
  0x6e   : > { %p8913_p2 = pnand %p8911_p13, %p9152_p7 }
  0x70   : > { %p8914_p3 = pneg %p8913_p2 }
  0x72   : > { %p8919_p1 = pnand %p8917_p0, %p8914_p3 }
  0x74   : > { %8922 = shalt.err (!%p8919_p1)
}
  0x75   : > { %s8923_s19 = scalar_lea.vmem %s9228_s26, 32768  ;;  %p8931_p9 = scmp.lt.s32.totalorder %s9228_s26, %s9228_s26 }
  0x76   : > { %p8924_p4 = scmp.ne.s32.totalorder %s9228_s26, %s8923_s19  ;;  %p8932_p10 = scmp.lt.s32.totalorder %s8923_s19, %s8923_s19 }
  0x78   : > { %p8926_p6 = pnand %p8924_p4, %p9152_p7  ;;  %p8933_p11 = por %p8932_p10, %p8931_p9 }
  0x7a   : > { %p8927_p8 = pneg %p8926_p6 }
  0x7c   : > { %p8934_p12 = pnand %p8933_p11, %p8927_p8 }
  0x7e   : > { %8937 = shalt.err (!%p8934_p12)
}
  0x7f   : > { %8739 = dma.hbm_to_vmem [thread:$0]  (!%p9138_p5), %s11947_s4, 32768, %s9228_s26, [#allocation5], %s12146_s18, %s12146_s18, %s12145_s17  }
  0x80   : > { %s9027_s20 = smov [#allocation9]   ;;  %s9028_s0 = smov [#allocation12]  }
  0x81   : > { %s475_s29 = sshll.u32 %s9027_s20, 4  ;;  %s507_s27 = sshll.u32 %s9028_s0, 4  ;;  %s476_s29 = int_to_ptr.vmem [resolvable:$true] %s475_s29  ;;  %s9277_s27 = int_to_ptr.vmem [resolvable:$true] %s507_s27 }
  0x82   : > { %s8938_s16 = scalar_lea.hbm %s11951_s8, 32768 }
  0x83   : > { %p8939_p13 = scmp.ne.s32.totalorder %s11951_s8, %s8938_s16  ;;  %p8945_p0 = scmp.lt.u32.totalorder %s8938_s16, %s11951_s8 }
  0x85   : > { %p8941_p2 = pnand %p8939_p13, %p9152_p7 }
  0x87   : > { %p8942_p3 = pneg %p8941_p2 }
  0x89   : > { %p8947_p1 = pnand %p8945_p0, %p8942_p3 }
  0x8b   : > { %8950 = shalt.err (!%p8947_p1)
}
  0x8c   : > { %s8951_s21 = scalar_lea.vmem %s476_s29, 32768  ;;  %p8959_p9 = scmp.lt.s32.totalorder %s476_s29, %s476_s29 }
  0x8d   : > { %p8952_p4 = scmp.ne.s32.totalorder %s476_s29, %s8951_s21  ;;  %p8960_p10 = scmp.lt.s32.totalorder %s8951_s21, %s8951_s21 }
  0x8f   : > { %p8954_p6 = pnand %p8952_p4, %p9152_p7  ;;  %p8961_p11 = por %p8960_p10, %p8959_p9 }
  0x91   : > { %p8955_p8 = pneg %p8954_p6 }
  0x93   : > { %p8962_p12 = pnand %p8961_p11, %p8955_p8 }
  0x95   : > { %8965 = shalt.err (!%p8962_p12)
}
  0x96   : > { %8745 = dma.hbm_to_vmem [thread:$0]  (!%p9138_p5), %s11951_s8, 32768, %s476_s29, [#allocation8], %s12146_s18, %s12146_s18, %s12145_s17  }
  0x97   : > { %s8966_s30 = scalar_lea.hbm %s11955_s12, 8192 }
  0x98   : > { %p8967_p13 = scmp.ne.s32.totalorder %s11955_s12, %s8966_s30  ;;  %p8973_p0 = scmp.lt.u32.totalorder %s8966_s30, %s11955_s12 }
  0x9a   : > { %p8969_p2 = pnand %p8967_p13, %p9152_p7 }
  0x9c   : > { %p8970_p3 = pneg %p8969_p2 }
  0x9e   : > { %p8975_p1 = pnand %p8973_p0, %p8970_p3 }
  0xa0   : > { %8978 = shalt.err (!%p8975_p1)
}
  0xa1   : > { %s8979_s17 = scalar_lea.vmem %s9277_s27, 8192  ;;  %p8987_p9 = scmp.lt.s32.totalorder %s9277_s27, %s9277_s27 }
  0xa2   : > { %p8980_p4 = scmp.ne.s32.totalorder %s9277_s27, %s8979_s17  ;;  %p8988_p10 = scmp.lt.s32.totalorder %s8979_s17, %s8979_s17 }
  0xa4   : > { %p8982_p6 = pnand %p8980_p4, %p9152_p7  ;;  %p8989_p11 = por %p8988_p10, %p8987_p9 }
  0xa6   : > { %p8983_p8 = pneg %p8982_p6 }
  0xa8   : > { %p8990_p12 = pnand %p8989_p11, %p8983_p8 }
  0xaa   : > { %8993 = shalt.err (!%p8990_p12)
}
  0xab   : > { %s12147_s18 = smov 16   ;;  %s12148_s29 = smov 256  }
  0xac   : > { %8751 = dma.hbm_to_vmem [thread:$0]  (!%p9138_p5), %s11955_s12, 8192, %s9277_s27, [#allocation11], %s12148_s29, %s12148_s29, %s12147_s18  }
  0xad   : > { %p12149_p13 = scmp.ne.s32.totalorder %s12142_s23, 0 }
  0xaf   : > { %542 = sbr.rel (%p12149_p13) target bundleno = 2256 (0x8d0), region = 84 }
  0xb6   : > { %p12150_p7 = scmp.eq.s32.totalorder %s9121_s22, 0 }
  0xb8   : > { %8999 = dma.done.wait (%p12150_p7), [#allocation3], 16384   ;;  %p12151_p2 = pmov %p12150_p7 }
  0xba   : > { %9001 = vsyncadd (%p12151_p2), [#allocation3], 4294950912  ;;  %p12152_p3 = pmov %p12151_p2 }
  0xbb   : > { %p12153_p0 = pmov %p12151_p2 }
  0xbc   : > { %9003 = dma.done.wait (%p12152_p3), [#allocation5], 49152  }
  0xbd   : > { %9005 = vsyncadd (%p12153_p0), [#allocation5], 4294918144  ;;  %p12154_p1 = pmov %p12153_p0 }
  0xbe   : > { %p12155_p5 = pmov %p12153_p0 }
  0xbf   : > { %9007 = dma.done.wait (%p12154_p1), [#allocation8], 65536  }
  0xc0   : > { %9009 = vsyncadd (%p12155_p5), [#allocation8], 4294901760  ;;  %p12156_p4 = pmov %p12153_p0 }
  0xc1   : > { %p12157_p6 = pmov %p12153_p0 }
  0xc2   : > { %9011 = dma.done.wait (%p12156_p4), [#allocation11], 24576  }
  0xc3   : > { %9013 = vsyncadd (%p12157_p6), [#allocation11], 4294942720  ;;  %v636_v0 = vld [vmem:[#allocation2 + $0x8] sm:$0xff]  ;;  %v638_v2 = vld [vmem:[#allocation2 + $0x18] sm:$0xff]  ;;  %s6943_s23 = sshll.u32 %s9121_s22, 3  ;;  %s12159_s0 = sld [smem:[#allocation169_spill]] }
  0xc4   : > { %v640_v1 = vld [vmem:[#allocation2 + $0x28] sm:$0xff]  ;;  %v642_v4 = vld [vmem:[#allocation2 + $0x38] sm:$0xff]  ;;  %v635_v5 = vld [vmem:[#allocation2] sm:$0xff]  ;;  %p9345_p8 = scmp.lt.s32.totalorder %s6943_s23, 15  ;;  %vm6359_vm0 = vcmask 1041409   ;;  %vm6361_vm1 = vcmask 1042434  }
  0xc5   : > { %v7066_v3 = vpack.c.bf16 %v640_v1, %v636_v0  ;;  %v639_v6 = vld [vmem:[#allocation2 + $0x20] sm:$0xff]  ;;  %v7130_v7 = vpack.c.bf16 %v642_v4, %v638_v2  ;;  %v637_v9 = vld [vmem:[#allocation2 + $0x10] sm:$0xff]  ;;  %v644_v11 = vld [vmem:[#allocation2 + $0x48] sm:$0xff]  ;;  %vm6363_vm2 = vcmask 1043459   ;;  %vm6365_vm3 = vcmask 1044484   ;;  %s12654_s21 = sld [smem:[#allocation170_spill]] }
  0xc6   : > { %v7068_v8 = vpack.c.bf16 %v639_v6, %v635_v5  ;;  %v641_v10 = vld [vmem:[#allocation2 + $0x30] sm:$0xff]  ;;  %v648_v13 = vld [vmem:[#allocation2 + $0x68] sm:$0xff]  ;;  %v646_v14 = vld [vmem:[#allocation2 + $0x58] sm:$0xff]  ;;  %s12659_s23 = smov (!%p9345_p8, %s6943_s23), 15  ;;  %vm6367_vm4 = vcmask 1045509   ;;  %vm6369_vm5 = vcmask 1046534  }
  0xc7   : > { %7067 = vmatprep.subr.bf16.mxu0 %v7066_v3  ;;  %v7132_v12 = vpack.c.bf16 %v641_v10, %v637_v9  ;;  %v650_v15 = vld [vmem:[#allocation2 + $0x78] sm:$0xff]  ;;  %7131 = vmatprep.subr.bf16.mxu1 %v7130_v7  ;;  %v7070_v16 = vpack.c.bf16 %v648_v13, %v644_v11  ;;  %v643_v18 = vld [vmem:[#allocation2 + $0x40] sm:$0xff]  ;;  %v645_v20 = vld [vmem:[#allocation2 + $0x50] sm:$0xff]  ;;  %s7030_s24 = sshll.u32 %s12659_s23, 3  ;;  %vm6371_vm6 = vcmask 1047559   ;;  %p623_p9 = scmp.lt.s32.totalorder %s9121_s22, 1 }
  0xc8   : > { %7069 = vmatpush1.bf16.msra.mxu0 %v7068_v8  ;;  %v7134_v17 = vpack.c.bf16 %v650_v15, %v646_v14  ;;  %v647_v19 = vld [vmem:[#allocation2 + $0x60] sm:$0xff]  ;;  %v649_v22 = vld [vmem:[#allocation2 + $0x70] sm:$0xff]  ;;  %v652_v23 = vld [vmem:[#allocation2 + $0x88] sm:$0xff]  ;;  %vm6800_vm7 = vcmask 64512  }
  0xc9   : > { %7133 = vmatpush1.bf16.msra.mxu1 %v7132_v12  ;;  %v7072_v21 = vpack.c.bf16 %v647_v19, %v643_v18  ;;  %v656_v24 = vld [vmem:[#allocation2 + $0xa8] sm:$0xff]  ;;  %7071 = vmatprep.subr.bf16.mxu0 %v7070_v16  ;;  %v7136_v25 = vpack.c.bf16 %v649_v22, %v645_v20  ;;  %v654_v27 = vld [vmem:[#allocation2 + $0x98] sm:$0xff]  ;;  %v651_v29 = vld [vmem:[#allocation2 + $0x80] sm:$0xff]  ;;  %s9357_s15 = scalar_lea.vmem %s12159_s0, %s7030_s24  ;;  %s12661_s22 = smov (!%p623_p9, %s9121_s22), 1 }
  0xca   : > { %7135 = vmatprep.subr.bf16.mxu1 %v7134_v17  ;;  %v7074_v26 = vpack.c.bf16 %v656_v24, %v652_v23  ;;  %v658_v28 = vld [vmem:[#allocation2 + $0xb8] sm:$0xff]  ;;  %v655_v31 = vld [vmem:[#allocation2 + $0xa0] sm:$0xff]  ;;  %v653_v32 = vld [vmem:[#allocation2 + $0x90] sm:$0xff]  ;;  %s6946_s13 = sshll.u32 %s12661_s22, 3  ;;  %s12655_s24 = sld [smem:[#allocation171_spill]] }
  0xcb   : > { %v7138_v30 = vpack.c.bf16 %v658_v28, %v654_v27  ;;  %v657_v33 = vld [vmem:[#allocation2 + $0xb0] sm:$0xff]  ;;  %v7076_v34 = vpack.c.bf16 %v655_v31, %v651_v29  ;;  %v660_v35 = vld [vmem:[#allocation2 + $0xc8] sm:$0xff]  ;;  %v662_v37 = vld [vmem:[#allocation2 + $0xd8] sm:$0xff]  ;;  %s12656_s0 = sld [smem:[#allocation172_spill]] }
  0xcc   : > { %7073 = vmatpush1.bf16.msra.mxu0 %v7072_v21  ;;  %v664_v36 = vld [vmem:[#allocation2 + $0xe8] sm:$0xff]  ;;  %v7140_v38 = vpack.c.bf16 %v657_v33, %v653_v32  ;;  %v666_v40 = vld [vmem:[#allocation2 + $0xf8] sm:$0xff]  ;;  %v659_v41 = vld [vmem:[#allocation2 + $0xc0] sm:$0xff] }
  0xcd   : > { %7137 = vmatpush1.bf16.msra.mxu1 %v7136_v25  ;;  %7075 = vmatprep.subr.bf16.mxu0 %v7074_v26  ;;  %v7078_v39 = vpack.c.bf16 %v664_v36, %v660_v35  ;;  %v663_v42 = vld [vmem:[#allocation2 + $0xe0] sm:$0xff]  ;;  %v7142_v43 = vpack.c.bf16 %v666_v40, %v662_v37  ;;  %v661_v44 = vld [vmem:[#allocation2 + $0xd0] sm:$0xff]  ;;  %v668_v46 = vld [vmem:[#allocation2 + $0x108] sm:$0xff] }
  0xce   : > { %7139 = vmatprep.subr.bf16.mxu1 %v7138_v30  ;;  %v665_v45 = vld [vmem:[#allocation2 + $0xf0] sm:$0xff]  ;;  %v672_v47 = vld [vmem:[#allocation2 + $0x128] sm:$0xff]  ;;  %v670_v48 = vld [vmem:[#allocation2 + $0x118] sm:$0xff]  ;;  %v7080_v50 = vpack.c.bf16 %v663_v42, %v659_v41 }
  0xcf   : > { %v674_v49 = vld [vmem:[#allocation2 + $0x138] sm:$0xff]  ;;  %v7144_v51 = vpack.c.bf16 %v665_v45, %v661_v44  ;;  %v7082_v52 = vpack.c.bf16 %v672_v47, %v668_v46  ;;  %v667_v53 = vld [vmem:[#allocation2 + $0x100] sm:$0xff]  ;;  %v669_v55 = vld [vmem:[#allocation2 + $0x110] sm:$0xff] }
  0xd0   : > { %7077 = vmatpush1.bf16.msra.mxu0 %v7076_v34  ;;  %v671_v54 = vld [vmem:[#allocation2 + $0x120] sm:$0xff]  ;;  %v7146_v56 = vpack.c.bf16 %v674_v49, %v670_v48  ;;  %v673_v57 = vld [vmem:[#allocation2 + $0x130] sm:$0xff]  ;;  %v676_v58 = vld [vmem:[#allocation2 + $0x148] sm:$0xff] }
  0xd1   : > { %7141 = vmatpush1.bf16.msra.mxu1 %v7140_v38  ;;  %7079 = vmatprep.subr.bf16.mxu0 %v7078_v39  ;;  %v680_v59 = vld [vmem:[#allocation2 + $0x168] sm:$0xff]  ;;  %v678_v60 = vld [vmem:[#allocation2 + $0x158] sm:$0xff]  ;;  %v7084_v62 = vpack.c.bf16 %v671_v54, %v667_v53  ;;  %v7148_v63 = vpack.c.bf16 %v673_v57, %v669_v55  ;;  %v675_v1 = vld [vmem:[#allocation2 + $0x140] sm:$0xff] }
  0xd2   : > { %7143 = vmatprep.subr.bf16.mxu1 %v7142_v43  ;;  %v682_v61 = vld [vmem:[#allocation2 + $0x178] sm:$0xff]  ;;  %v7086_v0 = vpack.c.bf16 %v680_v59, %v676_v58  ;;  %v679_v2 = vld [vmem:[#allocation2 + $0x160] sm:$0xff]  ;;  %v677_v3 = vld [vmem:[#allocation2 + $0x150] sm:$0xff] }
  0xd3   : > { %v7150_v4 = vpack.c.bf16 %v682_v61, %v678_v60  ;;  %v681_v5 = vld [vmem:[#allocation2 + $0x170] sm:$0xff]  ;;  %v684_v6 = vld [vmem:[#allocation2 + $0x188] sm:$0xff]  ;;  %v686_v8 = vld [vmem:[#allocation2 + $0x198] sm:$0xff]  ;;  %v7088_v10 = vpack.c.bf16 %v679_v2, %v675_v1 }
  0xd4   : > { %7081 = vmatpush1.bf16.msra.mxu0 %v7080_v50  ;;  %v688_v7 = vld [vmem:[#allocation2 + $0x1a8] sm:$0xff]  ;;  %v690_v9 = vld [vmem:[#allocation2 + $0x1b8] sm:$0xff]  ;;  %v7152_v11 = vpack.c.bf16 %v681_v5, %v677_v3  ;;  %v683_v13 = vld [vmem:[#allocation2 + $0x180] sm:$0xff] }
  0xd5   : > { %7145 = vmatpush1.bf16.msra.mxu1 %v7144_v51  ;;  %7083 = vmatprep.subr.bf16.mxu0 %v7082_v52  ;;  %v7090_v12 = vpack.c.bf16 %v688_v7, %v684_v6  ;;  %v687_v14 = vld [vmem:[#allocation2 + $0x1a0] sm:$0xff]  ;;  %v685_v15 = vld [vmem:[#allocation2 + $0x190] sm:$0xff]  ;;  %v7154_v16 = vpack.c.bf16 %v690_v9, %v686_v8  ;;  %v692_v18 = vld [vmem:[#allocation2 + $0x1c8] sm:$0xff] }
  0xd6   : > { %7147 = vmatprep.subr.bf16.mxu1 %v7146_v56  ;;  %v689_v17 = vld [vmem:[#allocation2 + $0x1b0] sm:$0xff]  ;;  %v696_v19 = vld [vmem:[#allocation2 + $0x1e8] sm:$0xff]  ;;  %v694_v20 = vld [vmem:[#allocation2 + $0x1d8] sm:$0xff]  ;;  %v7092_v22 = vpack.c.bf16 %v687_v14, %v683_v13 }
  0xd7   : > { %v698_v21 = vld [vmem:[#allocation2 + $0x1f8] sm:$0xff]  ;;  %v7156_v23 = vpack.c.bf16 %v689_v17, %v685_v15  ;;  %v7094_v24 = vpack.c.bf16 %v696_v19, %v692_v18  ;;  %v691_v25 = vld [vmem:[#allocation2 + $0x1c0] sm:$0xff]  ;;  %v693_v27 = vld [vmem:[#allocation2 + $0x1d0] sm:$0xff] }
  0xd8   : > { %7085 = vmatpush1.bf16.msra.mxu0 %v7084_v62  ;;  %v695_v26 = vld [vmem:[#allocation2 + $0x1e0] sm:$0xff]  ;;  %v7158_v28 = vpack.c.bf16 %v698_v21, %v694_v20  ;;  %v697_v29 = vld [vmem:[#allocation2 + $0x1f0] sm:$0xff]  ;;  %v700_v30 = vld [vmem:[#allocation2 + $0x208] sm:$0xff] }
  0xd9   : > { %7149 = vmatpush1.bf16.msra.mxu1 %v7148_v63  ;;  %7087 = vmatprep.subr.bf16.mxu0 %v7086_v0  ;;  %v704_v31 = vld [vmem:[#allocation2 + $0x228] sm:$0xff]  ;;  %v702_v32 = vld [vmem:[#allocation2 + $0x218] sm:$0xff]  ;;  %v7096_v34 = vpack.c.bf16 %v695_v26, %v691_v25  ;;  %v7160_v35 = vpack.c.bf16 %v697_v29, %v693_v27  ;;  %v699_v37 = vld [vmem:[#allocation2 + $0x200] sm:$0xff] }
  0xda   : > { %7151 = vmatprep.subr.bf16.mxu1 %v7150_v4  ;;  %v706_v33 = vld [vmem:[#allocation2 + $0x238] sm:$0xff]  ;;  %v7098_v36 = vpack.c.bf16 %v704_v31, %v700_v30  ;;  %v703_v38 = vld [vmem:[#allocation2 + $0x220] sm:$0xff]  ;;  %v701_v39 = vld [vmem:[#allocation2 + $0x210] sm:$0xff] }
  0xdb   : > { %v7162_v40 = vpack.c.bf16 %v706_v33, %v702_v32  ;;  %v705_v41 = vld [vmem:[#allocation2 + $0x230] sm:$0xff]  ;;  %v708_v42 = vld [vmem:[#allocation2 + $0x248] sm:$0xff]  ;;  %v710_v44 = vld [vmem:[#allocation2 + $0x258] sm:$0xff]  ;;  %v7100_v46 = vpack.c.bf16 %v703_v38, %v699_v37 }
  0xdc   : > { %7089 = vmatpush1.bf16.msra.mxu0 %v7088_v10  ;;  %v712_v43 = vld [vmem:[#allocation2 + $0x268] sm:$0xff]  ;;  %v714_v45 = vld [vmem:[#allocation2 + $0x278] sm:$0xff]  ;;  %v7164_v47 = vpack.c.bf16 %v705_v41, %v701_v39  ;;  %v707_v49 = vld [vmem:[#allocation2 + $0x240] sm:$0xff] }
  0xdd   : > { %7153 = vmatpush1.bf16.msra.mxu1 %v7152_v11  ;;  %7091 = vmatprep.subr.bf16.mxu0 %v7090_v12  ;;  %v7102_v48 = vpack.c.bf16 %v712_v43, %v708_v42  ;;  %v711_v50 = vld [vmem:[#allocation2 + $0x260] sm:$0xff]  ;;  %v709_v51 = vld [vmem:[#allocation2 + $0x250] sm:$0xff]  ;;  %v7166_v52 = vpack.c.bf16 %v714_v45, %v710_v44  ;;  %v716_v54 = vld [vmem:[#allocation2 + $0x288] sm:$0xff] }
  0xde   : > { %7155 = vmatprep.subr.bf16.mxu1 %v7154_v16  ;;  %v713_v53 = vld [vmem:[#allocation2 + $0x270] sm:$0xff]  ;;  %v720_v55 = vld [vmem:[#allocation2 + $0x2a8] sm:$0xff]  ;;  %v718_v56 = vld [vmem:[#allocation2 + $0x298] sm:$0xff]  ;;  %v7104_v58 = vpack.c.bf16 %v711_v50, %v707_v49 }
  0xdf   : > { %v722_v57 = vld [vmem:[#allocation2 + $0x2b8] sm:$0xff]  ;;  %v7168_v59 = vpack.c.bf16 %v713_v53, %v709_v51  ;;  %v7106_v60 = vpack.c.bf16 %v720_v55, %v716_v54  ;;  %v715_v61 = vld [vmem:[#allocation2 + $0x280] sm:$0xff]  ;;  %v717_v63 = vld [vmem:[#allocation2 + $0x290] sm:$0xff] }
  0xe0   : > { %7093 = vmatpush1.bf16.msra.mxu0 %v7092_v22  ;;  %v719_v62 = vld [vmem:[#allocation2 + $0x2a0] sm:$0xff]  ;;  %v7170_v0 = vpack.c.bf16 %v722_v57, %v718_v56  ;;  %v721_v1 = vld [vmem:[#allocation2 + $0x2b0] sm:$0xff]  ;;  %v724_v2 = vld [vmem:[#allocation2 + $0x2c8] sm:$0xff] }
  0xe1   : > { %7157 = vmatpush1.bf16.msra.mxu1 %v7156_v23  ;;  %7095 = vmatprep.subr.bf16.mxu0 %v7094_v24  ;;  %v728_v3 = vld [vmem:[#allocation2 + $0x2e8] sm:$0xff]  ;;  %v726_v4 = vld [vmem:[#allocation2 + $0x2d8] sm:$0xff]  ;;  %v7108_v6 = vpack.c.bf16 %v719_v62, %v715_v61  ;;  %v723_v7 = vld [vmem:[#allocation2 + $0x2c0] sm:$0xff]  ;;  %v7172_v9 = vpack.c.bf16 %v721_v1, %v717_v63 }
  0xe2   : > { %7159 = vmatprep.subr.bf16.mxu1 %v7158_v28  ;;  %v730_v5 = vld [vmem:[#allocation2 + $0x2f8] sm:$0xff]  ;;  %v727_v8 = vld [vmem:[#allocation2 + $0x2e0] sm:$0xff]  ;;  %v7110_v10 = vpack.c.bf16 %v728_v3, %v724_v2  ;;  %v725_v11 = vld [vmem:[#allocation2 + $0x2d0] sm:$0xff] }
  0xe3   : > { %v729_v12 = vld [vmem:[#allocation2 + $0x2f0] sm:$0xff]  ;;  %v732_v13 = vld [vmem:[#allocation2 + $0x308] sm:$0xff]  ;;  %v7174_v14 = vpack.c.bf16 %v730_v5, %v726_v4  ;;  %v734_v16 = vld [vmem:[#allocation2 + $0x318] sm:$0xff]  ;;  %v7112_v19 = vpack.c.bf16 %v727_v8, %v723_v7 }
  0xe4   : > { %7097 = vmatpush1.bf16.msra.mxu0 %v7096_v34  ;;  %v736_v15 = vld [vmem:[#allocation2 + $0x328] sm:$0xff]  ;;  %v738_v17 = vld [vmem:[#allocation2 + $0x338] sm:$0xff]  ;;  %v7176_v20 = vpack.c.bf16 %v729_v12, %v725_v11  ;;  %v731_v22 = vld [vmem:[#allocation2 + $0x300] sm:$0xff] }
  0xe5   : > { %7161 = vmatpush1.bf16.msra.mxu1 %v7160_v35  ;;  %7099 = vmatprep.subr.bf16.mxu0 %v7098_v36  ;;  %v9360_v18 = vld [vmem:[%s9357_s15 + $0x4] ss:$8 sps:$4 sm:$0xff]   ;;  %v7114_v21 = vpack.c.bf16 %v736_v15, %v732_v13  ;;  %v733_v24 = vld [vmem:[#allocation2 + $0x310] sm:$0xff]  ;;  %v7178_v25 = vpack.c.bf16 %v738_v17, %v734_v16  ;;  %v742_v29 = vld [vmem:[#allocation2 + $0x358] sm:$0xff] }
  0xe6   : > { %7163 = vmatprep.subr.bf16.mxu1 %v7162_v40  ;;  %v735_v23 = vld [vmem:[#allocation2 + $0x320] sm:$0xff]  ;;  %v737_v26 = vld [vmem:[#allocation2 + $0x330] sm:$0xff]  ;;  %v740_v27 = vld [vmem:[#allocation2 + $0x348] sm:$0xff]  ;;  %851 = vmatprep.mubr.f32.mxu0 %v9360_v18 }
  0xe7   : > { %v744_v28 = vld [vmem:[#allocation2 + $0x368] sm:$0xff]  ;;  %v746_v30 = vld [vmem:[#allocation2 + $0x378] sm:$0xff]  ;;  %940 = vmatprep.mubr.f32.mxu1 %v9360_v18  ;;  %v7116_v31 = vpack.c.bf16 %v735_v23, %v731_v22  ;;  %v7180_v32 = vpack.c.bf16 %v737_v26, %v733_v24  ;;  %v739_v34 = vld [vmem:[#allocation2 + $0x340] sm:$0xff] }
  0xe8   : > { %7101 = vmatpush1.bf16.msra.mxu0 %v7100_v46  ;;  %v7118_v33 = vpack.c.bf16 %v744_v28, %v740_v27  ;;  %v743_v35 = vld [vmem:[#allocation2 + $0x360] sm:$0xff]  ;;  %v741_v36 = vld [vmem:[#allocation2 + $0x350] sm:$0xff]  ;;  %v7182_v37 = vpack.c.bf16 %v746_v30, %v742_v29  ;;  %v748_v39 = vld [vmem:[#allocation2 + $0x388] sm:$0xff] }
  0xe9   : > { %7165 = vmatpush1.bf16.msra.mxu1 %v7164_v47  ;;  %7103 = vmatprep.subr.bf16.mxu0 %v7102_v48  ;;  %v745_v38 = vld [vmem:[#allocation2 + $0x370] sm:$0xff]  ;;  %v752_v40 = vld [vmem:[#allocation2 + $0x3a8] sm:$0xff]  ;;  %v750_v41 = vld [vmem:[#allocation2 + $0x398] sm:$0xff]  ;;  %v7120_v43 = vpack.c.bf16 %v743_v35, %v739_v34 }
  0xea   : > { %7167 = vmatprep.subr.bf16.mxu1 %v7166_v52  ;;  %v754_v42 = vld [vmem:[#allocation2 + $0x3b8] sm:$0xff]  ;;  %v7184_v44 = vpack.c.bf16 %v745_v38, %v741_v36  ;;  %v7122_v45 = vpack.c.bf16 %v752_v40, %v748_v39  ;;  %v747_v46 = vld [vmem:[#allocation2 + $0x380] sm:$0xff]  ;;  %v749_v48 = vld [vmem:[#allocation2 + $0x390] sm:$0xff] }
  0xeb   : > { %v751_v47 = vld [vmem:[#allocation2 + $0x3a0] sm:$0xff]  ;;  %v7186_v49 = vpack.c.bf16 %v754_v42, %v750_v41  ;;  %v753_v50 = vld [vmem:[#allocation2 + $0x3b0] sm:$0xff]  ;;  %v756_v51 = vld [vmem:[#allocation2 + $0x3c8] sm:$0xff] }
  0xec   : > { %7105 = vmatpush1.bf16.msra.mxu0 %v7104_v58  ;;  %v760_v52 = vld [vmem:[#allocation2 + $0x3e8] sm:$0xff]  ;;  %v758_v53 = vld [vmem:[#allocation2 + $0x3d8] sm:$0xff]  ;;  %v7124_v55 = vpack.c.bf16 %v751_v47, %v747_v46  ;;  %v7188_v56 = vpack.c.bf16 %v753_v50, %v749_v48  ;;  %v755_v58 = vld [vmem:[#allocation2 + $0x3c0] sm:$0xff] }
  0xed   : > { %7169 = vmatpush1.bf16.msra.mxu1 %v7168_v59  ;;  %7107 = vmatprep.subr.bf16.mxu0 %v7106_v60  ;;  %v762_v54 = vld [vmem:[#allocation2 + $0x3f8] sm:$0xff]  ;;  %v7126_v57 = vpack.c.bf16 %v760_v52, %v756_v51  ;;  %v759_v59 = vld [vmem:[#allocation2 + $0x3e0] sm:$0xff]  ;;  %v757_v60 = vld [vmem:[#allocation2 + $0x3d0] sm:$0xff] }
  0xee   : > { %7171 = vmatprep.subr.bf16.mxu1 %v7170_v0  ;;  %v7190_v61 = vpack.c.bf16 %v762_v54, %v758_v53  ;;  %v761_v62 = vld [vmem:[#allocation2 + $0x3f0] sm:$0xff]  ;;  %v966_v63 = vld [vmem:[#allocation4 + $0x8] sm:$0xff]  ;;  %v968_v1 = vld [vmem:[#allocation4 + $0x18] sm:$0xff]  ;;  %v7128_v3 = vpack.c.bf16 %v759_v59, %v755_v58 }
  0xef   : > { %v970_v0 = vld [vmem:[#allocation4 + $0x28] sm:$0xff]  ;;  %v972_v2 = vld [vmem:[#allocation4 + $0x38] sm:$0xff]  ;;  %v7192_v4 = vpack.c.bf16 %v761_v62, %v757_v60  ;;  %v969_v7 = vld [vmem:[#allocation4 + $0x20] sm:$0xff] }
  0xf0   : > { %7109 = vmatpush1.bf16.msra.mxu0 %v7108_v6  ;;  %v7194_v5 = vpack.c.bf16 %v970_v0, %v966_v63  ;;  %v965_v6 = vld [vmem:[#allocation4] sm:$0xff]  ;;  %v967_v8 = vld [vmem:[#allocation4 + $0x10] sm:$0xff]  ;;  %v974_v11 = vld [vmem:[#allocation4 + $0x48] sm:$0xff] }
  0xf1   : > { %7173 = vmatpush1.bf16.msra.mxu1 %v7172_v9  ;;  %7111 = vmatprep.subr.bf16.mxu0 %v7110_v10  ;;  %v7258_v9 = vpack.c.bf16 %v972_v2, %v968_v1  ;;  %v971_v10 = vld [vmem:[#allocation4 + $0x30] sm:$0xff]  ;;  %v978_v12 = vld [vmem:[#allocation4 + $0x68] sm:$0xff]  ;;  %v980_v15 = vld [vmem:[#allocation4 + $0x78] sm:$0xff]  ;;  %v7196_v16 = vpack.c.bf16 %v969_v7, %v965_v6 }
  0xf2   : > { %7175 = vmatprep.subr.bf16.mxu1 %v7174_v14  ;;  %v9365_v13 = vld [vmem:[%s9357_s15] ss:$8 sps:$4 sm:$0xff]   ;;  %v976_v14 = vld [vmem:[#allocation4 + $0x58] sm:$0xff]  ;;  %v7260_v17 = vpack.c.bf16 %v971_v10, %v967_v8  ;;  %v975_v22 = vld [vmem:[#allocation4 + $0x50] sm:$0xff] }
  0xf3   : > { %v7262_v23 = vpack.c.bf16 %v980_v15, %v976_v14  ;;  %v979_v24 = vld [vmem:[#allocation4 + $0x70] sm:$0xff]  ;;  %v986_v26 = vld [vmem:[#allocation4 + $0xa8] sm:$0xff]  ;;  %v984_v27 = vld [vmem:[#allocation4 + $0x98] sm:$0xff] }
  0xf4   : > { %7113 = vmatpush1.bf16.msra.mxu0 %v7112_v19  ;;  %v7198_v19 = vpack.c.bf16 %v978_v12, %v974_v11  ;;  %v988_v28 = vld [vmem:[#allocation4 + $0xb8] sm:$0xff]  ;;  %v7264_v30 = vpack.c.bf16 %v979_v24, %v975_v22  ;;  %v983_v34 = vld [vmem:[#allocation4 + $0x90] sm:$0xff]  ;;  %v994_v38 = vld [vmem:[#allocation4 + $0xe8] sm:$0xff] }
  0xf5   : > { %7177 = vmatpush1.bf16.msra.mxu1 %v7176_v20  ;;  %7115 = vmatprep.subr.bf16.mxu0 %v7114_v21  ;;  %v973_v20 = vld [vmem:[#allocation4 + $0x40] sm:$0xff]  ;;  %v7266_v35 = vpack.c.bf16 %v988_v28, %v984_v27  ;;  %v987_v36 = vld [vmem:[#allocation4 + $0xb0] sm:$0xff]  ;;  %v992_v39 = vld [vmem:[#allocation4 + $0xd8] sm:$0xff] }
  0xf6   : > { %7179 = vmatprep.subr.bf16.mxu1 %v7178_v25  ;;  %v977_v21 = vld [vmem:[#allocation4 + $0x60] sm:$0xff]  ;;  %v982_v25 = vld [vmem:[#allocation4 + $0x88] sm:$0xff]  ;;  %v996_v40 = vld [vmem:[#allocation4 + $0xf8] sm:$0xff]  ;;  %v7268_v42 = vpack.c.bf16 %v987_v36, %v983_v34 }
  0xf7   : > { %v7200_v29 = vpack.c.bf16 %v977_v21, %v973_v20  ;;  %v991_v46 = vld [vmem:[#allocation4 + $0xd0] sm:$0xff]  ;;  %v7270_v47 = vpack.c.bf16 %v996_v40, %v992_v39  ;;  %v1002_v50 = vld [vmem:[#allocation4 + $0x128] sm:$0xff]  ;;  %v1000_v51 = vld [vmem:[#allocation4 + $0x118] sm:$0xff] }
  0xf8   : > { %7117 = vmatpush1.bf16.msra.mxu0 %v7116_v31  ;;  %v7202_v31 = vpack.c.bf16 %v986_v26, %v982_v25  ;;  %v995_v48 = vld [vmem:[#allocation4 + $0xf0] sm:$0xff]  ;;  %v1004_v52 = vld [vmem:[#allocation4 + $0x138] sm:$0xff]  ;;  %v997_v54 = vld [vmem:[#allocation4 + $0x100] sm:$0xff] }
  0xf9   : > { %7181 = vmatpush1.bf16.msra.mxu1 %v7180_v32  ;;  %7119 = vmatprep.subr.bf16.mxu0 %v7118_v33  ;;  %v981_v32 = vld [vmem:[#allocation4 + $0x80] sm:$0xff]  ;;  %v1003_v59 = vld [vmem:[#allocation4 + $0x130] sm:$0xff]  ;;  %v1006_v60 = vld [vmem:[#allocation4 + $0x148] sm:$0xff]  ;;  %v7274_v62 = vpack.c.bf16 %v1004_v52, %v1000_v51 }
  0xfa   : > { %7183 = vmatprep.subr.bf16.mxu1 %v7182_v37  ;;  %v985_v33 = vld [vmem:[#allocation4 + $0xa0] sm:$0xff]  ;;  %v990_v37 = vld [vmem:[#allocation4 + $0xc8] sm:$0xff]  ;;  %v1008_v63 = vld [vmem:[#allocation4 + $0x158] sm:$0xff] }
  0xfb   : > { %v7204_v41 = vpack.c.bf16 %v985_v33, %v981_v32  ;;  %v1012_v0 = vld [vmem:[#allocation4 + $0x178] sm:$0xff]  ;;  %v1007_v6 = vld [vmem:[#allocation4 + $0x150] sm:$0xff]  ;;  %v1014_v10 = vld [vmem:[#allocation4 + $0x188] sm:$0xff] }
  0xfc   : > { %7121 = vmatpush1.bf16.msra.mxu0 %v7120_v43  ;;  %v7206_v43 = vpack.c.bf16 %v994_v38, %v990_v37  ;;  %v9370_v1 = vld [vmem:[%s9357_s15 + $0x14] ss:$8 sps:$4 sm:$0xff]   ;;  %v9373_v2 = vld [vmem:[%s9357_s15 + $0x10] ss:$8 sps:$4 sm:$0xff]   ;;  %v1018_v11 = vld [vmem:[#allocation4 + $0x1a8] sm:$0xff]  ;;  %v7278_v12 = vpack.c.bf16 %v1012_v0, %v1008_v63 }
  0xfd   : > { %7185 = vmatpush1.bf16.msra.mxu1 %v7184_v44  ;;  %7123 = vmatprep.subr.bf16.mxu0 %v7122_v45  ;;  %v989_v44 = vld [vmem:[#allocation4 + $0xc0] sm:$0xff]  ;;  %v1016_v14 = vld [vmem:[#allocation4 + $0x198] sm:$0xff]  ;;  %v1015_v22 = vld [vmem:[#allocation4 + $0x190] sm:$0xff]  ;;  %v7218_v24 = vpack.c.bf16 %v1018_v11, %v1014_v10 }
  0xfe   : > { %7187 = vmatprep.subr.bf16.mxu1 %v7186_v49  ;;  %v993_v45 = vld [vmem:[#allocation4 + $0xe0] sm:$0xff]  ;;  %v998_v49 = vld [vmem:[#allocation4 + $0x108] sm:$0xff]  ;;  %v1020_v15 = vld [vmem:[#allocation4 + $0x1b8] sm:$0xff] }
  0xff   : > { %v7208_v53 = vpack.c.bf16 %v993_v45, %v989_v44  ;;  %v7210_v58 = vpack.c.bf16 %v1002_v50, %v998_v49  ;;  %v1013_v20 = vld [vmem:[#allocation4 + $0x180] sm:$0xff]  ;;  %v1019_v25 = vld [vmem:[#allocation4 + $0x1b0] sm:$0xff]  ;;  %v1022_v26 = vld [vmem:[#allocation4 + $0x1c8] sm:$0xff]  ;;  %v7282_v28 = vpack.c.bf16 %v1020_v15, %v1016_v14 }
 0x100   : > { %7125 = vmatpush1.bf16.msra.mxu0 %v7124_v55  ;;  %v1001_v55 = vld [vmem:[#allocation4 + $0x120] sm:$0xff]  ;;  %v1026_v27 = vld [vmem:[#allocation4 + $0x1e8] sm:$0xff]  ;;  %v9392_v32 = vld [vmem:[%s9357_s15 + $0x30] ss:$8 sps:$4 sm:$0xff]   ;;  %v7284_v34 = vpack.c.bf16 %v1019_v25, %v1015_v22 }
 0x101   : > { %7189 = vmatpush1.bf16.msra.mxu1 %v7188_v56  ;;  %7127 = vmatprep.subr.bf16.mxu0 %v7126_v57  ;;  %v999_v56 = vld [vmem:[#allocation4 + $0x110] sm:$0xff]  ;;  %v7272_v57 = vpack.c.bf16 %v995_v48, %v991_v46  ;;  %v1017_v21 = vld [vmem:[#allocation4 + $0x1a0] sm:$0xff]  ;;  %v1036_v44 = vld [vmem:[#allocation4 + $0x238] sm:$0xff] }
 0x102   : > { %7191 = vmatprep.subr.bf16.mxu1 %v7190_v61  ;;  %v1010_v61 = vld [vmem:[#allocation4 + $0x168] sm:$0xff]  ;;  %v7276_v7 = vpack.c.bf16 %v1003_v59, %v999_v56  ;;  %v7220_v33 = vpack.c.bf16 %v1017_v21, %v1013_v20  ;;  %v1021_v36 = vld [vmem:[#allocation4 + $0x1c0] sm:$0xff]  ;;  %v1023_v38 = vld [vmem:[#allocation4 + $0x1d0] sm:$0xff] }
 0x103   : > { %v7214_v8 = vpack.c.bf16 %v1010_v61, %v1006_v60  ;;  %v1025_v37 = vld [vmem:[#allocation4 + $0x1e0] sm:$0xff]  ;;  %v1027_v40 = vld [vmem:[#allocation4 + $0x1f0] sm:$0xff]  ;;  %v1044_v56 = vld [vmem:[#allocation4 + $0x278] sm:$0xff] }
 0x104   : > { %7129 = vmatpush1.bf16.msra.mxu0 %v7128_v3  ;;  %v7212_v3 = vpack.c.bf16 %v1001_v55, %v997_v54  ;;  %v7224_v45 = vpack.c.bf16 %v1025_v37, %v1021_v36  ;;  %v7288_v46 = vpack.c.bf16 %v1027_v40, %v1023_v38  ;;  %v1029_v48 = vld [vmem:[#allocation4 + $0x200] sm:$0xff]  ;;  %v1031_v50 = vld [vmem:[#allocation4 + $0x210] sm:$0xff]  ;;  %v1042_v54 = vld [vmem:[#allocation4 + $0x268] sm:$0xff] }
 0x105   : > { %7193 = vmatpush1.bf16.msra.mxu1 %v7192_v4  ;;  %7195 = vmatprep.subr.bf16.mxu0 %v7194_v5  ;;  %v1005_v4 = vld [vmem:[#allocation4 + $0x140] sm:$0xff]  ;;  %v1035_v52 = vld [vmem:[#allocation4 + $0x230] sm:$0xff]  ;;  %v1040_v55 = vld [vmem:[#allocation4 + $0x258] sm:$0xff] }
 0x106   : > { %7259 = vmatprep.subr.bf16.mxu1 %v7258_v9  ;;  %v1009_v5 = vld [vmem:[#allocation4 + $0x160] sm:$0xff]  ;;  %v1011_v9 = vld [vmem:[#allocation4 + $0x170] sm:$0xff]  ;;  %v7294_v63 = vpack.c.bf16 %v1044_v56, %v1040_v55  ;;  %v1054_v15 = vld [vmem:[#allocation4 + $0x2c8] sm:$0xff] }
 0x107   : > { %852 = vmatmul.mubr.f32.vlgmr.msra.gmra.mrb[0].mxu0 %v9365_v13  ;;  %v1033_v49 = vld [vmem:[#allocation4 + $0x220] sm:$0xff]  ;;  %v1043_v0 = vld [vmem:[#allocation4 + $0x270] sm:$0xff]  ;;  %v1056_v20 = vld [vmem:[#allocation4 + $0x2d8] sm:$0xff] }
 0x108   : > { %941 = vmatmul.mubr.f32.vlgmr.msra.gmra.mrb[0].mxu1 %v9365_v13  ;;  %7197 = vmatpush1.bf16.msra.mxu0 %v7196_v16  ;;  %v9379_v16 = vld [vmem:[%s9357_s15 + $0x24] ss:$8 sps:$4 sm:$0xff]   ;;  %v1047_v11 = vld [vmem:[#allocation4 + $0x290] sm:$0xff]  ;;  %v1060_v21 = vld [vmem:[#allocation4 + $0x2f8] sm:$0xff] }
 0x109   : > { %7261 = vmatpush1.bf16.msra.mxu1 %v7260_v17  ;;  %7199 = vmatprep.subr.bf16.mxu0 %v7198_v19  ;;  %v9382_v17 = vld [vmem:[%s9357_s15 + $0x20] ss:$8 sps:$4 sm:$0xff]   ;;  %v7216_v19 = vpack.c.bf16 %v1009_v5, %v1005_v4  ;;  %v1048_v5 = vld [vmem:[#allocation4 + $0x298] sm:$0xff]  ;;  %v1051_v14 = vld [vmem:[#allocation4 + $0x2b0] sm:$0xff] }
 0x10a   : > { %7263 = vmatprep.subr.bf16.mxu1 %v7262_v23  ;;  %857 = vmatprep.mubr.f32.mxu0 %v9370_v1  ;;  %v7280_v23 = vpack.c.bf16 %v1011_v9, %v1007_v6  ;;  %v1037_v60 = vld [vmem:[#allocation4 + $0x240] sm:$0xff]  ;;  %v1050_v4 = vld [vmem:[#allocation4 + $0x2a8] sm:$0xff]  ;;  %v1052_v6 = vld [vmem:[#allocation4 + $0x2b8] sm:$0xff] }
 0x10b   : > { %946 = vmatprep.mubr.f32.mxu1 %v9370_v1  ;;  %858 = vmatmul.mubr.f32.gmra.mrb[2].mxu0 %v9373_v2  ;;  %v1041_v61 = vld [vmem:[#allocation4 + $0x260] sm:$0xff]  ;;  %v1075_v55 = vld [vmem:[#allocation4 + $0x370] sm:$0xff]  ;;  %v1078_v56 = vld [vmem:[#allocation4 + $0x388] sm:$0xff] }
 0x10c   : > { %7201 = vmatpush1.bf16.msra.mxu0 %v7200_v29  ;;  %947 = vmatmul.mubr.f32.gmra.mrb[2].mxu1 %v9373_v2  ;;  %v1024_v29 = vld [vmem:[#allocation4 + $0x1d8] sm:$0xff]  ;;  %v1045_v9 = vld [vmem:[#allocation4 + $0x280] sm:$0xff] }
 0x10d   : > { %7265 = vmatpush1.bf16.msra.mxu1 %v7264_v30  ;;  %7203 = vmatprep.subr.bf16.mxu0 %v7202_v31  ;;  %v1028_v30 = vld [vmem:[#allocation4 + $0x1f8] sm:$0xff]  ;;  %v1049_v10 = vld [vmem:[#allocation4 + $0x2a0] sm:$0xff] }
 0x10e   : > { %7267 = vmatprep.subr.bf16.mxu1 %v7266_v35  ;;  %863 = vmatprep.mubr.f32.mxu0 %v9379_v16  ;;  %v9389_v31 = vld [vmem:[%s9357_s15 + $0x34] ss:$8 sps:$4 sm:$0xff]   ;;  %v7222_v35 = vpack.c.bf16 %v1026_v27, %v1022_v26  ;;  %v7286_v39 = vpack.c.bf16 %v1028_v30, %v1024_v29  ;;  %v7236_v22 = vpack.c.bf16 %v1049_v10, %v1045_v9  ;;  %v1053_v25 = vld [vmem:[#allocation4 + $0x2c0] sm:$0xff]  ;;  %v1062_v30 = vld [vmem:[#allocation4 + $0x308] sm:$0xff]  ;;  %s626_s15 = scalar_lea.vmem %s12656_s0, %s6946_s13 }
 0x10f   : > { %952 = vmatprep.mubr.f32.mxu1 %v9379_v16  ;;  %864 = vmatmul.mubr.f32.gmra.mrb[4].mxu0 %v9382_v17  ;;  %v1057_v26 = vld [vmem:[#allocation4 + $0x2e0] sm:$0xff]  ;;  %v1055_v27 = vld [vmem:[#allocation4 + $0x2d0] sm:$0xff] }
 0x110   : > { %7205 = vmatpush1.bf16.msra.mxu0 %v7204_v41  ;;  %953 = vmatmul.mubr.f32.gmra.mrb[4].mxu1 %v9382_v17  ;;  %v1030_v41 = vld [vmem:[#allocation4 + $0x208] sm:$0xff]  ;;  %v1059_v29 = vld [vmem:[#allocation4 + $0x2f0] sm:$0xff]  ;;  %v7240_v36 = vpack.c.bf16 %v1057_v26, %v1053_v25  ;;  %v1065_v40 = vld [vmem:[#allocation4 + $0x320] sm:$0xff] }
 0x111   : > { %7269 = vmatpush1.bf16.msra.mxu1 %v7268_v42  ;;  %7207 = vmatprep.subr.bf16.mxu0 %v7206_v43  ;;  %v1034_v42 = vld [vmem:[#allocation4 + $0x228] sm:$0xff]  ;;  %v1032_v43 = vld [vmem:[#allocation4 + $0x218] sm:$0xff]  ;;  %v7304_v37 = vpack.c.bf16 %v1059_v29, %v1055_v27  ;;  %v2883_v29 = vld [vmem:[#allocation6 + $0x30] sm:$0xff] }
 0x112   : > { %7271 = vmatprep.subr.bf16.mxu1 %v7270_v47  ;;  %869 = vmatprep.mubr.f32.mxu0 %v9389_v31  ;;  %v7226_v47 = vpack.c.bf16 %v1034_v42, %v1030_v41  ;;  %v7290_v51 = vpack.c.bf16 %v1036_v44, %v1032_v43  ;;  %v1063_v41 = vld [vmem:[#allocation4 + $0x310] sm:$0xff]  ;;  %v1070_v44 = vld [vmem:[#allocation4 + $0x348] sm:$0xff]  ;;  %v2880_v25 = vld [vmem:[#allocation6 + $0x18] sm:$0xff] }
 0x113   : > { %958 = vmatprep.mubr.f32.mxu1 %v9389_v31  ;;  %870 = vmatmul.mubr.f32.gmra.mrb[6].mxu0 %v9392_v32  ;;  %v1067_v43 = vld [vmem:[#allocation4 + $0x330] sm:$0xff]  ;;  %v2884_v26 = vld [vmem:[#allocation6 + $0x38] sm:$0xff] }
 0x114   : > { %7209 = vmatpush1.bf16.msra.mxu0 %v7208_v53  ;;  %959 = vmatmul.mubr.f32.gmra.mrb[6].mxu1 %v9392_v32  ;;  %v1038_v53 = vld [vmem:[#allocation4 + $0x248] sm:$0xff]  ;;  %v7450_v27 = vpack.c.bf16 %v2884_v26, %v2880_v25  ;;  %v2923_v25 = vld [vmem:[#allocation6 + $0x170] sm:$0xff] }
 0x115   : > { %7273 = vmatpush1.bf16.msra.mxu1 %v7272_v57  ;;  %7211 = vmatprep.subr.bf16.mxu0 %v7210_v58  ;;  %v7228_v57 = vpack.c.bf16 %v1033_v49, %v1029_v48  ;;  %v7292_v58 = vpack.c.bf16 %v1035_v52, %v1031_v50  ;;  %v7230_v59 = vpack.c.bf16 %v1042_v54, %v1038_v53  ;;  %v1073_v52 = vld [vmem:[#allocation4 + $0x360] sm:$0xff]  ;;  %v1071_v53 = vld [vmem:[#allocation4 + $0x350] sm:$0xff]  ;;  %v2926_v26 = vld [vmem:[#allocation6 + $0x188] sm:$0xff] }
 0x116   : > { %7275 = vmatprep.subr.bf16.mxu1 %v7274_v62  ;;  %1157 = vmatprep.mubr.f32.mxu0 %v9360_v18  ;;  %v1039_v62 = vld [vmem:[#allocation4 + $0x250] sm:$0xff]  ;;  %v7308_v49 = vpack.c.bf16 %v1067_v43, %v1063_v41  ;;  %v2894_v41 = vld [vmem:[#allocation6 + $0x88] sm:$0xff] }
 0x117   : > { %1246 = vmatprep.mubr.f32.mxu1 %v9360_v18  ;;  %v7296_v18 = vpack.c.bf16 %v1043_v0, %v1039_v62  ;;  %v1081_v0 = vld [vmem:[#allocation4 + $0x3a0] sm:$0xff] }
 0x118   : > { %7213 = vmatpush1.bf16.msra.mxu0 %v7212_v3  ;;  %v1046_v3 = vld [vmem:[#allocation4 + $0x288] sm:$0xff] }
 0x119   : > { %7277 = vmatpush1.bf16.msra.mxu1 %v7276_v7  ;;  %7215 = vmatprep.subr.bf16.mxu0 %v7214_v8  ;;  %v7232_v7 = vpack.c.bf16 %v1041_v61, %v1037_v60  ;;  %v7234_v8 = vpack.c.bf16 %v1050_v4, %v1046_v3  ;;  %v7312_v61 = vpack.c.bf16 %v1075_v55, %v1071_v53  ;;  %v1079_v3 = vld [vmem:[#allocation4 + $0x390] sm:$0xff]  ;;  %v2902_v53 = vld [vmem:[#allocation6 + $0xc8] sm:$0xff]  ;;  %v2901_v55 = vld [vmem:[#allocation6 + $0xc0] sm:$0xff] }
 0x11a   : > { %7279 = vmatprep.subr.bf16.mxu1 %v7278_v12  ;;  %v7298_v12 = vpack.c.bf16 %v1052_v6, %v1048_v5  ;;  %v1083_v5 = vld [vmem:[#allocation4 + $0x3b0] sm:$0xff]  ;;  %v1086_v6 = vld [vmem:[#allocation4 + $0x3c8] sm:$0xff] }
 0x11b   : > { %v7316_v10 = vpack.c.bf16 %v1083_v5, %v1079_v3  ;;  %v2914_v3 = vld [vmem:[#allocation6 + $0x128] sm:$0xff]  ;;  %v2912_v5 = vld [vmem:[#allocation6 + $0x118] sm:$0xff] }
 0x11c   : > { %7217 = vmatpush1.bf16.msra.mxu0 %v7216_v19  ;;  %v1058_v19 = vld [vmem:[#allocation4 + $0x2e8] sm:$0xff] }
 0x11d   : > { %7281 = vmatpush1.bf16.msra.mxu1 %v7280_v23  ;;  %7219 = vmatprep.subr.bf16.mxu0 %v7218_v24  ;;  %v7300_v23 = vpack.c.bf16 %v1051_v14, %v1047_v11  ;;  %v7238_v24 = vpack.c.bf16 %v1058_v19, %v1054_v15  ;;  %v1089_v14 = vld [vmem:[#allocation4 + $0x3e0] sm:$0xff]  ;;  %v1087_v19 = vld [vmem:[#allocation4 + $0x3d0] sm:$0xff] }
 0x11e   : > { %7283 = vmatprep.subr.bf16.mxu1 %v7282_v28  ;;  %v7302_v28 = vpack.c.bf16 %v1060_v21, %v1056_v20  ;;  %v1091_v20 = vld [vmem:[#allocation4 + $0x3f0] sm:$0xff] }
 0x120   : > { %7221 = vmatpush1.bf16.msra.mxu0 %v7220_v33  ;;  %v1066_v33 = vld [vmem:[#allocation4 + $0x328] sm:$0xff] }
 0x121   : > { %7285 = vmatpush1.bf16.msra.mxu1 %v7284_v34  ;;  %7223 = vmatprep.subr.bf16.mxu0 %v7222_v35  ;;  %v1064_v34 = vld [vmem:[#allocation4 + $0x318] sm:$0xff]  ;;  %v7242_v38 = vpack.c.bf16 %v1066_v33, %v1062_v30  ;;  %v2890_v33 = vld [vmem:[#allocation6 + $0x68] sm:$0xff] }
 0x122   : > { %7287 = vmatprep.subr.bf16.mxu1 %v7286_v39  ;;  %v1068_v35 = vld [vmem:[#allocation4 + $0x338] sm:$0xff]  ;;  %v1061_v39 = vld [vmem:[#allocation4 + $0x300] sm:$0xff] }
 0x123   : > { %v7306_v42 = vpack.c.bf16 %v1068_v35, %v1064_v34  ;;  %v7244_v48 = vpack.c.bf16 %v1065_v40, %v1061_v39  ;;  %v2889_v34 = vld [vmem:[#allocation6 + $0x60] sm:$0xff]  ;;  %v2891_v40 = vld [vmem:[#allocation6 + $0x70] sm:$0xff] }
 0x124   : > { %7225 = vmatpush1.bf16.msra.mxu0 %v7224_v45  ;;  %v1074_v45 = vld [vmem:[#allocation4 + $0x368] sm:$0xff] }
 0x125   : > { %7289 = vmatpush1.bf16.msra.mxu1 %v7288_v46  ;;  %7227 = vmatprep.subr.bf16.mxu0 %v7226_v47  ;;  %v1072_v46 = vld [vmem:[#allocation4 + $0x358] sm:$0xff]  ;;  %v7246_v50 = vpack.c.bf16 %v1074_v45, %v1070_v44  ;;  %v2893_v45 = vld [vmem:[#allocation6 + $0x80] sm:$0xff] }
 0x126   : > { %7291 = vmatprep.subr.bf16.mxu1 %v7290_v51  ;;  %v1076_v47 = vld [vmem:[#allocation4 + $0x378] sm:$0xff]  ;;  %v1069_v51 = vld [vmem:[#allocation4 + $0x340] sm:$0xff] }
 0x127   : > { %v7310_v54 = vpack.c.bf16 %v1076_v47, %v1072_v46  ;;  %v7248_v60 = vpack.c.bf16 %v1073_v52, %v1069_v51  ;;  %v2897_v46 = vld [vmem:[#allocation6 + $0xa0] sm:$0xff]  ;;  %v2896_v47 = vld [vmem:[#allocation6 + $0x98] sm:$0xff] }
 0x128   : > { %7229 = vmatpush1.bf16.msra.mxu0 %v7228_v57  ;;  %v1082_v57 = vld [vmem:[#allocation4 + $0x3a8] sm:$0xff]  ;;  %v7332_v51 = vpack.c.bf16 %v2897_v46, %v2893_v45  ;;  %v2935_v45 = vld [vmem:[#allocation6 + $0x1d0] sm:$0xff] }
 0x129   : > { %7293 = vmatpush1.bf16.msra.mxu1 %v7292_v58  ;;  %7231 = vmatprep.subr.bf16.mxu0 %v7230_v59  ;;  %v1080_v58 = vld [vmem:[#allocation4 + $0x398] sm:$0xff]  ;;  %v7250_v62 = vpack.c.bf16 %v1082_v57, %v1078_v56 }
 0x12a   : > { %7295 = vmatprep.subr.bf16.mxu1 %v7294_v63  ;;  %v1084_v59 = vld [vmem:[#allocation4 + $0x3b8] sm:$0xff]  ;;  %v1077_v63 = vld [vmem:[#allocation4 + $0x380] sm:$0xff] }
 0x12b   : > { %v7314_v4 = vpack.c.bf16 %v1084_v59, %v1080_v58  ;;  %v7252_v9 = vpack.c.bf16 %v1081_v0, %v1077_v63  ;;  %v2905_v58 = vld [vmem:[#allocation6 + $0xe0] sm:$0xff]  ;;  %v2904_v59 = vld [vmem:[#allocation6 + $0xd8] sm:$0xff]  ;;  %v2907_v63 = vld [vmem:[#allocation6 + $0xf0] sm:$0xff] }
 0x12c   : > { %7233 = vmatpush1.bf16.msra.mxu0 %v7232_v7  ;;  %v1090_v7 = vld [vmem:[#allocation4 + $0x3e8] sm:$0xff] }
 0x12d   : > { %7297 = vmatpush1.bf16.msra.mxu1 %v7296_v18  ;;  %7235 = vmatprep.subr.bf16.mxu0 %v7234_v8  ;;  %v1088_v18 = vld [vmem:[#allocation4 + $0x3d8] sm:$0xff]  ;;  %v7254_v11 = vpack.c.bf16 %v1090_v7, %v1086_v6  ;;  %v2910_v0 = vld [vmem:[#allocation6 + $0x108] sm:$0xff] }
 0x12e   : > { %7299 = vmatprep.subr.bf16.mxu1 %v7298_v12  ;;  %v1092_v8 = vld [vmem:[#allocation4 + $0x3f8] sm:$0xff]  ;;  %v1085_v12 = vld [vmem:[#allocation4 + $0x3c0] sm:$0xff] }
 0x12f   : > { %v7318_v15 = vpack.c.bf16 %v1092_v8, %v1088_v18  ;;  %v7256_v21 = vpack.c.bf16 %v1089_v14, %v1085_v12  ;;  %v2916_v6 = vld [vmem:[#allocation6 + $0x138] sm:$0xff]  ;;  %v7338_v18 = vpack.c.bf16 %v2914_v3, %v2910_v0  ;;  %v2909_v8 = vld [vmem:[#allocation6 + $0x100] sm:$0xff]  ;;  %v2915_v12 = vld [vmem:[#allocation6 + $0x130] sm:$0xff] }
 0x130   : > { %7237 = vmatpush1.bf16.msra.mxu0 %v7236_v22  ;;  %v7320_v22 = vpack.c.bf16 %v1091_v20, %v1087_v19  ;;  %v2918_v14 = vld [vmem:[#allocation6 + $0x148] sm:$0xff]  ;;  %v2920_v19 = vld [vmem:[#allocation6 + $0x158] sm:$0xff] }
 0x131   : > { %7301 = vmatpush1.bf16.msra.mxu1 %v7300_v23  ;;  %7239 = vmatprep.subr.bf16.mxu0 %v7238_v24  ;;  %v2877_v23 = vld [vmem:[#allocation6] sm:$0xff]  ;;  %v2924_v20 = vld [vmem:[#allocation6 + $0x178] sm:$0xff] }
 0x132   : > { %7303 = vmatprep.subr.bf16.mxu1 %v7302_v28  ;;  %v2881_v24 = vld [vmem:[#allocation6 + $0x20] sm:$0xff]  ;;  %v2879_v28 = vld [vmem:[#allocation6 + $0x10] sm:$0xff] }
 0x133   : > { %v7452_v30 = vpack.c.bf16 %v2883_v29, %v2879_v28  ;;  %v2932_v28 = vld [vmem:[#allocation6 + $0x1b8] sm:$0xff] }
 0x134   : > { %7241 = vmatpush1.bf16.msra.mxu0 %v7240_v36  ;;  %v2888_v36 = vld [vmem:[#allocation6 + $0x58] sm:$0xff] }
 0x135   : > { %7305 = vmatpush1.bf16.msra.mxu1 %v7304_v37  ;;  %7243 = vmatprep.subr.bf16.mxu0 %v7242_v38  ;;  %v2892_v37 = vld [vmem:[#allocation6 + $0x78] sm:$0xff]  ;;  %v2887_v38 = vld [vmem:[#allocation6 + $0x50] sm:$0xff] }
 0x136   : > { %7307 = vmatprep.subr.bf16.mxu1 %v7306_v42  ;;  %v7454_v39 = vpack.c.bf16 %v2892_v37, %v2888_v36  ;;  %v2898_v42 = vld [vmem:[#allocation6 + $0xa8] sm:$0xff]  ;;  %v7456_v43 = vpack.c.bf16 %v2891_v40, %v2887_v38  ;;  %v2936_v38 = vld [vmem:[#allocation6 + $0x1d8] sm:$0xff] }
 0x137   : > { %v7330_v44 = vpack.c.bf16 %v2898_v42, %v2894_v41  ;;  %v2934_v36 = vld [vmem:[#allocation6 + $0x1c8] sm:$0xff] }
 0x138   : > { %7245 = vmatpush1.bf16.msra.mxu0 %v7244_v48  ;;  %v2900_v48 = vld [vmem:[#allocation6 + $0xb8] sm:$0xff]  ;;  %v2938_v37 = vld [vmem:[#allocation6 + $0x1e8] sm:$0xff] }
 0x139   : > { %7309 = vmatpush1.bf16.msra.mxu1 %v7308_v49  ;;  %7247 = vmatprep.subr.bf16.mxu0 %v7246_v50  ;;  %v2895_v49 = vld [vmem:[#allocation6 + $0x90] sm:$0xff]  ;;  %v7458_v52 = vpack.c.bf16 %v2900_v48, %v2896_v47  ;;  %v7350_v42 = vpack.c.bf16 %v2938_v37, %v2934_v36  ;;  %v2942_v48 = vld [vmem:[#allocation6 + $0x208] sm:$0xff] }
 0x13a   : > { %7311 = vmatprep.subr.bf16.mxu1 %v7310_v54  ;;  %v2899_v50 = vld [vmem:[#allocation6 + $0xb0] sm:$0xff]  ;;  %v2906_v54 = vld [vmem:[#allocation6 + $0xe8] sm:$0xff] }
 0x13b   : > { %v7460_v56 = vpack.c.bf16 %v2899_v50, %v2895_v49  ;;  %v7334_v57 = vpack.c.bf16 %v2906_v54, %v2902_v53  ;;  %v2939_v47 = vld [vmem:[#allocation6 + $0x1f0] sm:$0xff]  ;;  %v2946_v49 = vld [vmem:[#allocation6 + $0x228] sm:$0xff]  ;;  %v2944_v50 = vld [vmem:[#allocation6 + $0x218] sm:$0xff] }
 0x13c   : > { %7249 = vmatpush1.bf16.msra.mxu0 %v7248_v60  ;;  %v2908_v60 = vld [vmem:[#allocation6 + $0xf8] sm:$0xff]  ;;  %v7480_v53 = vpack.c.bf16 %v2939_v47, %v2935_v45  ;;  %v7354_v54 = vpack.c.bf16 %v2946_v49, %v2942_v48  ;;  %v2986_v47 = vld [vmem:[#allocation6 + $0x368] sm:$0xff] }
 0x13d   : > { %7313 = vmatpush1.bf16.msra.mxu1 %v7312_v61  ;;  %7251 = vmatprep.subr.bf16.mxu0 %v7250_v62  ;;  %v7462_v61 = vpack.c.bf16 %v2908_v60, %v2904_v59  ;;  %v2903_v62 = vld [vmem:[#allocation6 + $0xd0] sm:$0xff]  ;;  %v2950_v60 = vld [vmem:[#allocation6 + $0x248] sm:$0xff]  ;;  %v2984_v48 = vld [vmem:[#allocation6 + $0x358] sm:$0xff] }
 0x13e   : > { %7315 = vmatprep.subr.bf16.mxu1 %v7314_v4  ;;  %v7336_v4 = vpack.c.bf16 %v2905_v58, %v2901_v55  ;;  %v7464_v7 = vpack.c.bf16 %v2907_v63, %v2903_v62  ;;  %v2941_v55 = vld [vmem:[#allocation6 + $0x200] sm:$0xff]  ;;  %v2947_v59 = vld [vmem:[#allocation6 + $0x230] sm:$0xff]  ;;  %v2952_v62 = vld [vmem:[#allocation6 + $0x258] sm:$0xff] }
 0x13f   : > { %v2956_v63 = vld [vmem:[#allocation6 + $0x278] sm:$0xff] }
 0x140   : > { %7253 = vmatpush1.bf16.msra.mxu0 %v7252_v9  ;;  %v2913_v9 = vld [vmem:[#allocation6 + $0x120] sm:$0xff] }
 0x141   : > { %7317 = vmatpush1.bf16.msra.mxu1 %v7316_v10  ;;  %7255 = vmatprep.subr.bf16.mxu0 %v7254_v11  ;;  %v2911_v10 = vld [vmem:[#allocation6 + $0x110] sm:$0xff]  ;;  %v7466_v11 = vpack.c.bf16 %v2916_v6, %v2912_v5  ;;  %v2949_v5 = vld [vmem:[#allocation6 + $0x240] sm:$0xff] }
 0x142   : > { %7319 = vmatprep.subr.bf16.mxu1 %v7318_v15  ;;  %v2922_v15 = vld [vmem:[#allocation6 + $0x168] sm:$0xff]  ;;  %v2953_v6 = vld [vmem:[#allocation6 + $0x260] sm:$0xff] }
 0x144   : > { %7257 = vmatpush1.bf16.msra.mxu0 %v7256_v21  ;;  %v7340_v21 = vpack.c.bf16 %v2913_v9, %v2909_v8  ;;  %v2955_v8 = vld [vmem:[#allocation6 + $0x270] sm:$0xff]  ;;  %v2958_v9 = vld [vmem:[#allocation6 + $0x288] sm:$0xff] }
 0x145   : > { %7321 = vmatpush1.bf16.msra.mxu1 %v7320_v22  ;;  %v7468_v22 = vpack.c.bf16 %v2915_v12, %v2911_v10  ;;  %v2962_v10 = vld [vmem:[#allocation6 + $0x2a8] sm:$0xff]  ;;  %v2964_v12 = vld [vmem:[#allocation6 + $0x2b8] sm:$0xff] }
 0x146   : > { %7451 = vmatprep.subr.bf16.mxu1 %v7450_v27  ;;  %v2928_v27 = vld [vmem:[#allocation6 + $0x198] sm:$0xff] }
 0x147   : > { %1158 = vmatmul.mubr.f32.vlgmr.msra.gmra.mrb[8].mxu0 %v9365_v13 }
 0x148   : > { %1247 = vmatmul.mubr.f32.vlgmr.msra.gmra.mrb[8].mxu1 %v9365_v13  ;;  %1163 = vmatprep.mubr.f32.mxu0 %v9370_v1  ;;  %v2878_v13 = vld [vmem:[#allocation6 + $0x8] sm:$0xff] }
 0x149   : > { %1252 = vmatprep.mubr.f32.mxu1 %v9370_v1  ;;  %v2882_v1 = vld [vmem:[#allocation6 + $0x28] sm:$0xff]  ;;  %7453 = vmatpush1.bf16.msra.mxu1 %v7452_v30 }
 0x14a   : > { %7455 = vmatprep.subr.bf16.mxu1 %v7454_v39  ;;  %v2940_v39 = vld [vmem:[#allocation6 + $0x1f8] sm:$0xff] }
 0x14b   : > { %1164 = vmatmul.mubr.f32.gmra.mrb[10].mxu0 %v9373_v2  ;;  %v7478_v46 = vpack.c.bf16 %v2940_v39, %v2936_v38  ;;  %v2973_v39 = vld [vmem:[#allocation6 + $0x300] sm:$0xff] }
 0x14c   : > { %1253 = vmatmul.mubr.f32.gmra.mrb[10].mxu1 %v9373_v2  ;;  %1169 = vmatprep.mubr.f32.mxu0 %v9379_v16  ;;  %v7322_v2 = vpack.c.bf16 %v2882_v1, %v2878_v13  ;;  %v7342_v13 = vpack.c.bf16 %v2922_v15, %v2918_v14  ;;  %v2917_v1 = vld [vmem:[#allocation6 + $0x140] sm:$0xff]  ;;  %v7360_v14 = vpack.c.bf16 %v2953_v6, %v2949_v5  ;;  %v2991_v5 = vld [vmem:[#allocation6 + $0x390] sm:$0xff] }
 0x14d   : > { %1258 = vmatprep.mubr.f32.mxu1 %v9379_v16  ;;  %v7324_v16 = vpack.c.bf16 %v2881_v24, %v2877_v23  ;;  %7457 = vmatpush1.bf16.msra.mxu1 %v7456_v43  ;;  %v2921_v23 = vld [vmem:[#allocation6 + $0x160] sm:$0xff]  ;;  %v7470_v24 = vpack.c.bf16 %v2924_v20, %v2920_v19  ;;  %v7362_v19 = vpack.c.bf16 %v2962_v10, %v2958_v9  ;;  %v2995_v6 = vld [vmem:[#allocation6 + $0x3b0] sm:$0xff]  ;;  %v3000_v9 = vld [vmem:[#allocation6 + $0x3d8] sm:$0xff] }
 0x14e   : > { %7323 = vmatprep.subr.bf16.mxu0 %v7322_v2  ;;  %7459 = vmatprep.subr.bf16.mxu1 %v7458_v52  ;;  %v2919_v2 = vld [vmem:[#allocation6 + $0x150] sm:$0xff]  ;;  %v7344_v29 = vpack.c.bf16 %v2921_v23, %v2917_v1  ;;  %v2933_v43 = vld [vmem:[#allocation6 + $0x1c0] sm:$0xff]  ;;  %v2966_v23 = vld [vmem:[#allocation6 + $0x2c8] sm:$0xff] }
 0x14f   : > { %1170 = vmatmul.mubr.f32.gmra.mrb[12].mxu0 %v9382_v17  ;;  %v2957_v20 = vld [vmem:[#allocation6 + $0x280] sm:$0xff]  ;;  %v2963_v1 = vld [vmem:[#allocation6 + $0x2b0] sm:$0xff] }
 0x150   : > { %1259 = vmatmul.mubr.f32.gmra.mrb[12].mxu1 %v9382_v17  ;;  %1175 = vmatprep.mubr.f32.mxu0 %v9389_v31  ;;  %v2886_v17 = vld [vmem:[#allocation6 + $0x48] sm:$0xff] }
 0x151   : > { %1264 = vmatprep.mubr.f32.mxu1 %v9389_v31  ;;  %v2885_v31 = vld [vmem:[#allocation6 + $0x40] sm:$0xff]  ;;  %7325 = vmatpush1.bf16.msra.mxu0 %v7324_v16  ;;  %v2930_v16 = vld [vmem:[#allocation6 + $0x1a8] sm:$0xff] }
 0x152   : > { %v7328_v35 = vpack.c.bf16 %v2889_v34, %v2885_v31  ;;  %7461 = vmatpush1.bf16.msra.mxu1 %v7460_v56  ;;  %v7346_v30 = vpack.c.bf16 %v2930_v16, %v2926_v26  ;;  %v2929_v31 = vld [vmem:[#allocation6 + $0x1a0] sm:$0xff]  ;;  %v2927_v34 = vld [vmem:[#allocation6 + $0x190] sm:$0xff] }
 0x153   : > { %1176 = vmatmul.mubr.f32.gmra.mrb[14].mxu0 %v9392_v32  ;;  %7463 = vmatprep.subr.bf16.mxu1 %v7462_v61  ;;  %v2945_v56 = vld [vmem:[#allocation6 + $0x220] sm:$0xff]  ;;  %v2954_v61 = vld [vmem:[#allocation6 + $0x268] sm:$0xff] }
 0x154   : > { %1265 = vmatmul.mubr.f32.gmra.mrb[14].mxu1 %v9392_v32  ;;  %v7326_v32 = vpack.c.bf16 %v2890_v33, %v2886_v17  ;;  %v7472_v17 = vpack.c.bf16 %v2923_v25, %v2919_v2  ;;  %v2925_v33 = vld [vmem:[#allocation6 + $0x180] sm:$0xff]  ;;  %v7356_v0 = vpack.c.bf16 %v2945_v56, %v2941_v55  ;;  %v2970_v2 = vld [vmem:[#allocation6 + $0x2e8] sm:$0xff]  ;;  %v2972_v25 = vld [vmem:[#allocation6 + $0x2f8] sm:$0xff] }
 0x155   : > { %v7348_v40 = vpack.c.bf16 %v2929_v31, %v2925_v33  ;;  %v2971_v33 = vld [vmem:[#allocation6 + $0x2f0] sm:$0xff]  ;;  %v2974_v31 = vld [vmem:[#allocation6 + $0x308] sm:$0xff] }
 0x156   : > { %7327 = vmatprep.subr.bf16.mxu0 %v7326_v32  ;;  %7465 = vmatpush1.bf16.msra.mxu1 %v7464_v7  ;;  %v7474_v32 = vpack.c.bf16 %v2932_v28, %v2928_v27  ;;  %v2951_v7 = vld [vmem:[#allocation6 + $0x250] sm:$0xff]  ;;  %v7366_v27 = vpack.c.bf16 %v2970_v2, %v2966_v23  ;;  %v2965_v28 = vld [vmem:[#allocation6 + $0x2c0] sm:$0xff]  ;;  %v3008_v2 = vld [vmem:[#allocation6 + $0x418] sm:$0xff] }
 0x157   : > { %7329 = vmatpush1.bf16.msra.mxu0 %v7328_v35  ;;  %7467 = vmatprep.subr.bf16.mxu1 %v7466_v11  ;;  %v2931_v35 = vld [vmem:[#allocation6 + $0x1b0] sm:$0xff]  ;;  %v2960_v11 = vld [vmem:[#allocation6 + $0x298] sm:$0xff]  ;;  %v7488_v15 = vpack.c.bf16 %v2955_v8, %v2951_v7  ;;  %v7508_v7 = vpack.c.bf16 %v2995_v6, %v2991_v5  ;;  %v3002_v8 = vld [vmem:[#allocation6 + $0x3e8] sm:$0xff] }
 0x158   : > { %7331 = vmatprep.subr.bf16.mxu0 %v7330_v44  ;;  %v7476_v41 = vpack.c.bf16 %v2931_v35, %v2927_v34  ;;  %v2937_v44 = vld [vmem:[#allocation6 + $0x1e0] sm:$0xff]  ;;  %v2978_v34 = vld [vmem:[#allocation6 + $0x328] sm:$0xff]  ;;  %v2980_v35 = vld [vmem:[#allocation6 + $0x338] sm:$0xff] }
 0x159   : > { %v7352_v52 = vpack.c.bf16 %v2937_v44, %v2933_v43  ;;  %v7370_v38 = vpack.c.bf16 %v2978_v34, %v2974_v31  ;;  %v2979_v43 = vld [vmem:[#allocation6 + $0x330] sm:$0xff] }
 0x15a   : > { %7469 = vmatpush1.bf16.msra.mxu1 %v7468_v22  ;;  %v2959_v22 = vld [vmem:[#allocation6 + $0x290] sm:$0xff] }
 0x15b   : > { %7333 = vmatpush1.bf16.msra.mxu0 %v7332_v51  ;;  %7471 = vmatprep.subr.bf16.mxu1 %v7470_v24  ;;  %v2948_v51 = vld [vmem:[#allocation6 + $0x238] sm:$0xff]  ;;  %v7492_v16 = vpack.c.bf16 %v2963_v1, %v2959_v22  ;;  %v2983_v55 = vld [vmem:[#allocation6 + $0x350] sm:$0xff]  ;;  %v3010_v1 = vld [vmem:[#allocation6 + $0x428] sm:$0xff] }
 0x15c   : > { %7335 = vmatprep.subr.bf16.mxu0 %v7334_v57  ;;  %v2943_v57 = vld [vmem:[#allocation6 + $0x210] sm:$0xff]  ;;  %v7482_v58 = vpack.c.bf16 %v2948_v51, %v2944_v50  ;;  %v2968_v24 = vld [vmem:[#allocation6 + $0x2d8] sm:$0xff]  ;;  %v2981_v50 = vld [vmem:[#allocation6 + $0x340] sm:$0xff] }
 0x15d   : > { %v7484_v3 = vpack.c.bf16 %v2947_v59, %v2943_v57  ;;  %v2985_v51 = vld [vmem:[#allocation6 + $0x360] sm:$0xff]  ;;  %v2987_v56 = vld [vmem:[#allocation6 + $0x370] sm:$0xff]  ;;  %v2994_v59 = vld [vmem:[#allocation6 + $0x3a8] sm:$0xff] }
 0x15e   : > { %7473 = vmatpush1.bf16.msra.mxu1 %v7472_v17  ;;  %v2967_v17 = vld [vmem:[#allocation6 + $0x2d0] sm:$0xff]  ;;  %v7504_v57 = vpack.c.bf16 %v2987_v56, %v2983_v55  ;;  %v9470_v55 = vld [vmem:[#allocation6 + $0x4e0] sm:$0xff] }
 0x15f   : > { %7337 = vmatpush1.bf16.msra.mxu0 %v7336_v4  ;;  %7475 = vmatprep.subr.bf16.mxu1 %v7474_v32  ;;  %v7358_v4 = vpack.c.bf16 %v2954_v61, %v2950_v60  ;;  %v2976_v32 = vld [vmem:[#allocation6 + $0x318] sm:$0xff]  ;;  %v7496_v37 = vpack.c.bf16 %v2971_v33, %v2967_v17  ;;  %v9418_v17 = vld [vmem:[%s11946_s3] sm:$0xf]  ;;  %v9424_v31 = vld [vmem:[#allocation6 + $0x410] sm:$0xff]  ;;  %12177 = vst [vmem:[#allocation35_spill] sm:$0xff] %v9470_v55 }
 0x160   : > { %7339 = vmatprep.subr.bf16.mxu0 %v7338_v18  ;;  %v7486_v18 = vpack.c.bf16 %v2956_v63, %v2952_v62  ;;  %v2992_v60 = vld [vmem:[#allocation6 + $0x398] sm:$0xff]  ;;  %v2989_v62 = vld [vmem:[#allocation6 + $0x380] sm:$0xff]  ;;  %v9426_v34 = vld [vmem:[#allocation6 + $0x430] sm:$0xff] }
 0x161   : > { %v2993_v63 = vld [vmem:[#allocation6 + $0x3a0] sm:$0xff]  ;;  %v9570_v55 = vld [vmem:[#allocation6 + $0x590] sm:$0xff] }
 0x162   : > { %7477 = vmatpush1.bf16.msra.mxu1 %v7476_v41  ;;  %v7498_v41 = vpack.c.bf16 %v2980_v35, %v2976_v32  ;;  %v9422_v33 = vld [vmem:[#allocation6 + $0x420] sm:$0xff]  ;;  %v9428_v32 = vld [vmem:[#allocation6 + $0x448] sm:$0xff]  ;;  %12206 = vst [vmem:[#allocation64_spill] sm:$0xff] %v9570_v55  ;;  %v9694_v55 = vld [vmem:[#allocation6 + $0x6d0] sm:$0xff] }
 0x163   : > { %7341 = vmatpush1.bf16.msra.mxu0 %v7340_v21  ;;  %7479 = vmatprep.subr.bf16.mxu1 %v7478_v46  ;;  %v2961_v21 = vld [vmem:[#allocation6 + $0x2a0] sm:$0xff]  ;;  %v2982_v46 = vld [vmem:[#allocation6 + $0x348] sm:$0xff]  ;;  %12246 = vst [vmem:[#allocation104_spill] sm:$0xff] %v9694_v55 }
 0x164   : > { %7343 = vmatprep.subr.bf16.mxu0 %v7342_v13  ;;  %v7490_v13 = vpack.c.bf16 %v2964_v12, %v2960_v11  ;;  %v7364_v26 = vpack.c.bf16 %v2961_v21, %v2957_v20  ;;  %v7374_v49 = vpack.c.bf16 %v2986_v47, %v2982_v46  ;;  %v2997_v11 = vld [vmem:[#allocation6 + $0x3c0] sm:$0xff]  ;;  %v2999_v20 = vld [vmem:[#allocation6 + $0x3d0] sm:$0xff]  ;;  %v9430_v35 = vld [vmem:[#allocation6 + $0x468] sm:$0xff] }
 0x165   : > { %v3001_v12 = vld [vmem:[#allocation6 + $0x3e0] sm:$0xff]  ;;  %v3003_v21 = vld [vmem:[#allocation6 + $0x3f0] sm:$0xff] }
 0x166   : > { %7481 = vmatpush1.bf16.msra.mxu1 %v7480_v53  ;;  %v7376_v53 = vpack.c.bf16 %v2985_v51, %v2981_v50  ;;  %v7512_v22 = vpack.c.bf16 %v3003_v21, %v2999_v20  ;;  %v9460_v50 = vld [vmem:[#allocation6 + $0x490] sm:$0xff]  ;;  %v9522_v20 = vld [vmem:[#allocation6 + $0x540] sm:$0xff] }
 0x167   : > { %7345 = vmatpush1.bf16.msra.mxu0 %v7344_v29  ;;  %7483 = vmatprep.subr.bf16.mxu1 %v7482_v58  ;;  %v2969_v29 = vld [vmem:[#allocation6 + $0x2e0] sm:$0xff]  ;;  %v2990_v58 = vld [vmem:[#allocation6 + $0x388] sm:$0xff]  ;;  %12172 = vst [vmem:[#allocation30_spill] sm:$0xff] %v9460_v50  ;;  %v9462_v51 = vld [vmem:[#allocation6 + $0x4b0] sm:$0xff] }
 0x168   : > { %7347 = vmatprep.subr.bf16.mxu0 %v7346_v30  ;;  %v7494_v30 = vpack.c.bf16 %v2972_v25, %v2968_v24  ;;  %v7368_v36 = vpack.c.bf16 %v2969_v29, %v2965_v28  ;;  %v7378_v61 = vpack.c.bf16 %v2994_v59, %v2990_v58  ;;  %v3012_v24 = vld [vmem:[#allocation6 + $0x438] sm:$0xff]  ;;  %12173 = vst [vmem:[#allocation31_spill] sm:$0xff] %v9462_v51  ;;  %v9478_v59 = vld [vmem:[#allocation6 + $0x4d0] sm:$0xff]  ;;  %12194 = vst [vmem:[#allocation52_spill] sm:$0xff] %v9522_v20 }
 0x169   : > { %v7514_v25 = vpack.c.bf16 %v3012_v24, %v3008_v2  ;;  %v9476_v58 = vld [vmem:[#allocation6 + $0x4f8] sm:$0xff]  ;;  %12180 = vst [vmem:[#allocation38_spill] sm:$0xff] %v9478_v59  ;;  %v9524_v21 = vld [vmem:[#allocation6 + $0x560] sm:$0xff]  ;;  %v9624_v50 = vld [vmem:[#allocation6 + $0x648] sm:$0xff] }
 0x16a   : > { %7485 = vmatpush1.bf16.msra.mxu1 %v7484_v3  ;;  %v7380_v3 = vpack.c.bf16 %v2993_v63, %v2989_v62  ;;  %12179 = vst [vmem:[#allocation37_spill] sm:$0xff] %v9476_v58  ;;  %v9484_v62 = vld [vmem:[#allocation6 + $0x528] sm:$0xff]  ;;  %v9486_v63 = vld [vmem:[#allocation6 + $0x500] sm:$0xff]  ;;  %12195 = vst [vmem:[#allocation53_spill] sm:$0xff] %v9524_v21 }
 0x16b   : > { %7349 = vmatpush1.bf16.msra.mxu0 %v7348_v40  ;;  %7487 = vmatprep.subr.bf16.mxu1 %v7486_v18  ;;  %v2977_v40 = vld [vmem:[#allocation6 + $0x320] sm:$0xff]  ;;  %v2998_v18 = vld [vmem:[#allocation6 + $0x3c8] sm:$0xff]  ;;  %12183 = vst [vmem:[#allocation41_spill] sm:$0xff] %v9484_v62  ;;  %12184 = vst [vmem:[#allocation42_spill] sm:$0xff] %v9486_v63 }
 0x16c   : > { %7351 = vmatprep.subr.bf16.mxu0 %v7350_v42  ;;  %v2975_v42 = vld [vmem:[#allocation6 + $0x310] sm:$0xff]  ;;  %v7372_v44 = vpack.c.bf16 %v2977_v40, %v2973_v39  ;;  %v7382_v10 = vpack.c.bf16 %v3002_v8, %v2998_v18  ;;  %v9438_v39 = vld [vmem:[#allocation6 + $0x478] sm:$0xff]  ;;  %v9582_v63 = vld [vmem:[#allocation6 + $0x5c0] sm:$0xff]  ;;  %12224 = vst [vmem:[#allocation82_spill] sm:$0xff] %v9624_v50 }
 0x16d   : > { %v7500_v45 = vpack.c.bf16 %v2979_v43, %v2975_v42  ;;  %v9440_v40 = vld [vmem:[#allocation6 + $0x450] sm:$0xff]  ;;  %v9444_v42 = vld [vmem:[#allocation6 + $0x488] sm:$0xff]  ;;  %v9504_v18 = vld [vmem:[#allocation6 + $0x538] sm:$0xff]  ;;  %12210 = vst [vmem:[#allocation68_spill] sm:$0xff] %v9582_v63 }
 0x16e   : > { %7489 = vmatpush1.bf16.msra.mxu1 %v7488_v15  ;;  %v7384_v15 = vpack.c.bf16 %v3001_v12, %v2997_v11  ;;  %12162 = vst [vmem:[#allocation20_spill] sm:$0xff] %v9440_v40  ;;  %12164 = vst [vmem:[#allocation22_spill] sm:$0xff] %v9444_v42  ;;  %v9446_v43 = vld [vmem:[#allocation6 + $0x4a8] sm:$0xff]  ;;  %v9506_v8 = vld [vmem:[#allocation6 + $0x510] sm:$0xff] }
 0x16f   : > { %7353 = vmatpush1.bf16.msra.mxu0 %v7352_v52  ;;  %7491 = vmatprep.subr.bf16.mxu1 %v7490_v13  ;;  %v2988_v52 = vld [vmem:[#allocation6 + $0x378] sm:$0xff]  ;;  %v3006_v13 = vld [vmem:[#allocation6 + $0x408] sm:$0xff]  ;;  %12165 = vst [vmem:[#allocation23_spill] sm:$0xff] %v9446_v43  ;;  %12189 = vst [vmem:[#allocation47_spill] sm:$0xff] %v9504_v18 }
 0x170   : > { %7355 = vmatprep.subr.bf16.mxu0 %v7354_v54  ;;  %v7502_v54 = vpack.c.bf16 %v2988_v52, %v2984_v48  ;;  %v7386_v23 = vpack.c.bf16 %v3010_v1, %v3006_v13  ;;  %v9456_v48 = vld [vmem:[#allocation6 + $0x498] sm:$0xff]  ;;  %v9464_v52 = vld [vmem:[#allocation6 + $0x4c8] sm:$0xff]  ;;  %12190 = vst [vmem:[#allocation48_spill] sm:$0xff] %v9506_v8  ;;  %v9602_v18 = vld [vmem:[#allocation6 + $0x600] sm:$0xff] }
 0x171   : > { %12170 = vst [vmem:[#allocation28_spill] sm:$0xff] %v9456_v48  ;;  %12174 = vst [vmem:[#allocation32_spill] sm:$0xff] %v9464_v52  ;;  %v9534_v2 = vld [vmem:[#allocation6 + $0x558] sm:$0xff]  ;;  %v9550_v1 = vld [vmem:[#allocation6 + $0x588] sm:$0xff] }
 0x172   : > { %7493 = vmatpush1.bf16.msra.mxu1 %v7492_v16  ;;  %12196 = vst [vmem:[#allocation54_spill] sm:$0xff] %v9534_v2  ;;  %v9536_v24 = vld [vmem:[#allocation6 + $0x578] sm:$0xff]  ;;  %12200 = vst [vmem:[#allocation58_spill] sm:$0xff] %v9550_v1  ;;  %v9552_v13 = vld [vmem:[#allocation6 + $0x5a8] sm:$0xff] }
 0x173   : > { %7357 = vmatpush1.bf16.msra.mxu0 %v7356_v0  ;;  %7495 = vmatprep.subr.bf16.mxu1 %v7494_v30  ;;  %v2996_v0 = vld [vmem:[#allocation6 + $0x3b8] sm:$0xff]  ;;  %v9420_v30 = vld [vmem:[#allocation6 + $0x400] sm:$0xff]  ;;  %12197 = vst [vmem:[#allocation55_spill] sm:$0xff] %v9536_v24  ;;  %12201 = vst [vmem:[#allocation59_spill] sm:$0xff] %v9552_v13 }
 0x174   : > { %7359 = vmatprep.subr.bf16.mxu0 %v7358_v4  ;;  %v7506_v4 = vpack.c.bf16 %v2996_v0, %v2992_v60  ;;  %v9480_v60 = vld [vmem:[#allocation6 + $0x4f0] sm:$0xff]  ;;  %v9488_v0 = vld [vmem:[#allocation6 + $0x520] sm:$0xff]  ;;  %v9598_v8 = vld [vmem:[#allocation6 + $0x608] sm:$0xff]  ;;  %12218 = vst [vmem:[#allocation76_spill] sm:$0xff] %v9602_v18 }
 0x175   : > { %12181 = vst [vmem:[#allocation39_spill] sm:$0xff] %v9480_v60  ;;  %12185 = vst [vmem:[#allocation43_spill] sm:$0xff] %v9488_v0  ;;  %v9572_v52 = vld [vmem:[#allocation6 + $0x5b0] sm:$0xff]  ;;  %v9584_v0 = vld [vmem:[#allocation6 + $0x5e0] sm:$0xff] }
 0x176   : > { %7497 = vmatpush1.bf16.msra.mxu1 %v7496_v37  ;;  %v9434_v37 = vld [vmem:[#allocation6 + $0x460] sm:$0xff]  ;;  %12207 = vst [vmem:[#allocation65_spill] sm:$0xff] %v9572_v52  ;;  %12211 = vst [vmem:[#allocation69_spill] sm:$0xff] %v9584_v0  ;;  %v9616_v21 = vld [vmem:[#allocation6 + $0x618] sm:$0xff] }
 0x177   : > { %7361 = vmatpush1.bf16.msra.mxu0 %v7360_v14  ;;  %7499 = vmatprep.subr.bf16.mxu1 %v7498_v41  ;;  %v3004_v14 = vld [vmem:[#allocation6 + $0x3f8] sm:$0xff]  ;;  %12161 = vst [vmem:[#allocation19_spill] sm:$0xff] %v9434_v37  ;;  %v9442_v41 = vld [vmem:[#allocation6 + $0x470] sm:$0xff]  ;;  %12216 = vst [vmem:[#allocation74_spill] sm:$0xff] %v9598_v8 }
 0x178   : > { %7363 = vmatprep.subr.bf16.mxu0 %v7362_v19  ;;  %v7510_v19 = vpack.c.bf16 %v3004_v14, %v3000_v9  ;;  %12163 = vst [vmem:[#allocation21_spill] sm:$0xff] %v9442_v41  ;;  %v9508_v9 = vld [vmem:[#allocation6 + $0x530] sm:$0xff]  ;;  %v9554_v14 = vld [vmem:[#allocation6 + $0x580] sm:$0xff]  ;;  %12220 = vst [vmem:[#allocation78_spill] sm:$0xff] %v9616_v21 }
 0x179   : > { %12191 = vst [vmem:[#allocation49_spill] sm:$0xff] %v9508_v9  ;;  %12202 = vst [vmem:[#allocation60_spill] sm:$0xff] %v9554_v14  ;;  %v9600_v9 = vld [vmem:[#allocation6 + $0x628] sm:$0xff]  ;;  %v9622_v60 = vld [vmem:[#allocation6 + $0x630] sm:$0xff] }
 0x17a   : > { %7501 = vmatpush1.bf16.msra.mxu1 %v7500_v45  ;;  %v9450_v45 = vld [vmem:[#allocation6 + $0x4a0] sm:$0xff]  ;;  %12217 = vst [vmem:[#allocation75_spill] sm:$0xff] %v9600_v9  ;;  %12223 = vst [vmem:[#allocation81_spill] sm:$0xff] %v9622_v60  ;;  %v9642_v2 = vld [vmem:[#allocation6 + $0x658] sm:$0xff] }
 0x17b   : > { %7365 = vmatpush1.bf16.msra.mxu0 %v7364_v26  ;;  %7503 = vmatprep.subr.bf16.mxu1 %v7502_v54  ;;  %v9029_v26 = vmov 1966171168   ;;  %12167 = vst [vmem:[#allocation25_spill] sm:$0xff] %v9450_v45  ;;  %v9468_v54 = vld [vmem:[#allocation6 + $0x4c0] sm:$0xff]  ;;  %12228 = vst [vmem:[#allocation86_spill] sm:$0xff] %v9642_v2  ;;  %v9644_v24 = vld [vmem:[#allocation6 + $0x678] sm:$0xff] }
 0x17c   : > { %7367 = vmatprep.subr.bf16.mxu0 %v7366_v27  ;;  %v1292_v16 = vunpack.c.l.s4 %v9029_v26  ;;  %v1294_v27 = vlaneseq  ;;  %12176 = vst [vmem:[#allocation34_spill] sm:$0xff] %v9468_v54  ;;  %v9540_v26 = vld [vmem:[#allocation6 + $0x570] sm:$0xff]  ;;  %v9568_v54 = vld [vmem:[#allocation6 + $0x5b8] sm:$0xff]  ;;  %v9630_v51 = vld [vmem:[#allocation6 + $0x660] sm:$0xff] }
 0x17d   : > { %12199 = vst [vmem:[#allocation57_spill] sm:$0xff] %v9540_v26  ;;  %12205 = vst [vmem:[#allocation63_spill] sm:$0xff] %v9568_v54  ;;  %v9646_v48 = vld [vmem:[#allocation6 + $0x650] sm:$0xff]  ;;  %v9656_v45 = vld [vmem:[#allocation6 + $0x6a0] sm:$0xff] }
 0x17e   : > { %7505 = vmatpush1.bf16.msra.mxu1 %v7504_v57  ;;  %v1293_v28 = vunpack.c.0.s8 %v1292_v16  ;;  %v1295_v29 = vshrl.u32 %v1294_v27, 7  ;;  %v9474_v57 = vld [vmem:[#allocation6 + $0x4d8] sm:$0xff]  ;;  %12227 = vst [vmem:[#allocation85_spill] sm:$0xff] %v9630_v51  ;;  %12229 = vst [vmem:[#allocation87_spill] sm:$0xff] %v9644_v24  ;;  %v9670_v42 = vld [vmem:[#allocation6 + $0x690] sm:$0xff] }
 0x17f   : > { %7369 = vmatpush1.bf16.msra.mxu0 %v7368_v36  ;;  %7507 = vmatprep.subr.bf16.mxu1 %v7506_v4  ;;  %v9432_v36 = vld [vmem:[#allocation6 + $0x440] sm:$0xff]  ;;  %12178 = vst [vmem:[#allocation36_spill] sm:$0xff] %v9474_v57  ;;  %12230 = vst [vmem:[#allocation88_spill] sm:$0xff] %v9646_v48  ;;  %v9666_v1 = vld [vmem:[#allocation6 + $0x698] sm:$0xff] }
 0x180   : > { %7371 = vmatprep.subr.bf16.mxu0 %v7370_v38  ;;  %12160 = vst [vmem:[#allocation18_spill] sm:$0xff] %v9432_v36  ;;  %v9436_v38 = vld [vmem:[#allocation6 + $0x458] sm:$0xff]  ;;  %v9452_v46 = vsub.s32 0, %v1295_v29  ;;  %v9454_v47 = vsub.s32 1, %v1295_v29  ;;  %v9472_v56 = vsub.s32 %v1293_v28, %v1295_v29  ;;  %v9492_v4 = vsub.s32 3, %v1295_v29  ;;  %12235 = vst [vmem:[#allocation93_spill] sm:$0xff] %v9656_v45 }
 0x181   : > { %v9592_v28 = vld [vmem:[#allocation6 + $0x5f8] sm:$0xff]  ;;  %12236 = vst [vmem:[#allocation94_spill] sm:$0xff] %v9666_v1  ;;  %12238 = vst [vmem:[#allocation96_spill] sm:$0xff] %v9670_v42  ;;  %v9672_v43 = vld [vmem:[#allocation6 + $0x6b0] sm:$0xff] }
 0x182   : > { %7509 = vmatpush1.bf16.msra.mxu1 %v7508_v7  ;;  %12168 = vst [vmem:[#allocation26_spill] sm:$0xff] %v9452_v46  ;;  %12169 = vst [vmem:[#allocation27_spill] sm:$0xff] %v9454_v47  ;;  %v9496_v5 = vrot.slane %v9418_v17, %v9454_v47  ;;  %v9500_v6 = vrot.slane %v9418_v17, %v9452_v46  ;;  %v9502_v7 = vld [vmem:[#allocation6 + $0x518] sm:$0xff]  ;;  %v9674_v40 = vld [vmem:[#allocation6 + $0x6c8] sm:$0xff]  ;;  %v9782_v9 = vrot.slane %v9418_v17, %v9492_v4 }
 0x183   : > { %7373 = vmatpush1.bf16.msra.mxu0 %v7372_v44  ;;  %7511 = vmatprep.subr.bf16.mxu1 %v7510_v19  ;;  %v9448_v44 = vld [vmem:[#allocation6 + $0x480] sm:$0xff]  ;;  %12187 = vst [vmem:[#allocation45_spill] sm:$0xff] %v9492_v4  ;;  %12188 = vst [vmem:[#allocation46_spill] sm:$0xff] %v9502_v7  ;;  %v9520_v19 = vld [vmem:[#allocation6 + $0x568] sm:$0xff] }
 0x184   : > { %7375 = vmatprep.subr.bf16.mxu0 %v7374_v49  ;;  %12166 = vst [vmem:[#allocation24_spill] sm:$0xff] %v9448_v44  ;;  %v9458_v49 = vld [vmem:[#allocation6 + $0x4b8] sm:$0xff]  ;;  %12193 = vst [vmem:[#allocation51_spill] sm:$0xff] %v9520_v19  ;;  %v9594_v7 = vld [vmem:[#allocation6 + $0x5d0] sm:$0xff] }
 0x185   : > { %12171 = vst [vmem:[#allocation29_spill] sm:$0xff] %v9458_v49  ;;  %12213 = vst [vmem:[#allocation71_spill] sm:$0xff] %v9592_v28  ;;  %v9620_v19 = vld [vmem:[#allocation6 + $0x610] sm:$0xff]  ;;  %v9650_v44 = vld [vmem:[#allocation6 + $0x688] sm:$0xff] }
 0x186   : > { %7513 = vmatpush1.bf16.msra.mxu1 %v7512_v22  ;;  %v9556_v22 = vld [vmem:[#allocation6 + $0x5a0] sm:$0xff]  ;;  %12214 = vst [vmem:[#allocation72_spill] sm:$0xff] %v9594_v7  ;;  %12222 = vst [vmem:[#allocation80_spill] sm:$0xff] %v9620_v19  ;;  %v9648_v49 = vld [vmem:[#allocation6 + $0x670] sm:$0xff] }
 0x187   : > { %7377 = vmatpush1.bf16.msra.mxu0 %v7376_v53  ;;  %7515 = vmatprep.subr.bf16.mxu1 %v7514_v25  ;;  %v9466_v53 = vld [vmem:[#allocation6 + $0x4e8] sm:$0xff]  ;;  %v9538_v25 = vld [vmem:[#allocation6 + $0x550] sm:$0xff]  ;;  %12203 = vst [vmem:[#allocation61_spill] sm:$0xff] %v9556_v22  ;;  %12231 = vst [vmem:[#allocation89_spill] sm:$0xff] %v9648_v49 }
 0x188   : > { %7379 = vmatprep.subr.bf16.mxu0 %v7378_v61  ;;  %12175 = vst [vmem:[#allocation33_spill] sm:$0xff] %v9466_v53  ;;  %v9482_v61 = vld [vmem:[#allocation6 + $0x508] sm:$0xff]  ;;  %12198 = vst [vmem:[#allocation56_spill] sm:$0xff] %v9538_v25  ;;  %v9668_v13 = vld [vmem:[#allocation6 + $0x6b8] sm:$0xff] }
 0x189   : > { %12182 = vst [vmem:[#allocation40_spill] sm:$0xff] %v9482_v61  ;;  %v9574_v53 = vld [vmem:[#allocation6 + $0x5c8] sm:$0xff]  ;;  %12232 = vst [vmem:[#allocation90_spill] sm:$0xff] %v9650_v44  ;;  %v9680_v26 = vld [vmem:[#allocation6 + $0x6e0] sm:$0xff] }
 0x18a   : > { %12208 = vst [vmem:[#allocation66_spill] sm:$0xff] %v9574_v53  ;;  %12237 = vst [vmem:[#allocation95_spill] sm:$0xff] %v9668_v13  ;;  %v9676_v25 = vld [vmem:[#allocation6 + $0x6e8] sm:$0xff]  ;;  %v9690_v53 = vld [vmem:[#allocation6 + $0x6d8] sm:$0xff] }
 0x18b   : > { %7381 = vmatpush1.bf16.msra.mxu0 %v7380_v3  ;;  %v9490_v3 = vsub.s32 2, %v1295_v29  ;;  %v9596_v29 = vld [vmem:[#allocation6 + $0x5f0] sm:$0xff]  ;;  %12239 = vst [vmem:[#allocation97_spill] sm:$0xff] %v9672_v43  ;;  %12240 = vst [vmem:[#allocation98_spill] sm:$0xff] %v9674_v40  ;;  %v9708_v41 = vld [vmem:[#allocation6 + $0x728] sm:$0xff] }
 0x18c   : > { %7383 = vmatprep.subr.bf16.mxu0 %v7382_v10  ;;  %v9566_v10 = vld [vmem:[#allocation6 + $0x598] sm:$0xff]  ;;  %12215 = vst [vmem:[#allocation73_spill] sm:$0xff] %v9596_v29  ;;  %12241 = vst [vmem:[#allocation99_spill] sm:$0xff] %v9676_v25  ;;  %v9696_v52 = vld [vmem:[#allocation6 + $0x6f0] sm:$0xff] }
 0x18d   : > { %12186 = vst [vmem:[#allocation44_spill] sm:$0xff] %v9490_v3  ;;  %12204 = vst [vmem:[#allocation62_spill] sm:$0xff] %v9566_v10  ;;  %v9678_v10 = vld [vmem:[#allocation6 + $0x6c0] sm:$0xff]  ;;  %v9722_v18 = vld [vmem:[#allocation6 + $0x718] sm:$0xff]  ;;  %v9786_v54 = vrot.slane %v9418_v17, %v9490_v3 }
 0x18e   : > { %12242 = vst [vmem:[#allocation100_spill] sm:$0xff] %v9678_v10  ;;  %12243 = vst [vmem:[#allocation101_spill] sm:$0xff] %v9680_v26  ;;  %v9710_v36 = vld [vmem:[#allocation6 + $0x700] sm:$0xff]  ;;  %v9726_v8 = vld [vmem:[#allocation6 + $0x710] sm:$0xff] }
 0x18f   : > { %7385 = vmatpush1.bf16.msra.mxu0 %v7384_v15  ;;  %v9518_v15 = vld [vmem:[#allocation6 + $0x548] sm:$0xff]  ;;  %12244 = vst [vmem:[#allocation102_spill] sm:$0xff] %v9690_v53  ;;  %12247 = vst [vmem:[#allocation105_spill] sm:$0xff] %v9696_v52  ;;  %v9712_v37 = vld [vmem:[#allocation6 + $0x720] sm:$0xff] }
 0x190   : > { %7387 = vmatprep.subr.bf16.mxu0 %v7386_v23  ;;  %12192 = vst [vmem:[#allocation50_spill] sm:$0xff] %v9518_v15  ;;  %v9580_v23 = vld [vmem:[#allocation6 + $0x5e8] sm:$0xff]  ;;  %v9618_v15 = vld [vmem:[#allocation6 + $0x638] sm:$0xff]  ;;  %12249 = vst [vmem:[#allocation107_spill] sm:$0xff] %v9708_v41 }
 0x191   : > { %12209 = vst [vmem:[#allocation67_spill] sm:$0xff] %v9580_v23  ;;  %12221 = vst [vmem:[#allocation79_spill] sm:$0xff] %v9618_v15  ;;  %v9692_v23 = vld [vmem:[#allocation6 + $0x6f8] sm:$0xff]  ;;  %v9736_v50 = vld [vmem:[#allocation6 + $0x730] sm:$0xff] }
 0x192   : > { %12245 = vst [vmem:[#allocation103_spill] sm:$0xff] %v9692_v23  ;;  %12250 = vst [vmem:[#allocation108_spill] sm:$0xff] %v9710_v36  ;;  %v9750_v44 = vld [vmem:[#allocation6 + $0x740] sm:$0xff]  ;;  %v9766_v40 = vld [vmem:[#allocation6 + $0x778] sm:$0xff] }
 0x193   : > { %12251 = vst [vmem:[#allocation109_spill] sm:$0xff] %v9712_v37  ;;  %12252 = vst [vmem:[#allocation110_spill] sm:$0xff] %v9722_v18  ;;  %v9770_v10 = vld [vmem:[#allocation6 + $0x770] sm:$0xff]  ;;  %v9778_v25 = vld [vmem:[#allocation6 + $0x7a8] sm:$0xff] }
 0x194   : > { %12254 = vst [vmem:[#allocation112_spill] sm:$0xff] %v9726_v8  ;;  %12255 = vst [vmem:[#allocation113_spill] sm:$0xff] %v9736_v50  ;;  %v9868_v50 = vld [vmem:[#allocation6 + $0x790] sm:$0xff]  ;;  %v9888_v42 = vld [vmem:[#allocation6 + $0x7e8] sm:$0xff] }
 0x195   : > { %12258 = vst [vmem:[#allocation116_spill] sm:$0xff] %v9750_v44  ;;  %12263 = vst [vmem:[#allocation121_spill] sm:$0xff] %v9766_v40 }
 0x196   : > { %12265 = vst [vmem:[#allocation123_spill] sm:$0xff] %v9770_v10  ;;  %12267 = vst [vmem:[#allocation125_spill] sm:$0xff] %v9778_v25 }
 0x197   : > { %12268 = vst [vmem:[#allocation126_spill] sm:$0xff] %v9782_v9  ;;  %12269 = vst [vmem:[#allocation127_spill] sm:$0xff] %v9786_v54  ;;  %v9856_v9 = vld [vmem:[#allocation6 + $0x7a0] sm:$0xff] }
 0x198   : > { %12273 = vst [vmem:[#allocation131_spill] sm:$0xff] %v9856_v9  ;;  %12276 = vst [vmem:[#allocation134_spill] sm:$0xff] %v9868_v50 }
 0x199   : > { %12279 = vst [vmem:[#allocation137_spill] sm:$0xff] %v9888_v42 }
 0x1da   : > { %v853_v16 = vpop.f32.mrb[0].mxu0 }
 0x1db   : > { %v942_v12 = vpop.f32.mrb[0].mxu1  ;;  %v855_v11 = vpop.f32.mrb[1].mxu0 }
 0x1dc   : > { %v1287_v27 = vcombine.low %v853_v16, %v855_v11  ;;  %v1288_v57 = vcombine.high %v853_v16, %v855_v11  ;;  %v944_v58 = vpop.f32.mrb[1].mxu1  ;;  %v9590_v16 = vld [vmem:[#allocation6 + $0x5d8] sm:$0xff] }
 0x1dd   : > { %v1289_v61 = vcombine.low %v942_v12, %v944_v58  ;;  %v1290_v62 = vcombine.high %v942_v12, %v944_v58  ;;  %12212 = vst [vmem:[#allocation70_spill] sm:$0xff] %v9590_v16  ;;  %v9604_v58 = vld [vmem:[#allocation6 + $0x620] sm:$0xff] }
 0x1de   : > { %12219 = vst [vmem:[#allocation77_spill] sm:$0xff] %v9604_v58  ;;  %v9607_v12 = vrot.slane %v1287_v27, %v9472_v56  ;;  %v9610_v11 = vrot.slane %v1288_v57, %v9472_v56  ;;  %v9626_v27 = vld [vmem:[#allocation6 + $0x668] sm:$0xff]  ;;  %v9628_v57 = vld [vmem:[#allocation6 + $0x640] sm:$0xff]  ;;  %v9724_v58 = vld [vmem:[#allocation6 + $0x738] sm:$0xff]  ;;  %v859_v54 = vpop.f32.mrb[2].mxu0 }
 0x1df   : > { %12225 = vst [vmem:[#allocation83_spill] sm:$0xff] %v9626_v27  ;;  %12226 = vst [vmem:[#allocation84_spill] sm:$0xff] %v9628_v57  ;;  %v9633_v59 = vrot.slane %v1289_v61, %v9472_v56  ;;  %v9636_v20 = vrot.slane %v1290_v62, %v9472_v56  ;;  %v9652_v61 = vld [vmem:[#allocation6 + $0x6a8] sm:$0xff]  ;;  %v9654_v62 = vld [vmem:[#allocation6 + $0x680] sm:$0xff]  ;;  %v948_v36 = vpop.f32.mrb[2].mxu1  ;;  %v861_v44 = vpop.f32.mrb[3].mxu0 }
 0x1e0   : > { %12233 = vst [vmem:[#allocation91_spill] sm:$0xff] %v9652_v61  ;;  %12234 = vst [vmem:[#allocation92_spill] sm:$0xff] %v9654_v62  ;;  %v9740_v57 = vld [vmem:[#allocation6 + $0x768] sm:$0xff]  ;;  %v9754_v62 = vld [vmem:[#allocation6 + $0x758] sm:$0xff]  ;;  %v1356_v10 = vcombine.high %v859_v54, %v861_v44 }
 0x1e1   : > { %v1319_v14 = vcombine.low %v9607_v12, %v9633_v59  ;;  %v1320_v22 = vcombine.high %v9607_v12, %v9633_v59  ;;  %v1321_v63 = vcombine.low %v9610_v11, %v9636_v20  ;;  %v1322_v0 = vcombine.high %v9610_v11, %v9636_v20  ;;  %v9706_v11 = vld [vmem:[#allocation6 + $0x708] sm:$0xff]  ;;  %12253 = vst [vmem:[#allocation111_spill] sm:$0xff] %v9724_v58  ;;  %v9752_v12 = vld [vmem:[#allocation6 + $0x760] sm:$0xff]  ;;  %v9768_v59 = vld [vmem:[#allocation6 + $0x750] sm:$0xff] }
 0x1e2   : > { %12248 = vst [vmem:[#allocation106_spill] sm:$0xff] %v9706_v11  ;;  %v9738_v20 = vld [vmem:[#allocation6 + $0x748] sm:$0xff]  ;;  %12257 = vst [vmem:[#allocation115_spill] sm:$0xff] %v9740_v57 }
 0x1e3   : > { %12256 = vst [vmem:[#allocation114_spill] sm:$0xff] %v9738_v20  ;;  %12259 = vst [vmem:[#allocation117_spill] sm:$0xff] %v9752_v12  ;;  %v9757_v45 = vrot.slane %v1319_v14, %v9472_v56  ;;  %v9760_v51 = vrot.slane %v1320_v22, %v9472_v56  ;;  %v9776_v22 = vld [vmem:[#allocation6 + $0x788] sm:$0xff]  ;;  %v9789_v55 = vrot.slane %v1321_v63, %v9472_v56  ;;  %v9854_v12 = vld [vmem:[#allocation6 + $0x780] sm:$0xff] }
 0x1e4   : > { %12260 = vst [vmem:[#allocation118_spill] sm:$0xff] %v9754_v62  ;;  %12264 = vst [vmem:[#allocation122_spill] sm:$0xff] %v9768_v59  ;;  %v9798_v37 = vrot.slane %v1322_v0, %v9472_v56  ;;  %v1355_v59 = vcombine.low %v859_v54, %v861_v44  ;;  %v950_v62 = vpop.f32.mrb[3].mxu1  ;;  %v9838_v44 = vrot.slane %v1356_v10, %v9472_v56  ;;  %v865_v54 = vpop.f32.mrb[4].mxu0  ;;  %v9858_v20 = vld [vmem:[#allocation6 + $0x798] sm:$0xff]  ;;  %v9870_v10 = vld [vmem:[#allocation6 + $0x7b0] sm:$0xff] }
 0x1e5   : > { %12261 = vst [vmem:[#allocation119_spill] sm:$0xff] %v9757_v45  ;;  %12262 = vst [vmem:[#allocation120_spill] sm:$0xff] %v9760_v51  ;;  %v9812_v0 = vcombine.high %v9757_v45, %v9757_v45  ;;  %v9824_v14 = vcombine.high %v9760_v51, %v9760_v51  ;;  %v1357_v17 = vcombine.low %v948_v36, %v950_v62  ;;  %v954_v26 = vpop.f32.mrb[4].mxu1  ;;  %v867_v63 = vpop.f32.mrb[5].mxu0  ;;  %v9880_v58 = vld [vmem:[#allocation6 + $0x7c8] sm:$0xff] }
 0x1e6   : > { %12266 = vst [vmem:[#allocation124_spill] sm:$0xff] %v9776_v22  ;;  %v1358_v25 = vcombine.high %v948_v36, %v950_v62  ;;  %v9835_v40 = vrot.slane %v1355_v59, %v9472_v56  ;;  %12272 = vst [vmem:[#allocation130_spill] sm:$0xff] %v9854_v12  ;;  %v1423_v22 = vcombine.low %v865_v54, %v867_v63  ;;  %v956_v57 = vpop.f32.mrb[5].mxu1  ;;  %v9866_v59 = vld [vmem:[#allocation6 + $0x7b8] sm:$0xff]  ;;  %v871_v23 = vpop.f32.mrb[6].mxu0 }
 0x1e7   : > { %12270 = vst [vmem:[#allocation128_spill] sm:$0xff] %v9812_v0  ;;  %12271 = vst [vmem:[#allocation129_spill] sm:$0xff] %v9824_v14  ;;  %v9845_v36 = vrot.slane %v1357_v17, %v9472_v56  ;;  %v1424_v17 = vcombine.high %v865_v54, %v867_v63  ;;  %v9864_v8 = vcombine.high %v9789_v55, %v9789_v55  ;;  %v960_v43 = vpop.f32.mrb[6].mxu1  ;;  %v873_v1 = vpop.f32.mrb[7].mxu0  ;;  %v9910_v12 = vld [vmem:[#allocation6 + $0x7d8] sm:$0xff] }
 0x1e8   : > { %v9848_v62 = vrot.slane %v1358_v25, %v9472_v56  ;;  %12274 = vst [vmem:[#allocation132_spill] sm:$0xff] %v9858_v20  ;;  %12275 = vst [vmem:[#allocation133_spill] sm:$0xff] %v9866_v59  ;;  %v9883_v11 = vrot.slane %v1423_v22, %v9472_v56  ;;  %v1425_v52 = vcombine.low %v954_v26, %v956_v57  ;;  %v962_v48 = vpop.f32.mrb[7].mxu1 }
 0x1e9   : > { %12277 = vst [vmem:[#allocation135_spill] sm:$0xff] %v9870_v10  ;;  %v1387_v18 = vcombine.low %v9835_v40, %v9845_v36  ;;  %v1388_v63 = vcombine.high %v9835_v40, %v9845_v36  ;;  %12278 = vst [vmem:[#allocation136_spill] sm:$0xff] %v9880_v58  ;;  %v9886_v41 = vrot.slane %v1424_v17, %v9472_v56  ;;  %v9890_v40 = vld [vmem:[#allocation6 + $0x7c0] sm:$0xff] }
 0x1ea   : > { %v1389_v54 = vcombine.low %v9838_v44, %v9848_v62  ;;  %v1390_v25 = vcombine.high %v9838_v44, %v9848_v62  ;;  %v1426_v53 = vcombine.high %v954_v26, %v956_v57  ;;  %12280 = vst [vmem:[#allocation138_spill] sm:$0xff] %v9890_v40  ;;  %v9892_v36 = vld [vmem:[#allocation6 + $0x7e0] sm:$0xff]  ;;  %v9896_v44 = vcombine.high %v9798_v37, %v9798_v37  ;;  %v9912_v62 = vld [vmem:[#allocation6 + $0x7f8] sm:$0xff] }
 0x1eb   : > { %12281 = vst [vmem:[#allocation139_spill] sm:$0xff] %v9892_v36  ;;  %v1447_v57 = vrot.slane %v1425_v52, %v9472_v56  ;;  %v1491_v13 = vcombine.low %v871_v23, %v873_v1  ;;  %v1492_v61 = vcombine.high %v871_v23, %v873_v1  ;;  %v1493_v49 = vcombine.low %v960_v43, %v962_v48 }
 0x1ec   : > { %v1454_v17 = vrot.slane %v1426_v53, %v9472_v56  ;;  %v1494_v2 = vcombine.high %v960_v43, %v962_v48  ;;  %12282 = vst [vmem:[#allocation140_spill] sm:$0xff] %v9910_v12  ;;  %12283 = vst [vmem:[#allocation141_spill] sm:$0xff] %v9912_v62  ;;  %v9923_v24 = vrot.slane %v1387_v18, %v9472_v56 }
 0x1ed   : > { %v1455_v26 = vcombine.low %v9883_v11, %v1447_v57  ;;  %v1456_v52 = vcombine.high %v9883_v11, %v1447_v57  ;;  %v1501_v43 = vrot.slane %v1491_v13, %v9472_v56  ;;  %v1508_v48 = vrot.slane %v1492_v61, %v9472_v56  ;;  %v9931_v57 = vld [vmem:[#allocation6 + $0x7d0] sm:$0xff] }
 0x1ee   : > { %v1457_v53 = vcombine.low %v9886_v41, %v1454_v17  ;;  %v1458_v1 = vcombine.high %v9886_v41, %v1454_v17  ;;  %v1515_v23 = vrot.slane %v1493_v49, %v9472_v56  ;;  %v1522_v22 = vrot.slane %v1494_v2, %v9472_v56  ;;  %12284 = vst [vmem:[#allocation142_spill] sm:$0xff] %v9931_v57  ;;  %v9933_v13 = vld [vmem:[#allocation6 + $0x7f0] sm:$0xff] }
 0x1ef   : > { %12285 = vst [vmem:[#allocation143_spill] sm:$0xff] %v9933_v13  ;;  %v9936_v18 = vrot.slane %v1388_v63, %v9472_v56  ;;  %v9968_v63 = vcombine.high %v9923_v24, %v9923_v24  ;;  %v9987_v11 = vrot.slane %v1456_v52, %v9472_v56  ;;  %v12300_v50 = vrot.slane %v9757_v45, %v9452_v46 }
 0x1f0   : > { %v1523_v61 = vcombine.low %v1501_v43, %v1515_v23  ;;  %v1524_v49 = vcombine.high %v1501_v43, %v1515_v23  ;;  %v1525_v17 = vcombine.low %v1508_v48, %v1522_v22  ;;  %v1526_v2 = vcombine.high %v1508_v48, %v1522_v22 }
 0x1f1   : > { %v9961_v43 = vrot.slane %v1389_v54, %v9472_v56  ;;  %v9964_v22 = vrot.slane %v1390_v25, %v9472_v56  ;;  %v9973_v23 = vrot.slane %v1455_v26, %v9472_v56  ;;  %v9981_v25 = vcombine.high %v9936_v18, %v9936_v18 }
 0x1f2   : > { %v9984_v12 = vrot.slane %v1457_v53, %v9472_v56  ;;  %v9990_v48 = vrot.slane %v1458_v1, %v9472_v56  ;;  %v9995_v41 = vrot.slane %v1523_v61, %v9472_v56  ;;  %v9998_v54 = vrot.slane %v1525_v17, %v9472_v56 }
 0x1f3   : > { %v10001_v40 = vrot.slane %v1524_v49, %v9472_v56  ;;  %v10006_v52 = vrot.slane %v1526_v2, %v9472_v56  ;;  %v10012_v26 = vcombine.high %v9961_v43, %v9961_v43  ;;  %v10016_v61 = vcombine.high %v9964_v22, %v9964_v22 }
 0x1f4   : > { %12286 = vst [vmem:[#allocation144_spill] sm:$0xff] %v9995_v41  ;;  %12287 = vst [vmem:[#allocation145_spill] sm:$0xff] %v9998_v54  ;;  %v10026_v2 = vcombine.high %v9973_v23, %v9973_v23  ;;  %v10036_v49 = vcombine.high %v9987_v11, %v9987_v11  ;;  %v10060_v1 = vcombine.high %v9984_v12, %v9984_v12 }
 0x1f5   : > { %12288 = vst [vmem:[#allocation146_spill] sm:$0xff] %v10001_v40  ;;  %12289 = vst [vmem:[#allocation147_spill] sm:$0xff] %v10006_v52  ;;  %v10064_v53 = vcombine.high %v9990_v48, %v9990_v48  ;;  %v10074_v13 = vcombine.high %v9995_v41, %v9995_v41  ;;  %v10084_v62 = vcombine.high %v10001_v40, %v10001_v40 }
 0x1f6   : > { %12290 = vst [vmem:[#allocation148_spill] sm:$0xff] %v10060_v1  ;;  %v10108_v57 = vcombine.high %v9998_v54, %v9998_v54  ;;  %v10112_v36 = vcombine.high %v10006_v52, %v10006_v52 }
 0x1f7   : > { %12291 = vst [vmem:[#allocation149_spill] sm:$0xff] %v10064_v53  ;;  %12292 = vst [vmem:[#allocation150_spill] sm:$0xff] %v10074_v13 }
 0x1f8   : > { %12293 = vst [vmem:[#allocation151_spill] sm:$0xff] %v10084_v62  ;;  %12294 = vst [vmem:[#allocation152_spill] sm:$0xff] %v10108_v57 }
 0x1f9   : > { %12295 = vst [vmem:[#allocation153_spill] sm:$0xff] %v10112_v36 }
 0x21a   : > { %v1159_v59 = vpop.f32.mrb[8].mxu0 }
 0x21b   : > { %v1248_v58 = vpop.f32.mrb[8].mxu1  ;;  %v1161_v9 = vpop.f32.mrb[9].mxu0 }
 0x21c   : > { %v1575_v62 = vcombine.low %v1159_v59, %v1161_v9  ;;  %v10242_v13 = vcombine.high %v1159_v59, %v1161_v9  ;;  %v6947_v56 = vcombine.low %v1161_v9, %v1161_v9  ;;  %v10244_v54 = vcombine.high %v1161_v9, %v1161_v9  ;;  %v1250_v42 = vpop.f32.mrb[9].mxu1 }
 0x21d   : > { %v10246_v52 = vcombine.low %v1248_v58, %v1250_v42  ;;  %v10248_v27 = vcombine.high %v1248_v58, %v1250_v42  ;;  %v10250_v10 = vcombine.low %v1250_v42, %v1250_v42  ;;  %v10252_v20 = vcombine.high %v1250_v42, %v1250_v42 }
 0x21e   : > { %v2279_v4 = vadd.f32 %v12300_v50, %v1575_v62  ;;  %v12301_v59 = vrot.slane %v9760_v51, %v9452_v46  ;;  %v1165_v36 = vpop.f32.mrb[10].mxu0  ;;  %v12302_v9 = vrot.slane %v9757_v45, %v9454_v47  ;;  %v12303_v58 = vrot.slane %v9760_v51, %v9454_v47 }
 0x21f   : > { %12296 = vst [vmem:[#allocation154_spill] sm:$0xff] %v10246_v52  ;;  %12297 = vst [vmem:[#allocation155_spill] sm:$0xff] %v10248_v27  ;;  %v12304_v42 = vrot.slane %v9757_v45, %v9490_v3  ;;  %v12306_v50 = vrot.slane %v9760_v51, %v9490_v3  ;;  %v1167_v19 = vpop.f32.mrb[11].mxu0 }
 0x220   : > { %12298 = vst [vmem:[#allocation156_spill] sm:$0xff] %v10250_v10  ;;  %12299 = vst [vmem:[#allocation157_spill] sm:$0xff] %v10252_v20  ;;  %v2283_v17 = vadd.f32 %v12301_v59, %v1575_v62  ;;  %v2280_v57 = vadd.f32 %v6947_v56, %v12302_v9  ;;  %v2284_v27 = vadd.f32 %v6947_v56, %v12303_v58  ;;  %v1254_v10 = vpop.f32.mrb[10].mxu1 }
 0x221   : > { %v10270_v20 = vadd.f32 %v12304_v42, %v10246_v52  ;;  %v10276_v59 = vadd.f32 %v12306_v50, %v10246_v52  ;;  %v12308_v9 = vrot.slane %v9812_v0, %v9454_v47  ;;  %v12309_v58 = vrot.slane %v9824_v14, %v9454_v47  ;;  %v1256_v50 = vpop.f32.mrb[11].mxu1 }
 0x222   : > { %v10284_v41 = vcombine.low %v1165_v36, %v1167_v19  ;;  %v10286_v42 = vcombine.high %v1165_v36, %v1167_v19  ;;  %v10290_v45 = vcombine.high %v1167_v19, %v1167_v19  ;;  %v10292_v3 = vcombine.low %v1254_v10, %v1256_v50  ;;  %v1171_v51 = vpop.f32.mrb[12].mxu0 }
 0x223   : > { %12305 = vst [vmem:[#allocation158_spill] sm:$0xff] %v10270_v20  ;;  %12307 = vst [vmem:[#allocation159_spill] sm:$0xff] %v10276_v59  ;;  %v2288_v60 = vadd.f32 %v6947_v56, %v12308_v9  ;;  %v2292_v40 = vadd.f32 %v6947_v56, %v12309_v58  ;;  %v10288_v20 = vcombine.low %v1167_v19, %v1167_v19  ;;  %v1260_v19 = vpop.f32.mrb[12].mxu1  ;;  %v1173_v15 = vpop.f32.mrb[13].mxu0 }
 0x224   : > { %12310 = vst [vmem:[#allocation160_spill] sm:$0xff] %v10292_v3  ;;  %v10294_v52 = vcombine.high %v1254_v10, %v1256_v50  ;;  %v10296_v59 = vcombine.low %v1256_v50, %v1256_v50  ;;  %v10298_v9 = vcombine.high %v1256_v50, %v1256_v50  ;;  %v2430_v56 = vadd.f32 %v9496_v5, %v2280_v57 }
 0x225   : > { %v2434_v58 = vadd.f32 %v9496_v5, %v2284_v27  ;;  %v2429_v36 = vadd.f32 %v9500_v6, %v2279_v4  ;;  %v2433_v21 = vadd.f32 %v9500_v6, %v2283_v17  ;;  %v2438_v7 = vadd.f32 %v9496_v5, %v2288_v60 }
 0x226   : > { %12311 = vst [vmem:[#allocation161_spill] sm:$0xff] %v10294_v52  ;;  %12312 = vst [vmem:[#allocation162_spill] sm:$0xff] %v10296_v59  ;;  %v2442_v10 = vadd.f32 %v9496_v5, %v2292_v40  ;;  %v12314_v52 = vrot.slane %v9812_v0, %v9452_v46  ;;  %v10312_v3 = vcombine.low %v1171_v51, %v1173_v15  ;;  %v1262_v59 = vpop.f32.mrb[13].mxu1  ;;  %v1177_v0 = vpop.f32.mrb[14].mxu0 }
 0x227   : > { %12313 = vst [vmem:[#allocation163_spill] sm:$0xff] %v10298_v9  ;;  %v12315_v9 = vrot.slane %v9824_v14, %v9452_v46  ;;  %v10314_v27 = vcombine.high %v1171_v51, %v1173_v15  ;;  %v10316_v4 = vcombine.low %v1173_v15, %v1173_v15  ;;  %v10318_v17 = vcombine.high %v1173_v15, %v1173_v15  ;;  %v1266_v51 = vpop.f32.mrb[14].mxu1  ;;  %v1179_v1 = vpop.f32.mrb[15].mxu0 }
 0x228   : > { %v2287_v50 = vadd.f32 %v12314_v52, %v1575_v62  ;;  %v10320_v60 = vcombine.low %v1260_v19, %v1262_v59  ;;  %v10322_v40 = vcombine.high %v1260_v19, %v1262_v59  ;;  %v10324_v29 = vcombine.low %v1262_v59, %v1262_v59 }
 0x229   : > { %v2291_v57 = vadd.f32 %v12315_v9, %v1575_v62  ;;  %12316 = vst [vmem:[#allocation164_spill] sm:$0xff] %v10314_v27  ;;  %v10326_v52 = vcombine.high %v1262_v59, %v1262_v59  ;;  %v2558_v14 = vmax.f32 %v2430_v56, 0.0  ;;  %v2562_v62 = vmax.f32 %v2434_v58, 0.0 }
 0x22a   : > { %12317 = vst [vmem:[#allocation165_spill] sm:$0xff] %v10320_v60  ;;  %12318 = vst [vmem:[#allocation166_spill] sm:$0xff] %v10322_v40  ;;  %v2557_v9 = vmax.f32 %v2429_v36, 0.0  ;;  %v2561_v53 = vmax.f32 %v2433_v21, 0.0  ;;  %v2566_v16 = vmax.f32 %v2438_v7, 0.0  ;;  %v2570_v28 = vmax.f32 %v2442_v10, 0.0 }
 0x22b   : > { %12319 = vst [vmem:[#allocation167_spill] sm:$0xff] %v10326_v52  ;;  %v2437_v15 = vadd.f32 %v9500_v6, %v2287_v50  ;;  %v2441_v27 = vadd.f32 %v9500_v6, %v2291_v57  ;;  %v6964_v60 = vcombine.low %v2558_v14, %v2562_v62  ;;  %v10330_v19 = vcombine.low %v1177_v0, %v1179_v1  ;;  %v1268_v52 = vpop.f32.mrb[15].mxu1 }
 0x22c   : > { %v10332_v40 = vcombine.high %v1177_v0, %v1179_v1  ;;  %v10334_v59 = vcombine.low %v1179_v1, %v1179_v1  ;;  %v10336_v56 = vcombine.high %v1179_v1, %v1179_v1  ;;  %v10338_v58 = vcombine.low %v1266_v51, %v1268_v52 }
 0x22d   : > { %v10340_v21 = vcombine.high %v1266_v51, %v1268_v52  ;;  %v10342_v7 = vcombine.low %v1268_v52, %v1268_v52  ;;  %3347 = vmatprep.mubr.f32.mxu0 %v6964_v60  ;;  %3669 = vmatprep.mubr.f32.mxu1 %v6964_v60  ;;  %v10344_v36 = vcombine.high %v1268_v52, %v1268_v52  ;;  %v2565_v50 = vmax.f32 %v2437_v15, 0.0 }
 0x22e   : > { %v6963_v14 = vcombine.low %v2557_v9, %v2561_v53  ;;  %v6968_v10 = vcombine.low %v2566_v16, %v2570_v28  ;;  %v2569_v0 = vmax.f32 %v2441_v27, 0.0  ;;  %v12321_v57 = vrot.slane %v9789_v55, %v9454_v47 }
 0x22f   : > { %12320 = vst [vmem:[#allocation168_spill] sm:$0xff] %v10340_v21  ;;  %v12322_v62 = vrot.slane %v9798_v37, %v9454_v47  ;;  %v12323_v60 = vrot.slane %v9789_v55, %v9452_v46  ;;  %v12324_v28 = vrot.slane %v9798_v37, %v9452_v46  ;;  %v12325_v53 = vrot.slane %v9864_v8, %v9454_v47 }
 0x230   : > { %v2296_v1 = vadd.f32 %v10244_v54, %v12321_v57  ;;  %3348 = vmatmul.mubr.f32.vlgmr.msra.gmra.mrb[16].mxu0 %v6963_v14  ;;  %3670 = vmatmul.mubr.f32.vlgmr.msra.gmra.mrb[16].mxu1 %v6963_v14  ;;  %v12326_v9 = vrot.slane %v9896_v44, %v9454_v47  ;;  %v12327_v57 = vpack.c.bf16 %v9422_v33, %v9420_v30 }
 0x231   : > { %v2300_v51 = vadd.f32 %v10244_v54, %v12322_v62  ;;  %v2295_v52 = vadd.f32 %v12323_v60, %v10242_v13  ;;  %v2299_v16 = vadd.f32 %v12324_v28, %v10242_v13  ;;  %v2304_v27 = vadd.f32 %v10244_v54, %v12325_v53  ;;  %3353 = vmatprep.mubr.f32.mxu0 %v6968_v10 }
 0x232   : > { %v2308_v15 = vadd.f32 %v10244_v54, %v12326_v9  ;;  %7389 = vmatpush1.bf16.msra.mxu0 %v12327_v57  ;;  %v6967_v14 = vcombine.low %v2565_v50, %v2569_v0  ;;  %v2446_v62 = vadd.f32 %v9496_v5, %v2296_v1  ;;  %3675 = vmatprep.mubr.f32.mxu1 %v6968_v10 }
 0x233   : > { %v2450_v60 = vadd.f32 %v9496_v5, %v2300_v51  ;;  %v12328_v28 = vpack.c.bf16 %v9426_v34, %v9424_v31  ;;  %v2445_v53 = vadd.f32 %v9500_v6, %v2295_v52  ;;  %v2449_v21 = vadd.f32 %v9500_v6, %v2299_v16 }
 0x234   : > { %v2454_v54 = vadd.f32 %v9496_v5, %v2304_v27  ;;  %v12329_v30 = vpack.c.bf16 %v9430_v35, %v9428_v32  ;;  %v12330_v33 = vpack.c.bf16 %v9438_v39, %v9436_v38  ;;  %v2574_v50 = vmax.f32 %v2446_v62, 0.0  ;;  %3354 = vmatmul.mubr.f32.gmra.mrb[18].mxu0 %v6967_v14  ;;  %3676 = vmatmul.mubr.f32.gmra.mrb[18].mxu1 %v6967_v14  ;;  %v12333_v38 = vld [vmem:[#allocation19_spill] sm:$0xff]  ;;  %v12334_v39 = vld [vmem:[#allocation18_spill] sm:$0xff]  ;;  %v12338_v62 = vld [vmem:[#allocation20_spill] sm:$0xff] }
 0x235   : > { %7517 = vmatpush1.bf16.msra.mxu1 %v12328_v28  ;;  %v2578_v10 = vmax.f32 %v2450_v60, 0.0  ;;  %v2458_v0 = vadd.f32 %v9496_v5, %v2308_v15  ;;  %v12331_v31 = vrot.slane %v9864_v8, %v9452_v46  ;;  %v2573_v1 = vmax.f32 %v2445_v53, 0.0  ;;  %v12340_v28 = vld [vmem:[#allocation23_spill] sm:$0xff]  ;;  %v12341_v53 = vld [vmem:[#allocation22_spill] sm:$0xff] }
 0x236   : > { %7391 = vmatprep.subr.bf16.mxu0 %v12329_v30  ;;  %7519 = vmatprep.subr.bf16.mxu1 %v12330_v33  ;;  %v2577_v51 = vmax.f32 %v2449_v21, 0.0  ;;  %v2582_v52 = vmax.f32 %v2454_v54, 0.0  ;;  %v12332_v32 = vrot.slane %v9896_v44, %v9452_v46  ;;  %v12335_v16 = vpack.c.bf16 %v12333_v38, %v12334_v39  ;;  %v12337_v21 = vld [vmem:[#allocation21_spill] sm:$0xff] }
 0x237   : > { %v2303_v34 = vadd.f32 %v12331_v31, %v10242_v13  ;;  %v6972_v27 = vcombine.low %v2574_v50, %v2578_v10  ;;  %v2586_v9 = vmax.f32 %v2458_v0, 0.0  ;;  %v12336_v57 = vrot.slane %v9923_v24, %v9454_v47 }
 0x238   : > { %v2307_v35 = vadd.f32 %v12332_v32, %v10242_v13  ;;  %7393 = vmatpush1.bf16.msra.mxu0 %v12335_v16  ;;  %v12339_v60 = vpack.c.bf16 %v12337_v21, %v12338_v62  ;;  %v12342_v13 = vpack.c.bf16 %v12340_v28, %v12341_v53  ;;  %v6971_v54 = vcombine.low %v2573_v1, %v2577_v51  ;;  %v12347_v16 = vld [vmem:[#allocation25_spill] sm:$0xff] }
 0x239   : > { %v2453_v15 = vadd.f32 %v9500_v6, %v2303_v34  ;;  %v2312_v14 = vadd.f32 %v10288_v20, %v12336_v57  ;;  %v12343_v33 = vrot.slane %v9936_v18, %v9454_v47  ;;  %3359 = vmatprep.mubr.f32.mxu0 %v6972_v27  ;;  %3681 = vmatprep.mubr.f32.mxu1 %v6972_v27  ;;  %v12348_v27 = vld [vmem:[#allocation24_spill] sm:$0xff] }
 0x23a   : > { %7521 = vmatpush1.bf16.msra.mxu1 %v12339_v60  ;;  %7395 = vmatprep.subr.bf16.mxu0 %v12342_v13  ;;  %v2457_v30 = vadd.f32 %v9500_v6, %v2307_v35  ;;  %v6976_v10 = vcombine.low %v2582_v52, %v2586_v9  ;;  %v12344_v34 = vrot.slane %v9923_v24, %v9452_v46  ;;  %v12351_v57 = vld [vmem:[#allocation28_spill] sm:$0xff] }
 0x23b   : > { %v2316_v50 = vadd.f32 %v10288_v20, %v12343_v33  ;;  %v2581_v0 = vmax.f32 %v2453_v15, 0.0  ;;  %v2462_v31 = vadd.f32 %v9496_v5, %v2312_v14  ;;  %3360 = vmatmul.mubr.f32.gmra.mrb[20].mxu0 %v6971_v54  ;;  %3682 = vmatmul.mubr.f32.gmra.mrb[20].mxu1 %v6971_v54  ;;  %v12345_v35 = vrot.slane %v9936_v18, %v9452_v46  ;;  %v12350_v15 = vld [vmem:[#allocation29_spill] sm:$0xff] }
 0x23c   : > { %v2311_v32 = vadd.f32 %v12344_v34, %v10284_v41  ;;  %v2585_v1 = vmax.f32 %v2457_v30, 0.0  ;;  %v12346_v52 = vrot.slane %v9968_v63, %v9454_v47  ;;  %v12349_v9 = vpack.c.bf16 %v12347_v16, %v12348_v27  ;;  %3365 = vmatprep.mubr.f32.mxu0 %v6976_v10  ;;  %3687 = vmatprep.mubr.f32.mxu1 %v6976_v10  ;;  %v12356_v34 = vld [vmem:[#allocation30_spill] sm:$0xff] }
 0x23d   : > { %v2466_v51 = vadd.f32 %v9496_v5, %v2316_v50  ;;  %v2315_v38 = vadd.f32 %v12345_v35, %v10284_v41  ;;  %v12352_v14 = vpack.c.bf16 %v12350_v15, %v12351_v57  ;;  %v2590_v21 = vmax.f32 %v2462_v31, 0.0  ;;  %v12355_v31 = vld [vmem:[#allocation31_spill] sm:$0xff]  ;;  %v12358_v35 = vld [vmem:[#allocation33_spill] sm:$0xff] }
 0x23e   : > { %v2320_v39 = vadd.f32 %v10288_v20, %v12346_v52  ;;  %7397 = vmatpush1.bf16.msra.mxu0 %v12349_v9  ;;  %v2461_v62 = vadd.f32 %v9500_v6, %v2311_v32  ;;  %v12353_v60 = vrot.slane %v9981_v25, %v9454_v47  ;;  %v12354_v53 = vrot.slane %v9968_v63, %v9452_v46  ;;  %v12359_v52 = vld [vmem:[#allocation32_spill] sm:$0xff]  ;;  %v12363_v57 = vld [vmem:[#allocation35_spill] sm:$0xff] }
 0x23f   : > { %7523 = vmatprep.subr.bf16.mxu1 %v12352_v14  ;;  %v6975_v54 = vcombine.low %v2581_v0, %v2585_v1  ;;  %v2594_v30 = vmax.f32 %v2466_v51, 0.0  ;;  %v2465_v33 = vadd.f32 %v9500_v6, %v2315_v38  ;;  %v12357_v32 = vpack.c.bf16 %v12355_v31, %v12356_v34  ;;  %v12364_v14 = vld [vmem:[#allocation34_spill] sm:$0xff] }
 0x240   : > { %v2324_v28 = vadd.f32 %v10288_v20, %v12353_v60  ;;  %v2319_v13 = vadd.f32 %v12354_v53, %v10284_v41  ;;  %v2470_v50 = vadd.f32 %v9496_v5, %v2320_v39  ;;  %v12360_v20 = vpack.c.bf16 %v12358_v35, %v12359_v52  ;;  %v12366_v60 = vld [vmem:[#allocation37_spill] sm:$0xff]  ;;  %v12372_v35 = vld [vmem:[#allocation38_spill] sm:$0xff] }
 0x241   : > { %7525 = vmatpush1.bf16.msra.mxu1 %v12357_v32  ;;  %v2589_v16 = vmax.f32 %v2461_v62, 0.0  ;;  %v12361_v10 = vrot.slane %v9981_v25, %v9452_v46  ;;  %3366 = vmatmul.mubr.f32.gmra.mrb[22].mxu0 %v6975_v54  ;;  %v6980_v51 = vcombine.low %v2590_v21, %v2594_v30  ;;  %v2593_v38 = vmax.f32 %v2465_v33, 0.0  ;;  %v12371_v32 = vld [vmem:[#allocation39_spill] sm:$0xff] }
 0x242   : > { %7399 = vmatprep.subr.bf16.mxu0 %v12360_v20  ;;  %v2474_v27 = vadd.f32 %v9496_v5, %v2324_v28  ;;  %v2469_v1 = vadd.f32 %v9500_v6, %v2319_v13  ;;  %3688 = vmatmul.mubr.f32.gmra.mrb[22].mxu1 %v6975_v54  ;;  %v2598_v39 = vmax.f32 %v2470_v50, 0.0  ;;  %v12362_v9 = vrot.slane %v9961_v43, %v9454_v47  ;;  %v12367_v28 = vld [vmem:[#allocation36_spill] sm:$0xff]  ;;  %v12374_v20 = vld [vmem:[#allocation41_spill] sm:$0xff] }
 0x243   : > { %v2323_v0 = vadd.f32 %v12361_v10, %v10284_v41  ;;  %v12365_v62 = vpack.c.bf16 %v12363_v57, %v12364_v14  ;;  %v12368_v53 = vpack.c.bf16 %v12366_v60, %v12367_v28  ;;  %v12369_v21 = vrot.slane %v9964_v22, %v9454_v47  ;;  %3371 = vmatprep.mubr.f32.mxu0 %v6980_v51  ;;  %v12380_v60 = vld [vmem:[#allocation43_spill] sm:$0xff]  ;;  %v12381_v28 = vld [vmem:[#allocation42_spill] sm:$0xff] }
 0x244   : > { %v2328_v15 = vadd.f32 %v10290_v45, %v12362_v9  ;;  %v2602_v41 = vmax.f32 %v2474_v27, 0.0  ;;  %v2597_v54 = vmax.f32 %v2469_v1, 0.0  ;;  %3693 = vmatprep.mubr.f32.mxu1 %v6980_v51  ;;  %v6979_v33 = vcombine.low %v2589_v16, %v2593_v38  ;;  %v12375_v27 = vld [vmem:[#allocation40_spill] sm:$0xff] }
 0x245   : > { %7401 = vmatpush1.bf16.msra.mxu0 %v12365_v62  ;;  %7527 = vmatprep.subr.bf16.mxu1 %v12368_v53  ;;  %v2473_v13 = vadd.f32 %v9500_v6, %v2323_v0  ;;  %v2332_v30 = vadd.f32 %v10290_v45, %v12369_v21  ;;  %v12370_v31 = vrot.slane %v9961_v43, %v9452_v46 }
 0x246   : > { %v2478_v50 = vadd.f32 %v9496_v5, %v2328_v15  ;;  %v12373_v52 = vpack.c.bf16 %v12371_v32, %v12372_v35  ;;  %v12376_v10 = vpack.c.bf16 %v12374_v20, %v12375_v27  ;;  %v6984_v0 = vcombine.low %v2598_v39, %v2602_v41  ;;  %3372 = vmatmul.mubr.f32.gmra.mrb[24].mxu0 %v6979_v33  ;;  %v12383_v41 = vld [vmem:[#allocation47_spill] sm:$0xff]  ;;  %v12388_v20 = vld [vmem:[#allocation49_spill] sm:$0xff]  ;;  %v12389_v27 = vld [vmem:[#allocation48_spill] sm:$0xff] }
 0x247   : > { %v2327_v34 = vadd.f32 %v12370_v31, %v10286_v42  ;;  %v2601_v1 = vmax.f32 %v2473_v13, 0.0  ;;  %v2482_v51 = vadd.f32 %v9496_v5, %v2332_v30  ;;  %v12377_v16 = vrot.slane %v9964_v22, %v9452_v46  ;;  %3694 = vmatmul.mubr.f32.gmra.mrb[24].mxu1 %v6979_v33  ;;  %v12384_v13 = vld [vmem:[#allocation46_spill] sm:$0xff] }
 0x248   : > { %7529 = vmatpush1.bf16.msra.mxu1 %v12373_v52  ;;  %7403 = vmatprep.subr.bf16.mxu0 %v12376_v10  ;;  %v2606_v9 = vmax.f32 %v2478_v50, 0.0  ;;  %v12378_v57 = vrot.slane %v10012_v26, %v9454_v47  ;;  %v12379_v39 = vrot.slane %v10016_v61, %v9454_v47  ;;  %v12382_v53 = vpack.c.bf16 %v12380_v60, %v12381_v28 }
 0x249   : > { %v2331_v38 = vadd.f32 %v12377_v16, %v10286_v42  ;;  %v2477_v15 = vadd.f32 %v9500_v6, %v2327_v34  ;;  %v12385_v21 = vpack.c.bf16 %v12383_v41, %v12384_v13  ;;  %v6983_v30 = vcombine.low %v2597_v54, %v2601_v1  ;;  %3377 = vmatprep.mubr.f32.mxu0 %v6984_v0  ;;  %v12391_v1 = vld [vmem:[#allocation51_spill] sm:$0xff] }
 0x24a   : > { %v2336_v14 = vadd.f32 %v10290_v45, %v12378_v57  ;;  %v2340_v62 = vadd.f32 %v10290_v45, %v12379_v39  ;;  %7405 = vmatpush1.bf16.msra.mxu0 %v12382_v53  ;;  %v2610_v33 = vmax.f32 %v2482_v51, 0.0  ;;  %v12386_v31 = vrot.slane %v10012_v26, %v9452_v46  ;;  %3699 = vmatprep.mubr.f32.mxu1 %v6984_v0  ;;  %v12392_v51 = vld [vmem:[#allocation50_spill] sm:$0xff]  ;;  %v12397_v53 = vld [vmem:[#allocation52_spill] sm:$0xff]  ;;  %v12399_v13 = vld [vmem:[#allocation55_spill] sm:$0xff] }
 0x24b   : > { %7531 = vmatprep.subr.bf16.mxu1 %v12385_v21  ;;  %v2481_v50 = vadd.f32 %v9500_v6, %v2331_v38  ;;  %v2605_v45 = vmax.f32 %v2477_v15, 0.0  ;;  %v12387_v52 = vrot.slane %v10016_v61, %v9452_v46  ;;  %v12390_v10 = vpack.c.bf16 %v12388_v20, %v12389_v27  ;;  %3378 = vmatmul.mubr.f32.gmra.mrb[26].mxu0 %v6983_v30  ;;  %v12400_v21 = vld [vmem:[#allocation54_spill] sm:$0xff] }
 0x24c   : > { %v2335_v34 = vadd.f32 %v12386_v31, %v10286_v42  ;;  %v2486_v32 = vadd.f32 %v9496_v5, %v2336_v14  ;;  %v2490_v35 = vadd.f32 %v9496_v5, %v2340_v62  ;;  %v12393_v16 = vpack.c.bf16 %v12391_v1, %v12392_v51  ;;  %3700 = vmatmul.mubr.f32.gmra.mrb[26].mxu1 %v6983_v30  ;;  %v12407_v51 = vld [vmem:[#allocation59_spill] sm:$0xff] }
 0x24d   : > { %v2339_v54 = vadd.f32 %v12387_v52, %v10286_v42  ;;  %7533 = vmatpush1.bf16.msra.mxu1 %v12390_v10  ;;  %v6988_v38 = vcombine.low %v2606_v9, %v2610_v33  ;;  %v2609_v0 = vmax.f32 %v2481_v50, 0.0  ;;  %v12394_v57 = vrot.slane %v9973_v23, %v9454_v47  ;;  %v12396_v9 = vld [vmem:[#allocation53_spill] sm:$0xff]  ;;  %v12405_v10 = vld [vmem:[#allocation56_spill] sm:$0xff] }
 0x24e   : > { %7407 = vmatprep.subr.bf16.mxu0 %v12393_v16  ;;  %v2485_v15 = vadd.f32 %v9500_v6, %v2335_v34  ;;  %v2614_v42 = vmax.f32 %v2486_v32, 0.0  ;;  %v2618_v39 = vmax.f32 %v2490_v35, 0.0  ;;  %v12395_v60 = vrot.slane %v9987_v11, %v9454_v47  ;;  %v12408_v16 = vld [vmem:[#allocation58_spill] sm:$0xff] }
 0x24f   : > { %v2344_v14 = vadd.f32 %v10316_v4, %v12394_v57  ;;  %v2489_v62 = vadd.f32 %v9500_v6, %v2339_v54  ;;  %v12398_v41 = vpack.c.bf16 %v12396_v9, %v12397_v53  ;;  %v12401_v33 = vpack.c.bf16 %v12399_v13, %v12400_v21  ;;  %3383 = vmatprep.mubr.f32.mxu0 %v6988_v38  ;;  %v12414_v13 = vld [vmem:[#allocation60_spill] sm:$0xff] }
 0x250   : > { %v2348_v28 = vadd.f32 %v10316_v4, %v12395_v60  ;;  %v6987_v50 = vcombine.low %v2605_v45, %v2609_v0  ;;  %v2613_v31 = vmax.f32 %v2485_v15, 0.0  ;;  %v12402_v34 = vrot.slane %v9973_v23, %v9452_v46  ;;  %3705 = vmatprep.mubr.f32.mxu1 %v6988_v38  ;;  %v12404_v45 = vld [vmem:[#allocation57_spill] sm:$0xff] }
 0x251   : > { %7409 = vmatpush1.bf16.msra.mxu0 %v12398_v41  ;;  %7535 = vmatprep.subr.bf16.mxu1 %v12401_v33  ;;  %v2494_v30 = vadd.f32 %v9496_v5, %v2344_v14  ;;  %v6992_v35 = vcombine.low %v2614_v42, %v2618_v39  ;;  %v2617_v52 = vmax.f32 %v2489_v62, 0.0  ;;  %v12403_v20 = vrot.slane %v9987_v11, %v9452_v46  ;;  %v12413_v41 = vld [vmem:[#allocation61_spill] sm:$0xff]  ;;  %v12416_v33 = vld [vmem:[#allocation63_spill] sm:$0xff] }
 0x252   : > { %v2343_v32 = vadd.f32 %v12402_v34, %v10312_v3  ;;  %v2498_v54 = vadd.f32 %v9496_v5, %v2348_v28  ;;  %v12406_v1 = vpack.c.bf16 %v12404_v45, %v12405_v10  ;;  %v12409_v0 = vpack.c.bf16 %v12407_v51, %v12408_v16  ;;  %3384 = vmatmul.mubr.f32.gmra.mrb[28].mxu0 %v6987_v50  ;;  %v12422_v51 = vld [vmem:[#allocation64_spill] sm:$0xff] }
 0x253   : > { %v2347_v27 = vadd.f32 %v12403_v20, %v10312_v3  ;;  %v2622_v15 = vmax.f32 %v2494_v30, 0.0  ;;  %v12410_v57 = vrot.slane %v10026_v2, %v9454_v47  ;;  %v12411_v42 = vrot.slane %v10036_v49, %v9454_v47  ;;  %3706 = vmatmul.mubr.f32.gmra.mrb[28].mxu1 %v6987_v50  ;;  %v12417_v30 = vld [vmem:[#allocation62_spill] sm:$0xff]  ;;  %3389 = vmatprep.mubr.f32.mxu0 %v6992_v35 }
 0x254   : > { %7537 = vmatpush1.bf16.msra.mxu1 %v12406_v1  ;;  %7411 = vmatprep.subr.bf16.mxu0 %v12409_v0  ;;  %v2493_v38 = vadd.f32 %v9500_v6, %v2343_v32  ;;  %v6991_v62 = vcombine.low %v2613_v31, %v2617_v52  ;;  %v2626_v60 = vmax.f32 %v2498_v54, 0.0  ;;  %v12412_v9 = vrot.slane %v10026_v2, %v9452_v46  ;;  %v12421_v1 = vld [vmem:[#allocation65_spill] sm:$0xff]  ;;  %v12424_v0 = vld [vmem:[#allocation67_spill] sm:$0xff] }
 0x255   : > { %v2352_v14 = vadd.f32 %v10316_v4, %v12410_v57  ;;  %v2356_v39 = vadd.f32 %v10316_v4, %v12411_v42  ;;  %v2497_v28 = vadd.f32 %v9500_v6, %v2347_v27  ;;  %v12415_v21 = vpack.c.bf16 %v12413_v41, %v12414_v13  ;;  %3711 = vmatprep.mubr.f32.mxu1 %v6992_v35  ;;  %v12430_v13 = vld [vmem:[#allocation69_spill] sm:$0xff] }
 0x256   : > { %v2351_v53 = vadd.f32 %v12412_v9, %v10312_v3  ;;  %v12418_v34 = vpack.c.bf16 %v12416_v33, %v12417_v30  ;;  %v2621_v4 = vmax.f32 %v2493_v38, 0.0  ;;  %v12419_v32 = vrot.slane %v10036_v49, %v9452_v46  ;;  %v12425_v38 = vld [vmem:[#allocation66_spill] sm:$0xff]  ;;  %3390 = vmatmul.mubr.f32.gmra.mrb[30].mxu0 %v6991_v62  ;;  %v12428_v9 = vld [vmem:[#allocation164_spill] sm:$0xff]  ;;  %v12433_v30 = vld [vmem:[#allocation71_spill] sm:$0xff] }
 0x257   : > { %7413 = vmatpush1.bf16.msra.mxu0 %v12415_v21  ;;  %v2502_v50 = vadd.f32 %v9496_v5, %v2352_v14  ;;  %v2506_v31 = vadd.f32 %v9496_v5, %v2356_v39  ;;  %v6996_v54 = vcombine.low %v2622_v15, %v2626_v60  ;;  %v2625_v20 = vmax.f32 %v2497_v28, 0.0  ;;  %3712 = vmatmul.mubr.f32.gmra.mrb[30].mxu1 %v6991_v62  ;;  %v12431_v21 = vld [vmem:[#allocation68_spill] sm:$0xff] }
 0x258   : > { %7539 = vmatprep.subr.bf16.mxu1 %v12418_v34  ;;  %v2355_v52 = vadd.f32 %v12419_v32, %v10312_v3  ;;  %v2501_v27 = vadd.f32 %v9500_v6, %v2351_v53  ;;  %v12420_v45 = vrot.slane %v9984_v12, %v9454_v47  ;;  %v12423_v16 = vpack.c.bf16 %v12421_v1, %v12422_v51  ;;  %v12434_v34 = vld [vmem:[#allocation70_spill] sm:$0xff]  ;;  %v12439_v51 = vld [vmem:[#allocation149_spill] sm:$0xff] }
 0x259   : > { %v12426_v57 = vpack.c.bf16 %v12424_v0, %v12425_v38  ;;  %v2630_v3 = vmax.f32 %v2502_v50, 0.0  ;;  %v2634_v14 = vmax.f32 %v2506_v31, 0.0  ;;  %v12427_v15 = vrot.slane %v9990_v48, %v9454_v47  ;;  %3395 = vmatprep.mubr.f32.mxu0 %v6996_v54  ;;  %3717 = vmatprep.mubr.f32.mxu1 %v6996_v54  ;;  %v12441_v38 = vld [vmem:[#allocation73_spill] sm:$0xff] }
 0x25a   : > { %v2360_v10 = vadd.f32 %v10318_v17, %v12420_v45  ;;  %7541 = vmatpush1.bf16.msra.mxu1 %v12423_v16  ;;  %v2505_v35 = vadd.f32 %v9500_v6, %v2355_v52  ;;  %v6995_v39 = vcombine.low %v2621_v4, %v2625_v20  ;;  %v2629_v60 = vmax.f32 %v2501_v27, 0.0  ;;  %v12437_v45 = vld [vmem:[#allocation148_spill] sm:$0xff] }
 0x25b   : > { %7415 = vmatprep.subr.bf16.mxu0 %v12426_v57  ;;  %v2364_v42 = vadd.f32 %v10318_v17, %v12427_v15  ;;  %v12429_v53 = vrot.slane %v9984_v12, %v9452_v46  ;;  %v12432_v33 = vpack.c.bf16 %v12430_v13, %v12431_v21  ;;  %v12435_v50 = vpack.c.bf16 %v12433_v30, %v12434_v34  ;;  %v12442_v57 = vld [vmem:[#allocation72_spill] sm:$0xff]  ;;  %v12449_v30 = vld [vmem:[#allocation77_spill] sm:$0xff] }
 0x25c   : > { %v2510_v28 = vadd.f32 %v9496_v5, %v2360_v10  ;;  %v7000_v31 = vcombine.low %v2630_v3, %v2634_v14  ;;  %v2633_v32 = vmax.f32 %v2505_v35, 0.0  ;;  %v12436_v4 = vrot.slane %v9990_v48, %v9452_v46  ;;  %v12444_v14 = vld [vmem:[#allocation75_spill] sm:$0xff]  ;;  %v12445_v35 = vld [vmem:[#allocation74_spill] sm:$0xff]  ;;  %3396 = vmatmul.mubr.f32.gmra.mrb[32].mxu0 %v6995_v39  ;;  %3718 = vmatmul.mubr.f32.gmra.mrb[32].mxu1 %v6995_v39  ;;  %v12450_v34 = vld [vmem:[#allocation76_spill] sm:$0xff] }
 0x25d   : > { %v2359_v41 = vadd.f32 %v12429_v53, %v12428_v9  ;;  %7417 = vmatpush1.bf16.msra.mxu0 %v12432_v33  ;;  %7543 = vmatprep.subr.bf16.mxu1 %v12435_v50  ;;  %v2514_v62 = vadd.f32 %v9496_v5, %v2364_v42  ;;  %v12438_v10 = vrot.slane %v12437_v45, %v9454_v47 }
 0x25e   : > { %v2363_v52 = vadd.f32 %v12436_v4, %v12428_v9  ;;  %v2638_v20 = vmax.f32 %v2510_v28, 0.0  ;;  %v12440_v16 = vrot.slane %v12439_v51, %v9454_v47  ;;  %v12443_v3 = vpack.c.bf16 %v12441_v38, %v12442_v57  ;;  %3401 = vmatprep.mubr.f32.mxu0 %v7000_v31  ;;  %3723 = vmatprep.mubr.f32.mxu1 %v7000_v31  ;;  %v12457_v57 = vld [vmem:[#allocation146_spill] sm:$0xff] }
 0x25f   : > { %v2509_v27 = vadd.f32 %v9500_v6, %v2359_v41  ;;  %v2368_v1 = vadd.f32 %v10318_v17, %v12438_v10  ;;  %v12446_v54 = vpack.c.bf16 %v12444_v14, %v12445_v35  ;;  %v6999_v15 = vcombine.low %v2629_v60, %v2633_v32  ;;  %v12452_v32 = vld [vmem:[#allocation79_spill] sm:$0xff]  ;;  %v12455_v10 = vld [vmem:[#allocation144_spill] sm:$0xff] }
 0x260   : > { %v2372_v0 = vadd.f32 %v10318_v17, %v12440_v16  ;;  %7545 = vmatpush1.bf16.msra.mxu1 %v12443_v3  ;;  %v2642_v42 = vmax.f32 %v2514_v62, 0.0  ;;  %v2513_v28 = vadd.f32 %v9500_v6, %v2363_v52  ;;  %v12447_v53 = vrot.slane %v12437_v45, %v9452_v46  ;;  %v12453_v62 = vld [vmem:[#allocation78_spill] sm:$0xff]  ;;  %v12460_v35 = vld [vmem:[#allocation80_spill] sm:$0xff] }
 0x261   : > { %7419 = vmatprep.subr.bf16.mxu0 %v12446_v54  ;;  %v2637_v17 = vmax.f32 %v2509_v27, 0.0  ;;  %v2518_v13 = vadd.f32 %v9496_v5, %v2368_v1  ;;  %v12448_v33 = vrot.slane %v12439_v51, %v9452_v46  ;;  %v12451_v50 = vpack.c.bf16 %v12449_v30, %v12450_v34  ;;  %3402 = vmatmul.mubr.f32.gmra.mrb[34].mxu0 %v6999_v15 }
 0x262   : > { %v2367_v41 = vadd.f32 %v12447_v53, %v12428_v9  ;;  %v2522_v21 = vadd.f32 %v9496_v5, %v2372_v0  ;;  %v12454_v4 = vpack.c.bf16 %v12452_v32, %v12453_v62  ;;  %v7004_v52 = vcombine.low %v2638_v20, %v2642_v42  ;;  %v12459_v20 = vld [vmem:[#allocation81_spill] sm:$0xff]  ;;  %v12462_v42 = vld [vmem:[#allocation83_spill] sm:$0xff]  ;;  %3724 = vmatmul.mubr.f32.gmra.mrb[34].mxu1 %v6999_v15  ;;  %v12468_v62 = vld [vmem:[#allocation84_spill] sm:$0xff] }
 0x263   : > { %v2371_v60 = vadd.f32 %v12448_v33, %v12428_v9  ;;  %7421 = vmatpush1.bf16.msra.mxu0 %v12451_v50  ;;  %v2641_v39 = vmax.f32 %v2513_v28, 0.0  ;;  %v12456_v1 = vrot.slane %v12455_v10, %v9454_v47  ;;  %v2646_v9 = vmax.f32 %v2518_v13, 0.0  ;;  %v12463_v28 = vld [vmem:[#allocation82_spill] sm:$0xff] }
 0x264   : > { %7547 = vmatprep.subr.bf16.mxu1 %v12454_v4  ;;  %v2517_v27 = vadd.f32 %v9500_v6, %v2367_v41  ;;  %v2650_v0 = vmax.f32 %v2522_v21, 0.0  ;;  %v12458_v3 = vrot.slane %v12457_v57, %v9454_v47  ;;  %v12461_v54 = vpack.c.bf16 %v12459_v20, %v12460_v35  ;;  %3407 = vmatprep.mubr.f32.mxu0 %v7004_v52 }
 0x265   : > { %v2376_v16 = vadd.f32 %v10334_v59, %v12456_v1  ;;  %v2521_v38 = vadd.f32 %v9500_v6, %v2371_v60  ;;  %v12464_v53 = vpack.c.bf16 %v12462_v42, %v12463_v28  ;;  %v7003_v41 = vcombine.low %v2637_v17, %v2641_v39  ;;  %v12467_v17 = vld [vmem:[#allocation85_spill] sm:$0xff]  ;;  %v12470_v39 = vld [vmem:[#allocation87_spill] sm:$0xff]  ;;  %3729 = vmatprep.mubr.f32.mxu1 %v7004_v52 }
 0x266   : > { %v2380_v14 = vadd.f32 %v10334_v59, %v12458_v3  ;;  %7549 = vmatpush1.bf16.msra.mxu1 %v12461_v54  ;;  %v2645_v33 = vmax.f32 %v2517_v27, 0.0  ;;  %v12465_v13 = vrot.slane %v12455_v10, %v9452_v46  ;;  %v7008_v60 = vcombine.low %v2646_v9, %v2650_v0  ;;  %v12471_v27 = vld [vmem:[#allocation86_spill] sm:$0xff]  ;;  %v12475_v3 = vld [vmem:[#allocation151_spill] sm:$0xff] }
 0x267   : > { %7423 = vmatprep.subr.bf16.mxu0 %v12464_v53  ;;  %v2526_v31 = vadd.f32 %v9496_v5, %v2376_v16  ;;  %v2649_v30 = vmax.f32 %v2521_v38, 0.0  ;;  %v12466_v50 = vrot.slane %v12457_v57, %v9452_v46  ;;  %v12469_v4 = vpack.c.bf16 %v12467_v17, %v12468_v62  ;;  %v12473_v9 = vld [vmem:[#allocation150_spill] sm:$0xff]  ;;  %3408 = vmatmul.mubr.f32.gmra.mrb[36].mxu0 %v7003_v41 }
 0x268   : > { %v2375_v21 = vadd.f32 %v12465_v13, %v10330_v19  ;;  %v2530_v34 = vadd.f32 %v9496_v5, %v2380_v14  ;;  %v12472_v1 = vpack.c.bf16 %v12470_v39, %v12471_v27  ;;  %v12474_v0 = vrot.slane %v12473_v9, %v9454_v47  ;;  %v12479_v13 = vld [vmem:[#allocation88_spill] sm:$0xff]  ;;  %v12482_v17 = vld [vmem:[#allocation90_spill] sm:$0xff]  ;;  %3730 = vmatmul.mubr.f32.gmra.mrb[36].mxu1 %v7003_v41  ;;  %v12485_v27 = vld [vmem:[#allocation145_spill] sm:$0xff] }
 0x269   : > { %v2379_v32 = vadd.f32 %v12466_v50, %v10330_v19  ;;  %7425 = vmatpush1.bf16.msra.mxu0 %v12469_v4  ;;  %v2654_v16 = vmax.f32 %v2526_v31, 0.0  ;;  %v12476_v14 = vrot.slane %v12475_v3, %v9454_v47  ;;  %v7007_v35 = vcombine.low %v2645_v33, %v2649_v30  ;;  %v12478_v31 = vld [vmem:[#allocation89_spill] sm:$0xff]  ;;  %v12481_v50 = vld [vmem:[#allocation91_spill] sm:$0xff]  ;;  %3413 = vmatprep.mubr.f32.mxu0 %v7008_v60 }
 0x26a   : > { %7551 = vmatprep.subr.bf16.mxu1 %v12472_v1  ;;  %v2525_v15 = vadd.f32 %v9500_v6, %v2375_v21  ;;  %v2384_v38 = vadd.f32 %v10334_v59, %v12474_v0  ;;  %v2658_v54 = vmax.f32 %v2530_v34, 0.0  ;;  %v12477_v28 = vrot.slane %v12473_v9, %v9452_v46  ;;  %v12487_v0 = vld [vmem:[#allocation93_spill] sm:$0xff]  ;;  %3735 = vmatprep.mubr.f32.mxu1 %v7008_v60 }
 0x26b   : > { %v2388_v20 = vadd.f32 %v10334_v59, %v12476_v14  ;;  %v2529_v42 = vadd.f32 %v9500_v6, %v2379_v32  ;;  %v12480_v21 = vpack.c.bf16 %v12478_v31, %v12479_v13  ;;  %v12483_v62 = vpack.c.bf16 %v12481_v50, %v12482_v17  ;;  %3414 = vmatmul.mubr.f32.gmra.mrb[38].mxu0 %v7007_v35 }
 0x26c   : > { %v2383_v53 = vadd.f32 %v12477_v28, %v10330_v19  ;;  %v2653_v59 = vmax.f32 %v2525_v15, 0.0  ;;  %v2534_v52 = vadd.f32 %v9496_v5, %v2384_v38  ;;  %v12484_v30 = vrot.slane %v12475_v3, %v9452_v46  ;;  %v12488_v38 = vld [vmem:[#allocation92_spill] sm:$0xff]  ;;  %v12491_v28 = vld [vmem:[#allocation94_spill] sm:$0xff]  ;;  %3736 = vmatmul.mubr.f32.gmra.mrb[38].mxu1 %v7007_v35 }
 0x26d   : > { %7553 = vmatpush1.bf16.msra.mxu1 %v12480_v21  ;;  %7427 = vmatprep.subr.bf16.mxu0 %v12483_v62  ;;  %v2538_v33 = vadd.f32 %v9496_v5, %v2388_v20  ;;  %v7012_v32 = vcombine.low %v2654_v16, %v2658_v54  ;;  %v2657_v4 = vmax.f32 %v2529_v42, 0.0  ;;  %v12486_v1 = vrot.slane %v12485_v27, %v9454_v47  ;;  %v12490_v20 = vld [vmem:[#allocation95_spill] sm:$0xff] }
 0x26e   : > { %v2387_v34 = vadd.f32 %v12484_v30, %v10330_v19  ;;  %v2533_v39 = vadd.f32 %v9500_v6, %v2383_v53  ;;  %v12489_v14 = vpack.c.bf16 %v12487_v0, %v12488_v38  ;;  %v12492_v31 = vpack.c.bf16 %v12490_v20, %v12491_v28  ;;  %v12493_v16 = vld [vmem:[#allocation147_spill] sm:$0xff]  ;;  %v12503_v20 = vld [vmem:[#allocation152_spill] sm:$0xff] }
 0x26f   : > { %v2392_v15 = vadd.f32 %v10336_v56, %v12486_v1  ;;  %v2662_v19 = vmax.f32 %v2534_v52, 0.0  ;;  %v2666_v13 = vmax.f32 %v2538_v33, 0.0  ;;  %v12494_v54 = vrot.slane %v12493_v16, %v9454_v47  ;;  %v12496_v52 = vld [vmem:[#allocation97_spill] sm:$0xff]  ;;  %v12497_v33 = vld [vmem:[#allocation96_spill] sm:$0xff]  ;;  %v12500_v1 = vld [vmem:[#allocation98_spill] sm:$0xff]  ;;  %3419 = vmatprep.mubr.f32.mxu0 %v7012_v32  ;;  %3741 = vmatprep.mubr.f32.mxu1 %v7012_v32 }
 0x270   : > { %7429 = vmatpush1.bf16.msra.mxu0 %v12489_v14  ;;  %7555 = vmatprep.subr.bf16.mxu1 %v12492_v31  ;;  %v2537_v41 = vadd.f32 %v9500_v6, %v2387_v34  ;;  %v7011_v53 = vcombine.low %v2653_v59, %v2657_v4  ;;  %v2661_v21 = vmax.f32 %v2533_v39, 0.0  ;;  %v12495_v17 = vrot.slane %v12485_v27, %v9452_v46  ;;  %v12499_v34 = vld [vmem:[#allocation99_spill] sm:$0xff] }
 0x271   : > { %v2396_v42 = vadd.f32 %v10336_v56, %v12494_v54  ;;  %v2542_v50 = vadd.f32 %v9496_v5, %v2392_v15  ;;  %v12498_v30 = vpack.c.bf16 %v12496_v52, %v12497_v33  ;;  %v12501_v0 = vpack.c.bf16 %v12499_v34, %v12500_v1  ;;  %v12505_v54 = vld [vmem:[#allocation153_spill] sm:$0xff]  ;;  %v12510_v52 = vld [vmem:[#allocation103_spill] sm:$0xff]  ;;  %v12511_v33 = vld [vmem:[#allocation102_spill] sm:$0xff] }
 0x272   : > { %v2391_v62 = vadd.f32 %v12495_v17, %v10332_v40  ;;  %v7016_v38 = vcombine.low %v2662_v19, %v2666_v13  ;;  %v2665_v14 = vmax.f32 %v2537_v41, 0.0  ;;  %v12502_v59 = vrot.slane %v12493_v16, %v9452_v46  ;;  %v12507_v41 = vld [vmem:[#allocation101_spill] sm:$0xff]  ;;  %3420 = vmatmul.mubr.f32.gmra.mrb[40].mxu0 %v7011_v53  ;;  %3742 = vmatmul.mubr.f32.gmra.mrb[40].mxu1 %v7011_v53  ;;  %v12533_v53 = vld [vmem:[#allocation126_spill] sm:$0xff] }
 0x273   : > { %7557 = vmatpush1.bf16.msra.mxu1 %v12498_v30  ;;  %7431 = vmatprep.subr.bf16.mxu0 %v12501_v0  ;;  %v2546_v60 = vadd.f32 %v9496_v5, %v2396_v42  ;;  %v2670_v39 = vmax.f32 %v2542_v50, 0.0  ;;  %v12504_v28 = vrot.slane %v12503_v20, %v9454_v47  ;;  %v12506_v19 = vrot.slane %v12505_v54, %v9454_v47  ;;  %v12508_v42 = vld [vmem:[#allocation100_spill] sm:$0xff]  ;;  %v12554_v47 = vld [vmem:[#allocation118_spill] sm:$0xff] }
 0x274   : > { %v2395_v4 = vadd.f32 %v12502_v59, %v10332_v40  ;;  %v2541_v15 = vadd.f32 %v9500_v6, %v2391_v62  ;;  %v12509_v17 = vpack.c.bf16 %v12507_v41, %v12508_v42  ;;  %v12512_v35 = vpack.c.bf16 %v12510_v52, %v12511_v33  ;;  %v12519_v41 = vld [vmem:[#allocation106_spill] sm:$0xff]  ;;  %v12522_v52 = vld [vmem:[#allocation45_spill] sm:$0xff]  ;;  %3425 = vmatprep.mubr.f32.mxu0 %v7016_v38 }
 0x275   : > { %v2400_v31 = vadd.f32 %v10336_v56, %v12504_v28  ;;  %v2404_v13 = vadd.f32 %v10336_v56, %v12506_v19  ;;  %v7015_v50 = vcombine.low %v2661_v21, %v2665_v14  ;;  %v2674_v62 = vmax.f32 %v2546_v60, 0.0  ;;  %v12515_v14 = vld [vmem:[#allocation105_spill] sm:$0xff]  ;;  %v12516_v60 = vld [vmem:[#allocation104_spill] sm:$0xff]  ;;  %v12518_v19 = vld [vmem:[#allocation107_spill] sm:$0xff]  ;;  %3747 = vmatprep.mubr.f32.mxu1 %v7016_v38 }
 0x276   : > { %7433 = vmatpush1.bf16.msra.mxu0 %v12509_v17  ;;  %7559 = vmatprep.subr.bf16.mxu1 %v12512_v35  ;;  %v2545_v30 = vadd.f32 %v9500_v6, %v2395_v4  ;;  %v12513_v34 = vrot.slane %v12503_v20, %v9452_v46  ;;  %v2669_v56 = vmax.f32 %v2541_v15, 0.0  ;;  %v12514_v28 = vrot.slane %v12505_v54, %v9452_v46 }
 0x277   : > { %v2550_v0 = vadd.f32 %v9496_v5, %v2400_v31  ;;  %v2554_v59 = vadd.f32 %v9496_v5, %v2404_v13  ;;  %v12517_v4 = vpack.c.bf16 %v12515_v14, %v12516_v60  ;;  %v12520_v42 = vpack.c.bf16 %v12518_v19, %v12519_v41  ;;  %v12521_v31 = vld [vmem:[#allocation119_spill] sm:$0xff]  ;;  %v12524_v13 = vld [vmem:[#allocation156_spill] sm:$0xff]  ;;  %3426 = vmatmul.mubr.f32.gmra.mrb[42].mxu0 %v7015_v50 }
 0x278   : > { %v2399_v1 = vadd.f32 %v12513_v34, %v10332_v40  ;;  %v2403_v21 = vadd.f32 %v12514_v28, %v10332_v40  ;;  %v7020_v17 = vcombine.low %v2670_v39, %v2674_v62  ;;  %v2673_v32 = vmax.f32 %v2545_v30, 0.0  ;;  %v12525_v28 = vld [vmem:[#allocation120_spill] sm:$0xff]  ;;  %v12527_v39 = vld [vmem:[#allocation109_spill] sm:$0xff]  ;;  %3748 = vmatmul.mubr.f32.gmra.mrb[42].mxu1 %v7015_v50 }
 0x279   : > { %7561 = vmatpush1.bf16.msra.mxu1 %v12517_v4  ;;  %7435 = vmatprep.subr.bf16.mxu0 %v12520_v42  ;;  %v12523_v5 = vrot.slane %v12521_v31, %v12522_v52  ;;  %v2678_v40 = vmax.f32 %v2550_v0, 0.0  ;;  %v2682_v35 = vmax.f32 %v2554_v59, 0.0  ;;  %v12526_v14 = vrot.slane %v12525_v28, %v12522_v52  ;;  %v12528_v62 = vld [vmem:[#allocation108_spill] sm:$0xff]  ;;  %v12531_v4 = vld [vmem:[#allocation110_spill] sm:$0xff]  ;;  %v12535_v31 = vld [vmem:[#allocation127_spill] sm:$0xff] }
 0x27a   : > { %v2549_v15 = vadd.f32 %v9500_v6, %v2399_v1  ;;  %v2553_v34 = vadd.f32 %v9500_v6, %v2403_v21  ;;  %v12529_v30 = vpack.c.bf16 %v12527_v39, %v12528_v62  ;;  %v12530_v1 = vld [vmem:[#allocation111_spill] sm:$0xff]  ;;  %v7019_v41 = vcombine.low %v2669_v56, %v2673_v32  ;;  %v12534_v59 = vld [vmem:[#allocation158_spill] sm:$0xff]  ;;  %v12537_v62 = vld [vmem:[#allocation113_spill] sm:$0xff]  ;;  %3431 = vmatprep.mubr.f32.mxu0 %v7020_v17 }
 0x27b   : > { %v2282_v33 = vadd.f32 %v12524_v13, %v12523_v5  ;;  %v2286_v60 = vadd.f32 %v12524_v13, %v12526_v14  ;;  %v12532_v19 = vpack.c.bf16 %v12530_v1, %v12531_v4  ;;  %v2431_v6 = vadd.f32 %v12535_v31, %v12534_v59  ;;  %v12536_v14 = vld [vmem:[#allocation159_spill] sm:$0xff]  ;;  %v12541_v32 = vld [vmem:[#allocation114_spill] sm:$0xff]  ;;  %3753 = vmatprep.mubr.f32.mxu1 %v7020_v17  ;;  %v12564_v17 = vld [vmem:[#allocation157_spill] sm:$0xff] }
 0x27c   : > { %7437 = vmatpush1.bf16.msra.mxu0 %v12529_v30  ;;  %v2677_v42 = vmax.f32 %v2549_v15, 0.0  ;;  %v7024_v21 = vcombine.low %v2678_v40, %v2682_v35  ;;  %v2681_v5 = vmax.f32 %v2553_v34, 0.0  ;;  %v2435_v39 = vadd.f32 %v12535_v31, %v12536_v14  ;;  %v12538_v30 = vld [vmem:[#allocation112_spill] sm:$0xff]  ;;  %v12540_v56 = vld [vmem:[#allocation115_spill] sm:$0xff]  ;;  %v12545_v35 = vld [vmem:[#allocation129_spill] sm:$0xff]  ;;  %3754 = vmatmul.mubr.f32.gmra.mrb[44].mxu1 %v7019_v41 }
 0x27d   : > { %7563 = vmatprep.subr.bf16.mxu1 %v12532_v19  ;;  %v2432_v0 = vadd.f32 %v12533_v53, %v2282_v33  ;;  %v2436_v28 = vadd.f32 %v12533_v53, %v2286_v60  ;;  %v12539_v1 = vpack.c.bf16 %v12537_v62, %v12538_v30  ;;  %v12542_v15 = vpack.c.bf16 %v12540_v56, %v12541_v32  ;;  %v12543_v19 = vld [vmem:[#allocation128_spill] sm:$0xff]  ;;  %v12547_v30 = vld [vmem:[#allocation154_spill] sm:$0xff]  ;;  %v12550_v56 = vld [vmem:[#allocation117_spill] sm:$0xff] }
 0x27e   : > { %v2559_v4 = vmax.f32 %v2431_v6, 0.0  ;;  %v12544_v38 = vrot.slane %v12543_v19, %v12522_v52  ;;  %v12546_v34 = vrot.slane %v12545_v35, %v12522_v52  ;;  %v7023_v59 = vcombine.low %v2677_v42, %v2681_v5  ;;  %v12551_v32 = vld [vmem:[#allocation116_spill] sm:$0xff]  ;;  %3432 = vmatmul.mubr.f32.gmra.mrb[44].mxu0 %v7019_v41  ;;  %v12572_v41 = vld [vmem:[#allocation133_spill] sm:$0xff]  ;;  %3759 = vmatprep.mubr.f32.mxu1 %v7024_v21 }
 0x27f   : > { %7565 = vmatpush1.bf16.msra.mxu1 %v12539_v1  ;;  %7439 = vmatprep.subr.bf16.mxu0 %v12542_v15  ;;  %v2560_v33 = vmax.f32 %v2432_v0, 0.0  ;;  %v2564_v14 = vmax.f32 %v2436_v28, 0.0  ;;  %v2563_v62 = vmax.f32 %v2435_v39, 0.0  ;;  %v12548_v1 = vld [vmem:[#allocation44_spill] sm:$0xff]  ;;  %v12552_v15 = vpack.c.bf16 %v12550_v56, %v12551_v32 }
 0x280   : > { %v2290_v40 = vadd.f32 %v12524_v13, %v12544_v38  ;;  %v2294_v60 = vadd.f32 %v12524_v13, %v12546_v34  ;;  %v12549_v0 = vrot.slane %v12543_v19, %v12548_v1  ;;  %v12553_v38 = vld [vmem:[#allocation121_spill] sm:$0xff]  ;;  %v12556_v42 = vrot.slane %v12545_v35, %v12548_v1  ;;  %v12557_v34 = vld [vmem:[#allocation123_spill] sm:$0xff]  ;;  %3437 = vmatprep.mubr.f32.mxu0 %v7024_v21 }
 0x281   : > { %7441 = vmatpush1.bf16.msra.mxu0 %v12552_v15  ;;  %v12555_v46 = vpack.c.bf16 %v12553_v38, %v12554_v47  ;;  %v6966_v28 = vcombine.low %v2560_v33, %v2564_v14  ;;  %v6965_v39 = vcombine.low %v2559_v4, %v2563_v62  ;;  %v12561_v47 = vld [vmem:[#allocation124_spill] sm:$0xff]  ;;  %v12563_v35 = vrot.slane %v9789_v55, %v12522_v52 }
 0x282   : > { %v2289_v6 = vadd.f32 %v12549_v0, %v12547_v30  ;;  %v2440_v13 = vadd.f32 %v12533_v53, %v2290_v40  ;;  %v2444_v50 = vadd.f32 %v12533_v53, %v2294_v60  ;;  %v2293_v5 = vadd.f32 %v12556_v42, %v12547_v30  ;;  %v12558_v0 = vld [vmem:[#allocation122_spill] sm:$0xff]  ;;  %v12566_v30 = vld [vmem:[#allocation155_spill] sm:$0xff]  ;;  %3438 = vmatmul.mubr.f32.gmra.mrb[46].mxu0 %v7023_v59 }
 0x283   : > { %7567 = vmatprep.subr.bf16.mxu1 %v12555_v46  ;;  %v12559_v56 = vpack.c.bf16 %v12557_v34, %v12558_v0  ;;  %v12560_v46 = vld [vmem:[#allocation125_spill] sm:$0xff]  ;;  %v2298_v33 = vadd.f32 %v12564_v17, %v12563_v35  ;;  %v12565_v14 = vrot.slane %v9798_v37, %v12522_v52  ;;  %v12569_v42 = vld [vmem:[#allocation131_spill] sm:$0xff]  ;;  %3760 = vmatmul.mubr.f32.gmra.mrb[46].mxu1 %v7023_v59 }
 0x284   : > { %v2439_v19 = vadd.f32 %v12535_v31, %v2289_v6  ;;  %v12562_v40 = vpack.c.bf16 %v12560_v46, %v12561_v47  ;;  %v2568_v60 = vmax.f32 %v2440_v13, 0.0  ;;  %v2572_v32 = vmax.f32 %v2444_v50, 0.0  ;;  %3508 = vmatprep.mubr.f32.mxu0 %v6966_v28  ;;  %3830 = vmatprep.mubr.f32.mxu1 %v6966_v28 }
 0x285   : > { %7569 = vmatpush1.bf16.msra.mxu1 %v12559_v56  ;;  %v2443_v15 = vadd.f32 %v12535_v31, %v2293_v5  ;;  %v2302_v62 = vadd.f32 %v12564_v17, %v12565_v14  ;;  %v12567_v6 = vrot.slane %v9789_v55, %v12548_v1  ;;  %v12568_v13 = vrot.slane %v9798_v37, %v12548_v1  ;;  %v12570_v5 = vld [vmem:[#allocation130_spill] sm:$0xff] }
 0x286   : > { %7443 = vmatprep.subr.bf16.mxu0 %v12562_v40  ;;  %v2567_v4 = vmax.f32 %v2439_v19, 0.0  ;;  %v12571_v34 = vpack.c.bf16 %v12569_v42, %v12570_v5  ;;  %v12573_v19 = vld [vmem:[#allocation132_spill] sm:$0xff]  ;;  %v6970_v56 = vcombine.low %v2568_v60, %v2572_v32  ;;  %v2448_v47 = vadd.f32 %v12533_v53, %v2298_v33  ;;  %v12579_v60 = vld [vmem:[#allocation137_spill] sm:$0xff] }
 0x287   : > { %v2297_v38 = vadd.f32 %v12567_v6, %v12566_v30  ;;  %v2301_v50 = vadd.f32 %v12568_v13, %v12566_v30  ;;  %v12574_v0 = vpack.c.bf16 %v12572_v41, %v12573_v19  ;;  %v2571_v46 = vmax.f32 %v2443_v15, 0.0  ;;  %v12576_v6 = vld [vmem:[#allocation135_spill] sm:$0xff]  ;;  %v12577_v13 = vld [vmem:[#allocation134_spill] sm:$0xff]  ;;  %v12580_v32 = vld [vmem:[#allocation136_spill] sm:$0xff] }
 0x288   : > { %7445 = vmatpush1.bf16.msra.mxu0 %v12571_v34  ;;  %v12575_v55 = vrot.slane %v9864_v8, %v12522_v52  ;;  %v2452_v37 = vadd.f32 %v12533_v53, %v2302_v62  ;;  %v12578_v42 = vpack.c.bf16 %v12576_v6, %v12577_v13  ;;  %v12581_v15 = vpack.c.bf16 %v12579_v60, %v12580_v32  ;;  %v12588_v6 = vld [vmem:[#allocation140_spill] sm:$0xff] }
 0x289   : > { %7571 = vmatprep.subr.bf16.mxu1 %v12574_v0  ;;  %v2447_v35 = vadd.f32 %v12535_v31, %v2297_v38  ;;  %v2451_v14 = vadd.f32 %v12535_v31, %v2301_v50  ;;  %v6969_v33 = vcombine.low %v2567_v4, %v2571_v46  ;;  %v2576_v5 = vmax.f32 %v2448_v47, 0.0  ;;  %v12585_v4 = vld [vmem:[#allocation138_spill] sm:$0xff]  ;;  %v12587_v47 = vld [vmem:[#allocation141_spill] sm:$0xff] }
 0x28a   : > { %v2306_v40 = vadd.f32 %v12564_v17, %v12575_v55  ;;  %7573 = vmatpush1.bf16.msra.mxu1 %v12578_v42  ;;  %7447 = vmatprep.subr.bf16.mxu0 %v12581_v15  ;;  %v12582_v34 = vrot.slane %v9896_v44, %v12522_v52  ;;  %v2580_v38 = vmax.f32 %v2452_v37, 0.0  ;;  %v12583_v19 = vrot.slane %v9864_v8, %v12548_v1  ;;  %v12584_v55 = vld [vmem:[#allocation139_spill] sm:$0xff] }
 0x28b   : > { %v2575_v50 = vmax.f32 %v2447_v35, 0.0  ;;  %v2579_v41 = vmax.f32 %v2451_v14, 0.0  ;;  %v12586_v46 = vpack.c.bf16 %v12584_v55, %v12585_v4  ;;  %v12589_v13 = vpack.c.bf16 %v12587_v47, %v12588_v6  ;;  %v12592_v35 = vld [vmem:[#allocation162_spill] sm:$0xff]  ;;  %v12593_v15 = vld [vmem:[#allocation143_spill] sm:$0xff] }
 0x28c   : > { %v2310_v21 = vadd.f32 %v12564_v17, %v12582_v34  ;;  %v2456_v62 = vadd.f32 %v12533_v53, %v2306_v40  ;;  %v2305_v0 = vadd.f32 %v12583_v19, %v12566_v30  ;;  %v12590_v59 = vrot.slane %v9896_v44, %v12548_v1  ;;  %v12594_v34 = vld [vmem:[#allocation142_spill] sm:$0xff] }
 0x28d   : > { %7449 = vmatpush1.bf16.msra.mxu0 %v12586_v46  ;;  %7575 = vmatprep.subr.bf16.mxu1 %v12589_v13  ;;  %v12591_v8 = vrot.slane %v9923_v24, %v12522_v52  ;;  %v6974_v42 = vcombine.low %v2576_v5, %v2580_v38  ;;  %v6973_v60 = vcombine.low %v2575_v50, %v2579_v41  ;;  %v12597_v5 = vld [vmem:[#allocation160_spill] sm:$0xff] }
 0x28e   : > { %v2460_v17 = vadd.f32 %v12533_v53, %v2310_v21  ;;  %v2584_v40 = vmax.f32 %v2456_v62, 0.0  ;;  %v2309_v37 = vadd.f32 %v12590_v59, %v12566_v30  ;;  %v2455_v32 = vadd.f32 %v12535_v31, %v2305_v0 }
 0x28f   : > { %v2314_v14 = vadd.f32 %v12592_v35, %v12591_v8  ;;  %v12595_v21 = vpack.c.bf16 %v12593_v15, %v12594_v34  ;;  %v12596_v44 = vrot.slane %v9936_v18, %v12522_v52  ;;  %v12598_v38 = vrot.slane %v9923_v24, %v12548_v1 }
 0x290   : > { %v2588_v62 = vmax.f32 %v2460_v17, 0.0  ;;  %v2459_v19 = vadd.f32 %v12535_v31, %v2309_v37  ;;  %3509 = vmatmul.mubr.f32.vlgmr.msra.gmra.mrb[16].mxu0 %v6965_v39  ;;  %v2583_v28 = vmax.f32 %v2455_v32, 0.0  ;;  %v12599_v41 = vrot.slane %v9936_v18, %v12548_v1 }
 0x291   : > { %7577 = vmatpush1.bf16.msra.mxu1 %v12595_v21  ;;  %v2318_v30 = vadd.f32 %v12592_v35, %v12596_v44  ;;  %v2464_v55 = vadd.f32 %v12533_v53, %v2314_v14  ;;  %v2313_v50 = vadd.f32 %v12598_v38, %v12597_v5  ;;  %v12600_v4 = vrot.slane %v9968_v63, %v12522_v52 }
 0x292   : > { %v2317_v0 = vadd.f32 %v12599_v41, %v12597_v5  ;;  %3514 = vmatprep.mubr.f32.mxu0 %v6970_v56  ;;  %v6978_v47 = vcombine.low %v2584_v40, %v2588_v62  ;;  %v2587_v6 = vmax.f32 %v2459_v19, 0.0  ;;  %v12601_v18 = vrot.slane %v9981_v25, %v12522_v52  ;;  %v12607_v41 = vld [vmem:[#allocation161_spill] sm:$0xff] }
 0x293   : > { %v2322_v46 = vadd.f32 %v12592_v35, %v12600_v4  ;;  %v2468_v13 = vadd.f32 %v12533_v53, %v2318_v30  ;;  %v2592_v17 = vmax.f32 %v2464_v55, 0.0  ;;  %v2463_v24 = vadd.f32 %v12535_v31, %v2313_v50  ;;  %v12605_v55 = vld [vmem:[#allocation163_spill] sm:$0xff] }
 0x294   : > { %3831 = vmatmul.mubr.f32.vlgmr.msra.gmra.mrb[16].mxu1 %v6965_v39  ;;  %v2467_v59 = vadd.f32 %v12535_v31, %v2317_v0  ;;  %v2326_v37 = vadd.f32 %v12592_v35, %v12601_v18  ;;  %v6977_v14 = vcombine.low %v2583_v28, %v2587_v6  ;;  %v12602_v40 = vrot.slane %v9968_v63, %v12548_v1 }
 0x295   : > { %v2472_v8 = vadd.f32 %v12533_v53, %v2322_v46  ;;  %3836 = vmatprep.mubr.f32.mxu1 %v6970_v56  ;;  %v2596_v32 = vmax.f32 %v2468_v13, 0.0  ;;  %v12603_v39 = vrot.slane %v9981_v25, %v12548_v1  ;;  %3515 = vmatmul.mubr.f32.gmra.mrb[18].mxu0 %v6969_v33  ;;  %v2591_v21 = vmax.f32 %v2463_v24, 0.0 }
 0x296   : > { %v2321_v15 = vadd.f32 %v12602_v40, %v12597_v5  ;;  %v2595_v62 = vmax.f32 %v2467_v59, 0.0  ;;  %v2476_v35 = vadd.f32 %v12533_v53, %v2326_v37  ;;  %3520 = vmatprep.mubr.f32.mxu0 %v6974_v42  ;;  %v12604_v63 = vrot.slane %v9961_v43, %v12522_v52 }
 0x297   : > { %v2325_v34 = vadd.f32 %v12603_v39, %v12597_v5  ;;  %v2600_v19 = vmax.f32 %v2472_v8, 0.0  ;;  %v6982_v56 = vcombine.low %v2592_v17, %v2596_v32  ;;  %v12606_v38 = vrot.slane %v9964_v22, %v12522_v52 }
 0x298   : > { %v2471_v44 = vadd.f32 %v12535_v31, %v2321_v15  ;;  %v2330_v28 = vadd.f32 %v12605_v55, %v12604_v63  ;;  %3837 = vmatmul.mubr.f32.gmra.mrb[18].mxu1 %v6969_v33  ;;  %v6981_v25 = vcombine.low %v2591_v21, %v2595_v62  ;;  %v2604_v5 = vmax.f32 %v2476_v35, 0.0 }
 0x299   : > { %v2475_v30 = vadd.f32 %v12535_v31, %v2325_v34  ;;  %v2334_v50 = vadd.f32 %v12605_v55, %v12606_v38  ;;  %v12608_v0 = vrot.slane %v9961_v43, %v12548_v1  ;;  %3842 = vmatprep.mubr.f32.mxu1 %v6974_v42  ;;  %v12609_v33 = vrot.slane %v9964_v22, %v12548_v1 }
 0x29a   : > { %v2599_v46 = vmax.f32 %v2471_v44, 0.0  ;;  %v2480_v13 = vadd.f32 %v12533_v53, %v2330_v28  ;;  %3521 = vmatmul.mubr.f32.gmra.mrb[20].mxu0 %v6973_v60  ;;  %v6986_v24 = vcombine.low %v2600_v19, %v2604_v5  ;;  %v12610_v43 = vrot.slane %v10012_v26, %v12522_v52 }
 0x29b   : > { %v2329_v4 = vadd.f32 %v12608_v0, %v12607_v41  ;;  %v2603_v6 = vmax.f32 %v2475_v30, 0.0  ;;  %v2333_v17 = vadd.f32 %v12609_v33, %v12607_v41  ;;  %v2484_v59 = vadd.f32 %v12533_v53, %v2334_v50  ;;  %3526 = vmatprep.mubr.f32.mxu0 %v6978_v47 }
 0x29c   : > { %v2338_v42 = vadd.f32 %v12605_v55, %v12610_v43  ;;  %v2608_v8 = vmax.f32 %v2480_v13, 0.0  ;;  %v12611_v22 = vrot.slane %v10016_v61, %v12522_v52  ;;  %3843 = vmatmul.mubr.f32.gmra.mrb[20].mxu1 %v6973_v60  ;;  %v12612_v21 = vrot.slane %v10012_v26, %v12548_v1 }
 0x29d   : > { %v2479_v18 = vadd.f32 %v12535_v31, %v2329_v4  ;;  %v10949_v37 = vcombine.low %v2599_v46, %v2603_v6  ;;  %v2483_v32 = vadd.f32 %v12535_v31, %v2333_v17  ;;  %v2612_v15 = vmax.f32 %v2484_v59, 0.0  ;;  %3848 = vmatprep.mubr.f32.mxu1 %v6978_v47  ;;  %v12616_v46 = vld [vmem:[#allocation165_spill] sm:$0xff] }
 0x29e   : > { %v2342_v40 = vadd.f32 %v12605_v55, %v12611_v22  ;;  %v2488_v34 = vadd.f32 %v12533_v53, %v2338_v42  ;;  %v2337_v62 = vadd.f32 %v12612_v21, %v12607_v41  ;;  %v12613_v44 = vrot.slane %v10016_v61, %v12548_v1  ;;  %3527 = vmatmul.mubr.f32.gmra.mrb[22].mxu0 %v6977_v14 }
 0x29f   : > { %v2607_v39 = vmax.f32 %v2479_v18, 0.0  ;;  %v2611_v35 = vmax.f32 %v2483_v32, 0.0  ;;  %v12614_v60 = vrot.slane %v9973_v23, %v12522_v52  ;;  %v6990_v55 = vcombine.low %v2608_v8, %v2612_v15  ;;  %3532 = vmatprep.mubr.f32.mxu0 %v6982_v56 }
 0x2a0   : > { %v2492_v19 = vadd.f32 %v12533_v53, %v2342_v40  ;;  %v2341_v30 = vadd.f32 %v12613_v44, %v12607_v41  ;;  %v2616_v28 = vmax.f32 %v2488_v34, 0.0  ;;  %v2487_v26 = vadd.f32 %v12535_v31, %v2337_v62  ;;  %3849 = vmatmul.mubr.f32.gmra.mrb[22].mxu1 %v6977_v14 }
 0x2a1   : > { %v2346_v63 = vadd.f32 %v10324_v29, %v12614_v60  ;;  %v12615_v47 = vrot.slane %v9987_v11, %v12522_v52  ;;  %v10975_v38 = vcombine.low %v2607_v39, %v2611_v35  ;;  %v12617_v6 = vrot.slane %v9973_v23, %v12548_v1  ;;  %3854 = vmatprep.mubr.f32.mxu1 %v6982_v56 }
 0x2a2   : > { %v2620_v61 = vmax.f32 %v2492_v19, 0.0  ;;  %v2491_v50 = vadd.f32 %v12535_v31, %v2341_v30  ;;  %v2615_v0 = vmax.f32 %v2487_v26, 0.0  ;;  %v12618_v33 = vrot.slane %v9987_v11, %v12548_v1  ;;  %3533 = vmatmul.mubr.f32.gmra.mrb[24].mxu0 %v6981_v25 }
 0x2a3   : > { %v2350_v5 = vadd.f32 %v10324_v29, %v12615_v47  ;;  %v2496_v41 = vadd.f32 %v12533_v53, %v2346_v63  ;;  %v2345_v13 = vadd.f32 %v12617_v6, %v12616_v46  ;;  %v12619_v14 = vrot.slane %v10026_v2, %v12522_v52  ;;  %3538 = vmatprep.mubr.f32.mxu0 %v6986_v24  ;;  %v12624_v63 = vld [vmem:[#allocation167_spill] sm:$0xff]  ;;  %v12626_v47 = vld [vmem:[#allocation166_spill] sm:$0xff] }
 0x2a4   : > { %v2349_v17 = vadd.f32 %v12618_v33, %v12616_v46  ;;  %v6994_v59 = vcombine.low %v2616_v28, %v2620_v61  ;;  %v2619_v18 = vmax.f32 %v2491_v50, 0.0  ;;  %v12620_v22 = vrot.slane %v10036_v49, %v12522_v52  ;;  %3855 = vmatmul.mubr.f32.gmra.mrb[24].mxu1 %v6981_v25 }
 0x2a5   : > { %v2500_v4 = vadd.f32 %v12533_v53, %v2350_v5  ;;  %v2624_v43 = vmax.f32 %v2496_v41, 0.0  ;;  %v2354_v42 = vadd.f32 %v10324_v29, %v12619_v14  ;;  %v2495_v32 = vadd.f32 %v12535_v31, %v2345_v13  ;;  %3860 = vmatprep.mubr.f32.mxu1 %v6986_v24 }
 0x2a6   : > { %v2499_v23 = vadd.f32 %v12535_v31, %v2349_v17  ;;  %v2358_v11 = vadd.f32 %v10324_v29, %v12620_v22  ;;  %v10998_v56 = vcombine.low %v2615_v0, %v2619_v18  ;;  %v12621_v15 = vrot.slane %v10026_v2, %v12548_v1  ;;  %3539 = vmatmul.mubr.f32.gmra.mrb[26].mxu0 %v10949_v37 }
 0x2a7   : > { %v2628_v8 = vmax.f32 %v2500_v4, 0.0  ;;  %v2504_v40 = vadd.f32 %v12533_v53, %v2354_v42  ;;  %v12622_v34 = vrot.slane %v10036_v49, %v12548_v1  ;;  %v2623_v35 = vmax.f32 %v2495_v32, 0.0  ;;  %3544 = vmatprep.mubr.f32.mxu0 %v6990_v55 }
 0x2a8   : > { %v2353_v39 = vadd.f32 %v12621_v15, %v12616_v46  ;;  %v2627_v29 = vmax.f32 %v2499_v23, 0.0  ;;  %v2508_v19 = vadd.f32 %v12533_v53, %v2358_v11  ;;  %v12623_v2 = vrot.slane %v9984_v12, %v12522_v52  ;;  %3861 = vmatmul.mubr.f32.gmra.mrb[26].mxu1 %v10949_v37 }
 0x2a9   : > { %v2357_v21 = vadd.f32 %v12622_v34, %v12616_v46  ;;  %v11009_v62 = vcombine.low %v2624_v43, %v2628_v8  ;;  %v2632_v44 = vmax.f32 %v2504_v40, 0.0  ;;  %v12625_v26 = vrot.slane %v9990_v48, %v12522_v52  ;;  %3866 = vmatprep.mubr.f32.mxu1 %v6990_v55 }
 0x2aa   : > { %v2503_v30 = vadd.f32 %v12535_v31, %v2353_v39  ;;  %v2362_v28 = vadd.f32 %v12624_v63, %v12623_v2  ;;  %v11019_v49 = vcombine.low %v2623_v35, %v2627_v29  ;;  %v2636_v25 = vmax.f32 %v2508_v19, 0.0  ;;  %3545 = vmatmul.mubr.f32.gmra.mrb[28].mxu0 %v10975_v38 }
 0x2ab   : > { %v2507_v60 = vadd.f32 %v12535_v31, %v2357_v21  ;;  %v2366_v24 = vadd.f32 %v12624_v63, %v12625_v26  ;;  %v12627_v5 = vrot.slane %v9984_v12, %v12548_v1  ;;  %v12628_v4 = vrot.slane %v9990_v48, %v12548_v1  ;;  %3550 = vmatprep.mubr.f32.mxu0 %v6994_v59 }
 0x2ac   : > { %v2631_v50 = vmax.f32 %v2503_v30, 0.0  ;;  %v2512_v0 = vadd.f32 %v12533_v53, %v2362_v28  ;;  %v11035_v6 = vcombine.low %v2632_v44, %v2636_v25  ;;  %v12629_v12 = vrot.slane %v12437_v45, %v12522_v52  ;;  %3867 = vmatmul.mubr.f32.gmra.mrb[28].mxu1 %v10975_v38 }
 0x2ad   : > { %v2361_v61 = vadd.f32 %v12627_v5, %v12626_v47  ;;  %v2635_v41 = vmax.f32 %v2507_v60, 0.0  ;;  %v2365_v46 = vadd.f32 %v12628_v4, %v12626_v47  ;;  %v2516_v13 = vadd.f32 %v12533_v53, %v2366_v24  ;;  %3872 = vmatprep.mubr.f32.mxu1 %v6994_v59 }
 0x2ae   : > { %v2370_v17 = vadd.f32 %v12624_v63, %v12629_v12  ;;  %v2640_v43 = vmax.f32 %v2512_v0, 0.0  ;;  %v12630_v37 = vrot.slane %v12439_v51, %v12522_v52  ;;  %v12631_v55 = vrot.slane %v12437_v45, %v12548_v1  ;;  %3551 = vmatmul.mubr.f32.gmra.mrb[30].mxu0 %v10998_v56 }
 0x2af   : > { %v2511_v33 = vadd.f32 %v12535_v31, %v2361_v61  ;;  %v11043_v18 = vcombine.low %v2631_v50, %v2635_v41  ;;  %v2515_v48 = vadd.f32 %v12535_v31, %v2365_v46  ;;  %v2644_v42 = vmax.f32 %v2516_v13, 0.0  ;;  %3556 = vmatprep.mubr.f32.mxu0 %v11009_v62 }
 0x2b0   : > { %v2374_v14 = vadd.f32 %v12624_v63, %v12630_v37  ;;  %v2520_v32 = vadd.f32 %v12533_v53, %v2370_v17  ;;  %v2369_v23 = vadd.f32 %v12631_v55, %v12626_v47  ;;  %v12632_v40 = vrot.slane %v12439_v51, %v12548_v1  ;;  %3873 = vmatmul.mubr.f32.gmra.mrb[30].mxu1 %v10998_v56  ;;  %v12643_v55 = vld [vmem:[#allocation168_spill] sm:$0xff] }
 0x2b1   : > { %v2639_v8 = vmax.f32 %v2511_v33, 0.0  ;;  %v2643_v22 = vmax.f32 %v2515_v48, 0.0  ;;  %v12633_v39 = vrot.slane %v12455_v10, %v12522_v52  ;;  %v11066_v21 = vcombine.low %v2640_v43, %v2644_v42  ;;  %3878 = vmatprep.mubr.f32.mxu1 %v11009_v62 }
 0x2b2   : > { %v2524_v11 = vadd.f32 %v12533_v53, %v2374_v14  ;;  %v2373_v15 = vadd.f32 %v12632_v40, %v12626_v47  ;;  %v2648_v45 = vmax.f32 %v2520_v32, 0.0  ;;  %v2519_v35 = vadd.f32 %v12535_v31, %v2369_v23  ;;  %3557 = vmatmul.mubr.f32.gmra.mrb[32].mxu0 %v11019_v49 }
 0x2b3   : > { %v2378_v34 = vadd.f32 %v10342_v7, %v12633_v39  ;;  %v12634_v29 = vrot.slane %v12457_v57, %v12522_v52  ;;  %v11073_v51 = vcombine.low %v2639_v8, %v2643_v22  ;;  %v12635_v63 = vrot.slane %v12455_v10, %v12548_v1  ;;  %3562 = vmatprep.mubr.f32.mxu0 %v11035_v6 }
 0x2b4   : > { %v2652_v44 = vmax.f32 %v2524_v11, 0.0  ;;  %v2523_v30 = vadd.f32 %v12535_v31, %v2373_v15  ;;  %v2647_v38 = vmax.f32 %v2519_v35, 0.0  ;;  %v12636_v59 = vrot.slane %v12457_v57, %v12548_v1  ;;  %3879 = vmatmul.mubr.f32.gmra.mrb[32].mxu1 %v11019_v49 }
 0x2b5   : > { %v2382_v19 = vadd.f32 %v10342_v7, %v12634_v29  ;;  %v2528_v60 = vadd.f32 %v12533_v53, %v2378_v34  ;;  %v2377_v28 = vadd.f32 %v12635_v63, %v10338_v58  ;;  %v12637_v5 = vrot.slane %v12473_v9, %v12522_v52  ;;  %3884 = vmatprep.mubr.f32.mxu1 %v11035_v6  ;;  %v3992_v29 = vld [vmem:[#allocation7 + $0x8] sm:$0xff]  ;;  %v3995_v63 = vld [vmem:[#allocation7 + $0x20] sm:$0xff] }
 0x2b6   : > { %v2381_v25 = vadd.f32 %v12636_v59, %v10338_v58  ;;  %v11088_v26 = vcombine.low %v2648_v45, %v2652_v44  ;;  %v2651_v24 = vmax.f32 %v2523_v30, 0.0  ;;  %v12638_v57 = vrot.slane %v12475_v3, %v12522_v52  ;;  %3563 = vmatmul.mubr.f32.gmra.mrb[34].mxu0 %v11043_v18  ;;  %v3991_v44 = vld [vmem:[#allocation7] sm:$0xff]  ;;  %v3998_v59 = vld [vmem:[#allocation7 + $0x38] sm:$0xff] }
 0x2b7   : > { %v2532_v2 = vadd.f32 %v12533_v53, %v2382_v19  ;;  %v2656_v47 = vmax.f32 %v2528_v60, 0.0  ;;  %v2386_v61 = vadd.f32 %v10342_v7, %v12637_v5  ;;  %v2527_v50 = vadd.f32 %v12535_v31, %v2377_v28  ;;  %v3996_v19 = vld [vmem:[#allocation7 + $0x28] sm:$0xff]  ;;  %3568 = vmatprep.mubr.f32.mxu0 %v11066_v21  ;;  %v3994_v28 = vld [vmem:[#allocation7 + $0x18] sm:$0xff] }
 0x2b8   : > { %v2531_v41 = vadd.f32 %v12535_v31, %v2381_v25  ;;  %v2390_v0 = vadd.f32 %v10342_v7, %v12638_v57  ;;  %v11102_v4 = vcombine.low %v2647_v38, %v2651_v24  ;;  %v12639_v56 = vrot.slane %v12473_v9, %v12548_v1  ;;  %3885 = vmatmul.mubr.f32.gmra.mrb[34].mxu1 %v11043_v18 }
 0x2b9   : > { %v2660_v10 = vmax.f32 %v2532_v2, 0.0  ;;  %v2536_v46 = vadd.f32 %v12533_v53, %v2386_v61  ;;  %v12640_v33 = vrot.slane %v12475_v3, %v12548_v1  ;;  %v2655_v7 = vmax.f32 %v2527_v50, 0.0  ;;  %v3997_v50 = vld [vmem:[#allocation7 + $0x30] sm:$0xff]  ;;  %3890 = vmatprep.mubr.f32.mxu1 %v11066_v21 }
 0x2ba   : > { %v2385_v13 = vadd.f32 %v12639_v56, %v10338_v58  ;;  %v2659_v62 = vmax.f32 %v2531_v41, 0.0  ;;  %v2540_v43 = vadd.f32 %v12533_v53, %v2390_v0  ;;  %v12641_v14 = vrot.slane %v12485_v27, %v12522_v52  ;;  %v4000_v41 = vld [vmem:[#allocation7 + $0x48] sm:$0xff]  ;;  %3569 = vmatmul.mubr.f32.gmra.mrb[36].mxu0 %v11073_v51 }
 0x2bb   : > { %v2389_v12 = vadd.f32 %v12640_v33, %v10338_v58  ;;  %v11114_v17 = vcombine.low %v2656_v47, %v2660_v10  ;;  %v2664_v48 = vmax.f32 %v2536_v46, 0.0  ;;  %v12642_v8 = vrot.slane %v12493_v16, %v12522_v52  ;;  %v3993_v10 = vld [vmem:[#allocation7 + $0x10] sm:$0xff]  ;;  %v4004_v56 = vld [vmem:[#allocation7 + $0x68] sm:$0xff]  ;;  %v4003_v33 = vld [vmem:[#allocation7 + $0x60] sm:$0xff]  ;;  %3574 = vmatprep.mubr.f32.mxu0 %v11088_v26 }
 0x2bc   : > { %v2535_v37 = vadd.f32 %v12535_v31, %v2385_v13  ;;  %v2394_v58 = vadd.f32 %v10344_v36, %v12641_v14  ;;  %v11125_v3 = vcombine.low %v2655_v7, %v2659_v62  ;;  %v2668_v42 = vmax.f32 %v2540_v43, 0.0  ;;  %v3999_v13 = vld [vmem:[#allocation7 + $0x40] sm:$0xff]  ;;  %v4002_v62 = vld [vmem:[#allocation7 + $0x58] sm:$0xff]  ;;  %v4005_v14 = vld [vmem:[#allocation7 + $0x70] sm:$0xff]  ;;  %3891 = vmatmul.mubr.f32.gmra.mrb[36].mxu1 %v11073_v51 }
 0x2bd   : > { %v2539_v9 = vadd.f32 %v12535_v31, %v2389_v12  ;;  %v2398_v32 = vadd.f32 %v10344_v36, %v12642_v8  ;;  %v12644_v23 = vrot.slane %v12485_v27, %v12548_v1  ;;  %v12645_v49 = vrot.slane %v12493_v16, %v12548_v1  ;;  %v4006_v43 = vld [vmem:[#allocation7 + $0x78] sm:$0xff]  ;;  %3896 = vmatprep.mubr.f32.mxu1 %v11088_v26  ;;  %v4009_v26 = vld [vmem:[#allocation7 + $0x90] sm:$0xff] }
 0x2be   : > { %v2663_v11 = vmax.f32 %v2535_v37, 0.0  ;;  %v2544_v15 = vadd.f32 %v12533_v53, %v2394_v58  ;;  %v11142_v34 = vcombine.low %v2664_v48, %v2668_v42  ;;  %v12646_v6 = vrot.slane %v12503_v20, %v12522_v52  ;;  %3575 = vmatmul.mubr.f32.gmra.mrb[38].mxu0 %v11102_v4 }
 0x2bf   : > { %v2393_v22 = vadd.f32 %v12644_v23, %v12643_v55  ;;  %v2667_v40 = vmax.f32 %v2539_v9, 0.0  ;;  %v2397_v39 = vadd.f32 %v12645_v49, %v12643_v55  ;;  %v2548_v45 = vadd.f32 %v12533_v53, %v2398_v32  ;;  %v4001_v9 = vld [vmem:[#allocation7 + $0x50] sm:$0xff]  ;;  %v4012_v23 = vld [vmem:[#allocation7 + $0xa8] sm:$0xff]  ;;  %v4010_v49 = vld [vmem:[#allocation7 + $0x98] sm:$0xff]  ;;  %3580 = vmatprep.mubr.f32.mxu0 %v11114_v17 }
 0x2c0   : > { %v2402_v35 = vadd.f32 %v10344_v36, %v12646_v6  ;;  %v2672_v30 = vmax.f32 %v2544_v15, 0.0  ;;  %v12647_v38 = vrot.slane %v12505_v54, %v12522_v52  ;;  %v12648_v5 = vrot.slane %v12503_v20, %v12548_v1  ;;  %v4011_v15 = vld [vmem:[#allocation7 + $0xa0] sm:$0xff]  ;;  %v4013_v6 = vld [vmem:[#allocation7 + $0xb0] sm:$0xff]  ;;  %3897 = vmatmul.mubr.f32.gmra.mrb[38].mxu1 %v11102_v4 }
 0x2c1   : > { %v2543_v27 = vadd.f32 %v12535_v31, %v2393_v22  ;;  %v11151_v16 = vcombine.low %v2663_v11, %v2667_v40  ;;  %v2547_v60 = vadd.f32 %v12535_v31, %v2397_v39  ;;  %v2676_v25 = vmax.f32 %v2548_v45, 0.0  ;;  %v4007_v40 = vld [vmem:[#allocation7 + $0x80] sm:$0xff]  ;;  %v4014_v39 = vld [vmem:[#allocation7 + $0xb8] sm:$0xff]  ;;  %3902 = vmatprep.mubr.f32.mxu1 %v11114_v17 }
 0x2c2   : > { %v2406_v2 = vadd.f32 %v10344_v36, %v12647_v38  ;;  %v2552_v47 = vadd.f32 %v12533_v53, %v2402_v35  ;;  %v2401_v61 = vadd.f32 %v12648_v5, %v12643_v55  ;;  %v12649_v18 = vrot.slane %v12505_v54, %v12548_v1  ;;  %3581 = vmatmul.mubr.f32.gmra.mrb[40].mxu0 %v11125_v3  ;;  %v4023_v5 = vld [vmem:[#allocation7 + $0x100] sm:$0xff] }
 0x2c3   : > { %v2671_v24 = vmax.f32 %v2543_v27, 0.0  ;;  %v2675_v36 = vmax.f32 %v2547_v60, 0.0  ;;  %v7578_v46 = vpack.c.bf16 %v3996_v19, %v3992_v29  ;;  %v11171_v20 = vcombine.low %v2672_v30, %v2676_v25  ;;  %v4016_v29 = vld [vmem:[#allocation7 + $0xc8] sm:$0xff]  ;;  %v4015_v30 = vld [vmem:[#allocation7 + $0xc0] sm:$0xff]  ;;  %3586 = vmatprep.mubr.f32.mxu0 %v11142_v34 }
 0x2c4   : > { %v2556_v57 = vadd.f32 %v12533_v53, %v2406_v2  ;;  %v2405_v0 = vadd.f32 %v12649_v18, %v12643_v55  ;;  %v2680_v12 = vmax.f32 %v2552_v47, 0.0  ;;  %v2551_v7 = vadd.f32 %v12535_v31, %v2401_v61  ;;  %v4008_v55 = vld [vmem:[#allocation7 + $0x88] sm:$0xff]  ;;  %v4019_v60 = vld [vmem:[#allocation7 + $0xe0] sm:$0xff]  ;;  %v4018_v2 = vld [vmem:[#allocation7 + $0xd8] sm:$0xff]  ;;  %3903 = vmatmul.mubr.f32.gmra.mrb[40].mxu1 %v11125_v3 }
 0x2c5   : > { %v7580_v21 = vpack.c.bf16 %v3995_v63, %v3991_v44  ;;  %v11175_v53 = vcombine.low %v2671_v24, %v2675_v36  ;;  %7579 = vmatprep.subr.bf16.mxu0 %v7578_v46  ;;  %v7706_v37 = vpack.c.bf16 %v3998_v59, %v3994_v28  ;;  %v7708_v42 = vpack.c.bf16 %v3997_v50, %v3993_v10  ;;  %v4020_v19 = vld [vmem:[#allocation7 + $0xe8] sm:$0xff]  ;;  %v4022_v63 = vld [vmem:[#allocation7 + $0xf8] sm:$0xff]  ;;  %v4017_v28 = vld [vmem:[#allocation7 + $0xd0] sm:$0xff] }
 0x2c6   : > { %v2684_v54 = vmax.f32 %v2556_v57, 0.0  ;;  %v2555_v48 = vadd.f32 %v12535_v31, %v2405_v0  ;;  %v2679_v58 = vmax.f32 %v2551_v7, 0.0  ;;  %v7582_v8 = vpack.c.bf16 %v4004_v56, %v4000_v41  ;;  %v4021_v59 = vld [vmem:[#allocation7 + $0xf0] sm:$0xff]  ;;  %v4024_v25 = vld [vmem:[#allocation7 + $0x108] sm:$0xff]  ;;  %3908 = vmatprep.mubr.f32.mxu1 %v11142_v34  ;;  %v4027_v61 = vld [vmem:[#allocation7 + $0x120] sm:$0xff]  ;;  %3587 = vmatmul.mubr.f32.gmra.mrb[42].mxu0 %v11151_v16 }
 0x2c7   : > { %7581 = vmatpush1.bf16.msra.mxu0 %v7580_v21  ;;  %v7584_v32 = vpack.c.bf16 %v4003_v33, %v3999_v13  ;;  %7707 = vmatprep.subr.bf16.mxu1 %v7706_v37  ;;  %v7710_v31 = vpack.c.bf16 %v4006_v43, %v4002_v62  ;;  %v7712_v51 = vpack.c.bf16 %v4005_v14, %v4001_v9  ;;  %v4028_v24 = vld [vmem:[#allocation7 + $0x128] sm:$0xff]  ;;  %v4026_v50 = vld [vmem:[#allocation7 + $0x118] sm:$0xff]  ;;  %v4025_v36 = vld [vmem:[#allocation7 + $0x110] sm:$0xff] }
 0x2c8   : > { %v11180_v22 = vcombine.low %v2680_v12, %v2684_v54  ;;  %v2683_v11 = vmax.f32 %v2555_v48, 0.0  ;;  %7709 = vmatpush1.bf16.msra.mxu1 %v7708_v42  ;;  %7583 = vmatprep.subr.bf16.mxu0 %v7582_v8  ;;  %v7586_v27 = vpack.c.bf16 %v4012_v23, %v4008_v55  ;;  %v7588_v35 = vpack.c.bf16 %v4011_v15, %v4007_v40  ;;  %v4030_v41 = vld [vmem:[#allocation7 + $0x138] sm:$0xff]  ;;  %v4029_v57 = vld [vmem:[#allocation7 + $0x130] sm:$0xff]  ;;  %v4032_v18 = vld [vmem:[#allocation7 + $0x148] sm:$0xff] }
 0x2c9   : > { %7711 = vmatprep.subr.bf16.mxu1 %v7710_v31  ;;  %v7714_v44 = vpack.c.bf16 %v4014_v39, %v4010_v49  ;;  %v7716_v38 = vpack.c.bf16 %v4013_v6, %v4009_v26  ;;  %v7590_v4 = vpack.c.bf16 %v4020_v19, %v4016_v29  ;;  %v7592_v17 = vpack.c.bf16 %v4019_v60, %v4015_v30  ;;  %v4036_v0 = vld [vmem:[#allocation7 + $0x168] sm:$0xff]  ;;  %v4034_v46 = vld [vmem:[#allocation7 + $0x158] sm:$0xff]  ;;  %v4031_v33 = vld [vmem:[#allocation7 + $0x140] sm:$0xff] }
 0x2ca   : > { %v11184_v45 = vcombine.low %v2679_v58, %v2683_v11  ;;  %v7718_v47 = vpack.c.bf16 %v4022_v63, %v4018_v2  ;;  %v7720_v10 = vpack.c.bf16 %v4021_v59, %v4017_v28  ;;  %3592 = vmatprep.mubr.f32.mxu0 %v11171_v20  ;;  %v7594_v3 = vpack.c.bf16 %v4028_v24, %v4024_v25  ;;  %v4038_v56 = vld [vmem:[#allocation7 + $0x178] sm:$0xff]  ;;  %v4035_v12 = vld [vmem:[#allocation7 + $0x160] sm:$0xff]  ;;  %v4040_v21 = vld [vmem:[#allocation7 + $0x188] sm:$0xff] }
 0x2cb   : > { %7585 = vmatpush1.bf16.msra.mxu0 %v7584_v32  ;;  %3909 = vmatmul.mubr.f32.gmra.mrb[42].mxu1 %v11151_v16  ;;  %v7596_v34 = vpack.c.bf16 %v4027_v61, %v4023_v5  ;;  %v7722_v13 = vpack.c.bf16 %v4030_v41, %v4026_v50  ;;  %v7724_v7 = vpack.c.bf16 %v4029_v57, %v4025_v36  ;;  %v4044_v62 = vld [vmem:[#allocation7 + $0x1a8] sm:$0xff]  ;;  %v4033_v54 = vld [vmem:[#allocation7 + $0x150] sm:$0xff]  ;;  %v4042_v37 = vld [vmem:[#allocation7 + $0x198] sm:$0xff] }
 0x2cc   : > { %7713 = vmatpush1.bf16.msra.mxu1 %v7712_v51  ;;  %7587 = vmatprep.subr.bf16.mxu0 %v7586_v27  ;;  %v7598_v16 = vpack.c.bf16 %v4036_v0, %v4032_v18  ;;  %v7726_v43 = vpack.c.bf16 %v4038_v56, %v4034_v46  ;;  %v4037_v48 = vld [vmem:[#allocation7 + $0x170] sm:$0xff]  ;;  %v4046_v9 = vld [vmem:[#allocation7 + $0x1b8] sm:$0xff]  ;;  %v7602_v14 = vpack.c.bf16 %v4044_v62, %v4040_v21  ;;  %v4039_v58 = vld [vmem:[#allocation7 + $0x180] sm:$0xff] }
 0x2cd   : > { %7715 = vmatprep.subr.bf16.mxu1 %v7714_v44  ;;  %3914 = vmatprep.mubr.f32.mxu1 %v11171_v20  ;;  %v7600_v20 = vpack.c.bf16 %v4035_v12, %v4031_v33  ;;  %v4043_v42 = vld [vmem:[#allocation7 + $0x1a0] sm:$0xff]  ;;  %v7728_v8 = vpack.c.bf16 %v4037_v48, %v4033_v54  ;;  %v4048_v32 = vld [vmem:[#allocation7 + $0x1c8] sm:$0xff]  ;;  %v7730_v23 = vpack.c.bf16 %v4046_v9, %v4042_v37  ;;  %v4045_v11 = vld [vmem:[#allocation7 + $0x1b0] sm:$0xff] }
 0x2ce   : > { %3593 = vmatmul.mubr.f32.gmra.mrb[44].mxu0 %v11175_v53  ;;  %v4052_v55 = vld [vmem:[#allocation7 + $0x1e8] sm:$0xff]  ;;  %v7604_v31 = vpack.c.bf16 %v4043_v42, %v4039_v58  ;;  %v4054_v40 = vld [vmem:[#allocation7 + $0x1f8] sm:$0xff]  ;;  %v4047_v51 = vld [vmem:[#allocation7 + $0x1c0] sm:$0xff] }
 0x2cf   : > { %7589 = vmatpush1.bf16.msra.mxu0 %v7588_v35  ;;  %3598 = vmatprep.mubr.f32.mxu0 %v11180_v22  ;;  %v7606_v15 = vpack.c.bf16 %v4052_v55, %v4048_v32  ;;  %v4051_v49 = vld [vmem:[#allocation7 + $0x1e0] sm:$0xff]  ;;  %v4056_v27 = vld [vmem:[#allocation7 + $0x208] sm:$0xff]  ;;  %v4049_v35 = vld [vmem:[#allocation7 + $0x1d0] sm:$0xff] }
 0x2d0   : > { %7717 = vmatpush1.bf16.msra.mxu1 %v7716_v38  ;;  %7591 = vmatprep.subr.bf16.mxu0 %v7590_v4  ;;  %v4060_v26 = vld [vmem:[#allocation7 + $0x228] sm:$0xff]  ;;  %v4053_v29 = vld [vmem:[#allocation7 + $0x1f0] sm:$0xff]  ;;  %v7608_v19 = vpack.c.bf16 %v4051_v49, %v4047_v51  ;;  %v4058_v44 = vld [vmem:[#allocation7 + $0x218] sm:$0xff] }
 0x2d1   : > { %7719 = vmatprep.subr.bf16.mxu1 %v7718_v47  ;;  %3915 = vmatmul.mubr.f32.gmra.mrb[44].mxu1 %v11175_v53  ;;  %v4041_v53 = vld [vmem:[#allocation7 + $0x190] sm:$0xff]  ;;  %v7610_v30 = vpack.c.bf16 %v4060_v26, %v4056_v27  ;;  %v4055_v60 = vld [vmem:[#allocation7 + $0x200] sm:$0xff]  ;;  %v7736_v2 = vpack.c.bf16 %v4053_v29, %v4049_v35  ;;  %v4064_v63 = vld [vmem:[#allocation7 + $0x248] sm:$0xff] }
 0x2d2   : > { %3920 = vmatprep.mubr.f32.mxu1 %v11180_v22  ;;  %3599 = vmatmul.mubr.f32.gmra.mrb[46].mxu0 %v11184_v45  ;;  %v4050_v22 = vld [vmem:[#allocation7 + $0x1d8] sm:$0xff]  ;;  %v7732_v39 = vpack.c.bf16 %v4045_v11, %v4041_v53  ;;  %v4059_v38 = vld [vmem:[#allocation7 + $0x220] sm:$0xff]  ;;  %v4068_v4 = vld [vmem:[#allocation7 + $0x268] sm:$0xff] }
 0x2d3   : > { %7593 = vmatpush1.bf16.msra.mxu0 %v7592_v17  ;;  %v7734_v6 = vpack.c.bf16 %v4054_v40, %v4050_v22  ;;  %v4057_v59 = vld [vmem:[#allocation7 + $0x210] sm:$0xff]  ;;  %v7612_v25 = vpack.c.bf16 %v4059_v38, %v4055_v60  ;;  %v4066_v24 = vld [vmem:[#allocation7 + $0x258] sm:$0xff]  ;;  %v7614_v5 = vpack.c.bf16 %v4068_v4, %v4064_v63  ;;  %v4063_v61 = vld [vmem:[#allocation7 + $0x240] sm:$0xff] }
 0x2d4   : > { %7721 = vmatpush1.bf16.msra.mxu1 %v7720_v10  ;;  %7595 = vmatprep.subr.bf16.mxu0 %v7594_v3  ;;  %v4061_v17 = vld [vmem:[#allocation7 + $0x230] sm:$0xff]  ;;  %v4070_v47 = vld [vmem:[#allocation7 + $0x278] sm:$0xff]  ;;  %v4067_v10 = vld [vmem:[#allocation7 + $0x260] sm:$0xff] }
 0x2d5   : > { %7723 = vmatprep.subr.bf16.mxu1 %v7722_v13  ;;  %3921 = vmatmul.mubr.f32.gmra.mrb[46].mxu1 %v11184_v45  ;;  %v4062_v45 = vld [vmem:[#allocation7 + $0x238] sm:$0xff]  ;;  %v7740_v50 = vpack.c.bf16 %v4061_v17, %v4057_v59  ;;  %v4072_v41 = vld [vmem:[#allocation7 + $0x288] sm:$0xff]  ;;  %v7742_v36 = vpack.c.bf16 %v4070_v47, %v4066_v24  ;;  %v4065_v57 = vld [vmem:[#allocation7 + $0x250] sm:$0xff] }
 0x2d6   : > { %v7738_v28 = vpack.c.bf16 %v4062_v45, %v4058_v44  ;;  %v4076_v3 = vld [vmem:[#allocation7 + $0x2a8] sm:$0xff]  ;;  %v4069_v18 = vld [vmem:[#allocation7 + $0x270] sm:$0xff]  ;;  %v4074_v0 = vld [vmem:[#allocation7 + $0x298] sm:$0xff] }
 0x2d7   : > { %7597 = vmatpush1.bf16.msra.mxu0 %v7596_v34  ;;  %v7616_v34 = vpack.c.bf16 %v4067_v10, %v4063_v61  ;;  %v4078_v46 = vld [vmem:[#allocation7 + $0x2b8] sm:$0xff]  ;;  %v7618_v56 = vpack.c.bf16 %v4076_v3, %v4072_v41  ;;  %v4071_v13 = vld [vmem:[#allocation7 + $0x280] sm:$0xff]  ;;  %v7744_v12 = vpack.c.bf16 %v4069_v18, %v4065_v57  ;;  %v4084_v21 = vld [vmem:[#allocation7 + $0x2e8] sm:$0xff] }
 0x2d8   : > { %7725 = vmatpush1.bf16.msra.mxu1 %v7724_v7  ;;  %7599 = vmatprep.subr.bf16.mxu0 %v7598_v16  ;;  %v4075_v33 = vld [vmem:[#allocation7 + $0x2a0] sm:$0xff]  ;;  %v4080_v7 = vld [vmem:[#allocation7 + $0x2c8] sm:$0xff]  ;;  %v7746_v62 = vpack.c.bf16 %v4078_v46, %v4074_v0  ;;  %v4073_v16 = vld [vmem:[#allocation7 + $0x290] sm:$0xff] }
 0x2d9   : > { %7727 = vmatprep.subr.bf16.mxu1 %v7726_v43  ;;  %v4077_v43 = vld [vmem:[#allocation7 + $0x2b0] sm:$0xff]  ;;  %v7620_v54 = vpack.c.bf16 %v4075_v33, %v4071_v13  ;;  %v4082_v48 = vld [vmem:[#allocation7 + $0x2d8] sm:$0xff]  ;;  %v7622_v37 = vpack.c.bf16 %v4084_v21, %v4080_v7  ;;  %v4079_v9 = vld [vmem:[#allocation7 + $0x2c0] sm:$0xff] }
 0x2da   : > { %v7748_v58 = vpack.c.bf16 %v4077_v43, %v4073_v16  ;;  %v4088_v42 = vld [vmem:[#allocation7 + $0x308] sm:$0xff]  ;;  %v4081_v55 = vld [vmem:[#allocation7 + $0x2d0] sm:$0xff]  ;;  %v4090_v11 = vld [vmem:[#allocation7 + $0x318] sm:$0xff] }
 0x2db   : > { %7601 = vmatpush1.bf16.msra.mxu0 %v7600_v20  ;;  %v4086_v20 = vld [vmem:[#allocation7 + $0x2f8] sm:$0xff]  ;;  %v4087_v40 = vld [vmem:[#allocation7 + $0x300] sm:$0xff]  ;;  %v4096_v49 = vld [vmem:[#allocation7 + $0x348] sm:$0xff] }
 0x2dc   : > { %7603 = vmatprep.subr.bf16.mxu0 %v7602_v14  ;;  %7729 = vmatpush1.bf16.msra.mxu1 %v7728_v8  ;;  %v4083_v14 = vld [vmem:[#allocation7 + $0x2e0] sm:$0xff]  ;;  %v4092_v8 = vld [vmem:[#allocation7 + $0x328] sm:$0xff]  ;;  %v7750_v32 = vpack.c.bf16 %v4086_v20, %v4082_v48  ;;  %v4089_v26 = vld [vmem:[#allocation7 + $0x310] sm:$0xff] }
 0x2dd   : > { %7731 = vmatprep.subr.bf16.mxu1 %v7730_v23  ;;  %v4085_v23 = vld [vmem:[#allocation7 + $0x2f0] sm:$0xff]  ;;  %v7624_v53 = vpack.c.bf16 %v4083_v14, %v4079_v9  ;;  %v7626_v22 = vpack.c.bf16 %v4092_v8, %v4088_v42  ;;  %v4098_v29 = vld [vmem:[#allocation7 + $0x358] sm:$0xff]  ;;  %v4095_v45 = vld [vmem:[#allocation7 + $0x340] sm:$0xff] }
 0x2de   : > { %v7752_v51 = vpack.c.bf16 %v4085_v23, %v4081_v55  ;;  %v4104_v38 = vld [vmem:[#allocation7 + $0x388] sm:$0xff]  ;;  %v4097_v4 = vld [vmem:[#allocation7 + $0x350] sm:$0xff]  ;;  %v4106_v17 = vld [vmem:[#allocation7 + $0x398] sm:$0xff] }
 0x2df   : > { %7605 = vmatpush1.bf16.msra.mxu0 %v7604_v31  ;;  %v4094_v31 = vld [vmem:[#allocation7 + $0x338] sm:$0xff]  ;;  %v4103_v47 = vld [vmem:[#allocation7 + $0x380] sm:$0xff]  ;;  %v4112_v10 = vld [vmem:[#allocation7 + $0x3c8] sm:$0xff] }
 0x2e0   : > { %7607 = vmatprep.subr.bf16.mxu0 %v7606_v15  ;;  %7733 = vmatpush1.bf16.msra.mxu1 %v7732_v39  ;;  %v4091_v15 = vld [vmem:[#allocation7 + $0x320] sm:$0xff]  ;;  %v4100_v39 = vld [vmem:[#allocation7 + $0x368] sm:$0xff]  ;;  %v7754_v27 = vpack.c.bf16 %v4094_v31, %v4090_v11  ;;  %v4105_v3 = vld [vmem:[#allocation7 + $0x390] sm:$0xff] }
 0x2e1   : > { %7735 = vmatprep.subr.bf16.mxu1 %v7734_v6  ;;  %v4093_v6 = vld [vmem:[#allocation7 + $0x330] sm:$0xff]  ;;  %v7628_v35 = vpack.c.bf16 %v4091_v15, %v4087_v40  ;;  %v7630_v44 = vpack.c.bf16 %v4100_v39, %v4096_v49  ;;  %v4114_v18 = vld [vmem:[#allocation7 + $0x3d8] sm:$0xff]  ;;  %v4111_v46 = vld [vmem:[#allocation7 + $0x3c0] sm:$0xff] }
 0x2e2   : > { %v7756_v60 = vpack.c.bf16 %v4093_v6, %v4089_v26  ;;  %v4120_v33 = vld [vmem:[#allocation7 + $0x408] sm:$0xff]  ;;  %v4113_v21 = vld [vmem:[#allocation7 + $0x3d0] sm:$0xff]  ;;  %v4122_v43 = vld [vmem:[#allocation7 + $0x418] sm:$0xff] }
 0x2e3   : > { %7609 = vmatpush1.bf16.msra.mxu0 %v7608_v19  ;;  %v4102_v19 = vld [vmem:[#allocation7 + $0x378] sm:$0xff]  ;;  %v11205_v9 = vld [vmem:[%s11948_s5] sm:$0xf]  ;;  %v12651_v42 = vld [vmem:[#allocation27_spill] sm:$0xff] }
 0x2e4   : > { %7611 = vmatprep.subr.bf16.mxu0 %v7610_v30  ;;  %7737 = vmatpush1.bf16.msra.mxu1 %v7736_v2  ;;  %v4099_v30 = vld [vmem:[#allocation7 + $0x360] sm:$0xff]  ;;  %v4108_v2 = vld [vmem:[#allocation7 + $0x3a8] sm:$0xff]  ;;  %v7758_v63 = vpack.c.bf16 %v4102_v19, %v4098_v29  ;;  %v11213_v8 = vrot.slane %v11205_v9, %v12651_v42  ;;  %v4125_v40 = vld [vmem:[#allocation7 + $0x430] sm:$0xff] }
 0x2e5   : > { %7739 = vmatprep.subr.bf16.mxu1 %v7738_v28  ;;  %v4101_v28 = vld [vmem:[#allocation7 + $0x370] sm:$0xff]  ;;  %v7632_v59 = vpack.c.bf16 %v4099_v30, %v4095_v45  ;;  %v7634_v24 = vpack.c.bf16 %v4108_v2, %v4104_v38  ;;  %v12650_v14 = vld [vmem:[#allocation26_spill] sm:$0xff]  ;;  %v4128_v15 = vld [vmem:[#allocation7 + $0x448] sm:$0xff] }
 0x2e6   : > { %v7760_v61 = vpack.c.bf16 %v4101_v28, %v4097_v4  ;;  %v4119_v23 = vld [vmem:[#allocation7 + $0x400] sm:$0xff]  ;;  %v4132_v39 = vld [vmem:[#allocation7 + $0x468] sm:$0xff]  ;;  %v4134_v26 = vld [vmem:[#allocation7 + $0x478] sm:$0xff] }
 0x2e7   : > { %7613 = vmatpush1.bf16.msra.mxu0 %v7612_v25  ;;  %v4110_v25 = vld [vmem:[#allocation7 + $0x3b8] sm:$0xff]  ;;  %v4127_v30 = vld [vmem:[#allocation7 + $0x440] sm:$0xff]  ;;  %v7646_v4 = vpack.c.bf16 %v4132_v39, %v4128_v15 }
 0x2e8   : > { %7615 = vmatprep.subr.bf16.mxu0 %v7614_v5  ;;  %7741 = vmatpush1.bf16.msra.mxu1 %v7740_v50  ;;  %v4107_v5 = vld [vmem:[#allocation7 + $0x3a0] sm:$0xff]  ;;  %v4116_v50 = vld [vmem:[#allocation7 + $0x3e8] sm:$0xff]  ;;  %v7762_v41 = vpack.c.bf16 %v4110_v25, %v4106_v17  ;;  %v4133_v17 = vld [vmem:[#allocation7 + $0x470] sm:$0xff] }
 0x2e9   : > { %7743 = vmatprep.subr.bf16.mxu1 %v7742_v36  ;;  %v4109_v36 = vld [vmem:[#allocation7 + $0x3b0] sm:$0xff]  ;;  %v7636_v57 = vpack.c.bf16 %v4107_v5, %v4103_v47  ;;  %v7638_v0 = vpack.c.bf16 %v4116_v50, %v4112_v10  ;;  %v4136_v25 = vld [vmem:[#allocation7 + $0x488] sm:$0xff]  ;;  %v4142_v10 = vld [vmem:[#allocation7 + $0x4b8] sm:$0xff] }
 0x2ea   : > { %v7764_v13 = vpack.c.bf16 %v4109_v36, %v4105_v3  ;;  %v4140_v5 = vld [vmem:[#allocation7 + $0x4a8] sm:$0xff] }
 0x2eb   : > { %7617 = vmatpush1.bf16.msra.mxu0 %v7616_v34  ;;  %v4118_v34 = vld [vmem:[#allocation7 + $0x3f8] sm:$0xff] }
 0x2ec   : > { %7619 = vmatprep.subr.bf16.mxu0 %v7618_v56  ;;  %7745 = vmatpush1.bf16.msra.mxu1 %v7744_v12  ;;  %v4115_v56 = vld [vmem:[#allocation7 + $0x3e0] sm:$0xff]  ;;  %v4124_v12 = vld [vmem:[#allocation7 + $0x428] sm:$0xff]  ;;  %v7766_v7 = vpack.c.bf16 %v4118_v34, %v4114_v18 }
 0x2ed   : > { %7747 = vmatprep.subr.bf16.mxu1 %v7746_v62  ;;  %v4117_v62 = vld [vmem:[#allocation7 + $0x3f0] sm:$0xff]  ;;  %v7640_v16 = vpack.c.bf16 %v4115_v56, %v4111_v46  ;;  %v7642_v48 = vpack.c.bf16 %v4124_v12, %v4120_v33  ;;  %v4135_v34 = vld [vmem:[#allocation7 + $0x480] sm:$0xff]  ;;  %v7650_v33 = vpack.c.bf16 %v4140_v5, %v4136_v25 }
 0x2ee   : > { %v7768_v20 = vpack.c.bf16 %v4117_v62, %v4113_v21  ;;  %v4141_v21 = vld [vmem:[#allocation7 + $0x4b0] sm:$0xff]  ;;  %v4144_v62 = vld [vmem:[#allocation7 + $0x4c8] sm:$0xff]  ;;  %v4151_v25 = vld [vmem:[#allocation7 + $0x500] sm:$0xff] }
 0x2ef   : > { %7621 = vmatpush1.bf16.msra.mxu0 %v7620_v54  ;;  %v4126_v54 = vld [vmem:[#allocation7 + $0x438] sm:$0xff] }
 0x2f0   : > { %7623 = vmatprep.subr.bf16.mxu0 %v7622_v37  ;;  %7749 = vmatpush1.bf16.msra.mxu1 %v7748_v58  ;;  %v7770_v37 = vpack.c.bf16 %v4126_v54, %v4122_v43  ;;  %v11209_v58 = vrot.slane %v11205_v9, %v12650_v14  ;;  %v4148_v54 = vld [vmem:[#allocation7 + $0x4e8] sm:$0xff] }
 0x2f1   : > { %7751 = vmatprep.subr.bf16.mxu1 %v7750_v32  ;;  %v11217_v32 = vrot.slane %v11205_v9, %v12548_v1  ;;  %v7654_v39 = vpack.c.bf16 %v4148_v54, %v4144_v62  ;;  %v4163_v54 = vld [vmem:[#allocation7 + $0x560] sm:$0xff]  ;;  %v4240_v1 = vld [vmem:[#allocation7 + $0x7c8] sm:$0xff] }
 0x2f3   : > { %7625 = vmatpush1.bf16.msra.mxu0 %v7624_v53  ;;  %v4123_v53 = vld [vmem:[#allocation7 + $0x420] sm:$0xff] }
 0x2f4   : > { %7627 = vmatprep.subr.bf16.mxu0 %v7626_v22  ;;  %7753 = vmatpush1.bf16.msra.mxu1 %v7752_v51  ;;  %v4121_v22 = vld [vmem:[#allocation7 + $0x410] sm:$0xff] }
 0x2f5   : > { %7755 = vmatprep.subr.bf16.mxu1 %v7754_v27  ;;  %v4130_v27 = vld [vmem:[#allocation7 + $0x458] sm:$0xff]  ;;  %v7772_v45 = vpack.c.bf16 %v4125_v40, %v4121_v22  ;;  %v4143_v22 = vld [vmem:[#allocation7 + $0x4c0] sm:$0xff] }
 0x2f6   : > { %v7774_v28 = vpack.c.bf16 %v4134_v26, %v4130_v27  ;;  %v4147_v40 = vld [vmem:[#allocation7 + $0x4e0] sm:$0xff]  ;;  %v4145_v26 = vld [vmem:[#allocation7 + $0x4d0] sm:$0xff] }
 0x2f7   : > { %7629 = vmatpush1.bf16.msra.mxu0 %v7628_v35 }
 0x2f8   : > { %7631 = vmatprep.subr.bf16.mxu0 %v7630_v44  ;;  %7757 = vmatpush1.bf16.msra.mxu1 %v7756_v60  ;;  %v7644_v44 = vpack.c.bf16 %v4123_v53, %v4119_v23  ;;  %v4131_v60 = vld [vmem:[#allocation7 + $0x460] sm:$0xff] }
 0x2f9   : > { %7759 = vmatprep.subr.bf16.mxu1 %v7758_v63 }
 0x2fb   : > { %7633 = vmatpush1.bf16.msra.mxu0 %v7632_v59  ;;  %v4129_v59 = vld [vmem:[#allocation7 + $0x450] sm:$0xff] }
 0x2fc   : > { %7635 = vmatprep.subr.bf16.mxu0 %v7634_v24  ;;  %7761 = vmatpush1.bf16.msra.mxu1 %v7760_v61  ;;  %v4138_v61 = vld [vmem:[#allocation7 + $0x498] sm:$0xff]  ;;  %v7776_v18 = vpack.c.bf16 %v4133_v17, %v4129_v59  ;;  %v7656_v59 = vpack.c.bf16 %v4147_v40, %v4143_v22  ;;  %v4165_v22 = vld [vmem:[#allocation7 + $0x570] sm:$0xff]  ;;  %v4168_v40 = vld [vmem:[#allocation7 + $0x588] sm:$0xff] }
 0x2fd   : > { %7763 = vmatprep.subr.bf16.mxu1 %v7762_v41  ;;  %v7778_v12 = vpack.c.bf16 %v4142_v10, %v4138_v61 }
 0x2ff   : > { %7637 = vmatpush1.bf16.msra.mxu0 %v7636_v57  ;;  %v7648_v57 = vpack.c.bf16 %v4131_v60, %v4127_v30  ;;  %v4156_v30 = vld [vmem:[#allocation7 + $0x528] sm:$0xff]  ;;  %v4154_v60 = vld [vmem:[#allocation7 + $0x518] sm:$0xff] }
 0x300   : > { %7639 = vmatprep.subr.bf16.mxu0 %v7638_v0  ;;  %7765 = vmatpush1.bf16.msra.mxu1 %v7764_v13  ;;  %v4139_v0 = vld [vmem:[#allocation7 + $0x4a0] sm:$0xff] }
 0x301   : > { %7767 = vmatprep.subr.bf16.mxu1 %v7766_v7  ;;  %v4137_v7 = vld [vmem:[#allocation7 + $0x490] sm:$0xff] }
 0x303   : > { %7641 = vmatpush1.bf16.msra.mxu0 %v7640_v16 }
 0x304   : > { %7643 = vmatprep.subr.bf16.mxu0 %v7642_v48  ;;  %7769 = vmatpush1.bf16.msra.mxu1 %v7768_v20  ;;  %v4146_v48 = vld [vmem:[#allocation7 + $0x4d8] sm:$0xff] }
 0x305   : > { %7771 = vmatprep.subr.bf16.mxu1 %v7770_v37  ;;  %v4150_v20 = vld [vmem:[#allocation7 + $0x4f8] sm:$0xff] }
 0x306   : > { %v7782_v27 = vpack.c.bf16 %v4150_v20, %v4146_v48 }
 0x363   : > { %v3510_v55 = vpop.f32.mrb[16].mxu0 }
 0x364   : > { %v8314_v11 = vadd.f32 %v3510_v55, %v11209_v58  ;;  %v3512_v31 = vpop.f32.mrb[17].mxu0 }
 0x365   : > { %v8315_v49 = vadd.f32 %v3512_v31, %v11213_v8  ;;  %v7780_v31 = vpack.c.bf16 %v4141_v21, %v4137_v7 }
 0x366   : > { %v3927_v38 = vmax.f32 %v8314_v11, 0.0  ;;  %v7652_v11 = vpack.c.bf16 %v4139_v0, %v4135_v34 }
 0x367   : > { %v3832_v51 = vpop.f32.mrb[16].mxu1  ;;  %v3928_v29 = vmax.f32 %v8315_v49, 0.0 }
 0x368   : > { %v11222_v6 = vadd.f32 %v3832_v51, %v11217_v32  ;;  %v11224_v35 = vpop.f32.mrb[17].mxu1  ;;  %v3516_v19 = vpop.f32.mrb[18].mxu0 }
 0x369   : > { %v8316_v2 = vadd.f32 %v3516_v19, %v11209_v58  ;;  %v3518_v63 = vpop.f32.mrb[19].mxu0  ;;  %4333 = vmatprep.mubr.f32.mxu0 %v3928_v29  ;;  %4655 = vmatprep.mubr.f32.mxu1 %v3928_v29  ;;  %v4149_v29 = vld [vmem:[#allocation7 + $0x4f0] sm:$0xff]  ;;  %v4152_v19 = vld [vmem:[#allocation7 + $0x508] sm:$0xff] }
 0x36a   : > { %v8317_v47 = vadd.f32 %v3518_v63, %v11213_v8  ;;  %4334 = vmatmul.mubr.f32.vlgmr.msra.gmra.mrb[48].mxu0 %v3927_v38  ;;  %4656 = vmatmul.mubr.f32.vlgmr.msra.gmra.mrb[48].mxu1 %v3927_v38  ;;  %v4158_v38 = vld [vmem:[#allocation7 + $0x538] sm:$0xff]  ;;  %v7784_v17 = vpack.c.bf16 %v4149_v29, %v4145_v26  ;;  %v7658_v10 = vpack.c.bf16 %v4156_v30, %v4152_v19 }
 0x36b   : > { %v3838_v24 = vpop.f32.mrb[18].mxu1  ;;  %7645 = vmatpush1.bf16.msra.mxu0 %v7644_v44  ;;  %7773 = vmatpush1.bf16.msra.mxu1 %v7772_v45  ;;  %v3931_v46 = vmax.f32 %v8316_v2, 0.0 }
 0x36c   : > { %v11229_v50 = vadd.f32 %v3838_v24, %v11217_v32  ;;  %v11231_v41 = vpop.f32.mrb[19].mxu1  ;;  %v3932_v3 = vmax.f32 %v8317_v47, 0.0  ;;  %7647 = vmatprep.subr.bf16.mxu0 %v7646_v4  ;;  %7775 = vmatprep.subr.bf16.mxu1 %v7774_v28  ;;  %v4155_v24 = vld [vmem:[#allocation7 + $0x520] sm:$0xff] }
 0x36d   : > { %v3522_v36 = vpop.f32.mrb[20].mxu0  ;;  %v7660_v62 = vpack.c.bf16 %v4155_v24, %v4151_v25  ;;  %v4169_v24 = vld [vmem:[#allocation7 + $0x590] sm:$0xff] }
 0x36e   : > { %v8318_v56 = vadd.f32 %v3522_v36, %v11209_v58  ;;  %v3524_v13 = vpop.f32.mrb[21].mxu0  ;;  %4339 = vmatprep.mubr.f32.mxu0 %v3932_v3  ;;  %4661 = vmatprep.mubr.f32.mxu1 %v3932_v3  ;;  %v7786_v3 = vpack.c.bf16 %v4158_v38, %v4154_v60  ;;  %v4153_v36 = vld [vmem:[#allocation7 + $0x510] sm:$0xff]  ;;  %v4167_v60 = vld [vmem:[#allocation7 + $0x580] sm:$0xff] }
 0x36f   : > { %v3844_v16 = vpop.f32.mrb[20].mxu1  ;;  %v8319_v43 = vadd.f32 %v3524_v13, %v11213_v8  ;;  %4340 = vmatmul.mubr.f32.gmra.mrb[50].mxu0 %v3931_v46  ;;  %4662 = vmatmul.mubr.f32.gmra.mrb[50].mxu1 %v3931_v46  ;;  %v4164_v46 = vld [vmem:[#allocation7 + $0x568] sm:$0xff]  ;;  %v4166_v13 = vld [vmem:[#allocation7 + $0x578] sm:$0xff]  ;;  %v4171_v38 = vld [vmem:[#allocation7 + $0x5a0] sm:$0xff] }
 0x370   : > { %v11236_v37 = vadd.f32 %v3844_v16, %v11217_v32  ;;  %v11238_v55 = vpop.f32.mrb[21].mxu1  ;;  %7649 = vmatpush1.bf16.msra.mxu0 %v7648_v57  ;;  %7777 = vmatpush1.bf16.msra.mxu1 %v7776_v18  ;;  %v3935_v15 = vmax.f32 %v8318_v56, 0.0  ;;  %v4157_v57 = vld [vmem:[#allocation7 + $0x530] sm:$0xff]  ;;  %v4160_v18 = vld [vmem:[#allocation7 + $0x548] sm:$0xff]  ;;  %v4162_v56 = vld [vmem:[#allocation7 + $0x558] sm:$0xff] }
 0x371   : > { %v3936_v23 = vmax.f32 %v8319_v43, 0.0  ;;  %v3528_v53 = vpop.f32.mrb[22].mxu0  ;;  %7651 = vmatprep.subr.bf16.mxu0 %v7650_v33  ;;  %7779 = vmatprep.subr.bf16.mxu1 %v7778_v12  ;;  %v7788_v16 = vpack.c.bf16 %v4157_v57, %v4153_v36  ;;  %v4159_v43 = vld [vmem:[#allocation7 + $0x540] sm:$0xff]  ;;  %v4178_v36 = vld [vmem:[#allocation7 + $0x5d8] sm:$0xff] }
 0x372   : > { %v8320_v51 = vadd.f32 %v3528_v53, %v11209_v58  ;;  %v3530_v49 = vpop.f32.mrb[23].mxu0  ;;  %v7662_v53 = vpack.c.bf16 %v4164_v46, %v4160_v18  ;;  %v4182_v57 = vld [vmem:[#allocation7 + $0x5f8] sm:$0xff] }
 0x373   : > { %v3850_v44 = vpop.f32.mrb[22].mxu1  ;;  %v8321_v45 = vadd.f32 %v3530_v49, %v11213_v8  ;;  %4345 = vmatprep.mubr.f32.mxu0 %v3936_v23  ;;  %4667 = vmatprep.mubr.f32.mxu1 %v3936_v23  ;;  %v4172_v49 = vld [vmem:[#allocation7 + $0x5a8] sm:$0xff] }
 0x374   : > { %v11243_v2 = vadd.f32 %v3850_v44, %v11217_v32  ;;  %v11245_v63 = vpop.f32.mrb[23].mxu1  ;;  %4346 = vmatmul.mubr.f32.gmra.mrb[52].mxu0 %v3935_v15  ;;  %4668 = vmatmul.mubr.f32.gmra.mrb[52].mxu1 %v3935_v15  ;;  %v3939_v47 = vmax.f32 %v8320_v51, 0.0 }
 0x375   : > { %v3940_v4 = vmax.f32 %v8321_v45, 0.0  ;;  %7653 = vmatpush1.bf16.msra.mxu0 %v7652_v11  ;;  %v3534_v28 = vpop.f32.mrb[24].mxu0  ;;  %7781 = vmatpush1.bf16.msra.mxu1 %v7780_v31  ;;  %v7790_v11 = vpack.c.bf16 %v4166_v13, %v4162_v56  ;;  %v4161_v31 = vld [vmem:[#allocation7 + $0x550] sm:$0xff]  ;;  %v7664_v45 = vpack.c.bf16 %v4163_v54, %v4159_v43  ;;  %v7668_v56 = vpack.c.bf16 %v4171_v38, %v4167_v60 }
 0x376   : > { %v8322_v5 = vadd.f32 %v3534_v28, %v11209_v58  ;;  %v3536_v61 = vpop.f32.mrb[25].mxu0  ;;  %7655 = vmatprep.subr.bf16.mxu0 %v7654_v39  ;;  %7783 = vmatprep.subr.bf16.mxu1 %v7782_v27  ;;  %v4170_v39 = vld [vmem:[#allocation7 + $0x598] sm:$0xff]  ;;  %v7792_v30 = vpack.c.bf16 %v4165_v22, %v4161_v31  ;;  %v4188_v22 = vld [vmem:[#allocation7 + $0x628] sm:$0xff] }
 0x377   : > { %v3856_v34 = vpop.f32.mrb[24].mxu1  ;;  %v8323_v0 = vadd.f32 %v3536_v61, %v11213_v8  ;;  %4351 = vmatprep.mubr.f32.mxu0 %v3940_v4  ;;  %4673 = vmatprep.mubr.f32.mxu1 %v3940_v4  ;;  %v4174_v27 = vld [vmem:[#allocation7 + $0x5b8] sm:$0xff] }
 0x378   : > { %v11250_v33 = vadd.f32 %v3856_v34, %v11217_v32  ;;  %v11252_v12 = vpop.f32.mrb[25].mxu1  ;;  %4352 = vmatmul.mubr.f32.gmra.mrb[54].mxu0 %v3939_v47  ;;  %4674 = vmatmul.mubr.f32.gmra.mrb[54].mxu1 %v3939_v47  ;;  %v3943_v48 = vmax.f32 %v8322_v5, 0.0  ;;  %v7794_v25 = vpack.c.bf16 %v4174_v27, %v4170_v39  ;;  %v4173_v47 = vld [vmem:[#allocation7 + $0x5b0] sm:$0xff]  ;;  %v4176_v5 = vld [vmem:[#allocation7 + $0x5c8] sm:$0xff] }
 0x379   : > { %v3944_v7 = vmax.f32 %v8323_v0, 0.0  ;;  %7657 = vmatpush1.bf16.msra.mxu0 %v7656_v59  ;;  %v3540_v21 = vpop.f32.mrb[26].mxu0  ;;  %7785 = vmatpush1.bf16.msra.mxu1 %v7784_v17  ;;  %v7666_v17 = vpack.c.bf16 %v4172_v49, %v4168_v40  ;;  %v7796_v13 = vpack.c.bf16 %v4173_v47, %v4169_v24  ;;  %v4186_v40 = vld [vmem:[#allocation7 + $0x618] sm:$0xff]  ;;  %v4192_v24 = vld [vmem:[#allocation7 + $0x648] sm:$0xff] }
 0x37a   : > { %v8324_v20 = vadd.f32 %v3540_v21, %v11209_v58  ;;  %v3542_v23 = vpop.f32.mrb[27].mxu0  ;;  %7659 = vmatprep.subr.bf16.mxu0 %v7658_v10  ;;  %7787 = vmatprep.subr.bf16.mxu1 %v7786_v3  ;;  %v4180_v3 = vld [vmem:[#allocation7 + $0x5e8] sm:$0xff]  ;;  %v4179_v21 = vld [vmem:[#allocation7 + $0x5e0] sm:$0xff] }
 0x37b   : > { %v3862_v15 = vpop.f32.mrb[26].mxu1  ;;  %v8325_v51 = vadd.f32 %v3542_v23, %v11213_v8  ;;  %4357 = vmatprep.mubr.f32.mxu0 %v3944_v7  ;;  %4679 = vmatprep.mubr.f32.mxu1 %v3944_v7  ;;  %v4175_v7 = vld [vmem:[#allocation7 + $0x5c0] sm:$0xff]  ;;  %v7670_v54 = vpack.c.bf16 %v4180_v3, %v4176_v5  ;;  %v4181_v23 = vld [vmem:[#allocation7 + $0x5f0] sm:$0xff]  ;;  %v4198_v3 = vld [vmem:[#allocation7 + $0x678] sm:$0xff] }
 0x37c   : > { %v11257_v26 = vadd.f32 %v3862_v15, %v11217_v32  ;;  %v11259_v29 = vpop.f32.mrb[27].mxu1  ;;  %4358 = vmatmul.mubr.f32.gmra.mrb[56].mxu0 %v3943_v48  ;;  %4680 = vmatmul.mubr.f32.gmra.mrb[56].mxu1 %v3943_v48  ;;  %v3947_v4 = vmax.f32 %v8324_v20, 0.0  ;;  %v7798_v48 = vpack.c.bf16 %v4182_v57, %v4178_v36  ;;  %v4177_v20 = vld [vmem:[#allocation7 + $0x5d0] sm:$0xff]  ;;  %v4190_v15 = vld [vmem:[#allocation7 + $0x638] sm:$0xff] }
 0x37d   : > { %v3948_v19 = vmax.f32 %v8325_v51, 0.0  ;;  %7661 = vmatpush1.bf16.msra.mxu0 %v7660_v62  ;;  %v3546_v44 = vpop.f32.mrb[28].mxu0  ;;  %7789 = vmatpush1.bf16.msra.mxu1 %v7788_v16 }
 0x37e   : > { %v8326_v28 = vadd.f32 %v3546_v44, %v11209_v58  ;;  %v3548_v59 = vpop.f32.mrb[29].mxu0  ;;  %7663 = vmatprep.subr.bf16.mxu0 %v7662_v53  ;;  %7791 = vmatprep.subr.bf16.mxu1 %v7790_v11  ;;  %v4184_v53 = vld [vmem:[#allocation7 + $0x608] sm:$0xff]  ;;  %v7800_v44 = vpack.c.bf16 %v4181_v23, %v4177_v20  ;;  %v4193_v20 = vld [vmem:[#allocation7 + $0x650] sm:$0xff] }
 0x37f   : > { %v3868_v61 = vpop.f32.mrb[28].mxu1  ;;  %v8327_v10 = vadd.f32 %v3548_v59, %v11213_v8  ;;  %4363 = vmatprep.mubr.f32.mxu0 %v3948_v19  ;;  %4685 = vmatprep.mubr.f32.mxu1 %v3948_v19  ;;  %v7672_v19 = vpack.c.bf16 %v4179_v21, %v4175_v7  ;;  %v7802_v59 = vpack.c.bf16 %v4190_v15, %v4186_v40  ;;  %v4191_v7 = vld [vmem:[#allocation7 + $0x640] sm:$0xff]  ;;  %v4197_v23 = vld [vmem:[#allocation7 + $0x670] sm:$0xff]  ;;  %v4202_v40 = vld [vmem:[#allocation7 + $0x698] sm:$0xff] }
 0x380   : > { %v11264_v18 = vadd.f32 %v3868_v61, %v11217_v32  ;;  %v11266_v34 = vpop.f32.mrb[29].mxu1  ;;  %4364 = vmatmul.mubr.f32.gmra.mrb[58].mxu0 %v3947_v4  ;;  %4686 = vmatmul.mubr.f32.gmra.mrb[58].mxu1 %v3947_v4  ;;  %v3951_v62 = vmax.f32 %v8326_v28, 0.0  ;;  %v7674_v28 = vpack.c.bf16 %v4188_v22, %v4184_v53  ;;  %v4196_v61 = vld [vmem:[#allocation7 + $0x668] sm:$0xff]  ;;  %v4195_v21 = vld [vmem:[#allocation7 + $0x660] sm:$0xff]  ;;  %v4206_v15 = vld [vmem:[#allocation7 + $0x6b8] sm:$0xff] }
 0x381   : > { %v3952_v0 = vmax.f32 %v8327_v10, 0.0  ;;  %7665 = vmatpush1.bf16.msra.mxu0 %v7664_v45  ;;  %v3552_v46 = vpop.f32.mrb[30].mxu0  ;;  %7793 = vmatpush1.bf16.msra.mxu1 %v7792_v30  ;;  %v4183_v45 = vld [vmem:[#allocation7 + $0x600] sm:$0xff]  ;;  %v4194_v10 = vld [vmem:[#allocation7 + $0x658] sm:$0xff]  ;;  %v4200_v53 = vld [vmem:[#allocation7 + $0x688] sm:$0xff] }
 0x382   : > { %v8328_v16 = vadd.f32 %v3552_v46, %v11209_v58  ;;  %v3554_v43 = vpop.f32.mrb[31].mxu0  ;;  %7667 = vmatprep.subr.bf16.mxu0 %v7666_v17  ;;  %7795 = vmatprep.subr.bf16.mxu1 %v7794_v25  ;;  %v4187_v30 = vld [vmem:[#allocation7 + $0x620] sm:$0xff]  ;;  %v4185_v17 = vld [vmem:[#allocation7 + $0x610] sm:$0xff]  ;;  %v4204_v22 = vld [vmem:[#allocation7 + $0x6a8] sm:$0xff] }
 0x383   : > { %v3874_v11 = vpop.f32.mrb[30].mxu1  ;;  %v8329_v31 = vadd.f32 %v3554_v43, %v11213_v8  ;;  %4369 = vmatprep.mubr.f32.mxu0 %v3952_v0  ;;  %4691 = vmatprep.mubr.f32.mxu1 %v3952_v0  ;;  %v4189_v25 = vld [vmem:[#allocation7 + $0x630] sm:$0xff] }
 0x384   : > { %v11271_v51 = vadd.f32 %v3874_v11, %v11217_v32  ;;  %v11273_v49 = vpop.f32.mrb[31].mxu1  ;;  %4370 = vmatmul.mubr.f32.gmra.mrb[60].mxu0 %v3951_v62  ;;  %4692 = vmatmul.mubr.f32.gmra.mrb[60].mxu1 %v3951_v62  ;;  %v3955_v60 = vmax.f32 %v8328_v16, 0.0 }
 0x385   : > { %v3956_v39 = vmax.f32 %v8329_v31, 0.0  ;;  %7669 = vmatpush1.bf16.msra.mxu0 %v7668_v56  ;;  %v3558_v27 = vpop.f32.mrb[32].mxu0  ;;  %7797 = vmatpush1.bf16.msra.mxu1 %v7796_v13  ;;  %v7676_v56 = vpack.c.bf16 %v4187_v30, %v4183_v45  ;;  %v7804_v13 = vpack.c.bf16 %v4189_v25, %v4185_v17  ;;  %v7680_v45 = vpack.c.bf16 %v4195_v21, %v4191_v7 }
 0x386   : > { %v8330_v38 = vadd.f32 %v3558_v27, %v11209_v58  ;;  %v3560_v4 = vpop.f32.mrb[33].mxu0  ;;  %7671 = vmatprep.subr.bf16.mxu0 %v7670_v54  ;;  %7799 = vmatprep.subr.bf16.mxu1 %v7798_v48  ;;  %v7678_v54 = vpack.c.bf16 %v4196_v61, %v4192_v24  ;;  %v7806_v48 = vpack.c.bf16 %v4198_v3, %v4194_v10  ;;  %v4201_v24 = vld [vmem:[#allocation7 + $0x690] sm:$0xff]  ;;  %v4212_v3 = vld [vmem:[#allocation7 + $0x6e8] sm:$0xff] }
 0x387   : > { %v3880_v47 = vpop.f32.mrb[32].mxu1  ;;  %v8331_v5 = vadd.f32 %v3560_v4, %v11213_v8  ;;  %4375 = vmatprep.mubr.f32.mxu0 %v3956_v39  ;;  %4697 = vmatprep.mubr.f32.mxu1 %v3956_v39  ;;  %v7808_v30 = vpack.c.bf16 %v4197_v23, %v4193_v20  ;;  %v7682_v17 = vpack.c.bf16 %v4204_v22, %v4200_v53  ;;  %v4213_v22 = vld [vmem:[#allocation7 + $0x6f0] sm:$0xff] }
 0x388   : > { %v11278_v36 = vadd.f32 %v3880_v47, %v11217_v32  ;;  %v11280_v57 = vpop.f32.mrb[33].mxu1  ;;  %4376 = vmatmul.mubr.f32.gmra.mrb[62].mxu0 %v3955_v60  ;;  %4698 = vmatmul.mubr.f32.gmra.mrb[62].mxu1 %v3955_v60  ;;  %v3959_v62 = vmax.f32 %v8330_v38, 0.0  ;;  %v4199_v60 = vld [vmem:[#allocation7 + $0x680] sm:$0xff]  ;;  %v7810_v25 = vpack.c.bf16 %v4206_v15, %v4202_v40  ;;  %v4205_v47 = vld [vmem:[#allocation7 + $0x6b0] sm:$0xff]  ;;  %v4216_v40 = vld [vmem:[#allocation7 + $0x708] sm:$0xff] }
 0x389   : > { %v3960_v0 = vmax.f32 %v8331_v5, 0.0  ;;  %7673 = vmatpush1.bf16.msra.mxu0 %v7672_v19  ;;  %v3564_v46 = vpop.f32.mrb[34].mxu0  ;;  %7801 = vmatpush1.bf16.msra.mxu1 %v7800_v44  ;;  %v4203_v38 = vld [vmem:[#allocation7 + $0x6a0] sm:$0xff]  ;;  %v4208_v5 = vld [vmem:[#allocation7 + $0x6c8] sm:$0xff] }
 0x38a   : > { %v8332_v16 = vadd.f32 %v3564_v46, %v11209_v58  ;;  %v3566_v43 = vpop.f32.mrb[35].mxu0  ;;  %7675 = vmatprep.subr.bf16.mxu0 %v7674_v28  ;;  %7803 = vmatprep.subr.bf16.mxu1 %v7802_v59  ;;  %v4214_v46 = vld [vmem:[#allocation7 + $0x6f8] sm:$0xff]  ;;  %v7686_v53 = vpack.c.bf16 %v4212_v3, %v4208_v5 }
 0x38b   : > { %v3886_v11 = vpop.f32.mrb[34].mxu1  ;;  %v8333_v31 = vadd.f32 %v3566_v43, %v11213_v8  ;;  %4381 = vmatprep.mubr.f32.mxu0 %v3960_v0  ;;  %4703 = vmatprep.mubr.f32.mxu1 %v3960_v0  ;;  %v4210_v0 = vld [vmem:[#allocation7 + $0x6d8] sm:$0xff]  ;;  %v4207_v43 = vld [vmem:[#allocation7 + $0x6c0] sm:$0xff] }
 0x38c   : > { %v11285_v39 = vadd.f32 %v3886_v11, %v11217_v32  ;;  %v11287_v27 = vpop.f32.mrb[35].mxu1  ;;  %4382 = vmatmul.mubr.f32.gmra.mrb[64].mxu0 %v3959_v62  ;;  %4704 = vmatmul.mubr.f32.gmra.mrb[64].mxu1 %v3959_v62  ;;  %v3963_v4 = vmax.f32 %v8332_v16, 0.0  ;;  %v7684_v62 = vpack.c.bf16 %v4203_v38, %v4199_v60  ;;  %v7812_v16 = vpack.c.bf16 %v4205_v47, %v4201_v24  ;;  %v4219_v24 = vld [vmem:[#allocation7 + $0x720] sm:$0xff] }
 0x38d   : > { %v3964_v19 = vmax.f32 %v8333_v31, 0.0  ;;  %7677 = vmatpush1.bf16.msra.mxu0 %v7676_v56  ;;  %v3570_v44 = vpop.f32.mrb[36].mxu0  ;;  %7805 = vmatpush1.bf16.msra.mxu1 %v7804_v13  ;;  %v7814_v11 = vpack.c.bf16 %v4214_v46, %v4210_v0  ;;  %v4209_v31 = vld [vmem:[#allocation7 + $0x6d0] sm:$0xff] }
 0x38e   : > { %v8334_v28 = vadd.f32 %v3570_v44, %v11209_v58  ;;  %v3572_v59 = vpop.f32.mrb[37].mxu0  ;;  %7679 = vmatprep.subr.bf16.mxu0 %v7678_v54  ;;  %7807 = vmatprep.subr.bf16.mxu1 %v7806_v48  ;;  %v4211_v54 = vld [vmem:[#allocation7 + $0x6e0] sm:$0xff]  ;;  %v4220_v44 = vld [vmem:[#allocation7 + $0x728] sm:$0xff]  ;;  %v4217_v0 = vld [vmem:[#allocation7 + $0x710] sm:$0xff] }
 0x38f   : > { %v3892_v61 = vpop.f32.mrb[36].mxu1  ;;  %v8335_v10 = vadd.f32 %v3572_v59, %v11213_v8  ;;  %4387 = vmatprep.mubr.f32.mxu0 %v3964_v19  ;;  %4709 = vmatprep.mubr.f32.mxu1 %v3964_v19  ;;  %v7688_v59 = vpack.c.bf16 %v4211_v54, %v4207_v43  ;;  %v4221_v46 = vld [vmem:[#allocation7 + $0x730] sm:$0xff]  ;;  %v4226_v43 = vld [vmem:[#allocation7 + $0x758] sm:$0xff] }
 0x390   : > { %v11292_v56 = vadd.f32 %v3892_v61, %v11217_v32  ;;  %v11294_v13 = vpop.f32.mrb[37].mxu1  ;;  %4388 = vmatmul.mubr.f32.gmra.mrb[66].mxu0 %v3963_v4  ;;  %4710 = vmatmul.mubr.f32.gmra.mrb[66].mxu1 %v3963_v4  ;;  %v3967_v48 = vmax.f32 %v8334_v28, 0.0  ;;  %v4230_v54 = vld [vmem:[#allocation7 + $0x778] sm:$0xff] }
 0x391   : > { %v3968_v7 = vmax.f32 %v8335_v10, 0.0  ;;  %7681 = vmatpush1.bf16.msra.mxu0 %v7680_v45  ;;  %v3576_v21 = vpop.f32.mrb[38].mxu0  ;;  %7809 = vmatpush1.bf16.msra.mxu1 %v7808_v30  ;;  %v4218_v45 = vld [vmem:[#allocation7 + $0x718] sm:$0xff]  ;;  %v7690_v10 = vpack.c.bf16 %v4220_v44, %v4216_v40  ;;  %v4227_v40 = vld [vmem:[#allocation7 + $0x760] sm:$0xff] }
 0x392   : > { %v8336_v20 = vadd.f32 %v3576_v21, %v11209_v58  ;;  %v3578_v23 = vpop.f32.mrb[39].mxu0  ;;  %7683 = vmatprep.subr.bf16.mxu0 %v7682_v17  ;;  %7811 = vmatprep.subr.bf16.mxu1 %v7810_v25  ;;  %v4222_v30 = vld [vmem:[#allocation7 + $0x738] sm:$0xff]  ;;  %v7816_v17 = vpack.c.bf16 %v4213_v22, %v4209_v31  ;;  %v4215_v25 = vld [vmem:[#allocation7 + $0x700] sm:$0xff]  ;;  %v7820_v31 = vpack.c.bf16 %v4221_v46, %v4217_v0 }
 0x393   : > { %v3898_v15 = vpop.f32.mrb[38].mxu1  ;;  %v8337_v19 = vadd.f32 %v3578_v23, %v11213_v8  ;;  %4393 = vmatprep.mubr.f32.mxu0 %v3968_v7  ;;  %4715 = vmatprep.mubr.f32.mxu1 %v3968_v7  ;;  %v7818_v3 = vpack.c.bf16 %v4222_v30, %v4218_v45  ;;  %v4224_v7 = vld [vmem:[#allocation7 + $0x748] sm:$0xff]  ;;  %v4223_v22 = vld [vmem:[#allocation7 + $0x740] sm:$0xff]  ;;  %v7822_v30 = vpack.c.bf16 %v4230_v54, %v4226_v43 }
 0x394   : > { %v11299_v60 = vadd.f32 %v3898_v15, %v11217_v32  ;;  %v11301_v38 = vpop.f32.mrb[39].mxu1  ;;  %4394 = vmatmul.mubr.f32.gmra.mrb[68].mxu0 %v3967_v48  ;;  %4716 = vmatmul.mubr.f32.gmra.mrb[68].mxu1 %v3967_v48  ;;  %v3971_v47 = vmax.f32 %v8336_v20, 0.0  ;;  %v7696_v46 = vpack.c.bf16 %v4227_v40, %v4223_v22  ;;  %v4244_v40 = vld [vmem:[#allocation7 + $0x7e8] sm:$0xff] }
 0x395   : > { %v3972_v4 = vmax.f32 %v8337_v19, 0.0  ;;  %7685 = vmatpush1.bf16.msra.mxu0 %v7684_v62  ;;  %v3582_v28 = vpop.f32.mrb[40].mxu0  ;;  %7813 = vmatpush1.bf16.msra.mxu1 %v7812_v16  ;;  %v4228_v16 = vld [vmem:[#allocation7 + $0x768] sm:$0xff] }
 0x396   : > { %v8338_v5 = vadd.f32 %v3582_v28, %v11209_v58  ;;  %v3584_v61 = vpop.f32.mrb[41].mxu0  ;;  %7687 = vmatprep.subr.bf16.mxu0 %v7686_v53  ;;  %7815 = vmatprep.subr.bf16.mxu1 %v7814_v11  ;;  %v7692_v11 = vpack.c.bf16 %v4219_v24, %v4215_v25  ;;  %v7694_v45 = vpack.c.bf16 %v4228_v16, %v4224_v7  ;;  %v4229_v28 = vld [vmem:[#allocation7 + $0x770] sm:$0xff]  ;;  %v4234_v25 = vld [vmem:[#allocation7 + $0x798] sm:$0xff] }
 0x397   : > { %v3904_v21 = vpop.f32.mrb[40].mxu1  ;;  %v8339_v62 = vadd.f32 %v3584_v61, %v11213_v8  ;;  %4399 = vmatprep.mubr.f32.mxu0 %v3972_v4  ;;  %4721 = vmatprep.mubr.f32.mxu1 %v3972_v4  ;;  %v4225_v4 = vld [vmem:[#allocation7 + $0x750] sm:$0xff]  ;;  %v4232_v61 = vld [vmem:[#allocation7 + $0x788] sm:$0xff]  ;;  %v4238_v24 = vld [vmem:[#allocation7 + $0x7b8] sm:$0xff] }
 0x398   : > { %v11306_v48 = vadd.f32 %v3904_v21, %v11217_v32  ;;  %v11308_v20 = vpop.f32.mrb[41].mxu1  ;;  %4400 = vmatmul.mubr.f32.gmra.mrb[70].mxu0 %v3971_v47  ;;  %4722 = vmatmul.mubr.f32.gmra.mrb[70].mxu1 %v3971_v47  ;;  %v3975_v15 = vmax.f32 %v8338_v5, 0.0  ;;  %v7824_v7 = vpack.c.bf16 %v4229_v28, %v4225_v4  ;;  %v4231_v21 = vld [vmem:[#allocation7 + $0x780] sm:$0xff] }
 0x399   : > { %v3976_v23 = vmax.f32 %v8339_v62, 0.0  ;;  %7689 = vmatpush1.bf16.msra.mxu0 %v7688_v59  ;;  %v3588_v53 = vpop.f32.mrb[42].mxu0  ;;  %7817 = vmatpush1.bf16.msra.mxu1 %v7816_v17  ;;  %v4236_v17 = vld [vmem:[#allocation7 + $0x7a8] sm:$0xff]  ;;  %v4235_v62 = vld [vmem:[#allocation7 + $0x7a0] sm:$0xff] }
 0x39a   : > { %v8340_v19 = vadd.f32 %v3588_v53, %v11209_v58  ;;  %v3590_v44 = vpop.f32.mrb[43].mxu0  ;;  %7691 = vmatprep.subr.bf16.mxu0 %v7690_v10  ;;  %7819 = vmatprep.subr.bf16.mxu1 %v7818_v3  ;;  %v7826_v53 = vpack.c.bf16 %v4238_v24, %v4234_v25  ;;  %v7702_v24 = vpack.c.bf16 %v4244_v40, %v4240_v1  ;;  %v4982_v1 = vld [vmem:[#allocation9 + $0x28] sm:$0xff] }
 0x39b   : > { %v8341_v59 = vadd.f32 %v3590_v44, %v11213_v8  ;;  %4405 = vmatprep.mubr.f32.mxu0 %v3976_v23  ;;  %4727 = vmatprep.mubr.f32.mxu1 %v3976_v23  ;;  %v7698_v23 = vpack.c.bf16 %v4236_v17, %v4232_v61  ;;  %v4233_v44 = vld [vmem:[#allocation7 + $0x790] sm:$0xff] }
 0x39c   : > { %4406 = vmatmul.mubr.f32.gmra.mrb[72].mxu0 %v3975_v15  ;;  %4728 = vmatmul.mubr.f32.gmra.mrb[72].mxu1 %v3975_v15  ;;  %v3979_v16 = vmax.f32 %v8340_v19, 0.0  ;;  %v4242_v15 = vld [vmem:[#allocation7 + $0x7d8] sm:$0xff] }
 0x39d   : > { %v3980_v10 = vmax.f32 %v8341_v59, 0.0  ;;  %7693 = vmatpush1.bf16.msra.mxu0 %v7692_v11  ;;  %7821 = vmatpush1.bf16.msra.mxu1 %v7820_v31  ;;  %v11320_v11 = vrot.slane %v11205_v9, %v12522_v52  ;;  %v4246_v19 = vld [vmem:[#allocation7 + $0x7f8] sm:$0xff]  ;;  %v7700_v9 = vpack.c.bf16 %v4235_v62, %v4231_v21  ;;  %v4245_v21 = vld [vmem:[#allocation7 + $0x7f0] sm:$0xff]  ;;  %v4978_v62 = vld [vmem:[#allocation9 + $0x8] sm:$0xff] }
 0x39e   : > { %v3910_v47 = vpop.f32.mrb[42].mxu1  ;;  %7695 = vmatprep.subr.bf16.mxu0 %v7694_v45  ;;  %7823 = vmatprep.subr.bf16.mxu1 %v7822_v30  ;;  %v7834_v40 = vpack.c.bf16 %v4982_v1, %v4978_v62  ;;  %v4991_v62 = vld [vmem:[#allocation9 + $0x70] sm:$0xff]  ;;  %v4994_v1 = vld [vmem:[#allocation9 + $0x88] sm:$0xff] }
 0x39f   : > { %v11313_v5 = vadd.f32 %v3910_v47, %v11217_v32  ;;  %v11315_v0 = vpop.f32.mrb[43].mxu1  ;;  %v4237_v47 = vld [vmem:[#allocation7 + $0x7b0] sm:$0xff]  ;;  %4411 = vmatprep.mubr.f32.mxu0 %v3980_v10  ;;  %4733 = vmatprep.mubr.f32.mxu1 %v3980_v10  ;;  %v4239_v10 = vld [vmem:[#allocation7 + $0x7c0] sm:$0xff] }
 0x3a0   : > { %4412 = vmatmul.mubr.f32.gmra.mrb[74].mxu0 %v3979_v16  ;;  %4734 = vmatmul.mubr.f32.gmra.mrb[74].mxu1 %v3979_v16  ;;  %v7828_v61 = vpack.c.bf16 %v4237_v47, %v4233_v44 }
 0x3a1   : > { %v3594_v3 = vpop.f32.mrb[44].mxu0  ;;  %7697 = vmatpush1.bf16.msra.mxu0 %v7696_v46  ;;  %7825 = vmatpush1.bf16.msra.mxu1 %v7824_v7  ;;  %v4241_v7 = vld [vmem:[#allocation7 + $0x7d0] sm:$0xff] }
 0x3a2   : > { %v8342_v43 = vadd.f32 %v3594_v3, %v11209_v58  ;;  %v3596_v54 = vpop.f32.mrb[45].mxu0  ;;  %7699 = vmatprep.subr.bf16.mxu0 %v7698_v23  ;;  %7827 = vmatprep.subr.bf16.mxu1 %v7826_v53  ;;  %v4243_v3 = vld [vmem:[#allocation7 + $0x7e0] sm:$0xff]  ;;  %v4980_v23 = vld [vmem:[#allocation9 + $0x18] sm:$0xff]  ;;  %v7832_v47 = vpack.c.bf16 %v4245_v21, %v4241_v7  ;;  %v4987_v7 = vld [vmem:[#allocation9 + $0x50] sm:$0xff] }
 0x3a3   : > { %v8343_v22 = vadd.f32 %v3596_v54, %v11213_v8  ;;  %v7830_v54 = vpack.c.bf16 %v4246_v19, %v4242_v15  ;;  %v4984_v53 = vld [vmem:[#allocation9 + $0x38] sm:$0xff]  ;;  %v4977_v15 = vld [vmem:[#allocation9] sm:$0xff] }
 0x3a4   : > { %v3916_v31 = vpop.f32.mrb[44].mxu1  ;;  %v3983_v59 = vmax.f32 %v8342_v43, 0.0  ;;  %v4981_v19 = vld [vmem:[#allocation9 + $0x20] sm:$0xff] }
 0x3a5   : > { %v11324_v45 = vadd.f32 %v3916_v31, %v11217_v32  ;;  %v11326_v30 = vpop.f32.mrb[45].mxu1  ;;  %v3984_v4 = vmax.f32 %v8343_v22, 0.0  ;;  %v3600_v28 = vpop.f32.mrb[46].mxu0  ;;  %v8347_v31 = vadd.f32 %v11224_v35, %v11320_v11  ;;  %7701 = vmatpush1.bf16.msra.mxu0 %v7700_v9  ;;  %7829 = vmatpush1.bf16.msra.mxu1 %v7828_v61  ;;  %v7704_v35 = vpack.c.bf16 %v4243_v3, %v4239_v10  ;;  %v4983_v9 = vld [vmem:[#allocation9 + $0x30] sm:$0xff]  ;;  %v4986_v61 = vld [vmem:[#allocation9 + $0x48] sm:$0xff] }
 0x3a6   : > { %v8344_v17 = vadd.f32 %v3600_v28, %v11209_v58  ;;  %v3602_v25 = vpop.f32.mrb[47].mxu0  ;;  %7703 = vmatprep.subr.bf16.mxu0 %v7702_v24  ;;  %7831 = vmatprep.subr.bf16.mxu1 %v7830_v54  ;;  %v4979_v28 = vld [vmem:[#allocation9 + $0x10] sm:$0xff]  ;;  %v3929_v24 = vmax.f32 %v11222_v6, 0.0  ;;  %v8351_v3 = vadd.f32 %v11238_v55, %v11320_v11  ;;  %v4996_v6 = vld [vmem:[#allocation9 + $0x98] sm:$0xff] }
 0x3a7   : > { %v8345_v46 = vadd.f32 %v3602_v25, %v11213_v8  ;;  %4417 = vmatprep.mubr.f32.mxu0 %v3984_v4  ;;  %4739 = vmatprep.mubr.f32.mxu1 %v3984_v4  ;;  %v3930_v22 = vmax.f32 %v8347_v31, 0.0  ;;  %v7962_v4 = vpack.c.bf16 %v4984_v53, %v4980_v23  ;;  %v4992_v25 = vld [vmem:[#allocation9 + $0x78] sm:$0xff]  ;;  %v7964_v54 = vpack.c.bf16 %v4983_v9, %v4979_v28  ;;  %v4998_v23 = vld [vmem:[#allocation9 + $0xa8] sm:$0xff] }
 0x3a8   : > { %v3922_v16 = vpop.f32.mrb[46].mxu1  ;;  %4418 = vmatmul.mubr.f32.gmra.mrb[76].mxu0 %v3983_v59  ;;  %4740 = vmatmul.mubr.f32.gmra.mrb[76].mxu1 %v3983_v59  ;;  %v3987_v8 = vmax.f32 %v8344_v17, 0.0  ;;  %v4990_v59 = vld [vmem:[#allocation9 + $0x68] sm:$0xff]  ;;  %v4988_v17 = vld [vmem:[#allocation9 + $0x58] sm:$0xff] }
 0x3a9   : > { %v11333_v58 = vadd.f32 %v3922_v16, %v11217_v32  ;;  %v11335_v43 = vpop.f32.mrb[47].mxu1  ;;  %v3988_v44 = vmax.f32 %v8345_v46, 0.0  ;;  %v8349_v32 = vadd.f32 %v11231_v41, %v11320_v11  ;;  %7705 = vmatpush1.bf16.msra.mxu0 %v7704_v35  ;;  %7833 = vmatpush1.bf16.msra.mxu1 %v7832_v47  ;;  %v7836_v41 = vpack.c.bf16 %v4981_v19, %v4977_v15  ;;  %v4985_v16 = vld [vmem:[#allocation9 + $0x40] sm:$0xff]  ;;  %v5000_v53 = vld [vmem:[#allocation9 + $0xb8] sm:$0xff]  ;;  %v4995_v15 = vld [vmem:[#allocation9 + $0x90] sm:$0xff] }
 0x3aa   : > { %7835 = vmatprep.subr.bf16.mxu0 %v7834_v40  ;;  %7963 = vmatprep.subr.bf16.mxu1 %v7962_v4  ;;  %v7838_v31 = vpack.c.bf16 %v4990_v59, %v4986_v61  ;;  %v4989_v46 = vld [vmem:[#allocation9 + $0x60] sm:$0xff]  ;;  %v7966_v21 = vpack.c.bf16 %v4992_v25, %v4988_v17  ;;  %v3938_v35 = vmax.f32 %v8351_v3, 0.0  ;;  %v7968_v47 = vpack.c.bf16 %v4991_v62, %v4987_v7  ;;  %v4999_v4 = vld [vmem:[#allocation9 + $0xb0] sm:$0xff]  ;;  %v5002_v28 = vld [vmem:[#allocation9 + $0xc8] sm:$0xff] }
 0x3ab   : > { %4423 = vmatprep.mubr.f32.mxu0 %v3988_v44  ;;  %4745 = vmatprep.mubr.f32.mxu1 %v3988_v44  ;;  %v3934_v10 = vmax.f32 %v8349_v32, 0.0  ;;  %v3933_v44 = vmax.f32 %v11229_v50, 0.0  ;;  %v7840_v55 = vpack.c.bf16 %v4989_v46, %v4985_v16  ;;  %v4993_v32 = vld [vmem:[#allocation9 + $0x80] sm:$0xff]  ;;  %v7970_v19 = vpack.c.bf16 %v5000_v53, %v4996_v6  ;;  %v5006_v50 = vld [vmem:[#allocation9 + $0xe8] sm:$0xff]  ;;  %v5004_v9 = vld [vmem:[#allocation9 + $0xd8] sm:$0xff] }
 0x3ac   : > { %4424 = vmatmul.mubr.f32.gmra.mrb[78].mxu0 %v3987_v8  ;;  %4746 = vmatmul.mubr.f32.gmra.mrb[78].mxu1 %v3987_v8  ;;  %v8353_v8 = vadd.f32 %v11245_v63, %v11320_v11  ;;  %v4997_v40 = vld [vmem:[#allocation9 + $0xa0] sm:$0xff]  ;;  %v5008_v61 = vld [vmem:[#allocation9 + $0xf8] sm:$0xff]  ;;  %v3937_v59 = vmax.f32 %v11236_v37, 0.0  ;;  %v8355_v25 = vadd.f32 %v11252_v12, %v11320_v11  ;;  %v5007_v16 = vld [vmem:[#allocation9 + $0xf0] sm:$0xff]  ;;  %v3941_v62 = vmax.f32 %v11243_v2, 0.0 }
 0x3ad   : > { %4494 = vmatprep.mubr.f32.mxu0 %v3930_v22  ;;  %4816 = vmatprep.mubr.f32.mxu1 %v3930_v22  ;;  %v7842_v22 = vpack.c.bf16 %v4998_v23, %v4994_v1  ;;  %v7844_v63 = vpack.c.bf16 %v4997_v40, %v4993_v32  ;;  %v5005_v3 = vld [vmem:[#allocation9 + $0xe0] sm:$0xff]  ;;  %v5010_v46 = vld [vmem:[#allocation9 + $0x108] sm:$0xff]  ;;  %v5012_v7 = vld [vmem:[#allocation9 + $0x118] sm:$0xff]  ;;  %v8357_v23 = vadd.f32 %v11259_v29, %v11320_v11 }
 0x3ae   : > { %v3942_v17 = vmax.f32 %v8353_v8, 0.0  ;;  %v5014_v37 = vld [vmem:[#allocation9 + $0x128] sm:$0xff]  ;;  %v3946_v1 = vmax.f32 %v8355_v25, 0.0  ;;  %v5020_v32 = vld [vmem:[#allocation9 + $0x158] sm:$0xff] }
 0x3af   : > { %v7850_v53 = vpack.c.bf16 %v5014_v37, %v5010_v46  ;;  %v5022_v2 = vld [vmem:[#allocation9 + $0x168] sm:$0xff]  ;;  %v5024_v40 = vld [vmem:[#allocation9 + $0x178] sm:$0xff]  ;;  %v5025_v46 = vld [vmem:[#allocation9 + $0x180] sm:$0xff] }
 0x3b0   : > { %4495 = vmatmul.mubr.f32.vlgmr.msra.gmra.mrb[48].mxu0 %v3929_v24  ;;  %4817 = vmatmul.mubr.f32.vlgmr.msra.gmra.mrb[48].mxu1 %v3929_v24  ;;  %v7972_v24 = vpack.c.bf16 %v4999_v4, %v4995_v15  ;;  %v3945_v15 = vmax.f32 %v11250_v33, 0.0  ;;  %v8359_v4 = vadd.f32 %v11266_v34, %v11320_v11  ;;  %v5026_v25 = vld [vmem:[#allocation9 + $0x188] sm:$0xff]  ;;  %v5029_v37 = vld [vmem:[#allocation9 + $0x1a0] sm:$0xff] }
 0x3b1   : > { %4500 = vmatprep.mubr.f32.mxu0 %v3934_v10  ;;  %4822 = vmatprep.mubr.f32.mxu1 %v3934_v10  ;;  %v5001_v10 = vld [vmem:[#allocation9 + $0xc0] sm:$0xff]  ;;  %v5030_v33 = vld [vmem:[#allocation9 + $0x1a8] sm:$0xff] }
 0x3b2   : > { %7837 = vmatpush1.bf16.msra.mxu0 %v7836_v41  ;;  %7965 = vmatpush1.bf16.msra.mxu1 %v7964_v54  ;;  %v7846_v41 = vpack.c.bf16 %v5006_v50, %v5002_v28  ;;  %v5003_v54 = vld [vmem:[#allocation9 + $0xd0] sm:$0xff]  ;;  %v7848_v12 = vpack.c.bf16 %v5005_v3, %v5001_v10  ;;  %v3949_v10 = vmax.f32 %v11257_v26, 0.0  ;;  %v3954_v3 = vmax.f32 %v8359_v4, 0.0  ;;  %v5038_v26 = vld [vmem:[#allocation9 + $0x1e8] sm:$0xff] }
 0x3b3   : > { %7839 = vmatprep.subr.bf16.mxu0 %v7838_v31  ;;  %7967 = vmatprep.subr.bf16.mxu1 %v7966_v21  ;;  %v7974_v31 = vpack.c.bf16 %v5008_v61, %v5004_v9  ;;  %v5016_v21 = vld [vmem:[#allocation9 + $0x138] sm:$0xff]  ;;  %v7976_v6 = vpack.c.bf16 %v5007_v16, %v5003_v54  ;;  %v5017_v9 = vld [vmem:[#allocation9 + $0x140] sm:$0xff]  ;;  %v8361_v54 = vadd.f32 %v11273_v49, %v11320_v11 }
 0x3b4   : > { %4501 = vmatmul.mubr.f32.gmra.mrb[50].mxu0 %v3933_v44  ;;  %4823 = vmatmul.mubr.f32.gmra.mrb[50].mxu1 %v3933_v44  ;;  %v5009_v44 = vld [vmem:[#allocation9 + $0x100] sm:$0xff]  ;;  %v7978_v8 = vpack.c.bf16 %v5016_v21, %v5012_v7  ;;  %v7858_v16 = vpack.c.bf16 %v5030_v33, %v5026_v25  ;;  %v5027_v7 = vld [vmem:[#allocation9 + $0x190] sm:$0xff]  ;;  %v7860_v49 = vpack.c.bf16 %v5029_v37, %v5025_v46  ;;  %v5050_v33 = vld [vmem:[#allocation9 + $0x248] sm:$0xff] }
 0x3b5   : > { %4506 = vmatprep.mubr.f32.mxu0 %v3938_v35  ;;  %4828 = vmatprep.mubr.f32.mxu1 %v3938_v35  ;;  %v5011_v35 = vld [vmem:[#allocation9 + $0x110] sm:$0xff]  ;;  %v5021_v61 = vld [vmem:[#allocation9 + $0x160] sm:$0xff] }
 0x3b6   : > { %7841 = vmatpush1.bf16.msra.mxu0 %v7840_v55  ;;  %7969 = vmatpush1.bf16.msra.mxu1 %v7968_v47  ;;  %v5013_v55 = vld [vmem:[#allocation9 + $0x120] sm:$0xff]  ;;  %v5015_v47 = vld [vmem:[#allocation9 + $0x130] sm:$0xff]  ;;  %v7856_v34 = vpack.c.bf16 %v5021_v61, %v5017_v9 }
 0x3b7   : > { %7843 = vmatprep.subr.bf16.mxu0 %v7842_v22  ;;  %7971 = vmatprep.subr.bf16.mxu1 %v7970_v19  ;;  %v5018_v22 = vld [vmem:[#allocation9 + $0x148] sm:$0xff]  ;;  %v7852_v29 = vpack.c.bf16 %v5013_v55, %v5009_v44  ;;  %v3950_v19 = vmax.f32 %v8357_v23, 0.0  ;;  %v7980_v28 = vpack.c.bf16 %v5015_v47, %v5011_v35  ;;  %v5040_v23 = vld [vmem:[#allocation9 + $0x1f8] sm:$0xff]  ;;  %v8363_v44 = vadd.f32 %v11280_v57, %v11320_v11  ;;  %v5037_v47 = vld [vmem:[#allocation9 + $0x1e0] sm:$0xff] }
 0x3b8   : > { %4507 = vmatmul.mubr.f32.gmra.mrb[52].mxu0 %v3937_v59  ;;  %4829 = vmatmul.mubr.f32.gmra.mrb[52].mxu1 %v3937_v59  ;;  %v7854_v50 = vpack.c.bf16 %v5022_v2, %v5018_v22  ;;  %v5019_v59 = vld [vmem:[#allocation9 + $0x150] sm:$0xff]  ;;  %v5041_v61 = vld [vmem:[#allocation9 + $0x200] sm:$0xff] }
 0x3b9   : > { %4512 = vmatprep.mubr.f32.mxu0 %v3942_v17  ;;  %4834 = vmatprep.mubr.f32.mxu1 %v3942_v17  ;;  %v5023_v17 = vld [vmem:[#allocation9 + $0x170] sm:$0xff]  ;;  %v3962_v4 = vmax.f32 %v8363_v44, 0.0  ;;  %v5053_v46 = vld [vmem:[#allocation9 + $0x260] sm:$0xff] }
 0x3ba   : > { %7845 = vmatpush1.bf16.msra.mxu0 %v7844_v63  ;;  %7973 = vmatpush1.bf16.msra.mxu1 %v7972_v24  ;;  %v7982_v63 = vpack.c.bf16 %v5024_v40, %v5020_v32  ;;  %v5028_v24 = vld [vmem:[#allocation9 + $0x198] sm:$0xff]  ;;  %v5035_v22 = vld [vmem:[#allocation9 + $0x1d0] sm:$0xff]  ;;  %v5042_v40 = vld [vmem:[#allocation9 + $0x208] sm:$0xff] }
 0x3bb   : > { %7847 = vmatprep.subr.bf16.mxu0 %v7846_v41  ;;  %7975 = vmatprep.subr.bf16.mxu1 %v7974_v31  ;;  %v5032_v41 = vld [vmem:[#allocation9 + $0x1b8] sm:$0xff]  ;;  %v7984_v31 = vpack.c.bf16 %v5023_v17, %v5019_v59  ;;  %v5039_v32 = vld [vmem:[#allocation9 + $0x1f0] sm:$0xff]  ;;  %v5045_v59 = vld [vmem:[#allocation9 + $0x220] sm:$0xff] }
 0x3bc   : > { %4513 = vmatmul.mubr.f32.gmra.mrb[54].mxu0 %v3941_v62  ;;  %4835 = vmatmul.mubr.f32.gmra.mrb[54].mxu1 %v3941_v62  ;;  %v7986_v21 = vpack.c.bf16 %v5032_v41, %v5028_v24  ;;  %v5031_v62 = vld [vmem:[#allocation9 + $0x1b0] sm:$0xff]  ;;  %v5052_v24 = vld [vmem:[#allocation9 + $0x258] sm:$0xff]  ;;  %v5057_v44 = vld [vmem:[#allocation9 + $0x280] sm:$0xff] }
 0x3bd   : > { %4518 = vmatprep.mubr.f32.mxu0 %v3946_v1  ;;  %4840 = vmatprep.mubr.f32.mxu1 %v3946_v1  ;;  %v5036_v1 = vld [vmem:[#allocation9 + $0x1d8] sm:$0xff]  ;;  %v7988_v55 = vpack.c.bf16 %v5031_v62, %v5027_v7  ;;  %v5047_v25 = vld [vmem:[#allocation9 + $0x230] sm:$0xff]  ;;  %v5058_v62 = vld [vmem:[#allocation9 + $0x288] sm:$0xff] }
 0x3be   : > { %7849 = vmatpush1.bf16.msra.mxu0 %v7848_v12  ;;  %7977 = vmatpush1.bf16.msra.mxu1 %v7976_v6  ;;  %v5034_v12 = vld [vmem:[#allocation9 + $0x1c8] sm:$0xff]  ;;  %v3953_v6 = vmax.f32 %v11264_v18, 0.0  ;;  %v7990_v2 = vpack.c.bf16 %v5040_v23, %v5036_v1  ;;  %v5056_v41 = vld [vmem:[#allocation9 + $0x278] sm:$0xff]  ;;  %v5051_v37 = vld [vmem:[#allocation9 + $0x250] sm:$0xff]  ;;  %v3965_v1 = vmax.f32 %v11285_v39, 0.0 }
 0x3bf   : > { %7851 = vmatprep.subr.bf16.mxu0 %v7850_v53  ;;  %7979 = vmatprep.subr.bf16.mxu1 %v7978_v8  ;;  %v3958_v53 = vmax.f32 %v8361_v54, 0.0  ;;  %v7862_v35 = vpack.c.bf16 %v5038_v26, %v5034_v12  ;;  %v5033_v8 = vld [vmem:[#allocation9 + $0x1c0] sm:$0xff]  ;;  %v5046_v18 = vld [vmem:[#allocation9 + $0x228] sm:$0xff]  ;;  %v7998_v7 = vpack.c.bf16 %v5056_v41, %v5052_v24  ;;  %v5060_v12 = vld [vmem:[#allocation9 + $0x298] sm:$0xff] }
 0x3c0   : > { %4519 = vmatmul.mubr.f32.gmra.mrb[56].mxu0 %v3945_v15  ;;  %4841 = vmatmul.mubr.f32.gmra.mrb[56].mxu1 %v3945_v15  ;;  %v5044_v15 = vld [vmem:[#allocation9 + $0x218] sm:$0xff]  ;;  %v7864_v57 = vpack.c.bf16 %v5037_v47, %v5033_v8  ;;  %v7866_v9 = vpack.c.bf16 %v5046_v18, %v5042_v40  ;;  %v5063_v47 = vld [vmem:[#allocation9 + $0x2b0] sm:$0xff]  ;;  %v5070_v39 = vld [vmem:[#allocation9 + $0x2e8] sm:$0xff]  ;;  %v3969_v40 = vmax.f32 %v11292_v56, 0.0 }
 0x3c1   : > { %4524 = vmatprep.mubr.f32.mxu0 %v3950_v19  ;;  %4846 = vmatprep.mubr.f32.mxu1 %v3950_v19  ;;  %v3957_v19 = vmax.f32 %v11271_v51, 0.0  ;;  %v5054_v51 = vld [vmem:[#allocation9 + $0x268] sm:$0xff]  ;;  %v5064_v26 = vld [vmem:[#allocation9 + $0x2b8] sm:$0xff]  ;;  %v5073_v41 = vld [vmem:[#allocation9 + $0x300] sm:$0xff] }
 0x3c2   : > { %7853 = vmatpush1.bf16.msra.mxu0 %v7852_v29  ;;  %7981 = vmatpush1.bf16.msra.mxu1 %v7980_v28  ;;  %v5048_v29 = vld [vmem:[#allocation9 + $0x238] sm:$0xff]  ;;  %v8365_v28 = vadd.f32 %v11287_v27, %v11320_v11  ;;  %v7868_v27 = vpack.c.bf16 %v5045_v59, %v5041_v61  ;;  %v8002_v8 = vpack.c.bf16 %v5064_v26, %v5060_v12  ;;  %v5074_v61 = vld [vmem:[#allocation9 + $0x308] sm:$0xff]  ;;  %v5085_v12 = vld [vmem:[#allocation9 + $0x360] sm:$0xff] }
 0x3c3   : > { %7855 = vmatprep.subr.bf16.mxu0 %v7854_v50  ;;  %7983 = vmatprep.subr.bf16.mxu1 %v7982_v63  ;;  %v7992_v50 = vpack.c.bf16 %v5039_v32, %v5035_v22  ;;  %v5043_v63 = vld [vmem:[#allocation9 + $0x210] sm:$0xff]  ;;  %v7994_v17 = vpack.c.bf16 %v5048_v29, %v5044_v15  ;;  %v5066_v22 = vld [vmem:[#allocation9 + $0x2c8] sm:$0xff]  ;;  %v5072_v32 = vld [vmem:[#allocation9 + $0x2f8] sm:$0xff]  ;;  %v8371_v15 = vadd.f32 %v11308_v20, %v11320_v11 }
 0x3c4   : > { %4525 = vmatmul.mubr.f32.gmra.mrb[58].mxu0 %v3949_v10  ;;  %4847 = vmatmul.mubr.f32.gmra.mrb[58].mxu1 %v3949_v10  ;;  %v3961_v10 = vmax.f32 %v11278_v36, 0.0  ;;  %v7996_v54 = vpack.c.bf16 %v5047_v25, %v5043_v63  ;;  %v5062_v36 = vld [vmem:[#allocation9 + $0x2a8] sm:$0xff]  ;;  %v5076_v59 = vld [vmem:[#allocation9 + $0x318] sm:$0xff]  ;;  %v5083_v26 = vld [vmem:[#allocation9 + $0x350] sm:$0xff] }
 0x3c5   : > { %4530 = vmatprep.mubr.f32.mxu0 %v3954_v3  ;;  %4852 = vmatprep.mubr.f32.mxu1 %v3954_v3  ;;  %v8367_v3 = vadd.f32 %v11294_v13, %v11320_v11  ;;  %v5078_v56 = vld [vmem:[#allocation9 + $0x328] sm:$0xff]  ;;  %v5080_v63 = vld [vmem:[#allocation9 + $0x338] sm:$0xff]  ;;  %v3978_v25 = vmax.f32 %v8371_v15, 0.0  ;;  %v5097_v15 = vld [vmem:[#allocation9 + $0x3c0] sm:$0xff] }
 0x3c6   : > { %7857 = vmatpush1.bf16.msra.mxu0 %v7856_v34  ;;  %7985 = vmatpush1.bf16.msra.mxu1 %v7984_v31  ;;  %v3966_v34 = vmax.f32 %v8365_v28, 0.0  ;;  %v7870_v31 = vpack.c.bf16 %v5054_v51, %v5050_v33  ;;  %v5067_v28 = vld [vmem:[#allocation9 + $0x2d0] sm:$0xff]  ;;  %v8373_v33 = vadd.f32 %v11315_v0, %v11320_v11  ;;  %v7882_v24 = vpack.c.bf16 %v5078_v56, %v5074_v61  ;;  %v5106_v56 = vld [vmem:[#allocation9 + $0x408] sm:$0xff] }
 0x3c7   : > { %7859 = vmatprep.subr.bf16.mxu0 %v7858_v16  ;;  %7987 = vmatprep.subr.bf16.mxu1 %v7986_v21  ;;  %v5049_v16 = vld [vmem:[#allocation9 + $0x240] sm:$0xff]  ;;  %v5055_v21 = vld [vmem:[#allocation9 + $0x270] sm:$0xff]  ;;  %v3970_v23 = vmax.f32 %v8367_v3, 0.0 }
 0x3c8   : > { %4531 = vmatmul.mubr.f32.gmra.mrb[60].mxu0 %v3953_v6  ;;  %4853 = vmatmul.mubr.f32.gmra.mrb[60].mxu1 %v3953_v6  ;;  %v7872_v13 = vpack.c.bf16 %v5053_v46, %v5049_v16  ;;  %v8369_v6 = vadd.f32 %v11301_v38, %v11320_v11  ;;  %v5079_v3 = vld [vmem:[#allocation9 + $0x330] sm:$0xff]  ;;  %v5088_v16 = vld [vmem:[#allocation9 + $0x378] sm:$0xff]  ;;  %v3977_v46 = vmax.f32 %v11306_v48, 0.0  ;;  %v5094_v48 = vld [vmem:[#allocation9 + $0x3a8] sm:$0xff] }
 0x3c9   : > { %4536 = vmatprep.mubr.f32.mxu0 %v3958_v53  ;;  %4858 = vmatprep.mubr.f32.mxu1 %v3958_v53  ;;  %v7874_v53 = vpack.c.bf16 %v5062_v36, %v5058_v62  ;;  %v5081_v36 = vld [vmem:[#allocation9 + $0x340] sm:$0xff] }
 0x3ca   : > { %7861 = vmatpush1.bf16.msra.mxu0 %v7860_v49  ;;  %7989 = vmatpush1.bf16.msra.mxu1 %v7988_v55  ;;  %v8000_v49 = vpack.c.bf16 %v5055_v21, %v5051_v37  ;;  %v5061_v55 = vld [vmem:[#allocation9 + $0x2a0] sm:$0xff]  ;;  %v3974_v18 = vmax.f32 %v8369_v6, 0.0  ;;  %v3982_v37 = vmax.f32 %v8373_v33, 0.0  ;;  %v5092_v6 = vld [vmem:[#allocation9 + $0x398] sm:$0xff] }
 0x3cb   : > { %7863 = vmatprep.subr.bf16.mxu0 %v7862_v35  ;;  %7991 = vmatprep.subr.bf16.mxu1 %v7990_v2  ;;  %v5059_v35 = vld [vmem:[#allocation9 + $0x290] sm:$0xff]  ;;  %v5068_v2 = vld [vmem:[#allocation9 + $0x2d8] sm:$0xff]  ;;  %v7876_v38 = vpack.c.bf16 %v5061_v55, %v5057_v44  ;;  %v8377_v55 = vadd.f32 %v11335_v43, %v11320_v11  ;;  %v11386_v33 = vld [vmem:[%s11950_s7] sm:$0xf] }
 0x3cc   : > { %4537 = vmatmul.mubr.f32.gmra.mrb[62].mxu0 %v3957_v19  ;;  %4859 = vmatmul.mubr.f32.gmra.mrb[62].mxu1 %v3957_v19  ;;  %v8004_v29 = vpack.c.bf16 %v5063_v47, %v5059_v35  ;;  %v7878_v19 = vpack.c.bf16 %v5070_v39, %v5066_v22  ;;  %v5089_v47 = vld [vmem:[#allocation9 + $0x380] sm:$0xff]  ;;  %v5091_v43 = vld [vmem:[#allocation9 + $0x390] sm:$0xff] }
 0x3cd   : > { %4542 = vmatprep.mubr.f32.mxu0 %v3962_v4  ;;  %4864 = vmatprep.mubr.f32.mxu1 %v3962_v4  ;;  %v5069_v4 = vld [vmem:[#allocation9 + $0x2e0] sm:$0xff] }
 0x3ce   : > { %7865 = vmatpush1.bf16.msra.mxu0 %v7864_v57  ;;  %7993 = vmatpush1.bf16.msra.mxu1 %v7992_v50  ;;  %v5065_v57 = vld [vmem:[#allocation9 + $0x2c0] sm:$0xff]  ;;  %v8006_v50 = vpack.c.bf16 %v5072_v32, %v5068_v2  ;;  %v3990_v32 = vmax.f32 %v8377_v55, 0.0  ;;  %v5119_v55 = vld [vmem:[#allocation9 + $0x470] sm:$0xff] }
 0x3cf   : > { %7867 = vmatprep.subr.bf16.mxu0 %v7866_v9  ;;  %7995 = vmatprep.subr.bf16.mxu1 %v7994_v17  ;;  %v5071_v9 = vld [vmem:[#allocation9 + $0x2f0] sm:$0xff]  ;;  %v3973_v17 = vmax.f32 %v11299_v60, 0.0  ;;  %v7880_v20 = vpack.c.bf16 %v5069_v4, %v5065_v57  ;;  %v5086_v60 = vld [vmem:[#allocation9 + $0x368] sm:$0xff]  ;;  %v5093_v22 = vld [vmem:[#allocation9 + $0x3a0] sm:$0xff] }
 0x3d0   : > { %4543 = vmatmul.mubr.f32.gmra.mrb[64].mxu0 %v3961_v10  ;;  %4865 = vmatmul.mubr.f32.gmra.mrb[64].mxu1 %v3961_v10  ;;  %v8008_v51 = vpack.c.bf16 %v5071_v9, %v5067_v28  ;;  %v5077_v10 = vld [vmem:[#allocation9 + $0x320] sm:$0xff]  ;;  %v7892_v2 = vpack.c.bf16 %v5093_v22, %v5089_v47  ;;  %v5100_v57 = vld [vmem:[#allocation9 + $0x3d8] sm:$0xff]  ;;  %v5099_v9 = vld [vmem:[#allocation9 + $0x3d0] sm:$0xff] }
 0x3d1   : > { %4548 = vmatprep.mubr.f32.mxu0 %v3966_v34  ;;  %4870 = vmatprep.mubr.f32.mxu1 %v3966_v34  ;;  %v8010_v34 = vpack.c.bf16 %v5080_v63, %v5076_v59  ;;  %v7884_v0 = vpack.c.bf16 %v5077_v10, %v5073_v41  ;;  %v5104_v4 = vld [vmem:[#allocation9 + $0x3f8] sm:$0xff]  ;;  %v5110_v59 = vld [vmem:[#allocation9 + $0x428] sm:$0xff]  ;;  %v5105_v10 = vld [vmem:[#allocation9 + $0x400] sm:$0xff] }
 0x3d2   : > { %7869 = vmatpush1.bf16.msra.mxu0 %v7868_v27  ;;  %7997 = vmatpush1.bf16.msra.mxu1 %v7996_v54  ;;  %v5075_v27 = vld [vmem:[#allocation9 + $0x310] sm:$0xff]  ;;  %v5082_v54 = vld [vmem:[#allocation9 + $0x348] sm:$0xff]  ;;  %v7898_v63 = vpack.c.bf16 %v5110_v59, %v5106_v56  ;;  %v5132_v56 = vld [vmem:[#allocation9 + $0x4d8] sm:$0xff] }
 0x3d3   : > { %7871 = vmatprep.subr.bf16.mxu0 %v7870_v31  ;;  %7999 = vmatprep.subr.bf16.mxu1 %v7998_v7  ;;  %v5084_v31 = vld [vmem:[#allocation9 + $0x358] sm:$0xff]  ;;  %v8375_v7 = vadd.f32 %v11326_v30, %v11320_v11  ;;  %v8012_v21 = vpack.c.bf16 %v5079_v3, %v5075_v27  ;;  %v7886_v62 = vpack.c.bf16 %v5086_v60, %v5082_v54  ;;  %v3989_v11 = vmax.f32 %v11333_v58, 0.0  ;;  %v5103_v58 = vld [vmem:[#allocation9 + $0x3f0] sm:$0xff]  ;;  %v5109_v27 = vld [vmem:[#allocation9 + $0x420] sm:$0xff] }
 0x3d4   : > { %4549 = vmatmul.mubr.f32.gmra.mrb[66].mxu0 %v3965_v1  ;;  %4871 = vmatmul.mubr.f32.gmra.mrb[66].mxu1 %v3965_v1  ;;  %v8014_v1 = vpack.c.bf16 %v5088_v16, %v5084_v31  ;;  %v7888_v30 = vpack.c.bf16 %v5085_v12, %v5081_v36  ;;  %v8024_v61 = vpack.c.bf16 %v5103_v58, %v5099_v9  ;;  %v5107_v60 = vld [vmem:[#allocation9 + $0x410] sm:$0xff]  ;;  %v5114_v16 = vld [vmem:[#allocation9 + $0x448] sm:$0xff]  ;;  %v5136_v59 = vld [vmem:[#allocation9 + $0x4f8] sm:$0xff] }
 0x3d5   : > { %4554 = vmatprep.mubr.f32.mxu0 %v3970_v23  ;;  %4876 = vmatprep.mubr.f32.mxu1 %v3970_v23  ;;  %v5090_v23 = vld [vmem:[#allocation9 + $0x388] sm:$0xff]  ;;  %v3986_v44 = vmax.f32 %v8375_v7, 0.0  ;;  %v5111_v31 = vld [vmem:[#allocation9 + $0x430] sm:$0xff]  ;;  %v5116_v7 = vld [vmem:[#allocation9 + $0x458] sm:$0xff]  ;;  %v7900_v12 = vpack.c.bf16 %v5109_v27, %v5105_v10 }
 0x3d6   : > { %7873 = vmatpush1.bf16.msra.mxu0 %v7872_v13  ;;  %8001 = vmatpush1.bf16.msra.mxu1 %v8000_v49  ;;  %v5087_v13 = vld [vmem:[#allocation9 + $0x370] sm:$0xff]  ;;  %v5096_v49 = vld [vmem:[#allocation9 + $0x3b8] sm:$0xff]  ;;  %v5126_v22 = vld [vmem:[#allocation9 + $0x4a8] sm:$0xff] }
 0x3d7   : > { %7875 = vmatprep.subr.bf16.mxu0 %v7874_v53  ;;  %8003 = vmatprep.subr.bf16.mxu1 %v8002_v8  ;;  %v3981_v53 = vmax.f32 %v11313_v5, 0.0  ;;  %v8016_v35 = vpack.c.bf16 %v5087_v13, %v5083_v26  ;;  %v7890_v8 = vpack.c.bf16 %v5094_v48, %v5090_v23  ;;  %v8018_v39 = vpack.c.bf16 %v5096_v49, %v5092_v6  ;;  %v5117_v13 = vld [vmem:[#allocation9 + $0x460] sm:$0xff] }
 0x3d8   : > { %4555 = vmatmul.mubr.f32.gmra.mrb[68].mxu0 %v3969_v40  ;;  %4877 = vmatmul.mubr.f32.gmra.mrb[68].mxu1 %v3969_v40  ;;  %v3985_v5 = vmax.f32 %v11324_v45, 0.0  ;;  %v5095_v40 = vld [vmem:[#allocation9 + $0x3b0] sm:$0xff]  ;;  %v5098_v45 = vld [vmem:[#allocation9 + $0x3c8] sm:$0xff]  ;;  %v8028_v26 = vpack.c.bf16 %v5111_v31, %v5107_v60  ;;  %v5133_v10 = vld [vmem:[#allocation9 + $0x4e0] sm:$0xff] }
 0x3d9   : > { %4560 = vmatprep.mubr.f32.mxu0 %v3974_v18  ;;  %4882 = vmatprep.mubr.f32.mxu1 %v3974_v18  ;;  %v5102_v18 = vld [vmem:[#allocation9 + $0x3e8] sm:$0xff] }
 0x3da   : > { %7877 = vmatpush1.bf16.msra.mxu0 %v7876_v38  ;;  %8005 = vmatpush1.bf16.msra.mxu1 %v8004_v29  ;;  %v8020_v38 = vpack.c.bf16 %v5095_v40, %v5091_v43  ;;  %v7894_v29 = vpack.c.bf16 %v5102_v18, %v5098_v45  ;;  %v5121_v40 = vld [vmem:[#allocation9 + $0x480] sm:$0xff] }
 0x3db   : > { %7879 = vmatprep.subr.bf16.mxu0 %v7878_v19  ;;  %8007 = vmatprep.subr.bf16.mxu1 %v8006_v50  ;;  %v5101_v19 = vld [vmem:[#allocation9 + $0x3e0] sm:$0xff]  ;;  %v8022_v50 = vpack.c.bf16 %v5104_v4, %v5100_v57  ;;  %v5123_v4 = vld [vmem:[#allocation9 + $0x490] sm:$0xff] }
 0x3dc   : > { %4561 = vmatmul.mubr.f32.gmra.mrb[70].mxu0 %v3973_v17  ;;  %4883 = vmatmul.mubr.f32.gmra.mrb[70].mxu1 %v3973_v17  ;;  %v7896_v28 = vpack.c.bf16 %v5101_v19, %v5097_v15  ;;  %v5108_v17 = vld [vmem:[#allocation9 + $0x418] sm:$0xff] }
 0x3dd   : > { %4566 = vmatprep.mubr.f32.mxu0 %v3978_v25  ;;  %4888 = vmatprep.mubr.f32.mxu1 %v3978_v25 }
 0x3de   : > { %7881 = vmatpush1.bf16.msra.mxu0 %v7880_v20  ;;  %8009 = vmatpush1.bf16.msra.mxu1 %v8008_v51  ;;  %v5112_v20 = vld [vmem:[#allocation9 + $0x438] sm:$0xff]  ;;  %v11390_v51 = vrot.slane %v11386_v33, %v12650_v14 }
 0x3df   : > { %7883 = vmatprep.subr.bf16.mxu0 %v7882_v24  ;;  %8011 = vmatprep.subr.bf16.mxu1 %v8010_v34  ;;  %v8026_v25 = vpack.c.bf16 %v5112_v20, %v5108_v17  ;;  %v11394_v24 = vrot.slane %v11386_v33, %v12651_v42 }
 0x3e0   : > { %4567 = vmatmul.mubr.f32.gmra.mrb[72].mxu0 %v3977_v46  ;;  %4889 = vmatmul.mubr.f32.gmra.mrb[72].mxu1 %v3977_v46 }
 0x3e1   : > { %4572 = vmatprep.mubr.f32.mxu0 %v3982_v37  ;;  %4894 = vmatprep.mubr.f32.mxu1 %v3982_v37  ;;  %v5118_v37 = vld [vmem:[#allocation9 + $0x468] sm:$0xff] }
 0x3e2   : > { %7885 = vmatpush1.bf16.msra.mxu0 %v7884_v0  ;;  %8013 = vmatpush1.bf16.msra.mxu1 %v8012_v21  ;;  %v5120_v21 = vld [vmem:[#allocation9 + $0x478] sm:$0xff] }
 0x3e3   : > { %7887 = vmatprep.subr.bf16.mxu0 %v7886_v62  ;;  %8015 = vmatprep.subr.bf16.mxu1 %v8014_v1  ;;  %v5113_v1 = vld [vmem:[#allocation9 + $0x440] sm:$0xff] }
 0x3e4   : > { %4573 = vmatmul.mubr.f32.gmra.mrb[74].mxu0 %v3981_v53  ;;  %4895 = vmatmul.mubr.f32.gmra.mrb[74].mxu1 %v3981_v53  ;;  %v7902_v53 = vpack.c.bf16 %v5118_v37, %v5114_v16  ;;  %v8038_v16 = vpack.c.bf16 %v5136_v59, %v5132_v56  ;;  %v5135_v37 = vld [vmem:[#allocation9 + $0x4f0] sm:$0xff] }
 0x3e5   : > { %4578 = vmatprep.mubr.f32.mxu0 %v3986_v44  ;;  %4900 = vmatprep.mubr.f32.mxu1 %v3986_v44  ;;  %v5115_v44 = vld [vmem:[#allocation9 + $0x450] sm:$0xff] }
 0x3e6   : > { %7889 = vmatpush1.bf16.msra.mxu0 %v7888_v30  ;;  %8017 = vmatpush1.bf16.msra.mxu1 %v8016_v35  ;;  %v8030_v30 = vpack.c.bf16 %v5120_v21, %v5116_v7  ;;  %v5122_v35 = vld [vmem:[#allocation9 + $0x488] sm:$0xff]  ;;  %v8032_v43 = vpack.c.bf16 %v5119_v55, %v5115_v44 }
 0x3e7   : > { %7891 = vmatprep.subr.bf16.mxu0 %v7890_v8  ;;  %8019 = vmatprep.subr.bf16.mxu1 %v8018_v39  ;;  %v5124_v39 = vld [vmem:[#allocation9 + $0x498] sm:$0xff]  ;;  %v7906_v19 = vpack.c.bf16 %v5126_v22, %v5122_v35  ;;  %v5138_v7 = vld [vmem:[#allocation9 + $0x508] sm:$0xff] }
 0x3e8   : > { %4579 = vmatmul.mubr.f32.gmra.mrb[76].mxu0 %v3985_v5  ;;  %4901 = vmatmul.mubr.f32.gmra.mrb[76].mxu1 %v3985_v5  ;;  %v5128_v5 = vld [vmem:[#allocation9 + $0x4b8] sm:$0xff] }
 0x3e9   : > { %4584 = vmatprep.mubr.f32.mxu0 %v3990_v32  ;;  %4906 = vmatprep.mubr.f32.mxu1 %v3990_v32  ;;  %v8034_v57 = vpack.c.bf16 %v5128_v5, %v5124_v39  ;;  %v5139_v39 = vld [vmem:[#allocation9 + $0x510] sm:$0xff] }
 0x3ea   : > { %7893 = vmatpush1.bf16.msra.mxu0 %v7892_v2  ;;  %8021 = vmatpush1.bf16.msra.mxu1 %v8020_v38  ;;  %v5125_v38 = vld [vmem:[#allocation9 + $0x4a0] sm:$0xff]  ;;  %v5143_v5 = vld [vmem:[#allocation9 + $0x530] sm:$0xff] }
 0x3eb   : > { %7895 = vmatprep.subr.bf16.mxu0 %v7894_v29  ;;  %8023 = vmatprep.subr.bf16.mxu1 %v8022_v50  ;;  %v5130_v50 = vld [vmem:[#allocation9 + $0x4c8] sm:$0xff]  ;;  %v7908_v20 = vpack.c.bf16 %v5125_v38, %v5121_v40  ;;  %v5148_v40 = vld [vmem:[#allocation9 + $0x558] sm:$0xff] }
 0x3ec   : > { %4585 = vmatmul.mubr.f32.gmra.mrb[78].mxu0 %v3989_v11  ;;  %4907 = vmatmul.mubr.f32.gmra.mrb[78].mxu1 %v3989_v11  ;;  %v7904_v11 = vpack.c.bf16 %v5117_v13, %v5113_v1  ;;  %v5152_v38 = vld [vmem:[#allocation9 + $0x578] sm:$0xff] }
 0x3ed   : > { %v8046_v59 = vpack.c.bf16 %v5152_v38, %v5148_v40 }
 0x3ee   : > { %7897 = vmatpush1.bf16.msra.mxu0 %v7896_v28  ;;  %8025 = vmatpush1.bf16.msra.mxu1 %v8024_v61  ;;  %v5127_v28 = vld [vmem:[#allocation9 + $0x4b0] sm:$0xff]  ;;  %v5134_v61 = vld [vmem:[#allocation9 + $0x4e8] sm:$0xff] }
 0x3ef   : > { %7899 = vmatprep.subr.bf16.mxu0 %v7898_v63  ;;  %8027 = vmatprep.subr.bf16.mxu1 %v8026_v25  ;;  %v8036_v25 = vpack.c.bf16 %v5127_v28, %v5123_v4  ;;  %v7910_v31 = vpack.c.bf16 %v5134_v61, %v5130_v50  ;;  %v5149_v4 = vld [vmem:[#allocation9 + $0x560] sm:$0xff] }
 0x483   : > { %v4496_v41 = vpop.f32.mrb[48].mxu0  ;;  %v11397_v3 = vpop.f32.mrb[48].mxu1 }
 0x484   : > { %v8378_v34 = vadd.f32 %v4496_v41, %v11390_v51  ;;  %v4498_v54 = vpop.f32.mrb[49].mxu0  ;;  %v11400_v0 = vpop.f32.mrb[49].mxu1  ;;  %v5129_v41 = vld [vmem:[#allocation9 + $0x4c0] sm:$0xff] }
 0x485   : > { %v8379_v46 = vadd.f32 %v4498_v54, %v11394_v24 }
 0x486   : > { %v4913_v23 = vmax.f32 %v8378_v34, 0.0 }
 0x487   : > { %v4914_v62 = vmax.f32 %v8379_v46, 0.0  ;;  %v4502_v36 = vpop.f32.mrb[50].mxu0  ;;  %v11403_v6 = vpop.f32.mrb[50].mxu1  ;;  %v5131_v46 = vld [vmem:[#allocation9 + $0x4d0] sm:$0xff] }
 0x488   : > { %v8380_v48 = vadd.f32 %v4502_v36, %v11390_v51  ;;  %v4504_v49 = vpop.f32.mrb[51].mxu0  ;;  %v11406_v47 = vpop.f32.mrb[51].mxu1  ;;  %v5142_v36 = vld [vmem:[#allocation9 + $0x528] sm:$0xff] }
 0x489   : > { %v8381_v8 = vadd.f32 %v4504_v49, %v11394_v24  ;;  %5319 = vmatprep.mubr.f32.mxu0 %v4914_v62  ;;  %5641 = vmatprep.mubr.f32.mxu1 %v4914_v62  ;;  %v5137_v49 = vld [vmem:[#allocation9 + $0x500] sm:$0xff] }
 0x48a   : > { %5320 = vmatmul.mubr.f32.vlgmr.msra.gmra.mrb[80].mxu0 %v4913_v23  ;;  %5642 = vmatmul.mubr.f32.vlgmr.msra.gmra.mrb[80].mxu1 %v4913_v23  ;;  %v4917_v45 = vmax.f32 %v8380_v48, 0.0  ;;  %v7912_v23 = vpack.c.bf16 %v5133_v10, %v5129_v41  ;;  %v8040_v48 = vpack.c.bf16 %v5135_v37, %v5131_v46  ;;  %v5158_v10 = vld [vmem:[#allocation9 + $0x5a8] sm:$0xff]  ;;  %v5153_v37 = vld [vmem:[#allocation9 + $0x580] sm:$0xff] }
 0x48b   : > { %v4918_v2 = vmax.f32 %v8381_v8, 0.0  ;;  %7901 = vmatpush1.bf16.msra.mxu0 %v7900_v12  ;;  %v4508_v32 = vpop.f32.mrb[52].mxu0  ;;  %8029 = vmatpush1.bf16.msra.mxu1 %v8028_v26  ;;  %v11409_v15 = vpop.f32.mrb[52].mxu1  ;;  %v5140_v12 = vld [vmem:[#allocation9 + $0x518] sm:$0xff]  ;;  %v7914_v8 = vpack.c.bf16 %v5142_v36, %v5138_v7  ;;  %v5157_v7 = vld [vmem:[#allocation9 + $0x5a0] sm:$0xff] }
 0x48c   : > { %v8382_v18 = vadd.f32 %v4508_v32, %v11390_v51  ;;  %v4510_v29 = vpop.f32.mrb[53].mxu0  ;;  %7903 = vmatprep.subr.bf16.mxu0 %v7902_v53  ;;  %8031 = vmatprep.subr.bf16.mxu1 %v8030_v30  ;;  %v11412_v58 = vpop.f32.mrb[53].mxu1  ;;  %v5144_v26 = vld [vmem:[#allocation9 + $0x538] sm:$0xff]  ;;  %v5141_v53 = vld [vmem:[#allocation9 + $0x520] sm:$0xff] }
 0x48d   : > { %v8383_v9 = vadd.f32 %v4510_v29, %v11394_v24  ;;  %5325 = vmatprep.mubr.f32.mxu0 %v4918_v2  ;;  %5647 = vmatprep.mubr.f32.mxu1 %v4918_v2  ;;  %v8042_v22 = vpack.c.bf16 %v5144_v26, %v5140_v12  ;;  %v5146_v2 = vld [vmem:[#allocation9 + $0x548] sm:$0xff]  ;;  %v7916_v29 = vpack.c.bf16 %v5141_v53, %v5137_v49 }
 0x48e   : > { %5326 = vmatmul.mubr.f32.gmra.mrb[82].mxu0 %v4917_v45  ;;  %5648 = vmatmul.mubr.f32.gmra.mrb[82].mxu1 %v4917_v45  ;;  %v4921_v27 = vmax.f32 %v8382_v18, 0.0  ;;  %v5162_v49 = vld [vmem:[#allocation9 + $0x5c8] sm:$0xff] }
 0x48f   : > { %v4922_v63 = vmax.f32 %v8383_v9, 0.0  ;;  %7905 = vmatpush1.bf16.msra.mxu0 %v7904_v11  ;;  %v4514_v17 = vpop.f32.mrb[54].mxu0  ;;  %8033 = vmatpush1.bf16.msra.mxu1 %v8032_v43  ;;  %v11415_v54 = vpop.f32.mrb[54].mxu1  ;;  %v5150_v43 = vld [vmem:[#allocation9 + $0x568] sm:$0xff] }
 0x490   : > { %v8384_v34 = vadd.f32 %v4514_v17, %v11390_v51  ;;  %v4516_v60 = vpop.f32.mrb[55].mxu0  ;;  %7907 = vmatprep.subr.bf16.mxu0 %v7906_v19  ;;  %8035 = vmatprep.subr.bf16.mxu1 %v8034_v57  ;;  %v11418_v62 = vpop.f32.mrb[55].mxu1  ;;  %v8044_v19 = vpack.c.bf16 %v5143_v5, %v5139_v39  ;;  %v5145_v57 = vld [vmem:[#allocation9 + $0x540] sm:$0xff]  ;;  %v7918_v56 = vpack.c.bf16 %v5150_v43, %v5146_v2  ;;  %v5151_v17 = vld [vmem:[#allocation9 + $0x570] sm:$0xff] }
 0x491   : > { %v8385_v21 = vadd.f32 %v4516_v60, %v11394_v24  ;;  %5331 = vmatprep.mubr.f32.mxu0 %v4922_v63  ;;  %5653 = vmatprep.mubr.f32.mxu1 %v4922_v63  ;;  %v5147_v63 = vld [vmem:[#allocation9 + $0x550] sm:$0xff]  ;;  %v7924_v5 = vpack.c.bf16 %v5157_v7, %v5153_v37  ;;  %v5165_v43 = vld [vmem:[#allocation9 + $0x5e0] sm:$0xff] }
 0x492   : > { %5332 = vmatmul.mubr.f32.gmra.mrb[84].mxu0 %v4921_v27  ;;  %5654 = vmatmul.mubr.f32.gmra.mrb[84].mxu1 %v4921_v27  ;;  %v4925_v30 = vmax.f32 %v8384_v34, 0.0  ;;  %v5156_v27 = vld [vmem:[#allocation9 + $0x598] sm:$0xff]  ;;  %v8048_v46 = vpack.c.bf16 %v5151_v17, %v5147_v63 }
 0x493   : > { %v4926_v1 = vmax.f32 %v8385_v21, 0.0  ;;  %7909 = vmatpush1.bf16.msra.mxu0 %v7908_v20  ;;  %v4520_v13 = vpop.f32.mrb[56].mxu0  ;;  %8037 = vmatpush1.bf16.msra.mxu1 %v8036_v25  ;;  %v11421_v55 = vpop.f32.mrb[56].mxu1  ;;  %v5154_v20 = vld [vmem:[#allocation9 + $0x588] sm:$0xff]  ;;  %v5160_v34 = vld [vmem:[#allocation9 + $0x5b8] sm:$0xff] }
 0x494   : > { %v8386_v44 = vadd.f32 %v4520_v13, %v11390_v51  ;;  %v4522_v35 = vpop.f32.mrb[57].mxu0  ;;  %7911 = vmatprep.subr.bf16.mxu0 %v7910_v31  ;;  %8039 = vmatprep.subr.bf16.mxu1 %v8038_v16  ;;  %v11424_v11 = vpop.f32.mrb[57].mxu1  ;;  %v7920_v16 = vpack.c.bf16 %v5149_v4, %v5145_v57  ;;  %v8050_v13 = vpack.c.bf16 %v5160_v34, %v5156_v27  ;;  %v5163_v57 = vld [vmem:[#allocation9 + $0x5d0] sm:$0xff]  ;;  %v5176_v63 = vld [vmem:[#allocation9 + $0x638] sm:$0xff]  ;;  %v5169_v27 = vld [vmem:[#allocation9 + $0x600] sm:$0xff] }
 0x495   : > { %v8387_v32 = vadd.f32 %v4522_v35, %v11394_v24  ;;  %5337 = vmatprep.mubr.f32.mxu0 %v4926_v1  ;;  %5659 = vmatprep.mubr.f32.mxu1 %v4926_v1  ;;  %v7922_v1 = vpack.c.bf16 %v5158_v10, %v5154_v20  ;;  %v5164_v35 = vld [vmem:[#allocation9 + $0x5d8] sm:$0xff]  ;;  %v5167_v4 = vld [vmem:[#allocation9 + $0x5f0] sm:$0xff]  ;;  %v5173_v34 = vld [vmem:[#allocation9 + $0x620] sm:$0xff] }
 0x496   : > { %5338 = vmatmul.mubr.f32.gmra.mrb[86].mxu0 %v4925_v30  ;;  %5660 = vmatmul.mubr.f32.gmra.mrb[86].mxu1 %v4925_v30  ;;  %v4929_v28 = vmax.f32 %v8386_v44, 0.0  ;;  %v5166_v44 = vld [vmem:[#allocation9 + $0x5e8] sm:$0xff]  ;;  %v8056_v10 = vpack.c.bf16 %v5167_v4, %v5163_v57 }
 0x497   : > { %v4930_v45 = vmax.f32 %v8387_v32, 0.0  ;;  %7913 = vmatpush1.bf16.msra.mxu0 %v7912_v23  ;;  %v4526_v18 = vpop.f32.mrb[58].mxu0  ;;  %8041 = vmatpush1.bf16.msra.mxu1 %v8040_v48  ;;  %v11427_v9 = vpop.f32.mrb[58].mxu1  ;;  %v5155_v23 = vld [vmem:[#allocation9 + $0x590] sm:$0xff]  ;;  %v5161_v32 = vld [vmem:[#allocation9 + $0x5c0] sm:$0xff] }
 0x498   : > { %v8388_v50 = vadd.f32 %v4526_v18, %v11390_v51  ;;  %v4528_v61 = vpop.f32.mrb[59].mxu0  ;;  %7915 = vmatprep.subr.bf16.mxu0 %v7914_v8  ;;  %8043 = vmatprep.subr.bf16.mxu1 %v8042_v22  ;;  %v11430_v41 = vpop.f32.mrb[59].mxu1  ;;  %v5159_v48 = vld [vmem:[#allocation9 + $0x5b0] sm:$0xff]  ;;  %v5168_v8 = vld [vmem:[#allocation9 + $0x5f8] sm:$0xff] }
 0x499   : > { %v8389_v25 = vadd.f32 %v4528_v61, %v11394_v24  ;;  %5343 = vmatprep.mubr.f32.mxu0 %v4930_v45  ;;  %5665 = vmatprep.mubr.f32.mxu1 %v4930_v45  ;;  %v8052_v2 = vpack.c.bf16 %v5159_v48, %v5155_v23  ;;  %v5182_v23 = vld [vmem:[#allocation9 + $0x668] sm:$0xff]  ;;  %v5180_v48 = vld [vmem:[#allocation9 + $0x658] sm:$0xff] }
 0x49a   : > { %5344 = vmatmul.mubr.f32.gmra.mrb[88].mxu0 %v4929_v28  ;;  %5666 = vmatmul.mubr.f32.gmra.mrb[88].mxu1 %v4929_v28  ;;  %v4933_v21 = vmax.f32 %v8388_v50, 0.0  ;;  %v5170_v28 = vld [vmem:[#allocation9 + $0x608] sm:$0xff] }
 0x49b   : > { %v4934_v60 = vmax.f32 %v8389_v25, 0.0  ;;  %7917 = vmatpush1.bf16.msra.mxu0 %v7916_v29  ;;  %v4532_v31 = vpop.f32.mrb[60].mxu0  ;;  %8045 = vmatpush1.bf16.msra.mxu1 %v8044_v19  ;;  %v11433_v12 = vpop.f32.mrb[60].mxu1  ;;  %v7926_v29 = vpack.c.bf16 %v5166_v44, %v5162_v49  ;;  %v8054_v19 = vpack.c.bf16 %v5168_v8, %v5164_v35  ;;  %v7928_v25 = vpack.c.bf16 %v5165_v43, %v5161_v32  ;;  %v5184_v49 = vld [vmem:[#allocation9 + $0x678] sm:$0xff] }
 0x49c   : > { %v8390_v36 = vadd.f32 %v4532_v31, %v11390_v51  ;;  %v4534_v26 = vpop.f32.mrb[61].mxu0  ;;  %7919 = vmatprep.subr.bf16.mxu0 %v7918_v56  ;;  %8047 = vmatprep.subr.bf16.mxu1 %v8046_v59  ;;  %v11436_v30 = vpop.f32.mrb[61].mxu1  ;;  %v5174_v56 = vld [vmem:[#allocation9 + $0x628] sm:$0xff]  ;;  %v5172_v59 = vld [vmem:[#allocation9 + $0x618] sm:$0xff]  ;;  %v7932_v35 = vpack.c.bf16 %v5173_v34, %v5169_v27 }
 0x49d   : > { %v8391_v53 = vadd.f32 %v4534_v26, %v11394_v24  ;;  %5349 = vmatprep.mubr.f32.mxu0 %v4934_v60  ;;  %5671 = vmatprep.mubr.f32.mxu1 %v4934_v60  ;;  %v7930_v37 = vpack.c.bf16 %v5174_v56, %v5170_v28  ;;  %v8058_v7 = vpack.c.bf16 %v5176_v63, %v5172_v59  ;;  %v5178_v26 = vld [vmem:[#allocation9 + $0x648] sm:$0xff]  ;;  %v5192_v56 = vld [vmem:[#allocation9 + $0x6b8] sm:$0xff] }
 0x49e   : > { %5350 = vmatmul.mubr.f32.gmra.mrb[90].mxu0 %v4933_v21  ;;  %5672 = vmatmul.mubr.f32.gmra.mrb[90].mxu1 %v4933_v21  ;;  %v4937_v40 = vmax.f32 %v8390_v36, 0.0  ;;  %v5171_v21 = vld [vmem:[#allocation9 + $0x610] sm:$0xff]  ;;  %v5190_v28 = vld [vmem:[#allocation9 + $0x6a8] sm:$0xff] }
 0x49f   : > { %v4938_v22 = vmax.f32 %v8391_v53, 0.0  ;;  %7921 = vmatpush1.bf16.msra.mxu0 %v7920_v16  ;;  %v4538_v39 = vpop.f32.mrb[62].mxu0  ;;  %8049 = vmatpush1.bf16.msra.mxu1 %v8048_v46  ;;  %v11439_v45 = vpop.f32.mrb[62].mxu1  ;;  %v5175_v36 = vld [vmem:[#allocation9 + $0x630] sm:$0xff] }
 0x4a0   : > { %v8392_v38 = vadd.f32 %v4538_v39, %v11390_v51  ;;  %v4540_v18 = vpop.f32.mrb[63].mxu0  ;;  %7923 = vmatprep.subr.bf16.mxu0 %v7922_v1  ;;  %8051 = vmatprep.subr.bf16.mxu1 %v8050_v13  ;;  %v11442_v61 = vpop.f32.mrb[63].mxu1  ;;  %v8060_v8 = vpack.c.bf16 %v5175_v36, %v5171_v21  ;;  %v5181_v39 = vld [vmem:[#allocation9 + $0x660] sm:$0xff]  ;;  %v5191_v21 = vld [vmem:[#allocation9 + $0x6b0] sm:$0xff]  ;;  %v5194_v36 = vld [vmem:[#allocation9 + $0x6c8] sm:$0xff] }
 0x4a1   : > { %v8393_v50 = vadd.f32 %v4540_v18, %v11394_v24  ;;  %5355 = vmatprep.mubr.f32.mxu0 %v4938_v22  ;;  %5677 = vmatprep.mubr.f32.mxu1 %v4938_v22  ;;  %v5177_v22 = vld [vmem:[#allocation9 + $0x640] sm:$0xff]  ;;  %v5179_v18 = vld [vmem:[#allocation9 + $0x650] sm:$0xff] }
 0x4a2   : > { %5356 = vmatmul.mubr.f32.gmra.mrb[92].mxu0 %v4937_v40  ;;  %5678 = vmatmul.mubr.f32.gmra.mrb[92].mxu1 %v4937_v40  ;;  %v4941_v60 = vmax.f32 %v8392_v38, 0.0  ;;  %v7934_v40 = vpack.c.bf16 %v5182_v23, %v5178_v26  ;;  %v8062_v38 = vpack.c.bf16 %v5184_v49, %v5180_v48  ;;  %v5198_v23 = vld [vmem:[#allocation9 + $0x6e8] sm:$0xff]  ;;  %v5196_v48 = vld [vmem:[#allocation9 + $0x6d8] sm:$0xff] }
 0x4a3   : > { %v4942_v17 = vmax.f32 %v8393_v50, 0.0  ;;  %7925 = vmatpush1.bf16.msra.mxu0 %v7924_v5  ;;  %v4544_v20 = vpop.f32.mrb[64].mxu0  ;;  %8053 = vmatpush1.bf16.msra.mxu1 %v8052_v2  ;;  %v11445_v16 = vpop.f32.mrb[64].mxu1  ;;  %v5188_v50 = vld [vmem:[#allocation9 + $0x698] sm:$0xff] }
 0x4a4   : > { %v8394_v31 = vadd.f32 %v4544_v20, %v11390_v51  ;;  %v4546_v46 = vpop.f32.mrb[65].mxu0  ;;  %7927 = vmatprep.subr.bf16.mxu0 %v7926_v29  ;;  %8055 = vmatprep.subr.bf16.mxu1 %v8054_v19  ;;  %v11448_v13 = vpop.f32.mrb[65].mxu1  ;;  %v5183_v29 = vld [vmem:[#allocation9 + $0x670] sm:$0xff]  ;;  %v5186_v19 = vld [vmem:[#allocation9 + $0x688] sm:$0xff]  ;;  %v5200_v49 = vld [vmem:[#allocation9 + $0x6f8] sm:$0xff] }
 0x4a5   : > { %v8395_v1 = vadd.f32 %v4546_v46, %v11394_v24  ;;  %5361 = vmatprep.mubr.f32.mxu0 %v4942_v17  ;;  %5683 = vmatprep.mubr.f32.mxu1 %v4942_v17  ;;  %v7936_v17 = vpack.c.bf16 %v5181_v39, %v5177_v22  ;;  %v8064_v20 = vpack.c.bf16 %v5183_v29, %v5179_v18  ;;  %v5193_v22 = vld [vmem:[#allocation9 + $0x6c0] sm:$0xff]  ;;  %v5195_v29 = vld [vmem:[#allocation9 + $0x6d0] sm:$0xff] }
 0x4a6   : > { %5362 = vmatmul.mubr.f32.gmra.mrb[94].mxu0 %v4941_v60  ;;  %5684 = vmatmul.mubr.f32.gmra.mrb[94].mxu1 %v4941_v60  ;;  %v4945_v5 = vmax.f32 %v8394_v31, 0.0  ;;  %v7938_v46 = vpack.c.bf16 %v5190_v28, %v5186_v19  ;;  %v5197_v39 = vld [vmem:[#allocation9 + $0x6e0] sm:$0xff]  ;;  %v8070_v18 = vpack.c.bf16 %v5200_v49, %v5196_v48  ;;  %v5199_v19 = vld [vmem:[#allocation9 + $0x6f0] sm:$0xff]  ;;  %v5210_v48 = vld [vmem:[#allocation9 + $0x748] sm:$0xff] }
 0x4a7   : > { %v4946_v53 = vmax.f32 %v8395_v1, 0.0  ;;  %7929 = vmatpush1.bf16.msra.mxu0 %v7928_v25  ;;  %v4550_v44 = vpop.f32.mrb[66].mxu0  ;;  %8057 = vmatpush1.bf16.msra.mxu1 %v8056_v10  ;;  %v11451_v32 = vpop.f32.mrb[66].mxu1  ;;  %v5185_v25 = vld [vmem:[#allocation9 + $0x680] sm:$0xff] }
 0x4a8   : > { %v8396_v2 = vadd.f32 %v4550_v44, %v11390_v51  ;;  %v4552_v43 = vpop.f32.mrb[67].mxu0  ;;  %7931 = vmatprep.subr.bf16.mxu0 %v7930_v37  ;;  %8059 = vmatprep.subr.bf16.mxu1 %v8058_v7  ;;  %v11454_v4 = vpop.f32.mrb[67].mxu1  ;;  %v5189_v10 = vld [vmem:[#allocation9 + $0x6a0] sm:$0xff]  ;;  %v8066_v37 = vpack.c.bf16 %v5192_v56, %v5188_v50  ;;  %v5187_v7 = vld [vmem:[#allocation9 + $0x690] sm:$0xff]  ;;  %v5206_v56 = vld [vmem:[#allocation9 + $0x728] sm:$0xff] }
 0x4a9   : > { %v8397_v57 = vadd.f32 %v4552_v43, %v11394_v24  ;;  %5367 = vmatprep.mubr.f32.mxu0 %v4946_v53  ;;  %5689 = vmatprep.mubr.f32.mxu1 %v4946_v53 }
 0x4aa   : > { %5368 = vmatmul.mubr.f32.gmra.mrb[96].mxu0 %v4945_v5  ;;  %5690 = vmatmul.mubr.f32.gmra.mrb[96].mxu1 %v4945_v5  ;;  %v4949_v27 = vmax.f32 %v8396_v2, 0.0 }
 0x4ab   : > { %v4950_v59 = vmax.f32 %v8397_v57, 0.0  ;;  %7933 = vmatpush1.bf16.msra.mxu0 %v7932_v35  ;;  %v4556_v63 = vpop.f32.mrb[68].mxu0  ;;  %8061 = vmatpush1.bf16.msra.mxu1 %v8060_v8  ;;  %v11457_v60 = vpop.f32.mrb[68].mxu1  ;;  %v7940_v35 = vpack.c.bf16 %v5189_v10, %v5185_v25  ;;  %v8068_v8 = vpack.c.bf16 %v5191_v21, %v5187_v7  ;;  %v5202_v57 = vld [vmem:[#allocation9 + $0x708] sm:$0xff]  ;;  %v7944_v25 = vpack.c.bf16 %v5197_v39, %v5193_v22 }
 0x4ac   : > { %v8398_v34 = vadd.f32 %v4556_v63, %v11390_v51  ;;  %v4558_v31 = vpop.f32.mrb[69].mxu0  ;;  %7935 = vmatprep.subr.bf16.mxu0 %v7934_v40  ;;  %8063 = vmatprep.subr.bf16.mxu1 %v8062_v38  ;;  %v11460_v1 = vpop.f32.mrb[69].mxu1  ;;  %v7942_v38 = vpack.c.bf16 %v5198_v23, %v5194_v36  ;;  %v5208_v63 = vld [vmem:[#allocation9 + $0x738] sm:$0xff]  ;;  %v8072_v10 = vpack.c.bf16 %v5199_v19, %v5195_v29  ;;  %v5207_v23 = vld [vmem:[#allocation9 + $0x730] sm:$0xff] }
 0x4ad   : > { %v8399_v26 = vadd.f32 %v4558_v31, %v11394_v24  ;;  %5373 = vmatprep.mubr.f32.mxu0 %v4950_v59  ;;  %5695 = vmatprep.mubr.f32.mxu1 %v4950_v59  ;;  %v5204_v59 = vld [vmem:[#allocation9 + $0x718] sm:$0xff]  ;;  %v7946_v21 = vpack.c.bf16 %v5206_v56, %v5202_v57 }
 0x4ae   : > { %5374 = vmatmul.mubr.f32.gmra.mrb[98].mxu0 %v4949_v27  ;;  %5696 = vmatmul.mubr.f32.gmra.mrb[98].mxu1 %v4949_v27  ;;  %v4953_v5 = vmax.f32 %v8398_v34, 0.0  ;;  %v5201_v27 = vld [vmem:[#allocation9 + $0x700] sm:$0xff]  ;;  %v8074_v36 = vpack.c.bf16 %v5208_v63, %v5204_v59  ;;  %v5211_v59 = vld [vmem:[#allocation9 + $0x750] sm:$0xff] }
 0x4af   : > { %v4954_v53 = vmax.f32 %v8399_v26, 0.0  ;;  %7937 = vmatpush1.bf16.msra.mxu0 %v7936_v17  ;;  %v4562_v44 = vpop.f32.mrb[70].mxu0  ;;  %8065 = vmatpush1.bf16.msra.mxu1 %v8064_v20  ;;  %v11463_v43 = vpop.f32.mrb[70].mxu1  ;;  %v5205_v34 = vld [vmem:[#allocation9 + $0x720] sm:$0xff]  ;;  %v5203_v26 = vld [vmem:[#allocation9 + $0x710] sm:$0xff] }
 0x4b0   : > { %v8400_v2 = vadd.f32 %v4562_v44, %v11390_v51  ;;  %v4564_v40 = vpop.f32.mrb[71].mxu0  ;;  %7939 = vmatprep.subr.bf16.mxu0 %v7938_v46  ;;  %8067 = vmatprep.subr.bf16.mxu1 %v8066_v37  ;;  %v11466_v50 = vpop.f32.mrb[71].mxu1  ;;  %v5214_v44 = vld [vmem:[#allocation9 + $0x768] sm:$0xff]  ;;  %v5215_v63 = vld [vmem:[#allocation9 + $0x770] sm:$0xff] }
 0x4b1   : > { %v8401_v28 = vadd.f32 %v4564_v40, %v11394_v24  ;;  %5379 = vmatprep.mubr.f32.mxu0 %v4954_v53  ;;  %5701 = vmatprep.mubr.f32.mxu1 %v4954_v53  ;;  %v5209_v40 = vld [vmem:[#allocation9 + $0x740] sm:$0xff] }
 0x4b2   : > { %5380 = vmatmul.mubr.f32.gmra.mrb[100].mxu0 %v4953_v5  ;;  %5702 = vmatmul.mubr.f32.gmra.mrb[100].mxu1 %v4953_v5  ;;  %v4957_v31 = vmax.f32 %v8400_v2, 0.0  ;;  %v7948_v5 = vpack.c.bf16 %v5205_v34, %v5201_v27  ;;  %v8076_v2 = vpack.c.bf16 %v5207_v23, %v5203_v26  ;;  %v5220_v27 = vld [vmem:[#allocation9 + $0x798] sm:$0xff]  ;;  %v5221_v26 = vld [vmem:[#allocation9 + $0x7a0] sm:$0xff] }
 0x4b3   : > { %v4958_v17 = vmax.f32 %v8401_v28, 0.0  ;;  %7941 = vmatpush1.bf16.msra.mxu0 %v7940_v35  ;;  %v4568_v20 = vpop.f32.mrb[72].mxu0  ;;  %8069 = vmatpush1.bf16.msra.mxu1 %v8068_v8  ;;  %v11469_v37 = vpop.f32.mrb[72].mxu1  ;;  %v5212_v35 = vld [vmem:[#allocation9 + $0x758] sm:$0xff]  ;;  %v7950_v28 = vpack.c.bf16 %v5214_v44, %v5210_v48 }
 0x4b4   : > { %v8402_v46 = vadd.f32 %v4568_v20, %v11390_v51  ;;  %v4570_v7 = vpop.f32.mrb[73].mxu0  ;;  %7943 = vmatprep.subr.bf16.mxu0 %v7942_v38  ;;  %8071 = vmatprep.subr.bf16.mxu1 %v8070_v18  ;;  %v11472_v53 = vpop.f32.mrb[73].mxu1  ;;  %v5216_v8 = vld [vmem:[#allocation9 + $0x778] sm:$0xff]  ;;  %v5213_v38 = vld [vmem:[#allocation9 + $0x760] sm:$0xff] }
 0x4b5   : > { %v8403_v49 = vadd.f32 %v4570_v7, %v11394_v24  ;;  %5385 = vmatprep.mubr.f32.mxu0 %v4958_v17  ;;  %5707 = vmatprep.mubr.f32.mxu1 %v4958_v17  ;;  %v8078_v56 = vpack.c.bf16 %v5216_v8, %v5212_v35  ;;  %v5218_v17 = vld [vmem:[#allocation9 + $0x788] sm:$0xff]  ;;  %v5224_v34 = vld [vmem:[#allocation9 + $0x7b8] sm:$0xff]  ;;  %v7952_v7 = vpack.c.bf16 %v5213_v38, %v5209_v40 }
 0x4b6   : > { %5386 = vmatmul.mubr.f32.gmra.mrb[102].mxu0 %v4957_v31  ;;  %5708 = vmatmul.mubr.f32.gmra.mrb[102].mxu1 %v4957_v31  ;;  %v4961_v18 = vmax.f32 %v8402_v46, 0.0  ;;  %v8082_v8 = vpack.c.bf16 %v5224_v34, %v5220_v27  ;;  %v5230_v38 = vld [vmem:[#allocation9 + $0x7e8] sm:$0xff] }
 0x4b7   : > { %v4962_v22 = vmax.f32 %v8403_v49, 0.0  ;;  %7945 = vmatpush1.bf16.msra.mxu0 %v7944_v25  ;;  %v4574_v39 = vpop.f32.mrb[74].mxu0  ;;  %8073 = vmatpush1.bf16.msra.mxu1 %v8072_v10  ;;  %v11475_v19 = vpop.f32.mrb[74].mxu1  ;;  %v5222_v10 = vld [vmem:[#allocation9 + $0x7a8] sm:$0xff] }
 0x4b8   : > { %v8404_v29 = vadd.f32 %v4574_v39, %v11390_v51  ;;  %v4576_v57 = vpop.f32.mrb[75].mxu0  ;;  %7947 = vmatprep.subr.bf16.mxu0 %v7946_v21  ;;  %8075 = vmatprep.subr.bf16.mxu1 %v8074_v36  ;;  %v11478_v25 = vpop.f32.mrb[75].mxu1  ;;  %v8080_v21 = vpack.c.bf16 %v5215_v63, %v5211_v59  ;;  %v5217_v36 = vld [vmem:[#allocation9 + $0x780] sm:$0xff]  ;;  %v7954_v35 = vpack.c.bf16 %v5222_v10, %v5218_v17  ;;  %v5223_v39 = vld [vmem:[#allocation9 + $0x7b0] sm:$0xff] }
 0x4b9   : > { %v8405_v20 = vadd.f32 %v4576_v57, %v11394_v24  ;;  %5391 = vmatprep.mubr.f32.mxu0 %v4962_v22  ;;  %5713 = vmatprep.mubr.f32.mxu1 %v4962_v22  ;;  %v5219_v22 = vld [vmem:[#allocation9 + $0x790] sm:$0xff]  ;;  %v5232_v57 = vld [vmem:[#allocation9 + $0x7f8] sm:$0xff]  ;;  %v7956_v17 = vpack.c.bf16 %v5221_v26, %v5217_v36 }
 0x4ba   : > { %5392 = vmatmul.mubr.f32.gmra.mrb[104].mxu0 %v4961_v18  ;;  %5714 = vmatmul.mubr.f32.gmra.mrb[104].mxu1 %v4961_v18  ;;  %v4965_v23 = vmax.f32 %v8404_v29, 0.0  ;;  %v5226_v18 = vld [vmem:[#allocation9 + $0x7c8] sm:$0xff]  ;;  %v5228_v29 = vld [vmem:[#allocation9 + $0x7d8] sm:$0xff]  ;;  %v5227_v36 = vld [vmem:[#allocation9 + $0x7d0] sm:$0xff] }
 0x4bb   : > { %v4966_v31 = vmax.f32 %v8405_v20, 0.0  ;;  %7949 = vmatpush1.bf16.msra.mxu0 %v7948_v5  ;;  %v4580_v46 = vpop.f32.mrb[76].mxu0  ;;  %8077 = vmatpush1.bf16.msra.mxu1 %v8076_v2  ;;  %v11481_v49 = vpop.f32.mrb[76].mxu1  ;;  %v11485_v5 = vrot.slane %v11386_v33, %v12522_v52  ;;  %v8084_v20 = vpack.c.bf16 %v5223_v39, %v5219_v22  ;;  %v8086_v52 = vpack.c.bf16 %v5232_v57, %v5228_v29 }
 0x4bc   : > { %v8406_v48 = vadd.f32 %v4580_v46, %v11390_v51  ;;  %v4582_v44 = vpop.f32.mrb[77].mxu0  ;;  %7951 = vmatprep.subr.bf16.mxu0 %v7950_v28  ;;  %8079 = vmatprep.subr.bf16.mxu1 %v8078_v56  ;;  %v11488_v40 = vpop.f32.mrb[77].mxu1  ;;  %v12652_v28 = vld [vmem:[#allocation44_spill] sm:$0xff]  ;;  %v7958_v46 = vpack.c.bf16 %v5230_v38, %v5226_v18 }
 0x4bd   : > { %v8407_v2 = vadd.f32 %v4582_v44, %v11394_v24  ;;  %5397 = vmatprep.mubr.f32.mxu0 %v4966_v31  ;;  %5719 = vmatprep.mubr.f32.mxu1 %v4966_v31  ;;  %v11492_v56 = vrot.slane %v11386_v33, %v12652_v28  ;;  %v5229_v44 = vld [vmem:[#allocation9 + $0x7e0] sm:$0xff]  ;;  %v8411_v33 = vadd.f32 %v11400_v0, %v11485_v5 }
 0x4be   : > { %5398 = vmatmul.mubr.f32.gmra.mrb[106].mxu0 %v4965_v23  ;;  %5720 = vmatmul.mubr.f32.gmra.mrb[106].mxu1 %v4965_v23  ;;  %v4969_v10 = vmax.f32 %v8406_v48, 0.0  ;;  %v5225_v23 = vld [vmem:[#allocation9 + $0x7c0] sm:$0xff]  ;;  %v8413_v22 = vadd.f32 %v11406_v47, %v11485_v5  ;;  %v8417_v29 = vadd.f32 %v11418_v62, %v11485_v5 }
 0x4bf   : > { %v4970_v59 = vmax.f32 %v8407_v2, 0.0  ;;  %7953 = vmatpush1.bf16.msra.mxu0 %v7952_v7  ;;  %v4586_v63 = vpop.f32.mrb[78].mxu0  ;;  %8081 = vmatpush1.bf16.msra.mxu1 %v8080_v21  ;;  %v11495_v34 = vpop.f32.mrb[78].mxu1  ;;  %v7960_v48 = vpack.c.bf16 %v5229_v44, %v5225_v23  ;;  %v8412_v18 = vadd.f32 %v11403_v6, %v11492_v56  ;;  %v8414_v2 = vadd.f32 %v11409_v15, %v11492_v56 }
 0x4c0   : > { %v8408_v27 = vadd.f32 %v4586_v63, %v11390_v51  ;;  %v4588_v31 = vpop.f32.mrb[79].mxu0  ;;  %7955 = vmatprep.subr.bf16.mxu0 %v7954_v35  ;;  %8083 = vmatprep.subr.bf16.mxu1 %v8082_v8  ;;  %v11500_v21 = vpop.f32.mrb[79].mxu1  ;;  %v5231_v51 = vld [vmem:[#allocation9 + $0x7f0] sm:$0xff]  ;;  %v8410_v35 = vadd.f32 %v11397_v3, %v11492_v56  ;;  %v4920_v3 = vmax.f32 %v8413_v22, 0.0  ;;  %v8416_v57 = vadd.f32 %v11415_v54, %v11492_v56 }
 0x4c1   : > { %v8409_v7 = vadd.f32 %v4588_v31, %v11394_v24  ;;  %5403 = vmatprep.mubr.f32.mxu0 %v4970_v59  ;;  %5725 = vmatprep.mubr.f32.mxu1 %v4970_v59  ;;  %v8088_v0 = vpack.c.bf16 %v5231_v51, %v5227_v36  ;;  %v4916_v24 = vmax.f32 %v8411_v33, 0.0  ;;  %v4919_v47 = vmax.f32 %v8412_v18, 0.0 }
 0x4c2   : > { %5404 = vmatmul.mubr.f32.gmra.mrb[108].mxu0 %v4969_v10  ;;  %5726 = vmatmul.mubr.f32.gmra.mrb[108].mxu1 %v4969_v10  ;;  %v4973_v8 = vmax.f32 %v8408_v27, 0.0  ;;  %v4915_v39 = vmax.f32 %v8410_v35, 0.0  ;;  %v4923_v6 = vmax.f32 %v8414_v2, 0.0  ;;  %v8419_v59 = vadd.f32 %v11424_v11, %v11485_v5  ;;  %v6187_v2 = vld [vmem:[#allocation10] sm:$0xff] }
 0x4c3   : > { %v4974_v26 = vmax.f32 %v8409_v7, 0.0  ;;  %7957 = vmatpush1.bf16.msra.mxu0 %v7956_v17  ;;  %8085 = vmatpush1.bf16.msra.mxu1 %v8084_v20  ;;  %v4927_v15 = vmax.f32 %v8416_v57, 0.0  ;;  %v8418_v63 = vadd.f32 %v11421_v55, %v11492_v56  ;;  %v8421_v17 = vadd.f32 %v11430_v41, %v11485_v5  ;;  %v6193_v57 = vld [vmem:[#allocation10 + $0x30] sm:$0xff] }
 0x4c4   : > { %7959 = vmatprep.subr.bf16.mxu0 %v7958_v46  ;;  %8087 = vmatprep.subr.bf16.mxu1 %v8086_v52  ;;  %v8415_v52 = vadd.f32 %v11412_v58, %v11485_v5  ;;  %v4928_v58 = vmax.f32 %v8417_v29, 0.0  ;;  %v4932_v62 = vmax.f32 %v8419_v59, 0.0  ;;  %v8420_v20 = vadd.f32 %v11427_v9, %v11492_v56  ;;  %v6192_v29 = vld [vmem:[#allocation10 + $0x28] sm:$0xff]  ;;  %v6198_v59 = vld [vmem:[#allocation10 + $0x58] sm:$0xff] }
 0x4c5   : > { %5409 = vmatprep.mubr.f32.mxu0 %v4974_v26  ;;  %5731 = vmatprep.mubr.f32.mxu1 %v4974_v26  ;;  %v4931_v54 = vmax.f32 %v8418_v63, 0.0  ;;  %v4936_v11 = vmax.f32 %v8421_v17, 0.0  ;;  %v8423_v10 = vadd.f32 %v11436_v30, %v11485_v5  ;;  %v8422_v27 = vadd.f32 %v11433_v12, %v11492_v56  ;;  %v6197_v17 = vld [vmem:[#allocation10 + $0x50] sm:$0xff] }
 0x4c6   : > { %5410 = vmatmul.mubr.f32.gmra.mrb[110].mxu0 %v4973_v8  ;;  %5732 = vmatmul.mubr.f32.gmra.mrb[110].mxu1 %v4973_v8  ;;  %v4924_v38 = vmax.f32 %v8415_v52, 0.0  ;;  %v4935_v55 = vmax.f32 %v8420_v20, 0.0  ;;  %v8425_v31 = vadd.f32 %v11442_v61, %v11485_v5  ;;  %v8424_v46 = vadd.f32 %v11439_v45, %v11492_v56  ;;  %v6200_v20 = vld [vmem:[#allocation10 + $0x68] sm:$0xff] }
 0x4c7   : > { %7961 = vmatpush1.bf16.msra.mxu0 %v7960_v48  ;;  %5480 = vmatprep.mubr.f32.mxu0 %v4916_v24  ;;  %v4940_v41 = vmax.f32 %v8423_v10, 0.0  ;;  %v4939_v9 = vmax.f32 %v8422_v27, 0.0  ;;  %v8427_v23 = vadd.f32 %v11448_v13, %v11485_v5  ;;  %v8426_v44 = vadd.f32 %v11445_v16, %v11492_v56  ;;  %v6199_v10 = vld [vmem:[#allocation10 + $0x60] sm:$0xff]  ;;  %v6201_v27 = vld [vmem:[#allocation10 + $0x70] sm:$0xff] }
 0x4c8   : > { %8089 = vmatpush1.bf16.msra.mxu1 %v8088_v0  ;;  %5802 = vmatprep.mubr.f32.mxu1 %v4916_v24  ;;  %v4944_v30 = vmax.f32 %v8425_v31, 0.0  ;;  %v4943_v12 = vmax.f32 %v8424_v46, 0.0  ;;  %v8429_v33 = vadd.f32 %v11454_v4, %v11485_v5  ;;  %v8428_v7 = vadd.f32 %v11451_v32, %v11492_v56  ;;  %v6206_v31 = vld [vmem:[#allocation10 + $0x98] sm:$0xff] }
 0x4c9   : > { %v4948_v61 = vmax.f32 %v8427_v23, 0.0  ;;  %v4947_v45 = vmax.f32 %v8426_v44, 0.0  ;;  %v8431_v36 = vadd.f32 %v11460_v1, %v11485_v5  ;;  %v8430_v51 = vadd.f32 %v11457_v60, %v11492_v56  ;;  %v6205_v23 = vld [vmem:[#allocation10 + $0x90] sm:$0xff]  ;;  %v6208_v44 = vld [vmem:[#allocation10 + $0xa8] sm:$0xff] }
 0x4ca   : > { %5481 = vmatmul.mubr.f32.vlgmr.msra.gmra.mrb[80].mxu0 %v4915_v39  ;;  %v4952_v13 = vmax.f32 %v8429_v33, 0.0  ;;  %v4951_v16 = vmax.f32 %v8428_v7, 0.0  ;;  %v8433_v26 = vadd.f32 %v11466_v50, %v11485_v5  ;;  %v8432_v48 = vadd.f32 %v11463_v43, %v11492_v56  ;;  %v6207_v33 = vld [vmem:[#allocation10 + $0xa0] sm:$0xff]  ;;  %v6209_v7 = vld [vmem:[#allocation10 + $0xb0] sm:$0xff] }
 0x4cb   : > { %5803 = vmatmul.mubr.f32.vlgmr.msra.gmra.mrb[80].mxu1 %v4915_v39  ;;  %5486 = vmatprep.mubr.f32.mxu0 %v4920_v3  ;;  %v4956_v4 = vmax.f32 %v8431_v36, 0.0  ;;  %v4955_v32 = vmax.f32 %v8430_v51, 0.0  ;;  %v8435_v35 = vadd.f32 %v11472_v53, %v11485_v5  ;;  %v8434_v8 = vadd.f32 %v11469_v37, %v11492_v56  ;;  %v6214_v36 = vld [vmem:[#allocation10 + $0xd8] sm:$0xff] }
 0x4cc   : > { %5808 = vmatprep.mubr.f32.mxu1 %v4920_v3  ;;  %v4960_v1 = vmax.f32 %v8433_v26, 0.0  ;;  %v4959_v60 = vmax.f32 %v8432_v48, 0.0  ;;  %v8437_v0 = vadd.f32 %v11478_v25, %v11485_v5  ;;  %v8436_v24 = vadd.f32 %v11475_v19, %v11492_v56  ;;  %v6213_v26 = vld [vmem:[#allocation10 + $0xd0] sm:$0xff]  ;;  %v6216_v48 = vld [vmem:[#allocation10 + $0xe8] sm:$0xff] }
 0x4cd   : > { %v4964_v50 = vmax.f32 %v8435_v35, 0.0  ;;  %v4963_v43 = vmax.f32 %v8434_v8, 0.0  ;;  %v8439_v22 = vadd.f32 %v11488_v40, %v11485_v5  ;;  %v8438_v39 = vadd.f32 %v11481_v49, %v11492_v56  ;;  %v6188_v49 = vld [vmem:[#allocation10 + $0x8] sm:$0xff]  ;;  %v6215_v35 = vld [vmem:[#allocation10 + $0xe0] sm:$0xff]  ;;  %v6217_v8 = vld [vmem:[#allocation10 + $0xf0] sm:$0xff] }
 0x4ce   : > { %5487 = vmatmul.mubr.f32.gmra.mrb[82].mxu0 %v4919_v47  ;;  %v4968_v53 = vmax.f32 %v8437_v0, 0.0  ;;  %v4967_v37 = vmax.f32 %v8436_v24, 0.0  ;;  %v8441_v18 = vadd.f32 %v11500_v21, %v11485_v5  ;;  %v8440_v3 = vadd.f32 %v11495_v34, %v11492_v56  ;;  %v6189_v21 = vld [vmem:[#allocation10 + $0x10] sm:$0xff]  ;;  %v6191_v56 = vld [vmem:[#allocation10 + $0x20] sm:$0xff]  ;;  %v6222_v0 = vld [vmem:[#allocation10 + $0x118] sm:$0xff] }
 0x4cf   : > { %5809 = vmatmul.mubr.f32.gmra.mrb[82].mxu1 %v4919_v47  ;;  %5492 = vmatprep.mubr.f32.mxu0 %v4924_v38  ;;  %v4972_v25 = vmax.f32 %v8439_v22, 0.0  ;;  %v4971_v19 = vmax.f32 %v8438_v39, 0.0  ;;  %v6190_v47 = vld [vmem:[#allocation10 + $0x18] sm:$0xff]  ;;  %v6221_v22 = vld [vmem:[#allocation10 + $0x110] sm:$0xff]  ;;  %v6224_v39 = vld [vmem:[#allocation10 + $0x128] sm:$0xff] }
 0x4d0   : > { %5814 = vmatprep.mubr.f32.mxu1 %v4924_v38  ;;  %v4976_v40 = vmax.f32 %v8441_v18, 0.0  ;;  %v4975_v52 = vmax.f32 %v8440_v3, 0.0  ;;  %v8090_v5 = vpack.c.bf16 %v6190_v47, %v6188_v49  ;;  %v8092_v38 = vpack.c.bf16 %v6189_v21, %v6187_v2  ;;  %v6223_v18 = vld [vmem:[#allocation10 + $0x120] sm:$0xff]  ;;  %v6225_v3 = vld [vmem:[#allocation10 + $0x130] sm:$0xff] }
 0x4d1   : > { %v8128_v49 = vpack.c.bf16 %v6225_v3, %v6223_v18  ;;  %v6227_v2 = vld [vmem:[#allocation10 + $0x140] sm:$0xff] }
 0x4d2   : > { %5493 = vmatmul.mubr.f32.gmra.mrb[84].mxu0 %v4923_v6  ;;  %8091 = vmatprep.subr.bf16.mxu0 %v8090_v5  ;;  %v6229_v5 = vld [vmem:[#allocation10 + $0x150] sm:$0xff] }
 0x4d3   : > { %5815 = vmatmul.mubr.f32.gmra.mrb[84].mxu1 %v4923_v6  ;;  %5498 = vmatprep.mubr.f32.mxu0 %v4928_v58  ;;  %v6194_v6 = vld [vmem:[#allocation10 + $0x38] sm:$0xff]  ;;  %v8132_v21 = vpack.c.bf16 %v6229_v5, %v6227_v2 }
 0x4d4   : > { %5820 = vmatprep.mubr.f32.mxu1 %v4928_v58  ;;  %8093 = vmatpush1.bf16.msra.mxu0 %v8092_v38  ;;  %v8094_v34 = vpack.c.bf16 %v6194_v6, %v6192_v29  ;;  %v6196_v58 = vld [vmem:[#allocation10 + $0x48] sm:$0xff]  ;;  %v6234_v29 = vld [vmem:[#allocation10 + $0x178] sm:$0xff]  ;;  %v6231_v6 = vld [vmem:[#allocation10 + $0x160] sm:$0xff] }
 0x4d5   : > { %v8098_v63 = vpack.c.bf16 %v6198_v59, %v6196_v58  ;;  %v6232_v38 = vld [vmem:[#allocation10 + $0x168] sm:$0xff]  ;;  %v6238_v58 = vld [vmem:[#allocation10 + $0x198] sm:$0xff] }
 0x4d6   : > { %5499 = vmatmul.mubr.f32.gmra.mrb[86].mxu0 %v4927_v15  ;;  %8095 = vmatprep.subr.bf16.mxu0 %v8094_v34  ;;  %v6233_v34 = vld [vmem:[#allocation10 + $0x170] sm:$0xff] }
 0x4d7   : > { %5821 = vmatmul.mubr.f32.gmra.mrb[86].mxu1 %v4927_v15  ;;  %5504 = vmatprep.mubr.f32.mxu0 %v4932_v62  ;;  %v8096_v15 = vpack.c.bf16 %v6193_v57, %v6191_v56  ;;  %v8134_v56 = vpack.c.bf16 %v6234_v29, %v6232_v38  ;;  %v6236_v57 = vld [vmem:[#allocation10 + $0x188] sm:$0xff]  ;;  %v8136_v59 = vpack.c.bf16 %v6233_v34, %v6231_v6 }
 0x4d8   : > { %5826 = vmatprep.mubr.f32.mxu1 %v4932_v62  ;;  %v6195_v62 = vld [vmem:[#allocation10 + $0x40] sm:$0xff] }
 0x4d9   : > { %8097 = vmatpush1.bf16.msra.mxu0 %v8096_v15  ;;  %v8138_v15 = vpack.c.bf16 %v6238_v58, %v6236_v57 }
 0x4da   : > { %5505 = vmatmul.mubr.f32.gmra.mrb[88].mxu0 %v4931_v54  ;;  %8099 = vmatprep.subr.bf16.mxu0 %v8098_v63  ;;  %v6235_v63 = vld [vmem:[#allocation10 + $0x180] sm:$0xff] }
 0x4db   : > { %5827 = vmatmul.mubr.f32.gmra.mrb[88].mxu1 %v4931_v54  ;;  %5510 = vmatprep.mubr.f32.mxu0 %v4936_v11  ;;  %v8100_v54 = vpack.c.bf16 %v6197_v17, %v6195_v62  ;;  %v6237_v62 = vld [vmem:[#allocation10 + $0x190] sm:$0xff]  ;;  %v6240_v17 = vld [vmem:[#allocation10 + $0x1a8] sm:$0xff] }
 0x4dc   : > { %5832 = vmatprep.mubr.f32.mxu1 %v4936_v11  ;;  %v6202_v11 = vld [vmem:[#allocation10 + $0x78] sm:$0xff] }
 0x4dd   : > { %8101 = vmatpush1.bf16.msra.mxu0 %v8100_v54  ;;  %v6242_v54 = vld [vmem:[#allocation10 + $0x1b8] sm:$0xff] }
 0x4de   : > { %5511 = vmatmul.mubr.f32.gmra.mrb[90].mxu0 %v4935_v55 }
 0x4df   : > { %5833 = vmatmul.mubr.f32.gmra.mrb[90].mxu1 %v4935_v55  ;;  %5516 = vmatprep.mubr.f32.mxu0 %v4940_v41  ;;  %v8102_v55 = vpack.c.bf16 %v6202_v11, %v6200_v20  ;;  %v8140_v20 = vpack.c.bf16 %v6237_v62, %v6235_v63  ;;  %v8142_v11 = vpack.c.bf16 %v6242_v54, %v6240_v17 }
 0x4e0   : > { %5838 = vmatprep.mubr.f32.mxu1 %v4940_v41  ;;  %v6204_v41 = vld [vmem:[#allocation10 + $0x88] sm:$0xff] }
 0x4e1   : > { %v8106_v46 = vpack.c.bf16 %v6206_v31, %v6204_v41  ;;  %8103 = vmatprep.subr.bf16.mxu0 %v8102_v55  ;;  %v6241_v55 = vld [vmem:[#allocation10 + $0x1b0] sm:$0xff]  ;;  %v6246_v41 = vld [vmem:[#allocation10 + $0x1d8] sm:$0xff] }
 0x4e2   : > { %5517 = vmatmul.mubr.f32.gmra.mrb[92].mxu0 %v4939_v9 }
 0x4e3   : > { %5839 = vmatmul.mubr.f32.gmra.mrb[92].mxu1 %v4939_v9  ;;  %5522 = vmatprep.mubr.f32.mxu0 %v4944_v30  ;;  %v8104_v9 = vpack.c.bf16 %v6201_v27, %v6199_v10  ;;  %v6239_v10 = vld [vmem:[#allocation10 + $0x1a0] sm:$0xff]  ;;  %v6244_v27 = vld [vmem:[#allocation10 + $0x1c8] sm:$0xff] }
 0x4e4   : > { %5844 = vmatprep.mubr.f32.mxu1 %v4944_v30  ;;  %v6203_v30 = vld [vmem:[#allocation10 + $0x80] sm:$0xff]  ;;  %v8144_v31 = vpack.c.bf16 %v6241_v55, %v6239_v10 }
 0x4e5   : > { %8105 = vmatpush1.bf16.msra.mxu0 %v8104_v9  ;;  %v8146_v9 = vpack.c.bf16 %v6246_v41, %v6244_v27 }
 0x4e6   : > { %5523 = vmatmul.mubr.f32.gmra.mrb[94].mxu0 %v4943_v12  ;;  %8107 = vmatprep.subr.bf16.mxu0 %v8106_v46  ;;  %v6243_v46 = vld [vmem:[#allocation10 + $0x1c0] sm:$0xff] }
 0x4e7   : > { %5845 = vmatmul.mubr.f32.gmra.mrb[94].mxu1 %v4943_v12  ;;  %5528 = vmatprep.mubr.f32.mxu0 %v4948_v61  ;;  %v8108_v12 = vpack.c.bf16 %v6205_v23, %v6203_v30  ;;  %v6245_v30 = vld [vmem:[#allocation10 + $0x1d0] sm:$0xff]  ;;  %v6248_v23 = vld [vmem:[#allocation10 + $0x1e8] sm:$0xff] }
 0x4e8   : > { %5850 = vmatprep.mubr.f32.mxu1 %v4948_v61  ;;  %v6210_v61 = vld [vmem:[#allocation10 + $0xb8] sm:$0xff] }
 0x4e9   : > { %8109 = vmatpush1.bf16.msra.mxu0 %v8108_v12  ;;  %v6250_v12 = vld [vmem:[#allocation10 + $0x1f8] sm:$0xff] }
 0x4ea   : > { %5529 = vmatmul.mubr.f32.gmra.mrb[96].mxu0 %v4947_v45 }
 0x4eb   : > { %5851 = vmatmul.mubr.f32.gmra.mrb[96].mxu1 %v4947_v45  ;;  %5534 = vmatprep.mubr.f32.mxu0 %v4952_v13  ;;  %v8110_v45 = vpack.c.bf16 %v6210_v61, %v6208_v44  ;;  %v8148_v44 = vpack.c.bf16 %v6245_v30, %v6243_v46  ;;  %v8150_v61 = vpack.c.bf16 %v6250_v12, %v6248_v23 }
 0x4ec   : > { %5856 = vmatprep.mubr.f32.mxu1 %v4952_v13  ;;  %v6212_v13 = vld [vmem:[#allocation10 + $0xc8] sm:$0xff] }
 0x4ed   : > { %v8114_v51 = vpack.c.bf16 %v6214_v36, %v6212_v13  ;;  %8111 = vmatprep.subr.bf16.mxu0 %v8110_v45  ;;  %v6249_v45 = vld [vmem:[#allocation10 + $0x1f0] sm:$0xff]  ;;  %v6254_v13 = vld [vmem:[#allocation10 + $0x218] sm:$0xff] }
 0x4ee   : > { %5535 = vmatmul.mubr.f32.gmra.mrb[98].mxu0 %v4951_v16 }
 0x4ef   : > { %5857 = vmatmul.mubr.f32.gmra.mrb[98].mxu1 %v4951_v16  ;;  %5540 = vmatprep.mubr.f32.mxu0 %v4956_v4  ;;  %v8112_v16 = vpack.c.bf16 %v6209_v7, %v6207_v33  ;;  %v6247_v33 = vld [vmem:[#allocation10 + $0x1e0] sm:$0xff]  ;;  %v6252_v7 = vld [vmem:[#allocation10 + $0x208] sm:$0xff] }
 0x4f0   : > { %5862 = vmatprep.mubr.f32.mxu1 %v4956_v4  ;;  %v6211_v4 = vld [vmem:[#allocation10 + $0xc0] sm:$0xff]  ;;  %v8152_v36 = vpack.c.bf16 %v6249_v45, %v6247_v33 }
 0x4f1   : > { %8113 = vmatpush1.bf16.msra.mxu0 %v8112_v16  ;;  %v8154_v16 = vpack.c.bf16 %v6254_v13, %v6252_v7 }
 0x4f2   : > { %5541 = vmatmul.mubr.f32.gmra.mrb[100].mxu0 %v4955_v32  ;;  %8115 = vmatprep.subr.bf16.mxu0 %v8114_v51  ;;  %v5233_v51 = vld [vmem:[%s11952_s9] sm:$0xf] }
 0x4f3   : > { %5863 = vmatmul.mubr.f32.gmra.mrb[100].mxu1 %v4955_v32  ;;  %5546 = vmatprep.mubr.f32.mxu0 %v4960_v1  ;;  %v8116_v32 = vpack.c.bf16 %v6213_v26, %v6211_v4  ;;  %v11568_v4 = vrot.slane %v5233_v51, %v12650_v14 }
 0x4f4   : > { %5868 = vmatprep.mubr.f32.mxu1 %v4960_v1  ;;  %v6218_v1 = vld [vmem:[#allocation10 + $0xf8] sm:$0xff] }
 0x4f5   : > { %8117 = vmatpush1.bf16.msra.mxu0 %v8116_v32  ;;  %v11571_v32 = vrot.slane %v5233_v51, %v12652_v28 }
 0x4f6   : > { %5547 = vmatmul.mubr.f32.gmra.mrb[102].mxu0 %v4959_v60 }
 0x4f7   : > { %5869 = vmatmul.mubr.f32.gmra.mrb[102].mxu1 %v4959_v60  ;;  %5552 = vmatprep.mubr.f32.mxu0 %v4964_v50  ;;  %v8118_v60 = vpack.c.bf16 %v6218_v1, %v6216_v48  ;;  %v11574_v48 = vrot.slane %v5233_v51, %v12651_v42 }
 0x4f8   : > { %5874 = vmatprep.mubr.f32.mxu1 %v4964_v50  ;;  %v6220_v50 = vld [vmem:[#allocation10 + $0x108] sm:$0xff] }
 0x4f9   : > { %v8122_v24 = vpack.c.bf16 %v6222_v0, %v6220_v50  ;;  %8119 = vmatprep.subr.bf16.mxu0 %v8118_v60  ;;  %v12653_v60 = vld [vmem:[#allocation45_spill] sm:$0xff] }
 0x4fa   : > { %5553 = vmatmul.mubr.f32.gmra.mrb[104].mxu0 %v4963_v43 }
 0x4fb   : > { %5875 = vmatmul.mubr.f32.gmra.mrb[104].mxu1 %v4963_v43  ;;  %5558 = vmatprep.mubr.f32.mxu0 %v4968_v53  ;;  %v8120_v43 = vpack.c.bf16 %v6217_v8, %v6215_v35  ;;  %v11577_v8 = vrot.slane %v5233_v51, %v12653_v60 }
 0x4fc   : > { %5880 = vmatprep.mubr.f32.mxu1 %v4968_v53  ;;  %v6219_v53 = vld [vmem:[#allocation10 + $0x100] sm:$0xff] }
 0x4fd   : > { %8121 = vmatpush1.bf16.msra.mxu0 %v8120_v43 }
 0x4fe   : > { %5559 = vmatmul.mubr.f32.gmra.mrb[106].mxu0 %v4967_v37  ;;  %8123 = vmatprep.subr.bf16.mxu0 %v8122_v24 }
 0x4ff   : > { %5881 = vmatmul.mubr.f32.gmra.mrb[106].mxu1 %v4967_v37  ;;  %5564 = vmatprep.mubr.f32.mxu0 %v4972_v25  ;;  %v8124_v37 = vpack.c.bf16 %v6221_v22, %v6219_v53 }
 0x500   : > { %5886 = vmatprep.mubr.f32.mxu1 %v4972_v25  ;;  %v6226_v25 = vld [vmem:[#allocation10 + $0x138] sm:$0xff] }
 0x501   : > { %8125 = vmatpush1.bf16.msra.mxu0 %v8124_v37 }
 0x502   : > { %5565 = vmatmul.mubr.f32.gmra.mrb[108].mxu0 %v4971_v19 }
 0x503   : > { %5887 = vmatmul.mubr.f32.gmra.mrb[108].mxu1 %v4971_v19  ;;  %5570 = vmatprep.mubr.f32.mxu0 %v4976_v40  ;;  %v8126_v19 = vpack.c.bf16 %v6226_v25, %v6224_v39 }
 0x504   : > { %5892 = vmatprep.mubr.f32.mxu1 %v4976_v40  ;;  %v6228_v40 = vld [vmem:[#allocation10 + $0x148] sm:$0xff] }
 0x505   : > { %8127 = vmatprep.subr.bf16.mxu0 %v8126_v19 }
 0x506   : > { %5571 = vmatmul.mubr.f32.gmra.mrb[110].mxu0 %v4975_v52 }
 0x507   : > { %5893 = vmatmul.mubr.f32.gmra.mrb[110].mxu1 %v4975_v52  ;;  %v6230_v52 = vld [vmem:[#allocation10 + $0x158] sm:$0xff]  ;;  %8129 = vmatpush1.bf16.msra.mxu0 %v8128_v49 }
 0x508   : > { %v8130_v47 = vpack.c.bf16 %v6230_v52, %v6228_v40 }
 0x50a   : > { %8131 = vmatprep.subr.bf16.mxu0 %v8130_v47 }
 0x50b   : > { %8133 = vmatpush1.bf16.msra.mxu0 %v8132_v21 }
 0x50c   : > { %8135 = vmatprep.subr.bf16.mxu0 %v8134_v56 }
 0x50f   : > { %8137 = vmatpush1.bf16.msra.mxu0 %v8136_v59 }
 0x510   : > { %8139 = vmatprep.subr.bf16.mxu0 %v8138_v15 }
 0x513   : > { %8141 = vmatpush1.bf16.msra.mxu0 %v8140_v20 }
 0x514   : > { %8143 = vmatprep.subr.bf16.mxu0 %v8142_v11 }
 0x517   : > { %8145 = vmatpush1.bf16.msra.mxu0 %v8144_v31 }
 0x518   : > { %8147 = vmatprep.subr.bf16.mxu0 %v8146_v9 }
 0x51b   : > { %8149 = vmatpush1.bf16.msra.mxu0 %v8148_v44 }
 0x51c   : > { %8151 = vmatprep.subr.bf16.mxu0 %v8150_v61 }
 0x51f   : > { %8153 = vmatpush1.bf16.msra.mxu0 %v8152_v36 }
 0x520   : > { %8155 = vmatprep.subr.bf16.mxu0 %v8154_v16 }
 0x59d   : > { %v5482_v26 = vpop.f32.mrb[80].mxu0 }
 0x59e   : > { %v5804_v1 = vpop.f32.mrb[80].mxu1  ;;  %v5484_v35 = vpop.f32.mrb[81].mxu0  ;;  %v8442_v0 = vadd.f32 %v5482_v26, %v11568_v4 }
 0x59f   : > { %v5806_v50 = vpop.f32.mrb[81].mxu1  ;;  %v8474_v43 = vadd.f32 %v5804_v1, %v11571_v32  ;;  %v8443_v24 = vadd.f32 %v5484_v35, %v11574_v48 }
 0x5a0   : > { %v8475_v22 = vadd.f32 %v5806_v50, %v11577_v8  ;;  %v5899_v3 = vmax.f32 %v8442_v0, 0.0 }
 0x5a1   : > { %v5488_v53 = vpop.f32.mrb[82].mxu0  ;;  %v5901_v49 = vmax.f32 %v8474_v43, 0.0  ;;  %v5900_v47 = vmax.f32 %v8443_v24, 0.0 }
 0x5a2   : > { %v8444_v28 = vadd.f32 %v5488_v53, %v11568_v4  ;;  %v5810_v37 = vpop.f32.mrb[82].mxu1  ;;  %v5490_v39 = vpop.f32.mrb[83].mxu0  ;;  %v5902_v38 = vmax.f32 %v8475_v22, 0.0 }
 0x5a3   : > { %v8476_v25 = vadd.f32 %v5810_v37, %v11571_v32  ;;  %v8445_v18 = vadd.f32 %v5490_v39, %v11574_v48  ;;  %v5812_v19 = vpop.f32.mrb[83].mxu1 }
 0x5a4   : > { %v5903_v40 = vmax.f32 %v8444_v28, 0.0  ;;  %v8477_v52 = vadd.f32 %v5812_v19, %v11577_v8 }
 0x5a5   : > { %v5905_v2 = vmax.f32 %v8476_v25, 0.0  ;;  %v5904_v5 = vmax.f32 %v8445_v18, 0.0  ;;  %v5494_v21 = vpop.f32.mrb[84].mxu0 }
 0x5a6   : > { %v5963_v29 = vadd.f32 %v5903_v40, %v5899_v3  ;;  %v5906_v6 = vmax.f32 %v8477_v52, 0.0  ;;  %v8446_v56 = vadd.f32 %v5494_v21, %v11568_v4  ;;  %v5816_v34 = vpop.f32.mrb[84].mxu1  ;;  %v5496_v57 = vpop.f32.mrb[85].mxu0 }
 0x5a7   : > { %v5977_v58 = vadd.f32 %v5905_v2, %v5901_v49  ;;  %v5970_v59 = vadd.f32 %v5904_v5, %v5900_v47  ;;  %v8478_v15 = vadd.f32 %v5816_v34, %v11571_v32  ;;  %v8447_v63 = vadd.f32 %v5496_v57, %v11574_v48  ;;  %v5818_v62 = vpop.f32.mrb[85].mxu1 }
 0x5a8   : > { %v5964_v17 = vrot.slane %v5963_v29, 4  ;;  %v5984_v54 = vadd.f32 %v5906_v6, %v5902_v38  ;;  %v5907_v20 = vmax.f32 %v8446_v56, 0.0  ;;  %v8479_v11 = vadd.f32 %v5818_v62, %v11577_v8 }
 0x5a9   : > { %v5978_v10 = vrot.slane %v5977_v58, 4  ;;  %v5971_v55 = vrot.slane %v5970_v59, 4  ;;  %v5909_v27 = vmax.f32 %v8478_v15, 0.0  ;;  %v5908_v41 = vmax.f32 %v8447_v63, 0.0  ;;  %v5500_v31 = vpop.f32.mrb[86].mxu0 }
 0x5aa   : > { %v5965_v9 = vadd.f32 %v5964_v17, %v5963_v29  ;;  %v5985_v46 = vrot.slane %v5984_v54, 4  ;;  %v5910_v30 = vmax.f32 %v8479_v11, 0.0  ;;  %v8448_v23 = vadd.f32 %v5500_v31, %v11568_v4  ;;  %v5822_v12 = vpop.f32.mrb[86].mxu1  ;;  %v5502_v44 = vpop.f32.mrb[87].mxu0 }
 0x5ab   : > { %v5979_v61 = vadd.f32 %v5978_v10, %v5977_v58  ;;  %v5972_v33 = vadd.f32 %v5971_v55, %v5970_v59  ;;  %v8480_v45 = vadd.f32 %v5822_v12, %v11571_v32  ;;  %v8449_v7 = vadd.f32 %v5502_v44, %v11574_v48  ;;  %v5824_v13 = vpop.f32.mrb[87].mxu1 }
 0x5ac   : > { %v5966_v36 = vrot.slane %v5965_v9, 2  ;;  %v5986_v16 = vadd.f32 %v5985_v46, %v5984_v54  ;;  %v5911_v51 = vmax.f32 %v8448_v23, 0.0  ;;  %v8481_v26 = vadd.f32 %v5824_v13, %v11577_v8 }
 0x5ad   : > { %v5980_v1 = vrot.slane %v5979_v61, 2  ;;  %v5973_v35 = vrot.slane %v5972_v33, 2  ;;  %v5913_v60 = vmax.f32 %v8480_v45, 0.0  ;;  %v5912_v50 = vmax.f32 %v8449_v7, 0.0  ;;  %v5506_v0 = vpop.f32.mrb[88].mxu0 }
 0x5ae   : > { %v5967_v43 = vadd.f32 %v5966_v36, %v5965_v9  ;;  %v5987_v24 = vrot.slane %v5986_v16, 2  ;;  %v5991_v53 = vadd.f32 %v5911_v51, %v5907_v20  ;;  %v5914_v22 = vmax.f32 %v8481_v26, 0.0  ;;  %v5828_v28 = vpop.f32.mrb[88].mxu1  ;;  %v5508_v37 = vpop.f32.mrb[89].mxu0 }
 0x5af   : > { %v5981_v39 = vadd.f32 %v5980_v1, %v5979_v61  ;;  %v5974_v25 = vadd.f32 %v5973_v35, %v5972_v33  ;;  %v6005_v18 = vadd.f32 %v5913_v60, %v5909_v27  ;;  %v5998_v19 = vadd.f32 %v5912_v50, %v5908_v41  ;;  %v5830_v3 = vpop.f32.mrb[89].mxu1 }
 0x5b0   : > { %v5968_v40 = vrot.slane %v5967_v43, 1  ;;  %v5988_v52 = vadd.f32 %v5987_v24, %v5986_v16  ;;  %v5992_v49 = vrot.slane %v5991_v53, 4  ;;  %v6012_v47 = vadd.f32 %v5914_v22, %v5910_v30 }
 0x5b1   : > { %v5982_v2 = vrot.slane %v5981_v39, 1  ;;  %v5975_v5 = vrot.slane %v5974_v25, 1  ;;  %v6006_v21 = vrot.slane %v6005_v18, 4  ;;  %v5999_v38 = vrot.slane %v5998_v19, 4  ;;  %v5512_v29 = vpop.f32.mrb[90].mxu0 }
 0x5b2   : > { %v5969_v6 = vadd.f32 %v5968_v40, %v5967_v43  ;;  %v5989_v56 = vrot.slane %v5988_v52, 1  ;;  %v5993_v34 = vadd.f32 %v5992_v49, %v5991_v53  ;;  %v6013_v57 = vrot.slane %v6012_v47, 4  ;;  %v5834_v58 = vpop.f32.mrb[90].mxu1  ;;  %v5514_v59 = vpop.f32.mrb[91].mxu0 }
 0x5b3   : > { %v5983_v15 = vadd.f32 %v5982_v2, %v5981_v39  ;;  %v5976_v63 = vadd.f32 %v5975_v5, %v5974_v25  ;;  %v6007_v62 = vadd.f32 %v6006_v21, %v6005_v18  ;;  %v6000_v17 = vadd.f32 %v5999_v38, %v5998_v19  ;;  %v5836_v54 = vpop.f32.mrb[91].mxu1 }
 0x5b4   : > { %v5990_v20 = vadd.f32 %v5989_v56, %v5988_v52  ;;  %v5994_v11 = vrot.slane %v5993_v34, 2  ;;  %v6014_v10 = vadd.f32 %v6013_v57, %v6012_v47  ;;  %v8450_v55 = vadd.f32 %v5506_v0, %v11568_v4 }
 0x5b5   : > { %v6008_v27 = vrot.slane %v6007_v62, 2  ;;  %v6001_v41 = vrot.slane %v6000_v17, 2  ;;  %v8482_v31 = vadd.f32 %v5828_v28, %v11571_v32  ;;  %v8451_v9 = vadd.f32 %v5508_v37, %v11574_v48  ;;  %v5518_v46 = vpop.f32.mrb[92].mxu0 }
 0x5b6   : > { %v5995_v30 = vadd.f32 %v5994_v11, %v5993_v34  ;;  %v6015_v23 = vrot.slane %v6014_v10, 2  ;;  %v5915_v12 = vmax.f32 %v8450_v55, 0.0  ;;  %v8483_v44 = vadd.f32 %v5830_v3, %v11577_v8  ;;  %v5840_v61 = vpop.f32.mrb[92].mxu1  ;;  %v5520_v33 = vpop.f32.mrb[93].mxu0 }
 0x5b7   : > { %v6009_v45 = vadd.f32 %v6008_v27, %v6007_v62  ;;  %v6002_v7 = vadd.f32 %v6001_v41, %v6000_v17  ;;  %v5917_v13 = vmax.f32 %v8482_v31, 0.0  ;;  %v5916_v36 = vmax.f32 %v8451_v9, 0.0  ;;  %v5842_v16 = vpop.f32.mrb[93].mxu1 }
 0x5b8   : > { %v5996_v51 = vrot.slane %v5995_v30, 1  ;;  %v6016_v26 = vadd.f32 %v6015_v23, %v6014_v10  ;;  %v5918_v1 = vmax.f32 %v8483_v44, 0.0  ;;  %v8452_v35 = vadd.f32 %v5512_v29, %v11568_v4 }
 0x5b9   : > { %v6010_v60 = vrot.slane %v6009_v45, 1  ;;  %v6003_v50 = vrot.slane %v6002_v7, 1  ;;  %v8484_v0 = vadd.f32 %v5834_v58, %v11571_v32  ;;  %v8453_v43 = vadd.f32 %v5514_v59, %v11574_v48  ;;  %v5524_v24 = vpop.f32.mrb[94].mxu0 }
 0x5ba   : > { %v5997_v53 = vadd.f32 %v5996_v51, %v5995_v30  ;;  %v6017_v22 = vrot.slane %v6016_v26, 1  ;;  %v5919_v28 = vmax.f32 %v8452_v35, 0.0  ;;  %v8485_v37 = vadd.f32 %v5836_v54, %v11577_v8  ;;  %v5846_v39 = vpop.f32.mrb[94].mxu1  ;;  %v5526_v25 = vpop.f32.mrb[95].mxu0 }
 0x5bb   : > { %v6011_v18 = vadd.f32 %v6010_v60, %v6009_v45  ;;  %v6004_v19 = vadd.f32 %v6003_v50, %v6002_v7  ;;  %v5921_v3 = vmax.f32 %v8484_v0, 0.0  ;;  %v5920_v40 = vmax.f32 %v8453_v43, 0.0  ;;  %v5848_v52 = vpop.f32.mrb[95].mxu1 }
 0x5bc   : > { %v11604_v49 = vsel %vm6359_vm0, %v5997_v53, %v5969_v6  ;;  %v6018_v47 = vadd.f32 %v6017_v22, %v6016_v26  ;;  %v6019_v2 = vadd.f32 %v5919_v28, %v5915_v12  ;;  %v5922_v5 = vmax.f32 %v8485_v37, 0.0 }
 0x5bd   : > { %v11607_v21 = vsel %vm6359_vm0, %v6011_v18, %v5983_v15  ;;  %v11610_v38 = vsel %vm6359_vm0, %v6004_v19, %v5976_v63  ;;  %v6033_v29 = vadd.f32 %v5921_v3, %v5917_v13  ;;  %v6026_v56 = vadd.f32 %v5920_v40, %v5916_v36  ;;  %v11612_v34 = vpop.f32.mrb[96].mxu0 }
 0x5be   : > { %v11615_v57 = vsel %vm6359_vm0, %v6018_v47, %v5990_v20  ;;  %v6020_v58 = vrot.slane %v6019_v2, 4  ;;  %v6040_v59 = vadd.f32 %v5922_v5, %v5918_v1  ;;  %v8454_v6 = vadd.f32 %v5518_v46, %v11568_v4  ;;  %v11618_v62 = vpop.f32.mrb[96].mxu1  ;;  %v11620_v17 = vpop.f32.mrb[97].mxu0 }
 0x5bf   : > { %v6034_v15 = vrot.slane %v6033_v29, 4  ;;  %v6027_v54 = vrot.slane %v6026_v56, 4  ;;  %v8486_v63 = vadd.f32 %v5840_v61, %v11571_v32  ;;  %v8455_v11 = vadd.f32 %v5520_v33, %v11574_v48  ;;  %v11624_v10 = vpop.f32.mrb[97].mxu1 }
 0x5c0   : > { %v6021_v55 = vadd.f32 %v6020_v58, %v6019_v2  ;;  %v6041_v27 = vrot.slane %v6040_v59, 4  ;;  %v5923_v20 = vmax.f32 %v8454_v6, 0.0  ;;  %v8487_v41 = vadd.f32 %v5842_v16, %v11577_v8 }
 0x5c1   : > { %v6035_v31 = vadd.f32 %v6034_v15, %v6033_v29  ;;  %v6028_v9 = vadd.f32 %v6027_v54, %v6026_v56  ;;  %v5925_v46 = vmax.f32 %v8486_v63, 0.0  ;;  %v5924_v30 = vmax.f32 %v8455_v11, 0.0  ;;  %v11627_v23 = vpop.f32.mrb[98].mxu0 }
 0x5c2   : > { %v6022_v12 = vrot.slane %v6021_v55, 2  ;;  %v6042_v44 = vadd.f32 %v6041_v27, %v6040_v59  ;;  %v5926_v45 = vmax.f32 %v8487_v41, 0.0  ;;  %v8456_v61 = vadd.f32 %v5524_v24, %v11568_v4  ;;  %v11630_v7 = vpop.f32.mrb[98].mxu1  ;;  %v11632_v33 = vpop.f32.mrb[99].mxu0 }
 0x5c3   : > { %v6036_v13 = vrot.slane %v6035_v31, 2  ;;  %v6029_v36 = vrot.slane %v6028_v9, 2  ;;  %v8488_v51 = vadd.f32 %v5846_v39, %v11571_v32  ;;  %v8457_v16 = vadd.f32 %v5526_v25, %v11574_v48  ;;  %v11636_v26 = vpop.f32.mrb[99].mxu1 }
 0x5c4   : > { %v6023_v1 = vadd.f32 %v6022_v12, %v6021_v55  ;;  %v6043_v35 = vrot.slane %v6042_v44, 2  ;;  %v5927_v60 = vmax.f32 %v8456_v61, 0.0  ;;  %v8489_v50 = vadd.f32 %v5848_v52, %v11577_v8 }
 0x5c5   : > { %v6037_v0 = vadd.f32 %v6036_v13, %v6035_v31  ;;  %v6030_v43 = vadd.f32 %v6029_v36, %v6028_v9  ;;  %v5929_v24 = vmax.f32 %v8488_v51, 0.0  ;;  %v5928_v53 = vmax.f32 %v8457_v16, 0.0  ;;  %v11639_v22 = vpop.f32.mrb[100].mxu0 }
 0x5c6   : > { %v6024_v28 = vrot.slane %v6023_v1, 1  ;;  %v6044_v37 = vadd.f32 %v6043_v35, %v6042_v44  ;;  %v6047_v18 = vadd.f32 %v5927_v60, %v5923_v20  ;;  %v5930_v19 = vmax.f32 %v8489_v50, 0.0  ;;  %v11641_v39 = vpop.f32.mrb[100].mxu1  ;;  %v11643_v25 = vpop.f32.mrb[101].mxu0 }
 0x5c7   : > { %v6038_v3 = vrot.slane %v6037_v0, 1  ;;  %v6061_v40 = vadd.f32 %v5929_v24, %v5925_v46  ;;  %v6054_v47 = vadd.f32 %v5928_v53, %v5924_v30  ;;  %v11645_v2 = vpop.f32.mrb[101].mxu1  ;;  %v6031_v58 = vrot.slane %v6030_v43, 1 }
 0x5c8   : > { %v6025_v52 = vadd.f32 %v6024_v28, %v6023_v1  ;;  %v6048_v5 = vrot.slane %v6047_v18, 4  ;;  %v6068_v29 = vadd.f32 %v5930_v19, %v5926_v45  ;;  %v6045_v63 = vrot.slane %v6044_v37, 1 }
 0x5c9   : > { %v6039_v56 = vadd.f32 %v6038_v3, %v6037_v0  ;;  %v6062_v59 = vrot.slane %v6061_v40, 4  ;;  %v6055_v6 = vrot.slane %v6054_v47, 4  ;;  %v11647_v15 = vpop.f32.mrb[102].mxu0  ;;  %v8458_v12 = vadd.f32 %v11612_v34, %v11568_v4 }
 0x5ca   : > { %v6362_v54 = vsel %vm6361_vm1, %v6025_v52, %v11604_v49  ;;  %v6049_v11 = vadd.f32 %v6048_v5, %v6047_v18  ;;  %v6069_v55 = vrot.slane %v6068_v29, 4  ;;  %v11651_v27 = vpop.f32.mrb[102].mxu1  ;;  %v11653_v20 = vpop.f32.mrb[103].mxu0  ;;  %v8490_v44 = vadd.f32 %v11618_v62, %v11571_v32 }
 0x5cb   : > { %v11657_v41 = vsel %vm6361_vm1, %v6039_v56, %v11607_v21  ;;  %v6063_v31 = vadd.f32 %v6062_v59, %v6061_v40  ;;  %v6056_v9 = vadd.f32 %v6055_v6, %v6054_v47  ;;  %v11659_v46 = vpop.f32.mrb[103].mxu1  ;;  %v11667_v61 = vadd.f32 %v6031_v58, %v6030_v43 }
 0x5cc   : > { %v6050_v30 = vrot.slane %v6049_v11, 2  ;;  %v6070_v49 = vadd.f32 %v6069_v55, %v6068_v29  ;;  %v11669_v13 = vadd.f32 %v6045_v63, %v6044_v37  ;;  %v8459_v36 = vadd.f32 %v11620_v17, %v11574_v48 }
 0x5cd   : > { %v11665_v45 = vpop.f32.mrb[104].mxu0  ;;  %v6064_v34 = vrot.slane %v6063_v31, 2  ;;  %v6057_v1 = vrot.slane %v6056_v9, 2  ;;  %v8491_v35 = vadd.f32 %v11624_v10, %v11577_v8  ;;  %v8460_v62 = vadd.f32 %v11627_v23, %v11568_v4 }
 0x5ce   : > { %v6051_v21 = vadd.f32 %v6050_v30, %v6049_v11  ;;  %v11673_v51 = vpop.f32.mrb[104].mxu1  ;;  %v11675_v16 = vpop.f32.mrb[105].mxu0  ;;  %v5931_v0 = vmax.f32 %v8458_v12, 0.0  ;;  %v8492_v43 = vadd.f32 %v11630_v7, %v11571_v32  ;;  %v8461_v17 = vadd.f32 %v11632_v33, %v11574_v48 }
 0x5cf   : > { %v11681_v60 = vpop.f32.mrb[105].mxu1  ;;  %v6071_v24 = vrot.slane %v6070_v49, 2  ;;  %v5933_v53 = vmax.f32 %v8490_v44, 0.0  ;;  %v5935_v28 = vmax.f32 %v8460_v62, 0.0  ;;  %v8493_v37 = vadd.f32 %v11636_v26, %v11577_v8 }
 0x5d0   : > { %v6052_v50 = vrot.slane %v6051_v21, 1  ;;  %v5932_v23 = vmax.f32 %v8459_v36, 0.0  ;;  %v5937_v19 = vmax.f32 %v8492_v43, 0.0  ;;  %v5936_v3 = vmax.f32 %v8461_v17, 0.0 }
 0x5d1   : > { %v11689_v10 = vpop.f32.mrb[106].mxu0  ;;  %v6058_v7 = vadd.f32 %v6057_v1, %v6056_v9  ;;  %v5934_v52 = vmax.f32 %v8491_v35, 0.0  ;;  %v6075_v5 = vadd.f32 %v5935_v28, %v5931_v0  ;;  %v5938_v33 = vmax.f32 %v8493_v37, 0.0 }
 0x5d2   : > { %v6053_v18 = vadd.f32 %v6052_v50, %v6051_v21  ;;  %v11691_v40 = vpop.f32.mrb[106].mxu1  ;;  %v11693_v47 = vpop.f32.mrb[107].mxu0  ;;  %v11700_v26 = vadd.f32 %v6064_v34, %v6063_v31  ;;  %v6089_v58 = vadd.f32 %v5937_v19, %v5933_v53  ;;  %v6082_v59 = vadd.f32 %v5936_v3, %v5932_v23 }
 0x5d3   : > { %v11695_v29 = vpop.f32.mrb[107].mxu1  ;;  %v6076_v6 = vrot.slane %v6075_v5, 4  ;;  %v6096_v63 = vadd.f32 %v5938_v33, %v5934_v52  ;;  %v8462_v11 = vadd.f32 %v11639_v22, %v11568_v4  ;;  %v8494_v55 = vadd.f32 %v11641_v39, %v11571_v32 }
 0x5d4   : > { %v11698_v56 = vsel %vm6363_vm2, %v6053_v18, %v6362_v54  ;;  %v6072_v30 = vadd.f32 %v6071_v24, %v6070_v49  ;;  %v6090_v12 = vrot.slane %v6089_v58, 4  ;;  %v6083_v44 = vrot.slane %v6082_v59, 4 }
 0x5d5   : > { %v11706_v9 = vpop.f32.mrb[108].mxu0  ;;  %v8463_v54 = vadd.f32 %v11643_v25, %v11574_v48  ;;  %v6059_v36 = vrot.slane %v6058_v7, 1  ;;  %v6077_v34 = vadd.f32 %v6076_v6, %v6075_v5  ;;  %v6097_v1 = vrot.slane %v6096_v63, 4 }
 0x5d6   : > { %v11710_v31 = vpop.f32.mrb[108].mxu1  ;;  %v11712_v21 = vpop.f32.mrb[109].mxu0  ;;  %v8495_v22 = vadd.f32 %v11645_v2, %v11577_v8  ;;  %v6091_v39 = vadd.f32 %v6090_v12, %v6089_v58  ;;  %v6084_v62 = vadd.f32 %v6083_v44, %v6082_v59  ;;  %v5939_v49 = vmax.f32 %v8462_v11, 0.0 }
 0x5d7   : > { %v11716_v35 = vpop.f32.mrb[109].mxu1  ;;  %v5941_v50 = vmax.f32 %v8494_v55, 0.0  ;;  %v6078_v0 = vrot.slane %v6077_v34, 2  ;;  %v6098_v43 = vadd.f32 %v6097_v1, %v6096_v63  ;;  %v8464_v25 = vadd.f32 %v11647_v15, %v11568_v4 }
 0x5d8   : > { %v8496_v17 = vadd.f32 %v11651_v27, %v11571_v32  ;;  %v6085_v53 = vrot.slane %v6084_v62, 2  ;;  %v5940_v28 = vmax.f32 %v8463_v54, 0.0  ;;  %v8465_v2 = vadd.f32 %v11653_v20, %v11574_v48 }
 0x5d9   : > { %v11722_v24 = vpop.f32.mrb[110].mxu0  ;;  %v8497_v37 = vadd.f32 %v11659_v46, %v11577_v8  ;;  %v6079_v19 = vadd.f32 %v6078_v0, %v6077_v34  ;;  %v6099_v3 = vrot.slane %v6098_v43, 2  ;;  %v5943_v15 = vmax.f32 %v8464_v25, 0.0 }
 0x5da   : > { %v11728_v18 = vpop.f32.mrb[110].mxu1  ;;  %v11730_v23 = vpop.f32.mrb[111].mxu0  ;;  %v5945_v52 = vmax.f32 %v8496_v17, 0.0  ;;  %v6086_v27 = vadd.f32 %v6085_v53, %v6084_v62  ;;  %v5942_v33 = vmax.f32 %v8495_v22, 0.0  ;;  %v5944_v58 = vmax.f32 %v8465_v2, 0.0 }
 0x5db   : > { %v11732_v5 = vpop.f32.mrb[111].mxu1  ;;  %v5946_v59 = vmax.f32 %v8497_v37, 0.0  ;;  %v6073_v6 = vrot.slane %v6072_v30, 1  ;;  %v6100_v63 = vadd.f32 %v6099_v3, %v6098_v43  ;;  %v6103_v20 = vadd.f32 %v5943_v15, %v5939_v49 }
 0x5dc   : > { %v6117_v11 = vadd.f32 %v5945_v52, %v5941_v50  ;;  %v6080_v55 = vrot.slane %v6079_v19, 1  ;;  %v6092_v46 = vrot.slane %v6091_v39, 2  ;;  %v6110_v12 = vadd.f32 %v5944_v58, %v5940_v28 }
 0x5dd   : > { %v6124_v44 = vadd.f32 %v5946_v59, %v5942_v33  ;;  %v6087_v54 = vrot.slane %v6086_v27, 1  ;;  %v6101_v1 = vrot.slane %v6100_v63, 1  ;;  %v6104_v34 = vrot.slane %v6103_v20, 4 }
 0x5de   : > { %v6118_v0 = vrot.slane %v6117_v11, 4  ;;  %v6066_v25 = vrot.slane %v11700_v26, 1  ;;  %v11735_v17 = vadd.f32 %v6059_v36, %v6058_v7  ;;  %v6111_v62 = vrot.slane %v6110_v12, 4 }
 0x5df   : > { %v6125_v22 = vrot.slane %v6124_v44, 4  ;;  %v11737_v53 = vadd.f32 %v6073_v6, %v6072_v30  ;;  %v6105_v2 = vadd.f32 %v6104_v34, %v6103_v20  ;;  %v8466_v49 = vadd.f32 %v11665_v45, %v11568_v4 }
 0x5e0   : > { %v6119_v43 = vadd.f32 %v6118_v0, %v6117_v11  ;;  %v11741_v50 = vadd.f32 %v6080_v55, %v6079_v19  ;;  %v11743_v28 = vadd.f32 %v6092_v46, %v6091_v39  ;;  %v6112_v37 = vadd.f32 %v6111_v62, %v6110_v12 }
 0x5e1   : > { %v6126_v3 = vadd.f32 %v6125_v22, %v6124_v44  ;;  %v11745_v15 = vadd.f32 %v6087_v54, %v6086_v27  ;;  %v11747_v52 = vadd.f32 %v6101_v1, %v6100_v63  ;;  %v6106_v7 = vrot.slane %v6105_v2, 2 }
 0x5e2   : > { %v8498_v30 = vadd.f32 %v11673_v51, %v11571_v32  ;;  %v6120_v36 = vrot.slane %v6119_v43, 2  ;;  %v6113_v33 = vrot.slane %v6112_v37, 2  ;;  %v8467_v45 = vadd.f32 %v11675_v16, %v11574_v48 }
 0x5e3   : > { %v6127_v58 = vrot.slane %v6126_v3, 2  ;;  %v6107_v19 = vadd.f32 %v6106_v7, %v6105_v2  ;;  %v5947_v59 = vmax.f32 %v8466_v49, 0.0  ;;  %v8499_v39 = vadd.f32 %v11681_v60, %v11577_v8 }
 0x5e4   : > { %v8468_v27 = vadd.f32 %v11689_v10, %v11568_v4  ;;  %v6114_v6 = vadd.f32 %v6113_v33, %v6112_v37  ;;  %v8500_v20 = vadd.f32 %v11691_v40, %v11571_v32  ;;  %v8469_v51 = vadd.f32 %v11693_v47, %v11574_v48 }
 0x5e5   : > { %v6128_v63 = vadd.f32 %v6127_v58, %v6126_v3  ;;  %v6108_v11 = vrot.slane %v6107_v19, 1  ;;  %v5949_v55 = vmax.f32 %v8498_v30, 0.0  ;;  %v8501_v16 = vadd.f32 %v11695_v29, %v11577_v8 }
 0x5e6   : > { %v5951_v46 = vmax.f32 %v8468_v27, 0.0  ;;  %v6115_v12 = vrot.slane %v6114_v6, 1  ;;  %v5948_v44 = vmax.f32 %v8467_v45, 0.0  ;;  %v5953_v60 = vmax.f32 %v8500_v20, 0.0 }
 0x5e7   : > { %v5952_v54 = vmax.f32 %v8469_v51, 0.0  ;;  %v11763_v1 = vadd.f32 %v6120_v36, %v6119_v43  ;;  %v5950_v10 = vmax.f32 %v8499_v39, 0.0  ;;  %v5954_v0 = vmax.f32 %v8501_v16, 0.0 }
 0x5e8   : > { %v6131_v34 = vadd.f32 %v5951_v46, %v5947_v59  ;;  %v11765_v62 = vadd.f32 %v6108_v11, %v6107_v19  ;;  %v6129_v40 = vrot.slane %v6128_v63, 1  ;;  %v6145_v22 = vadd.f32 %v5953_v60, %v5949_v55 }
 0x5e9   : > { %v6138_v47 = vadd.f32 %v5952_v54, %v5948_v44  ;;  %v6152_v49 = vadd.f32 %v5954_v0, %v5950_v10  ;;  %v8470_v37 = vadd.f32 %v11706_v9, %v11568_v4  ;;  %v8502_v29 = vadd.f32 %v11710_v31, %v11571_v32 }
 0x5ea   : > { %v6132_v2 = vrot.slane %v6131_v34, 4  ;;  %v6116_v3 = vadd.f32 %v6115_v12, %v6114_v6  ;;  %v6146_v7 = vrot.slane %v6145_v22, 4  ;;  %v8471_v30 = vadd.f32 %v11712_v21, %v11574_v48 }
 0x5eb   : > { %v6139_v43 = vrot.slane %v6138_v47, 4  ;;  %v6153_v33 = vrot.slane %v6152_v49, 4  ;;  %v5955_v58 = vmax.f32 %v8470_v37, 0.0  ;;  %v8503_v45 = vadd.f32 %v11716_v35, %v11577_v8 }
 0x5ec   : > { %v6133_v36 = vadd.f32 %v6132_v2, %v6131_v34  ;;  %v6147_v19 = vadd.f32 %v6146_v7, %v6145_v22  ;;  %v5957_v9 = vmax.f32 %v8502_v29, 0.0  ;;  %v5956_v39 = vmax.f32 %v8471_v30, 0.0 }
 0x5ed   : > { %v6140_v59 = vadd.f32 %v6139_v43, %v6138_v47  ;;  %v6154_v27 = vadd.f32 %v6153_v33, %v6152_v49  ;;  %v8472_v6 = vadd.f32 %v11722_v24, %v11568_v4  ;;  %v8504_v21 = vadd.f32 %v11728_v18, %v11571_v32 }
 0x5ee   : > { %v6134_v31 = vrot.slane %v6133_v36, 2  ;;  %v6148_v20 = vrot.slane %v6147_v19, 2  ;;  %v8473_v11 = vadd.f32 %v11730_v23, %v11574_v48  ;;  %v8505_v35 = vadd.f32 %v11732_v5, %v11577_v8 }
 0x5ef   : > { %v6141_v51 = vrot.slane %v6140_v59, 2  ;;  %v6155_v46 = vrot.slane %v6154_v27, 2  ;;  %v5959_v16 = vmax.f32 %v8472_v6, 0.0  ;;  %v5961_v12 = vmax.f32 %v8504_v21, 0.0 }
 0x5f0   : > { %v6135_v55 = vadd.f32 %v6134_v31, %v6133_v36  ;;  %v5958_v60 = vmax.f32 %v8503_v45, 0.0  ;;  %v5960_v54 = vmax.f32 %v8473_v11, 0.0  ;;  %v5962_v10 = vmax.f32 %v8505_v35, 0.0 }
 0x5f1   : > { %v6142_v44 = vadd.f32 %v6141_v51, %v6140_v59  ;;  %v6156_v24 = vadd.f32 %v6155_v46, %v6154_v27  ;;  %v6159_v34 = vadd.f32 %v5959_v16, %v5955_v58  ;;  %v6173_v32 = vadd.f32 %v5961_v12, %v5957_v9  ;;  %v6253_v46 = vld [vmem:[#allocation10 + $0x210] sm:$0xff] }
 0x5f2   : > { %v6136_v4 = vrot.slane %v6135_v55, 1  ;;  %v6130_v18 = vadd.f32 %v6129_v40, %v6128_v63  ;;  %v6166_v22 = vadd.f32 %v5960_v54, %v5956_v39  ;;  %v6180_v47 = vadd.f32 %v5962_v10, %v5958_v60  ;;  %v6256_v60 = vld [vmem:[#allocation10 + $0x228] sm:$0xff]  ;;  %v6258_v54 = vld [vmem:[#allocation10 + $0x238] sm:$0xff] }
 0x5f3   : > { %v6143_v0 = vrot.slane %v6142_v44, 1  ;;  %v6149_v23 = vadd.f32 %v6148_v20, %v6147_v19  ;;  %v6160_v2 = vrot.slane %v6159_v34, 4  ;;  %v6174_v8 = vrot.slane %v6173_v32, 4 }
 0x5f4   : > { %v6137_v48 = vadd.f32 %v6136_v4, %v6135_v55  ;;  %v6157_v5 = vrot.slane %v6156_v24, 1  ;;  %v6167_v49 = vrot.slane %v6166_v22, 4  ;;  %v6181_v37 = vrot.slane %v6180_v47, 4  ;;  %v6251_v55 = vld [vmem:[#allocation10 + $0x200] sm:$0xff] }
 0x5f5   : > { %v6144_v29 = vadd.f32 %v6143_v0, %v6142_v44  ;;  %v6161_v7 = vadd.f32 %v6160_v2, %v6159_v34  ;;  %v6175_v43 = vadd.f32 %v6174_v8, %v6173_v32  ;;  %v6374_v30 = vsel %vm6361_vm1, %v11667_v61, %v11610_v38  ;;  %v6545_v34 = vld [vmem:[#allocation12 + $0x18] sm:$0xff]  ;;  %v6542_v32 = vld [vmem:[#allocation12] sm:$0xff] }
 0x5f6   : > { %v6366_v63 = vsel %vm6365_vm3, %v11741_v50, %v11698_v56  ;;  %v6168_v40 = vadd.f32 %v6167_v49, %v6166_v22  ;;  %v6182_v36 = vadd.f32 %v6181_v37, %v6180_v47  ;;  %v6375_v33 = vsel %vm6363_vm2, %v11735_v17, %v6374_v30  ;;  %v6544_v47 = vld [vmem:[#allocation12 + $0x10] sm:$0xff]  ;;  %v6260_v37 = vld [vmem:[#allocation10 + $0x248] sm:$0xff] }
 0x5f7   : > { %v6368_v58 = vsel %vm6367_vm4, %v11765_v62, %v6366_v63  ;;  %v6162_v45 = vrot.slane %v6161_v7, 2  ;;  %v6176_v19 = vrot.slane %v6175_v43, 2  ;;  %v6376_v59 = vsel %vm6365_vm3, %v11745_v15, %v6375_v33  ;;  %v6257_v49 = vld [vmem:[#allocation10 + $0x230] sm:$0xff] }
 0x5f8   : > { %v6370_v9 = vsel %vm6369_vm5, %v6137_v48, %v6368_v58  ;;  %v6169_v38 = vrot.slane %v6168_v40, 2  ;;  %v6183_v61 = vrot.slane %v6182_v36, 2  ;;  %v6377_v39 = vsel %vm6367_vm4, %v6116_v3, %v6376_v59 }
 0x5f9   : > { %v6158_v56 = vadd.f32 %v6157_v5, %v6156_v24  ;;  %v6163_v50 = vadd.f32 %v6162_v45, %v6161_v7  ;;  %v6177_v31 = vadd.f32 %v6176_v19, %v6175_v43  ;;  %v6378_v27 = vsel %vm6369_vm5, %v6144_v29, %v6377_v39  ;;  %v6543_v24 = vld [vmem:[#allocation12 + $0x8] sm:$0xff]  ;;  %v6262_v29 = vld [vmem:[#allocation10 + $0x258] sm:$0xff] }
 0x5fa   : > { %v6388_v17 = vsel %vm6361_vm1, %v11669_v13, %v11615_v57  ;;  %v6094_v62 = vrot.slane %v11743_v28, 1  ;;  %v6170_v6 = vadd.f32 %v6169_v38, %v6168_v40  ;;  %v6184_v21 = vadd.f32 %v6183_v61, %v6182_v36  ;;  %v6546_v40 = vld [vmem:[#allocation12 + $0x20] sm:$0xff]  ;;  %v6548_v36 = vld [vmem:[#allocation12 + $0x30] sm:$0xff]  ;;  %v6551_v45 = vld [vmem:[#allocation12 + $0x48] sm:$0xff] }
 0x5fb   : > { %v6389_v15 = vsel %vm6363_vm2, %v11737_v53, %v6388_v17  ;;  %v6122_v20 = vrot.slane %v11763_v1, 1  ;;  %v6164_v51 = vrot.slane %v6163_v50, 1  ;;  %v6150_v11 = vrot.slane %v6149_v23, 1  ;;  %v6553_v19 = vld [vmem:[#allocation12 + $0x58] sm:$0xff]  ;;  %v6261_v38 = vld [vmem:[#allocation10 + $0x250] sm:$0xff]  ;;  %v6264_v61 = vld [vmem:[#allocation10 + $0x268] sm:$0xff] }
 0x5fc   : > { %v6390_v3 = vsel %vm6365_vm3, %v11747_v52, %v6389_v15  ;;  %v6171_v35 = vrot.slane %v6170_v6, 1  ;;  %v6185_v16 = vrot.slane %v6184_v21, 1  ;;  %v6067_v13 = vadd.f32 %v6066_v25, %v11700_v26  ;;  %v6547_v26 = vld [vmem:[#allocation12 + $0x28] sm:$0xff]  ;;  %v6549_v25 = vld [vmem:[#allocation12 + $0x38] sm:$0xff]  ;;  %v6552_v17 = vld [vmem:[#allocation12 + $0x50] sm:$0xff] }
 0x5fd   : > { %v6391_v57 = vsel %vm6367_vm4, %v6130_v18, %v6390_v3  ;;  %v6165_v12 = vadd.f32 %v6164_v51, %v6163_v50  ;;  %v6178_v53 = vrot.slane %v6177_v31, 1  ;;  %v6095_v10 = vadd.f32 %v6094_v62, %v11743_v28  ;;  %v6255_v28 = vld [vmem:[#allocation10 + $0x220] sm:$0xff]  ;;  %v6266_v39 = vld [vmem:[#allocation10 + $0x278] sm:$0xff]  ;;  %v6265_v51 = vld [vmem:[#allocation10 + $0x270] sm:$0xff] }
 0x5fe   : > { %v6392_v44 = vsel %vm6369_vm5, %v6158_v56, %v6391_v57  ;;  %v6172_v52 = vadd.f32 %v6171_v35, %v6170_v6  ;;  %v6186_v4 = vadd.f32 %v6185_v16, %v6184_v21  ;;  %v6123_v0 = vadd.f32 %v6122_v20, %v11763_v1  ;;  %v6555_v6 = vld [vmem:[#allocation12 + $0x68] sm:$0xff]  ;;  %v6557_v21 = vld [vmem:[#allocation12 + $0x78] sm:$0xff]  ;;  %v6263_v20 = vld [vmem:[#allocation10 + $0x260] sm:$0xff] }
 0x5ff   : > { %v6372_v18 = vsel %vm6371_vm6, %v6165_v12, %v6370_v9  ;;  %v8156_v22 = vpack.c.bf16 %v6253_v46, %v6251_v55  ;;  %v6151_v48 = vadd.f32 %v6150_v11, %v6149_v23  ;;  %v8158_v5 = vpack.c.bf16 %v6258_v54, %v6256_v60  ;;  %v6259_v9 = vld [vmem:[#allocation10 + $0x240] sm:$0xff]  ;;  %v6268_v3 = vld [vmem:[#allocation10 + $0x288] sm:$0xff]  ;;  %v6270_v11 = vld [vmem:[#allocation10 + $0x298] sm:$0xff] }
 0x600   : > { %v6379_v2 = vsel %vm6371_vm6, %v6172_v52, %v6378_v27  ;;  %v6393_v8 = vsel %vm6371_vm6, %v6186_v4, %v6392_v44  ;;  %v6179_v7 = vadd.f32 %v6178_v53, %v6177_v31  ;;  %v6382_v1 = vsel %vm6363_vm2, %v6067_v13, %v11657_v41  ;;  %v6550_v27 = vld [vmem:[#allocation12 + $0x40] sm:$0xff]  ;;  %v6556_v16 = vld [vmem:[#allocation12 + $0x70] sm:$0xff]  ;;  %v6559_v13 = vld [vmem:[#allocation12 + $0x88] sm:$0xff] }
 0x601   : > { %6462 = vmatprep.mubr.f32.mxu0 %v6379_v2  ;;  %v8218_v43 = vpack.c.bf16 %v6545_v34, %v6543_v24  ;;  %v6383_v30 = vsel %vm6365_vm3, %v6095_v10, %v6382_v1  ;;  %v8220_v63 = vpack.c.bf16 %v6544_v47, %v6542_v32  ;;  %v8222_v23 = vpack.c.bf16 %v6549_v25, %v6547_v26  ;;  %v6554_v46 = vld [vmem:[#allocation12 + $0x60] sm:$0xff]  ;;  %v6561_v12 = vld [vmem:[#allocation12 + $0x98] sm:$0xff]  ;;  %v6269_v60 = vld [vmem:[#allocation10 + $0x290] sm:$0xff] }
 0x602   : > { %6463 = vmatmul.mubr.f32.vlgmr.msra.gmra.mrb[112].mxu0 %v6372_v18  ;;  %v8160_v33 = vpack.c.bf16 %v6257_v49, %v6255_v28  ;;  %v6384_v58 = vsel %vm6367_vm4, %v6123_v0, %v6383_v30  ;;  %v8162_v59 = vpack.c.bf16 %v6262_v29, %v6260_v37  ;;  %v8224_v50 = vpack.c.bf16 %v6548_v36, %v6546_v40  ;;  %v6267_v44 = vld [vmem:[#allocation10 + $0x280] sm:$0xff]  ;;  %v6272_v54 = vld [vmem:[#allocation10 + $0x2a8] sm:$0xff]  ;;  %v6274_v10 = vld [vmem:[#allocation10 + $0x2b8] sm:$0xff] }
 0x603   : > { %8157 = vmatpush1.bf16.msra.mxu0 %v8156_v22  ;;  %6533 = vmatprep.mubr.f32.mxu0 %v6393_v8  ;;  %v6385_v41 = vsel %vm6369_vm5, %v6151_v48, %v6384_v58  ;;  %v8226_v31 = vpack.c.bf16 %v6553_v19, %v6551_v45  ;;  %v8164_v62 = vpack.c.bf16 %v6261_v38, %v6259_v9  ;;  %v6558_v24 = vld [vmem:[#allocation12 + $0x80] sm:$0xff]  ;;  %v6560_v34 = vld [vmem:[#allocation12 + $0x90] sm:$0xff]  ;;  %v6563_v0 = vld [vmem:[#allocation12 + $0xa8] sm:$0xff] }
 0x604   : > { %8159 = vmatprep.subr.bf16.mxu0 %v8158_v5  ;;  %8219 = vmatprep.subr.bf16.mxu1 %v8218_v43  ;;  %v11823_v56 = vsel %vm6371_vm6, %v6179_v7, %v6385_v41  ;;  %v8166_v15 = vpack.c.bf16 %v6266_v39, %v6264_v61  ;;  %v8228_v35 = vpack.c.bf16 %v6552_v17, %v6550_v27  ;;  %v6565_v18 = vld [vmem:[#allocation12 + $0xb8] sm:$0xff]  ;;  %v6271_v47 = vld [vmem:[#allocation10 + $0x2a0] sm:$0xff]  ;;  %v6273_v26 = vld [vmem:[#allocation10 + $0x2b0] sm:$0xff] }
 0x605   : > { %8221 = vmatpush1.bf16.msra.mxu1 %v8220_v63  ;;  %v8230_v55 = vpack.c.bf16 %v6557_v21, %v6555_v6  ;;  %v8168_v57 = vpack.c.bf16 %v6265_v51, %v6263_v20  ;;  %v8170_v53 = vpack.c.bf16 %v6270_v11, %v6268_v3  ;;  %v8232_v52 = vpack.c.bf16 %v6556_v16, %v6554_v46  ;;  %v6276_v25 = vld [vmem:[#allocation10 + $0x2c8] sm:$0xff]  ;;  %v6278_v48 = vld [vmem:[#allocation10 + $0x2d8] sm:$0xff]  ;;  %v6562_v5 = vld [vmem:[#allocation12 + $0xa0] sm:$0xff] }
 0x606   : > { %8223 = vmatprep.subr.bf16.mxu1 %v8222_v23  ;;  %v8234_v4 = vpack.c.bf16 %v6561_v12, %v6559_v13  ;;  %v8172_v32 = vpack.c.bf16 %v6269_v60, %v6267_v44  ;;  %v8174_v22 = vpack.c.bf16 %v6274_v10, %v6272_v54  ;;  %v8236_v2 = vpack.c.bf16 %v6560_v34, %v6558_v24  ;;  %v6564_v28 = vld [vmem:[#allocation12 + $0xb0] sm:$0xff]  ;;  %v6567_v37 = vld [vmem:[#allocation12 + $0xc8] sm:$0xff]  ;;  %v6569_v29 = vld [vmem:[#allocation12 + $0xd8] sm:$0xff] }
 0x607   : > { %8161 = vmatpush1.bf16.msra.mxu0 %v8160_v33  ;;  %v8238_v8 = vpack.c.bf16 %v6565_v18, %v6563_v0  ;;  %v8176_v49 = vpack.c.bf16 %v6273_v26, %v6271_v47  ;;  %v8178_v7 = vpack.c.bf16 %v6278_v48, %v6276_v25  ;;  %v6275_v1 = vld [vmem:[#allocation10 + $0x2c0] sm:$0xff]  ;;  %v6277_v43 = vld [vmem:[#allocation10 + $0x2d0] sm:$0xff]  ;;  %v6280_v30 = vld [vmem:[#allocation10 + $0x2e8] sm:$0xff]  ;;  %v8240_v23 = vpack.c.bf16 %v6564_v28, %v6562_v5 }
 0x608   : > { %8163 = vmatprep.subr.bf16.mxu0 %v8162_v59  ;;  %v6282_v63 = vld [vmem:[#allocation10 + $0x2f8] sm:$0xff]  ;;  %v8242_v40 = vpack.c.bf16 %v6569_v29, %v6567_v37  ;;  %v6566_v36 = vld [vmem:[#allocation12 + $0xc0] sm:$0xff]  ;;  %v6568_v33 = vld [vmem:[#allocation12 + $0xd0] sm:$0xff]  ;;  %v8180_v58 = vpack.c.bf16 %v6277_v43, %v6275_v1 }
 0x609   : > { %8225 = vmatpush1.bf16.msra.mxu1 %v8224_v50  ;;  %v6571_v45 = vld [vmem:[#allocation12 + $0xe8] sm:$0xff]  ;;  %v6573_v19 = vld [vmem:[#allocation12 + $0xf8] sm:$0xff]  ;;  %v8182_v59 = vpack.c.bf16 %v6282_v63, %v6280_v30  ;;  %v6279_v9 = vld [vmem:[#allocation10 + $0x2e0] sm:$0xff]  ;;  %v8244_v39 = vpack.c.bf16 %v6568_v33, %v6566_v36 }
 0x60a   : > { %8227 = vmatprep.subr.bf16.mxu1 %v8226_v31  ;;  %v6281_v38 = vld [vmem:[#allocation10 + $0x2f0] sm:$0xff]  ;;  %v6284_v41 = vld [vmem:[#allocation10 + $0x308] sm:$0xff]  ;;  %v6286_v61 = vld [vmem:[#allocation10 + $0x318] sm:$0xff]  ;;  %v8246_v50 = vpack.c.bf16 %v6573_v19, %v6571_v45 }
 0x60b   : > { %8165 = vmatpush1.bf16.msra.mxu0 %v8164_v62  ;;  %v6570_v31 = vld [vmem:[#allocation12 + $0xe0] sm:$0xff]  ;;  %v6572_v27 = vld [vmem:[#allocation12 + $0xf0] sm:$0xff]  ;;  %v8184_v17 = vpack.c.bf16 %v6281_v38, %v6279_v9  ;;  %v6575_v62 = vld [vmem:[#allocation12 + $0x108] sm:$0xff]  ;;  %v8186_v21 = vpack.c.bf16 %v6286_v61, %v6284_v41 }
 0x60c   : > { %8167 = vmatprep.subr.bf16.mxu0 %v8166_v15  ;;  %v6577_v6 = vld [vmem:[#allocation12 + $0x118] sm:$0xff]  ;;  %v6283_v15 = vld [vmem:[#allocation10 + $0x300] sm:$0xff]  ;;  %v6285_v20 = vld [vmem:[#allocation10 + $0x310] sm:$0xff]  ;;  %v8248_v11 = vpack.c.bf16 %v6572_v27, %v6570_v31 }
 0x60d   : > { %8229 = vmatpush1.bf16.msra.mxu1 %v8228_v35  ;;  %v6288_v51 = vld [vmem:[#allocation10 + $0x328] sm:$0xff]  ;;  %v6290_v3 = vld [vmem:[#allocation10 + $0x338] sm:$0xff]  ;;  %v8250_v35 = vpack.c.bf16 %v6577_v6, %v6575_v62  ;;  %v6576_v46 = vld [vmem:[#allocation12 + $0x110] sm:$0xff]  ;;  %v8188_v16 = vpack.c.bf16 %v6285_v20, %v6283_v15 }
 0x60e   : > { %8231 = vmatprep.subr.bf16.mxu1 %v8230_v55  ;;  %v6574_v55 = vld [vmem:[#allocation12 + $0x100] sm:$0xff]  ;;  %v6581_v13 = vld [vmem:[#allocation12 + $0x138] sm:$0xff]  ;;  %v8190_v12 = vpack.c.bf16 %v6290_v3, %v6288_v51  ;;  %v6289_v44 = vld [vmem:[#allocation10 + $0x330] sm:$0xff] }
 0x60f   : > { %8169 = vmatpush1.bf16.msra.mxu0 %v8168_v57  ;;  %v6579_v57 = vld [vmem:[#allocation12 + $0x128] sm:$0xff]  ;;  %v6294_v54 = vld [vmem:[#allocation10 + $0x358] sm:$0xff]  ;;  %v8252_v10 = vpack.c.bf16 %v6576_v46, %v6574_v55  ;;  %v6580_v24 = vld [vmem:[#allocation12 + $0x130] sm:$0xff] }
 0x610   : > { %8171 = vmatprep.subr.bf16.mxu0 %v8170_v53  ;;  %v6287_v53 = vld [vmem:[#allocation10 + $0x320] sm:$0xff]  ;;  %v6292_v60 = vld [vmem:[#allocation10 + $0x348] sm:$0xff]  ;;  %v6585_v0 = vld [vmem:[#allocation12 + $0x158] sm:$0xff] }
 0x611   : > { %8233 = vmatpush1.bf16.msra.mxu1 %v8232_v52  ;;  %v8254_v52 = vpack.c.bf16 %v6581_v13, %v6579_v57  ;;  %v8192_v34 = vpack.c.bf16 %v6289_v44, %v6287_v53  ;;  %v8194_v18 = vpack.c.bf16 %v6294_v54, %v6292_v60  ;;  %v6293_v47 = vld [vmem:[#allocation10 + $0x350] sm:$0xff]  ;;  %v6296_v26 = vld [vmem:[#allocation10 + $0x368] sm:$0xff]  ;;  %v6298_v25 = vld [vmem:[#allocation10 + $0x378] sm:$0xff] }
 0x612   : > { %8235 = vmatprep.subr.bf16.mxu1 %v8234_v4  ;;  %v6578_v4 = vld [vmem:[#allocation12 + $0x120] sm:$0xff]  ;;  %v6584_v5 = vld [vmem:[#allocation12 + $0x150] sm:$0xff]  ;;  %v6589_v37 = vld [vmem:[#allocation12 + $0x178] sm:$0xff]  ;;  %v8198_v29 = vpack.c.bf16 %v6298_v25, %v6296_v26 }
 0x613   : > { %8173 = vmatpush1.bf16.msra.mxu0 %v8172_v32  ;;  %v6583_v32 = vld [vmem:[#allocation12 + $0x148] sm:$0xff]  ;;  %v8256_v48 = vpack.c.bf16 %v6580_v24, %v6578_v4  ;;  %v6297_v1 = vld [vmem:[#allocation10 + $0x370] sm:$0xff]  ;;  %v6302_v30 = vld [vmem:[#allocation10 + $0x398] sm:$0xff] }
 0x614   : > { %8175 = vmatprep.subr.bf16.mxu0 %v8174_v22  ;;  %v6291_v22 = vld [vmem:[#allocation10 + $0x340] sm:$0xff]  ;;  %v6300_v43 = vld [vmem:[#allocation10 + $0x388] sm:$0xff]  ;;  %v6588_v36 = vld [vmem:[#allocation12 + $0x170] sm:$0xff] }
 0x615   : > { %8237 = vmatpush1.bf16.msra.mxu1 %v8236_v2  ;;  %v8258_v2 = vpack.c.bf16 %v6585_v0, %v6583_v32  ;;  %v8196_v28 = vpack.c.bf16 %v6293_v47, %v6291_v22  ;;  %v6593_v45 = vld [vmem:[#allocation12 + $0x198] sm:$0xff]  ;;  %v8202_v19 = vpack.c.bf16 %v6302_v30, %v6300_v43  ;;  %v6301_v9 = vld [vmem:[#allocation10 + $0x390] sm:$0xff]  ;;  %v6304_v38 = vld [vmem:[#allocation10 + $0x3a8] sm:$0xff] }
 0x616   : > { %8239 = vmatprep.subr.bf16.mxu1 %v8238_v8  ;;  %v6582_v8 = vld [vmem:[#allocation12 + $0x140] sm:$0xff]  ;;  %v6306_v41 = vld [vmem:[#allocation10 + $0x3b8] sm:$0xff]  ;;  %v6592_v31 = vld [vmem:[#allocation12 + $0x190] sm:$0xff] }
 0x617   : > { %8177 = vmatpush1.bf16.msra.mxu0 %v8176_v49  ;;  %v6587_v49 = vld [vmem:[#allocation12 + $0x168] sm:$0xff]  ;;  %v8260_v63 = vpack.c.bf16 %v6584_v5, %v6582_v8  ;;  %v6597_v62 = vld [vmem:[#allocation12 + $0x1b8] sm:$0xff]  ;;  %v8206_v6 = vpack.c.bf16 %v6306_v41, %v6304_v38  ;;  %v6305_v15 = vld [vmem:[#allocation10 + $0x3b0] sm:$0xff] }
 0x618   : > { %8179 = vmatprep.subr.bf16.mxu0 %v8178_v7  ;;  %v6295_v7 = vld [vmem:[#allocation10 + $0x360] sm:$0xff]  ;;  %v6308_v20 = vld [vmem:[#allocation10 + $0x3c8] sm:$0xff]  ;;  %v6310_v51 = vld [vmem:[#allocation10 + $0x3d8] sm:$0xff] }
 0x619   : > { %8241 = vmatpush1.bf16.msra.mxu1 %v8240_v23  ;;  %v8262_v23 = vpack.c.bf16 %v6589_v37, %v6587_v49  ;;  %v8200_v33 = vpack.c.bf16 %v6297_v1, %v6295_v7  ;;  %v6596_v55 = vld [vmem:[#allocation12 + $0x1b0] sm:$0xff]  ;;  %v6601_v57 = vld [vmem:[#allocation12 + $0x1d8] sm:$0xff]  ;;  %v8210_v13 = vpack.c.bf16 %v6310_v51, %v6308_v20  ;;  %v6312_v44 = vld [vmem:[#allocation10 + $0x3e8] sm:$0xff] }
 0x61a   : > { %8243 = vmatprep.subr.bf16.mxu1 %v8242_v40  ;;  %v6586_v40 = vld [vmem:[#allocation12 + $0x160] sm:$0xff]  ;;  %v6309_v53 = vld [vmem:[#allocation10 + $0x3d0] sm:$0xff]  ;;  %v6314_v60 = vld [vmem:[#allocation10 + $0x3f8] sm:$0xff] }
 0x61b   : > { %8181 = vmatpush1.bf16.msra.mxu0 %v8180_v58  ;;  %v6591_v58 = vld [vmem:[#allocation12 + $0x188] sm:$0xff]  ;;  %v8264_v61 = vpack.c.bf16 %v6588_v36, %v6586_v40  ;;  %v6600_v4 = vld [vmem:[#allocation12 + $0x1d0] sm:$0xff]  ;;  %v6311_v32 = vld [vmem:[#allocation10 + $0x3e0] sm:$0xff] }
 0x61c   : > { %8183 = vmatprep.subr.bf16.mxu0 %v8182_v59  ;;  %v6299_v59 = vld [vmem:[#allocation10 + $0x380] sm:$0xff]  ;;  %v6313_v0 = vld [vmem:[#allocation10 + $0x3f0] sm:$0xff]  ;;  %v6603_v47 = vld [vmem:[#allocation12 + $0x1e8] sm:$0xff] }
 0x61d   : > { %8245 = vmatpush1.bf16.msra.mxu1 %v8244_v39  ;;  %v8266_v39 = vpack.c.bf16 %v6593_v45, %v6591_v58  ;;  %v8204_v27 = vpack.c.bf16 %v6301_v9, %v6299_v59  ;;  %v8216_v22 = vpack.c.bf16 %v6313_v0, %v6311_v32  ;;  %v6605_v26 = vld [vmem:[#allocation12 + $0x1f8] sm:$0xff]  ;;  %v6602_v25 = vld [vmem:[#allocation12 + $0x1e0] sm:$0xff]  ;;  %v6709_v40 = vld [vmem:[%s11957_s14 + $0x90] sm:$0xff] }
 0x61e   : > { %8247 = vmatprep.subr.bf16.mxu1 %v8246_v50  ;;  %v6590_v50 = vld [vmem:[#allocation12 + $0x180] sm:$0xff]  ;;  %v6710_v36 = vld [vmem:[%s11957_s14 + $0x98] sm:$0xff]  ;;  %v6693_v59 = vld [vmem:[%s11957_s14 + $0x10] sm:$0xff] }
 0x61f   : > { %8185 = vmatpush1.bf16.msra.mxu0 %v8184_v17  ;;  %v6595_v17 = vld [vmem:[#allocation12 + $0x1a8] sm:$0xff]  ;;  %v8268_v3 = vpack.c.bf16 %v6592_v31, %v6590_v50  ;;  %v6707_v5 = vld [vmem:[%s11957_s14 + $0x80] sm:$0xff]  ;;  %v6694_v9 = vld [vmem:[%s11957_s14 + $0x18] sm:$0xff] }
 0x620   : > { %8187 = vmatprep.subr.bf16.mxu0 %v8186_v21  ;;  %v6303_v21 = vld [vmem:[#allocation10 + $0x3a0] sm:$0xff]  ;;  %v6712_v41 = vld [vmem:[%s11957_s14 + $0xa8] sm:$0xff]  ;;  %v6722_v32 = vld [vmem:[%s11957_s14 + $0xf8] sm:$0xff] }
 0x621   : > { %8249 = vmatpush1.bf16.msra.mxu1 %v8248_v11  ;;  %v8270_v11 = vpack.c.bf16 %v6597_v62, %v6595_v17  ;;  %v8208_v46 = vpack.c.bf16 %v6305_v15, %v6303_v21  ;;  %v6691_v30 = vld [vmem:[%s11957_s14] sm:$0xff]  ;;  %v6696_v31 = vld [vmem:[%s11957_s14 + $0x28] sm:$0xff]  ;;  %v6714_v17 = vld [vmem:[%s11957_s14 + $0xb8] sm:$0xff] }
 0x622   : > { %8251 = vmatprep.subr.bf16.mxu1 %v8250_v35  ;;  %v6594_v35 = vld [vmem:[#allocation12 + $0x1a0] sm:$0xff]  ;;  %v6697_v21 = vld [vmem:[%s11957_s14 + $0x30] sm:$0xff]  ;;  %v6698_v15 = vld [vmem:[%s11957_s14 + $0x38] sm:$0xff] }
 0x623   : > { %8189 = vmatpush1.bf16.msra.mxu0 %v8188_v16  ;;  %v6599_v16 = vld [vmem:[#allocation12 + $0x1c8] sm:$0xff]  ;;  %v8272_v54 = vpack.c.bf16 %v6596_v55, %v6594_v35  ;;  %v6711_v38 = vld [vmem:[%s11957_s14 + $0xa0] sm:$0xff]  ;;  %v6705_v0 = vld [vmem:[%s11957_s14 + $0x70] sm:$0xff] }
 0x624   : > { %8191 = vmatprep.subr.bf16.mxu0 %v8190_v12  ;;  %v6307_v12 = vld [vmem:[#allocation10 + $0x3c0] sm:$0xff]  ;;  %v6716_v51 = vld [vmem:[%s11957_s14 + $0xc8] sm:$0xff] }
 0x625   : > { %8253 = vmatpush1.bf16.msra.mxu1 %v8252_v10  ;;  %v8274_v10 = vpack.c.bf16 %v6601_v57, %v6599_v16  ;;  %v8212_v24 = vpack.c.bf16 %v6309_v53, %v6307_v12  ;;  %v6695_v50 = vld [vmem:[%s11957_s14 + $0x20] sm:$0xff]  ;;  %v6700_v55 = vld [vmem:[%s11957_s14 + $0x48] sm:$0xff]  ;;  %v6718_v16 = vld [vmem:[%s11957_s14 + $0xd8] sm:$0xff] }
 0x626   : > { %8255 = vmatprep.subr.bf16.mxu1 %v8254_v52  ;;  %v6598_v52 = vld [vmem:[#allocation12 + $0x1c0] sm:$0xff]  ;;  %v8292_v62 = vpack.c.bf16 %v6696_v31, %v6695_v50  ;;  %v6701_v12 = vld [vmem:[%s11957_s14 + $0x50] sm:$0xff]  ;;  %v6702_v53 = vld [vmem:[%s11957_s14 + $0x58] sm:$0xff] }
 0x627   : > { %8193 = vmatpush1.bf16.msra.mxu0 %v8192_v34  ;;  %v8214_v34 = vpack.c.bf16 %v6314_v60, %v6312_v44  ;;  %v6715_v20 = vld [vmem:[%s11957_s14 + $0xc0] sm:$0xff]  ;;  %v6720_v60 = vld [vmem:[%s11957_s14 + $0xe8] sm:$0xff] }
 0x628   : > { %8195 = vmatprep.subr.bf16.mxu0 %v8194_v18  ;;  %v8276_v18 = vpack.c.bf16 %v6600_v4, %v6598_v52  ;;  %v6699_v35 = vld [vmem:[%s11957_s14 + $0x40] sm:$0xff]  ;;  %v6704_v4 = vld [vmem:[%s11957_s14 + $0x68] sm:$0xff] }
 0x629   : > { %8257 = vmatpush1.bf16.msra.mxu1 %v8256_v48  ;;  %v8278_v48 = vpack.c.bf16 %v6605_v26, %v6603_v47  ;;  %v8300_v57 = vpack.c.bf16 %v6700_v55, %v6699_v35  ;;  %v6719_v44 = vld [vmem:[%s11957_s14 + $0xe0] sm:$0xff] }
 0x62a   : > { %8259 = vmatprep.subr.bf16.mxu1 %v8258_v2  ;;  %v6604_v2 = vld [vmem:[#allocation12 + $0x1f0] sm:$0xff]  ;;  %v6703_v52 = vld [vmem:[%s11957_s14 + $0x60] sm:$0xff] }
 0x62b   : > { %8197 = vmatpush1.bf16.msra.mxu0 %v8196_v28  ;;  %v8280_v8 = vpack.c.bf16 %v6604_v2, %v6602_v25  ;;  %v6708_v28 = vld [vmem:[%s11957_s14 + $0x88] sm:$0xff]  ;;  %v6606_v26 = vld [vmem:[%s12654_s21] sm:$0x3] }
 0x62c   : > { %8199 = vmatprep.subr.bf16.mxu0 %v8198_v29  ;;  %v8282_v49 = vpack.c.bf16 %v6708_v28, %v6707_v5  ;;  %v6611_v25 = vrot.slane %v6606_v26, %v12650_v14 }
 0x62d   : > { %8261 = vmatpush1.bf16.msra.mxu1 %v8260_v63  ;;  %v6692_v63 = vld [vmem:[%s11957_s14 + $0x8] sm:$0xff] }
 0x62e   : > { %8263 = vmatprep.subr.bf16.mxu1 %v8262_v23  ;;  %v8284_v58 = vpack.c.bf16 %v6692_v63, %v6691_v30 }
 0x62f   : > { %8201 = vmatpush1.bf16.msra.mxu0 %v8200_v33 }
 0x630   : > { %8203 = vmatprep.subr.bf16.mxu0 %v8202_v19  ;;  %v8286_v19 = vpack.c.bf16 %v6710_v36, %v6709_v40 }
 0x631   : > { %8265 = vmatpush1.bf16.msra.mxu1 %v8264_v61  ;;  %v8288_v61 = vpack.c.bf16 %v6694_v9, %v6693_v59 }
 0x632   : > { %8267 = vmatprep.subr.bf16.mxu1 %v8266_v39  ;;  %v8290_v39 = vpack.c.bf16 %v6712_v41, %v6711_v38 }
 0x633   : > { %8205 = vmatpush1.bf16.msra.mxu0 %v8204_v27  ;;  %v6713_v27 = vld [vmem:[%s11957_s14 + $0xb0] sm:$0xff] }
 0x634   : > { %8207 = vmatprep.subr.bf16.mxu0 %v8206_v6  ;;  %v8294_v6 = vpack.c.bf16 %v6714_v17, %v6713_v27 }
 0x635   : > { %8269 = vmatpush1.bf16.msra.mxu1 %v8268_v3  ;;  %v8296_v3 = vpack.c.bf16 %v6698_v15, %v6697_v21 }
 0x636   : > { %8271 = vmatprep.subr.bf16.mxu1 %v8270_v11  ;;  %v8298_v11 = vpack.c.bf16 %v6716_v51, %v6715_v20 }
 0x637   : > { %8209 = vmatpush1.bf16.msra.mxu0 %v8208_v46  ;;  %v6717_v46 = vld [vmem:[%s11957_s14 + $0xd0] sm:$0xff] }
 0x638   : > { %8211 = vmatprep.subr.bf16.mxu0 %v8210_v13  ;;  %v8302_v13 = vpack.c.bf16 %v6718_v16, %v6717_v46 }
 0x639   : > { %8273 = vmatpush1.bf16.msra.mxu1 %v8272_v54  ;;  %v8304_v54 = vpack.c.bf16 %v6702_v53, %v6701_v12 }
 0x63a   : > { %8275 = vmatprep.subr.bf16.mxu1 %v8274_v10  ;;  %v8306_v10 = vpack.c.bf16 %v6720_v60, %v6719_v44 }
 0x63b   : > { %8213 = vmatpush1.bf16.msra.mxu0 %v8212_v24  ;;  %v8308_v24 = vpack.c.bf16 %v6704_v4, %v6703_v52 }
 0x63c   : > { %8215 = vmatprep.subr.bf16.mxu0 %v8214_v34  ;;  %v6721_v34 = vld [vmem:[%s11957_s14 + $0xf0] sm:$0xff] }
 0x63d   : > { %8277 = vmatpush1.bf16.msra.mxu1 %v8276_v18  ;;  %v8310_v18 = vpack.c.bf16 %v6722_v32, %v6721_v34 }
 0x63e   : > { %8279 = vmatprep.subr.bf16.mxu1 %v8278_v48  ;;  %v6615_v48 = vrot.slane %v6606_v26, %v12651_v42 }
 0x63f   : > { %8217 = vmatpush1.bf16.msra.mxu0 %v8216_v22  ;;  %v6706_v22 = vld [vmem:[%s11957_s14 + $0x78] sm:$0xff] }
 0x640   : > { %v8312_v47 = vpack.c.bf16 %v6706_v22, %v6705_v0 }
 0x641   : > { %8281 = vmatpush1.bf16.msra.mxu1 %v8280_v8 }
 0x642   : > { %6534 = vmatmul.mubr.f32.vlgmr.msra.gmra.mrb[112].mxu0 %v11823_v56  ;;  %8283 = vmatprep.subr.bf16.mxu1 %v8282_v49  ;;  %v6315_v56 = vld [vmem:[%s11954_s11] sm:$0x3] }
 0x643   : > { %v6320_v37 = vrot.slane %v6315_v56, %v12650_v14  ;;  %v6324_v29 = vrot.slane %v6315_v56, %v12651_v42 }
 0x715   : > { %v6535_v7 = vpop.f32.mrb[112].mxu0 }
 0x716   : > { %v8506_v1 = vadd.f32 %v6535_v7, %v6320_v37  ;;  %v6537_v43 = vpop.f32.mrb[113].mxu0 }
 0x717   : > { %v8507_v23 = vadd.f32 %v6537_v43, %v6324_v29  ;;  %v7027_v29 = vld [vmem:[%s12655_s24] ss:$0 sm:$0xff] }
 0x718   : > { %v6540_v45 = vmax.f32 %v8506_v1, 0.0 }
 0x719   : > { %v6541_v33 = vmax.f32 %v8507_v23, 0.0 }
 0x71b   : > { %6682 = vmatprep.mubr.f32.mxu1 %v6541_v33 }
 0x71c   : > { %6683 = vmatmul.mubr.f32.vlgmr.msra.gmra.mrb[112].mxu1 %v6540_v45 }
 0x71d   : > { %8285 = vmatpush3.bf16.msra.mxu1 %v8284_v58 }
 0x71e   : > { %8287 = vmatprep.subr.bf16.mxu1 %v8286_v19 }
 0x721   : > { %8289 = vmatpush3.bf16.msra.mxu1 %v8288_v61 }
 0x722   : > { %8291 = vmatprep.subr.bf16.mxu1 %v8290_v39 }
 0x725   : > { %8293 = vmatpush3.bf16.msra.mxu1 %v8292_v62 }
 0x726   : > { %8295 = vmatprep.subr.bf16.mxu1 %v8294_v6 }
 0x729   : > { %8297 = vmatpush3.bf16.msra.mxu1 %v8296_v3 }
 0x72a   : > { %8299 = vmatprep.subr.bf16.mxu1 %v8298_v11 }
 0x72d   : > { %8301 = vmatpush3.bf16.msra.mxu1 %v8300_v57 }
 0x72e   : > { %8303 = vmatprep.subr.bf16.mxu1 %v8302_v13 }
 0x731   : > { %8305 = vmatpush3.bf16.msra.mxu1 %v8304_v54 }
 0x732   : > { %8307 = vmatprep.subr.bf16.mxu1 %v8306_v10 }
 0x735   : > { %8309 = vmatpush3.bf16.msra.mxu1 %v8308_v24 }
 0x736   : > { %8311 = vmatprep.subr.bf16.mxu1 %v8310_v18 }
 0x739   : > { %8313 = vmatpush3.bf16.msra.mxu1 %v8312_v47 }
 0x7ef   : > { %v6684_v2 = vpop.f32.mrb[112].mxu1 }
 0x7f0   : > { %v6685_v8 = vadd.f32 %v6684_v2, %v6611_v25  ;;  %v6686_v5 = vpop.f32.mrb[113].mxu1 }
 0x7f1   : > { %v6687_v28 = vadd.f32 %v6686_v5, %v6615_v48 }
 0x7f2   : > { %v6689_v56 = vmax.f32 %v6685_v8, 0.0 }
 0x7f3   : > { %v6690_v49 = vmax.f32 %v6687_v28, 0.0 }
 0x7f5   : > { %6794 = vmatprep.mubr.f32.mxu1 %v6690_v49 }
 0x7f6   : > { %6795 = vmatmul.mubr.f32.vlgmr.msra.gmra.mrb[114].mxu1 %v6689_v56 }
 0x8c9   : > { %v7063_v37 = vpop.f32.mrb[114].mxu1 }
 0x8ca   : > { %v7064_v7 = vpop.f32.mrb[115].mxu1 }
 0x8cb   : > { %v7065_v14 = vadd.f32 %v7064_v7, %v7063_v37 }
 0x8cd   : > { %v6797_v42 = vadd.f32 %v7065_v14, %v7027_v29 }
 0x8cf   : > { %6801 = vst.msk [vmem:[%s626_s15] sm:$0xff] %vm6800_vm7, %v6797_v42 }
 0x8d0 PF: > { %s12657_s30 = sld [smem:[#allocation17_spill]] }
 0x8d6   : > { %s30_s21 = sadd.s32 1, %s12657_s30  }
 0x8d7   : > { %p27_p10 = scmp.ge.s32.totalorder %s30_s21, 4  }
 0x8d9   :  { %29 = sbr.rel (!%p27_p10) target bundleno = 9 (0x9), region = 143 }
 0x8e0   :  { %6821 = vsyncpa [#allocation3], 1 }
 0x8e1   :  { %6823 = vsyncpa [#allocation3 + $0x1], 1 }
 0x8e2   :  { %6824 = vsyncpa [#allocation5], 1 }
 0x8e3   :  { %6825 = vsyncpa [#allocation8], 1 }
 0x8e4   :  { %6826 = vsyncpa [#allocation11], 1 }

</bundles_post_ra>
